<compile_context>
chip_gen: v7x
topology: tpu7x:2x2x1
jax: 0.10.0
libtpu: 0.0.40
codegen_flags: <defaults>
</compile_context>

<pallas_src>
import functools

import jax
import jax.numpy as jnp
from jax.experimental import pallas as pl
from jax.experimental.pallas import tpu as pltpu

EPS = 1e-5  # torch nn.LayerNorm default eps


# ---------------------------------------------------------------------------
# in-kernel math helpers
# ---------------------------------------------------------------------------
def _erf(x):
    # Abramowitz & Stegun 7.1.26 erf polynomial (abs err ~1.5e-7, f32 level);
    # reproduces torch's exact (erf-based) nn.GELU with Mosaic-safe ops only.
    p = 0.3275911
    a1, a2, a3, a4, a5 = 0.254829592, -0.284496736, 1.421413741, -1.453152027, 1.061405429
    sgn = jnp.where(x >= 0.0, 1.0, -1.0)
    ax = jnp.abs(x)
    t = 1.0 / (1.0 + p * ax)
    poly = ((((a5 * t + a4) * t + a3) * t + a2) * t + a1) * t
    return sgn * (1.0 - poly * jnp.exp(-ax * ax))


def _gelu(x):
    return 0.5 * x * (1.0 + _erf(x * 0.7071067811865476))


def _layernorm(x, w, b):
    mean = jnp.mean(x, axis=-1, keepdims=True)
    var = jnp.mean(jnp.square(x - mean), axis=-1, keepdims=True)
    return (x - mean) * jax.lax.rsqrt(var + EPS) * w + b


def _softmax(x):
    m = jnp.max(x, axis=-1, keepdims=True)
    e = jnp.exp(x - m)
    s = jnp.sum(e, axis=-1, keepdims=True)
    return e * pl.reciprocal(s, approx=True)


# ---------------------------------------------------------------------------
# Fused whole-model kernel (one grid step == one batch element)
# ---------------------------------------------------------------------------
def _transformer_kernel(eeg_ref, nirs_ref, cls_ref, pos_e_ref, pos_n_ref, type_ref,
                        wqkv_ref, wo_ref, lnw_ref, lnb_ref,
                        fw1_ref, fb1_ref, fw2_ref, fb2_ref,
                        out_ref, *, num_heads, depth, emb):
    E = emb
    d = E // num_heads
    scale = 1.0 / (float(E) ** 0.5)  # torch scales by emb_size ** 0.5 (not head dim)

    def heads_attend(qkv_q, qkv_kv, wo, n_rows):
        """Per-head attention with W_O folded into the head accumulation.

        qkv_q:  (Nq, >=E)  -- columns [0, E)       hold Q
        qkv_kv: (Nk, 2E|3E)-- last 2E columns      hold K | V
        """
        koff = qkv_kv.shape[1] - 2 * E
        out = jnp.zeros((n_rows, E), jnp.float32)
        for h in range(num_heads):              # static unroll: no reshapes/transposes
            qh = qkv_q[:, h * d:(h + 1) * d] * scale
            kh = qkv_kv[:, koff + h * d:koff + (h + 1) * d]
            vh = qkv_kv[:, koff + E + h * d:koff + E + (h + 1) * d]
            energy = jax.lax.dot_general(qh, kh, (((1,), (1,)), ((), ())),
                                         preferred_element_type=jnp.float32)
            att = _softmax(energy)
            ctx = jnp.dot(att, vh, preferred_element_type=jnp.float32)
            # fold the output projection into the per-head accumulation
            out = out + jnp.dot(ctx, wo[h * d:(h + 1) * d, :],
                                preferred_element_type=jnp.float32)
        return out

    def self_mha(x, i):
        wqkv = wqkv_ref[i]                      # (E, 3E) fused QKV
        qkv = jnp.dot(x, wqkv, preferred_element_type=jnp.float32)
        return heads_attend(qkv, qkv, wo_ref[i], x.shape[0])

    def cross_mha(x, y, i):
        wqkv = wqkv_ref[i]
        q = jnp.dot(x, wqkv[:, :E], preferred_element_type=jnp.float32)      # (Nq, E)
        kv = jnp.dot(y, wqkv[:, E:], preferred_element_type=jnp.float32)     # (Nk, 2E)
        return heads_attend(q, kv, wo_ref[i], x.shape[0])

    def ffn(x, i):
        h = jnp.dot(x, fw1_ref[i], preferred_element_type=jnp.float32) + fb1_ref[i]
        h = _gelu(h)
        return jnp.dot(h, fw2_ref[i], preferred_element_type=jnp.float32) + fb2_ref[i]

    def self_block(x, i):
        lnw = lnw_ref[i]                        # (3, E); row 2 unused for self blocks
        lnb = lnb_ref[i]
        xn = _layernorm(x, lnw[0:1], lnb[0:1])
        y = self_mha(xn, i) + x
        yn = _layernorm(y, lnw[1:2], lnb[1:2])
        return ffn(yn, i) + y

    def cross_block(x, y, i):
        lnw = lnw_ref[i]
        lnb = lnb_ref[i]
        xn = _layernorm(x, lnw[0:1], lnb[0:1])
        yn = _layernorm(y, lnw[1:2], lnb[1:2])
        y1 = cross_mha(xn, yn, i) + x
        y2n = _layernorm(y1, lnw[2:3], lnb[2:3])
        return ffn(y2n, i) + y1

    # ---- EEG temporal self encoder: cls token + positional emb + blocks ----
    x_e = jnp.concatenate([cls_ref[0:1, :], eeg_ref[0]], axis=0) + pos_e_ref[...]
    for l in range(depth):
        x_e = self_block(x_e, l)

    # ---- NIRS temporal self encoder ----
    x_n = jnp.concatenate([cls_ref[1:2, :], nirs_ref[0]], axis=0) + pos_n_ref[...]
    for l in range(depth):
        x_n = self_block(x_n, depth + l)

    # ---- context (cat) encoder: concat + modality type embedding + 1 block ----
    # first mask[0] tokens (eeg part) -> type index 1, remaining (nirs) -> 0
    ctx = jnp.concatenate([x_e + type_ref[1:2, :], x_n + type_ref[0:1, :]], axis=0)
    ctx = self_block(ctx, 2 * depth)

    # ---- cross encoders (query = modality sequence, key/value = context) ----
    ce = x_e
    for l in range(depth):
        ce = cross_block(ce, ctx, 2 * depth + 1 + l)
    cn = x_n
    for l in range(depth):
        cn = cross_block(cn, ctx, 3 * depth + 1 + l)

    # Only the CLS rows leave the kernel: one (4, E) store per batch element.
    out_ref[0] = jnp.concatenate([x_e[0:1], x_n[0:1], ce[0:1], cn[0:1]], axis=0)


# ---------------------------------------------------------------------------
# wrapper
# ---------------------------------------------------------------------------
def transformer_forward(params, temporal_eeg, temporal_nirs,
                        spatial_eeg, spatial_nirs, *, num_heads, depth):
    # spatial_eeg / spatial_nirs accepted but unused (exactly as in torch forward).
    del spatial_eeg, spatial_nirs
    B, Ce, E = temporal_eeg.shape
    _, Cn, _ = temporal_nirs.shape

    weights = [params["cls"], params["pos_e"], params["pos_n"], params["type_table"],
               params["wqkv"], params["wo"], params["lnw"], params["lnb"],
               params["fw1"], params["fb1"], params["fw2"], params["fb2"]]

    def rep_spec(a):
        # full-array block, constant index_map -> weights DMA'd once, stay in VMEM
        zeros = (0,) * a.ndim
        return pl.BlockSpec(a.shape, lambda b, _z=zeros: _z)

    out = pl.pallas_call(
        functools.partial(_transformer_kernel, num_heads=num_heads, depth=depth, emb=E),
        out_shape=jax.ShapeDtypeStruct((B, 4, E), jnp.float32),
        grid=(B,),
        in_specs=[pl.BlockSpec((1, Ce, E), lambda b: (b, 0, 0)),
                  pl.BlockSpec((1, Cn, E), lambda b: (b, 0, 0))]
                 + [rep_spec(a) for a in weights],
        out_specs=pl.BlockSpec((1, 4, E), lambda b: (b, 0, 0)),
        compiler_params=pltpu.CompilerParams(
            dimension_semantics=("parallel",),
            vmem_limit_bytes=64 << 20),
    )(temporal_eeg, temporal_nirs, *weights)

    # [eeg_out[:,0], nirs_out[:,0], [eeg_cross[:,0], nirs_cross[:,0]]]
    return [out[:, 0], out[:, 1], [out[:, 2], out[:, 3]]]


# ---------------------------------------------------------------------------
# parameter initialization (deterministic; stacked along a leading layer axis)
# Layer index layout:
#   [0 .. depth)                 eeg self blocks
#   [depth .. 2*depth)           nirs self blocks
#   2*depth                      context block (TransformerCatEncoder depth=1)
#   [2*depth+1 .. 3*depth+1)     eeg cross blocks
#   [3*depth+1 .. 4*depth+1)     nirs cross blocks
# ---------------------------------------------------------------------------
def init_transformer_params(key, depth, E, channels, expansion):
    H = expansion * E
    L = 4 * depth + 1
    Ne, Nn = channels[0] + 1, channels[1] + 1
    ks = jax.random.split(key, 8)
    s = 0.02
    return {
        "cls": jax.random.normal(ks[0], (2, E), jnp.float32),        # [eeg, nirs] cls tokens
        "pos_e": jax.random.normal(ks[1], (Ne, E), jnp.float32),     # eeg positional emb
        "pos_n": jax.random.normal(ks[2], (Nn, E), jnp.float32),     # nirs positional emb
        "type_table": jax.random.normal(ks[3], (2, E), jnp.float32), # nn.Embedding(2, E)
        "wqkv": s * jax.random.normal(ks[4], (L, E, 3 * E), jnp.float32),
        "wo": s * jax.random.normal(ks[5], (L, E, E), jnp.float32),
        "lnw": jnp.ones((L, 3, E), jnp.float32),   # rows: ln1, ln2, ln3 (ln3 unused for self blocks)
        "lnb": jnp.zeros((L, 3, E), jnp.float32),
        "fw1": s * jax.random.normal(ks[6], (L, E, H), jnp.float32),
        "fb1": jnp.zeros((L, 1, H), jnp.float32),
        "fw2": s * jax.random.normal(ks[7], (L, H, E), jnp.float32),
        "fb2": jnp.zeros((L, 1, E), jnp.float32),
    }


# ---------------------------------------------------------------------------
if __name__ == "__main__":
    key = jax.random.PRNGKey(0)
    B = 2
    E = 32            # emb_size == query_size == key_size == value_size
    num_heads = 4
    depth = 2
    expansion = 2
    channels = (8, 6)  # (eeg channels, nirs channels)

    k_param, k_e, k_n, k_se, k_sn = jax.random.split(key, 5)
    params = init_transformer_params(k_param, depth, E, channels, expansion)

    temporal_eeg = jax.random.normal(k_e, (B, channels[0], E), jnp.float32)
    temporal_nirs = jax.random.normal(k_n, (B, channels[1], E), jnp.float32)
    spatial_eeg = jax.random.normal(k_se, (B, channels[0], E), jnp.float32)   # unused
    spatial_nirs = jax.random.normal(k_sn, (B, channels[1], E), jnp.float32)  # unused

    # TODO(synk): dropout layers (p=0.5 in the reference) are treated as identity
    # (inference/eval semantics); training-mode stochastic dropout is not implemented.
    out = transformer_forward(params, temporal_eeg, temporal_nirs,
                              spatial_eeg, spatial_nirs,
                              num_heads=num_heads, depth=depth)
    jax.block_until_ready(out[0])
    jax.block_until_ready(out[1])
    jax.block_until_ready(out[2][0])
    jax.block_until_ready(out[2][1])

    assert out[0].shape == (B, E) and out[1].shape == (B, E)
    assert out[2][0].shape == (B, E) and out[2][1].shape == (B, E)
    assert bool(jnp.all(jnp.isfinite(out[0])))
    assert bool(jnp.all(jnp.isfinite(out[1])))
    assert bool(jnp.all(jnp.isfinite(out[2][0])))
    assert bool(jnp.all(jnp.isfinite(out[2][1])))
    print("KERNEL_OK")
</pallas_src>

<mosaic_0001>
module attributes {stable_mosaic.version = 11 : i64} {
  func.func @_transformer_kernel(%arg0: i32, %arg1: memref<1x8x32xf32, #tpu.memory_space<vmem>>, %arg2: memref<1x6x32xf32, #tpu.memory_space<vmem>>, %arg3: memref<2x32xf32, #tpu.memory_space<vmem>>, %arg4: memref<9x32xf32, #tpu.memory_space<vmem>>, %arg5: memref<7x32xf32, #tpu.memory_space<vmem>>, %arg6: memref<2x32xf32, #tpu.memory_space<vmem>>, %arg7: memref<9x32x96xf32, #tpu.memory_space<vmem>>, %arg8: memref<9x32x32xf32, #tpu.memory_space<vmem>>, %arg9: memref<9x3x32xf32, #tpu.memory_space<vmem>>, %arg10: memref<9x3x32xf32, #tpu.memory_space<vmem>>, %arg11: memref<9x32x64xf32, #tpu.memory_space<vmem>>, %arg12: memref<9x1x64xf32, #tpu.memory_space<vmem>>, %arg13: memref<9x64x32xf32, #tpu.memory_space<vmem>>, %arg14: memref<9x1x32xf32, #tpu.memory_space<vmem>>, %arg15: memref<1x4x32xf32, #tpu.memory_space<vmem>>) attributes {dimension_semantics = [#tpu.dimension_semantics<parallel>], iteration_bounds = array<i64: 2>, scalar_prefetch = 0 : i64, scratch_operands = 0 : i64, tpu.core_type = #tpu.core_type<tc>, window_params = [{transform_indices = @transform_0, window_bounds = array<i64: 1, 8, 32>}, {transform_indices = @transform_1, window_bounds = array<i64: 1, 6, 32>}, {pipeline_mode = #tpu.pipeline_mode<synchronous>, transform_indices = @transform_2, window_bounds = array<i64: 2, 32>}, {pipeline_mode = #tpu.pipeline_mode<synchronous>, transform_indices = @transform_3, window_bounds = array<i64: 9, 32>}, {pipeline_mode = #tpu.pipeline_mode<synchronous>, transform_indices = @transform_4, window_bounds = array<i64: 7, 32>}, {pipeline_mode = #tpu.pipeline_mode<synchronous>, transform_indices = @transform_5, window_bounds = array<i64: 2, 32>}, {pipeline_mode = #tpu.pipeline_mode<synchronous>, transform_indices = @transform_6, window_bounds = array<i64: 9, 32, 96>}, {pipeline_mode = #tpu.pipeline_mode<synchronous>, transform_indices = @transform_7, window_bounds = array<i64: 9, 32, 32>}, {pipeline_mode = #tpu.pipeline_mode<synchronous>, transform_indices = @transform_8, window_bounds = array<i64: 9, 3, 32>}, {pipeline_mode = #tpu.pipeline_mode<synchronous>, transform_indices = @transform_9, window_bounds = array<i64: 9, 3, 32>}, {pipeline_mode = #tpu.pipeline_mode<synchronous>, transform_indices = @transform_10, window_bounds = array<i64: 9, 32, 64>}, {pipeline_mode = #tpu.pipeline_mode<synchronous>, transform_indices = @transform_11, window_bounds = array<i64: 9, 1, 64>}, {pipeline_mode = #tpu.pipeline_mode<synchronous>, transform_indices = @transform_12, window_bounds = array<i64: 9, 64, 32>}, {pipeline_mode = #tpu.pipeline_mode<synchronous>, transform_indices = @transform_13, window_bounds = array<i64: 9, 1, 32>}, {transform_indices = @transform_14, window_bounds = array<i64: 1, 4, 32>}]} {
    %c0 = arith.constant 0 : index
    %c0_0 = arith.constant 0 : index
    %0 = vector.load %arg3[%c0, %c0_0] : memref<2x32xf32, #tpu.memory_space<vmem>>, vector<1x32xf32>
    %c0_1 = arith.constant 0 : index
    %c0_2 = arith.constant 0 : index
    %c0_3 = arith.constant 0 : index
    %1 = vector.load %arg1[%c0_1, %c0_2, %c0_3] : memref<1x8x32xf32, #tpu.memory_space<vmem>>, vector<1x8x32xf32>
    %2 = vector.shape_cast %1 : vector<1x8x32xf32> to vector<8x32xf32>
    %3 = tpu.concatenate %0, %2 in 0 : vector<1x32xf32>, vector<8x32xf32> -> vector<9x32xf32>
    %c0_4 = arith.constant 0 : index
    %c0_5 = arith.constant 0 : index
    %4 = vector.load %arg4[%c0_4, %c0_5] : memref<9x32xf32, #tpu.memory_space<vmem>>, vector<9x32xf32>
    %5 = arith.addf %3, %4 : vector<9x32xf32>
    %c0_6 = arith.constant 0 : index
    %c0_7 = arith.constant 0 : index
    %c0_8 = arith.constant 0 : index
    %6 = vector.load %arg9[%c0_6, %c0_7, %c0_8] : memref<9x3x32xf32, #tpu.memory_space<vmem>>, vector<1x3x32xf32>
    %7 = vector.shape_cast %6 : vector<1x3x32xf32> to vector<3x32xf32>
    %c0_9 = arith.constant 0 : index
    %c0_10 = arith.constant 0 : index
    %c0_11 = arith.constant 0 : index
    %8 = vector.load %arg10[%c0_9, %c0_10, %c0_11] : memref<9x3x32xf32, #tpu.memory_space<vmem>>, vector<1x3x32xf32>
    %9 = vector.shape_cast %8 : vector<1x3x32xf32> to vector<3x32xf32>
    %10 = vector.extract_strided_slice %7 {offsets = [0, 0], sizes = [1, 32], strides = [1, 1]} : vector<3x32xf32> to vector<1x32xf32>
    %11 = vector.extract_strided_slice %9 {offsets = [0, 0], sizes = [1, 32], strides = [1, 1]} : vector<3x32xf32> to vector<1x32xf32>
    %cst = arith.constant dense<0.000000e+00> : vector<9xf32>
    %12 = vector.multi_reduction <add>, %5, %cst [1] : vector<9x32xf32> to vector<9xf32>
    %13 = vector.shape_cast %12 : vector<9xf32> to vector<9x1xf32>
    %cst_12 = arith.constant 3.200000e+01 : f32
    %14 = vector.broadcast %cst_12 : f32 to vector<9x1xf32>
    %15 = arith.divf %13, %14 : vector<9x1xf32>
    %16 = vector.broadcast %15 : vector<9x1xf32> to vector<9x32xf32>
    %17 = arith.subf %5, %16 : vector<9x32xf32>
    %18 = arith.mulf %17, %17 : vector<9x32xf32>
    %cst_13 = arith.constant dense<0.000000e+00> : vector<9xf32>
    %19 = vector.multi_reduction <add>, %18, %cst_13 [1] : vector<9x32xf32> to vector<9xf32>
    %20 = vector.shape_cast %19 : vector<9xf32> to vector<9x1xf32>
    %cst_14 = arith.constant 3.200000e+01 : f32
    %21 = vector.broadcast %cst_14 : f32 to vector<9x1xf32>
    %22 = arith.divf %20, %21 : vector<9x1xf32>
    %23 = vector.broadcast %15 : vector<9x1xf32> to vector<9x32xf32>
    %24 = arith.subf %5, %23 : vector<9x32xf32>
    %cst_15 = arith.constant 9.99999974E-6 : f32
    %25 = vector.broadcast %cst_15 : f32 to vector<9x1xf32>
    %26 = arith.addf %22, %25 : vector<9x1xf32>
    %27 = math.rsqrt %26 : vector<9x1xf32>
    %28 = vector.broadcast %27 : vector<9x1xf32> to vector<9x32xf32>
    %29 = arith.mulf %24, %28 : vector<9x32xf32>
    %30 = vector.broadcast %10 : vector<1x32xf32> to vector<9x32xf32>
    %31 = arith.mulf %29, %30 : vector<9x32xf32>
    %32 = vector.broadcast %11 : vector<1x32xf32> to vector<9x32xf32>
    %33 = arith.addf %31, %32 : vector<9x32xf32>
    %c0_16 = arith.constant 0 : index
    %c0_17 = arith.constant 0 : index
    %c0_18 = arith.constant 0 : index
    %34 = vector.load %arg7[%c0_16, %c0_17, %c0_18] : memref<9x32x96xf32, #tpu.memory_space<vmem>>, vector<1x32x96xf32>
    %35 = vector.shape_cast %34 : vector<1x32x96xf32> to vector<32x96xf32>
    %cst_19 = arith.constant dense<0.000000e+00> : vector<9x96xf32>
    %36 = tpu.matmul %33, %35, %cst_19 {dimension_numbers = #tpu.dot_dimension_numbers<[1], [0], [0], [1], [0, 0, 1, 1], [], []>} : vector<9x32xf32>, vector<32x96xf32>, vector<9x96xf32> -> vector<9x96xf32>
    %c0_20 = arith.constant 0 : index
    %c0_21 = arith.constant 0 : index
    %c0_22 = arith.constant 0 : index
    %37 = vector.load %arg8[%c0_20, %c0_21, %c0_22] : memref<9x32x32xf32, #tpu.memory_space<vmem>>, vector<1x32x32xf32>
    %38 = vector.shape_cast %37 : vector<1x32x32xf32> to vector<32x32xf32>
    %cst_23 = arith.constant 0.000000e+00 : f32
    %39 = vector.broadcast %cst_23 : f32 to vector<9x32xf32>
    %40 = vector.extract_strided_slice %36 {offsets = [0, 0], sizes = [9, 8], strides = [1, 1]} : vector<9x96xf32> to vector<9x8xf32>
    %cst_24 = arith.constant 0.176776692 : f32
    %41 = vector.broadcast %cst_24 : f32 to vector<9x8xf32>
    %42 = arith.mulf %40, %41 : vector<9x8xf32>
    %43 = vector.extract_strided_slice %36 {offsets = [0, 32], sizes = [9, 8], strides = [1, 1]} : vector<9x96xf32> to vector<9x8xf32>
    %44 = vector.extract_strided_slice %36 {offsets = [0, 64], sizes = [9, 8], strides = [1, 1]} : vector<9x96xf32> to vector<9x8xf32>
    %cst_25 = arith.constant dense<0.000000e+00> : vector<9x9xf32>
    %45 = tpu.matmul %42, %43, %cst_25 {dimension_numbers = #tpu.dot_dimension_numbers<[1], [1], [0], [0], [0, 0, 1, 0], [], []>} : vector<9x8xf32>, vector<9x8xf32>, vector<9x9xf32> -> vector<9x9xf32>
    %cst_26 = arith.constant dense<0xFF800000> : vector<9xf32>
    %46 = vector.multi_reduction <maximumf>, %45, %cst_26 [1] : vector<9x9xf32> to vector<9xf32>
    %47 = vector.shape_cast %46 : vector<9xf32> to vector<9x1xf32>
    %48 = vector.broadcast %47 : vector<9x1xf32> to vector<9x9xf32>
    %49 = arith.subf %45, %48 : vector<9x9xf32>
    %50 = math.exp %49 : vector<9x9xf32>
    %cst_27 = arith.constant dense<0.000000e+00> : vector<9xf32>
    %51 = vector.multi_reduction <add>, %50, %cst_27 [1] : vector<9x9xf32> to vector<9xf32>
    %52 = vector.shape_cast %51 : vector<9xf32> to vector<9x1xf32>
    %53 = tpu.reciprocal %52 {approx = true} : vector<9x1xf32> -> vector<9x1xf32>
    %54 = vector.broadcast %53 : vector<9x1xf32> to vector<9x9xf32>
    %55 = arith.mulf %50, %54 : vector<9x9xf32>
    %cst_28 = arith.constant dense<0.000000e+00> : vector<9x8xf32>
    %56 = tpu.matmul %55, %44, %cst_28 {dimension_numbers = #tpu.dot_dimension_numbers<[1], [0], [0], [1], [0, 0, 1, 1], [], []>} : vector<9x9xf32>, vector<9x8xf32>, vector<9x8xf32> -> vector<9x8xf32>
    %57 = vector.extract_strided_slice %38 {offsets = [0, 0], sizes = [8, 32], strides = [1, 1]} : vector<32x32xf32> to vector<8x32xf32>
    %cst_29 = arith.constant dense<0.000000e+00> : vector<9x32xf32>
    %58 = tpu.matmul %56, %57, %cst_29 {dimension_numbers = #tpu.dot_dimension_numbers<[1], [0], [0], [1], [0, 0, 1, 1], [], []>} : vector<9x8xf32>, vector<8x32xf32>, vector<9x32xf32> -> vector<9x32xf32>
    %59 = arith.addf %39, %58 : vector<9x32xf32>
    %60 = vector.extract_strided_slice %36 {offsets = [0, 8], sizes = [9, 8], strides = [1, 1]} : vector<9x96xf32> to vector<9x8xf32>
    %cst_30 = arith.constant 0.176776692 : f32
    %61 = vector.broadcast %cst_30 : f32 to vector<9x8xf32>
    %62 = arith.mulf %60, %61 : vector<9x8xf32>
    %63 = vector.extract_strided_slice %36 {offsets = [0, 40], sizes = [9, 8], strides = [1, 1]} : vector<9x96xf32> to vector<9x8xf32>
    %64 = vector.extract_strided_slice %36 {offsets = [0, 72], sizes = [9, 8], strides = [1, 1]} : vector<9x96xf32> to vector<9x8xf32>
    %cst_31 = arith.constant dense<0.000000e+00> : vector<9x9xf32>
    %65 = tpu.matmul %62, %63, %cst_31 {dimension_numbers = #tpu.dot_dimension_numbers<[1], [1], [0], [0], [0, 0, 1, 0], [], []>} : vector<9x8xf32>, vector<9x8xf32>, vector<9x9xf32> -> vector<9x9xf32>
    %cst_32 = arith.constant dense<0xFF800000> : vector<9xf32>
    %66 = vector.multi_reduction <maximumf>, %65, %cst_32 [1] : vector<9x9xf32> to vector<9xf32>
    %67 = vector.shape_cast %66 : vector<9xf32> to vector<9x1xf32>
    %68 = vector.broadcast %67 : vector<9x1xf32> to vector<9x9xf32>
    %69 = arith.subf %65, %68 : vector<9x9xf32>
    %70 = math.exp %69 : vector<9x9xf32>
    %cst_33 = arith.constant dense<0.000000e+00> : vector<9xf32>
    %71 = vector.multi_reduction <add>, %70, %cst_33 [1] : vector<9x9xf32> to vector<9xf32>
    %72 = vector.shape_cast %71 : vector<9xf32> to vector<9x1xf32>
    %73 = tpu.reciprocal %72 {approx = true} : vector<9x1xf32> -> vector<9x1xf32>
    %74 = vector.broadcast %73 : vector<9x1xf32> to vector<9x9xf32>
    %75 = arith.mulf %70, %74 : vector<9x9xf32>
    %cst_34 = arith.constant dense<0.000000e+00> : vector<9x8xf32>
    %76 = tpu.matmul %75, %64, %cst_34 {dimension_numbers = #tpu.dot_dimension_numbers<[1], [0], [0], [1], [0, 0, 1, 1], [], []>} : vector<9x9xf32>, vector<9x8xf32>, vector<9x8xf32> -> vector<9x8xf32>
    %77 = vector.extract_strided_slice %38 {offsets = [8, 0], sizes = [8, 32], strides = [1, 1]} : vector<32x32xf32> to vector<8x32xf32>
    %cst_35 = arith.constant dense<0.000000e+00> : vector<9x32xf32>
    %78 = tpu.matmul %76, %77, %cst_35 {dimension_numbers = #tpu.dot_dimension_numbers<[1], [0], [0], [1], [0, 0, 1, 1], [], []>} : vector<9x8xf32>, vector<8x32xf32>, vector<9x32xf32> -> vector<9x32xf32>
    %79 = arith.addf %59, %78 : vector<9x32xf32>
    %80 = vector.extract_strided_slice %36 {offsets = [0, 16], sizes = [9, 8], strides = [1, 1]} : vector<9x96xf32> to vector<9x8xf32>
    %cst_36 = arith.constant 0.176776692 : f32
    %81 = vector.broadcast %cst_36 : f32 to vector<9x8xf32>
    %82 = arith.mulf %80, %81 : vector<9x8xf32>
    %83 = vector.extract_strided_slice %36 {offsets = [0, 48], sizes = [9, 8], strides = [1, 1]} : vector<9x96xf32> to vector<9x8xf32>
    %84 = vector.extract_strided_slice %36 {offsets = [0, 80], sizes = [9, 8], strides = [1, 1]} : vector<9x96xf32> to vector<9x8xf32>
    %cst_37 = arith.constant dense<0.000000e+00> : vector<9x9xf32>
    %85 = tpu.matmul %82, %83, %cst_37 {dimension_numbers = #tpu.dot_dimension_numbers<[1], [1], [0], [0], [0, 0, 1, 0], [], []>} : vector<9x8xf32>, vector<9x8xf32>, vector<9x9xf32> -> vector<9x9xf32>
    %cst_38 = arith.constant dense<0xFF800000> : vector<9xf32>
    %86 = vector.multi_reduction <maximumf>, %85, %cst_38 [1] : vector<9x9xf32> to vector<9xf32>
    %87 = vector.shape_cast %86 : vector<9xf32> to vector<9x1xf32>
    %88 = vector.broadcast %87 : vector<9x1xf32> to vector<9x9xf32>
    %89 = arith.subf %85, %88 : vector<9x9xf32>
    %90 = math.exp %89 : vector<9x9xf32>
    %cst_39 = arith.constant dense<0.000000e+00> : vector<9xf32>
    %91 = vector.multi_reduction <add>, %90, %cst_39 [1] : vector<9x9xf32> to vector<9xf32>
    %92 = vector.shape_cast %91 : vector<9xf32> to vector<9x1xf32>
    %93 = tpu.reciprocal %92 {approx = true} : vector<9x1xf32> -> vector<9x1xf32>
    %94 = vector.broadcast %93 : vector<9x1xf32> to vector<9x9xf32>
    %95 = arith.mulf %90, %94 : vector<9x9xf32>
    %cst_40 = arith.constant dense<0.000000e+00> : vector<9x8xf32>
    %96 = tpu.matmul %95, %84, %cst_40 {dimension_numbers = #tpu.dot_dimension_numbers<[1], [0], [0], [1], [0, 0, 1, 1], [], []>} : vector<9x9xf32>, vector<9x8xf32>, vector<9x8xf32> -> vector<9x8xf32>
    %97 = vector.extract_strided_slice %38 {offsets = [16, 0], sizes = [8, 32], strides = [1, 1]} : vector<32x32xf32> to vector<8x32xf32>
    %cst_41 = arith.constant dense<0.000000e+00> : vector<9x32xf32>
    %98 = tpu.matmul %96, %97, %cst_41 {dimension_numbers = #tpu.dot_dimension_numbers<[1], [0], [0], [1], [0, 0, 1, 1], [], []>} : vector<9x8xf32>, vector<8x32xf32>, vector<9x32xf32> -> vector<9x32xf32>
    %99 = arith.addf %79, %98 : vector<9x32xf32>
    %100 = vector.extract_strided_slice %36 {offsets = [0, 24], sizes = [9, 8], strides = [1, 1]} : vector<9x96xf32> to vector<9x8xf32>
    %cst_42 = arith.constant 0.176776692 : f32
    %101 = vector.broadcast %cst_42 : f32 to vector<9x8xf32>
    %102 = arith.mulf %100, %101 : vector<9x8xf32>
    %103 = vector.extract_strided_slice %36 {offsets = [0, 56], sizes = [9, 8], strides = [1, 1]} : vector<9x96xf32> to vector<9x8xf32>
    %104 = vector.extract_strided_slice %36 {offsets = [0, 88], sizes = [9, 8], strides = [1, 1]} : vector<9x96xf32> to vector<9x8xf32>
    %cst_43 = arith.constant dense<0.000000e+00> : vector<9x9xf32>
    %105 = tpu.matmul %102, %103, %cst_43 {dimension_numbers = #tpu.dot_dimension_numbers<[1], [1], [0], [0], [0, 0, 1, 0], [], []>} : vector<9x8xf32>, vector<9x8xf32>, vector<9x9xf32> -> vector<9x9xf32>
    %cst_44 = arith.constant dense<0xFF800000> : vector<9xf32>
    %106 = vector.multi_reduction <maximumf>, %105, %cst_44 [1] : vector<9x9xf32> to vector<9xf32>
    %107 = vector.shape_cast %106 : vector<9xf32> to vector<9x1xf32>
    %108 = vector.broadcast %107 : vector<9x1xf32> to vector<9x9xf32>
    %109 = arith.subf %105, %108 : vector<9x9xf32>
    %110 = math.exp %109 : vector<9x9xf32>
    %cst_45 = arith.constant dense<0.000000e+00> : vector<9xf32>
    %111 = vector.multi_reduction <add>, %110, %cst_45 [1] : vector<9x9xf32> to vector<9xf32>
    %112 = vector.shape_cast %111 : vector<9xf32> to vector<9x1xf32>
    %113 = tpu.reciprocal %112 {approx = true} : vector<9x1xf32> -> vector<9x1xf32>
    %114 = vector.broadcast %113 : vector<9x1xf32> to vector<9x9xf32>
    %115 = arith.mulf %110, %114 : vector<9x9xf32>
    %cst_46 = arith.constant dense<0.000000e+00> : vector<9x8xf32>
    %116 = tpu.matmul %115, %104, %cst_46 {dimension_numbers = #tpu.dot_dimension_numbers<[1], [0], [0], [1], [0, 0, 1, 1], [], []>} : vector<9x9xf32>, vector<9x8xf32>, vector<9x8xf32> -> vector<9x8xf32>
    %117 = vector.extract_strided_slice %38 {offsets = [24, 0], sizes = [8, 32], strides = [1, 1]} : vector<32x32xf32> to vector<8x32xf32>
    %cst_47 = arith.constant dense<0.000000e+00> : vector<9x32xf32>
    %118 = tpu.matmul %116, %117, %cst_47 {dimension_numbers = #tpu.dot_dimension_numbers<[1], [0], [0], [1], [0, 0, 1, 1], [], []>} : vector<9x8xf32>, vector<8x32xf32>, vector<9x32xf32> -> vector<9x32xf32>
    %119 = arith.addf %99, %118 : vector<9x32xf32>
    %120 = arith.addf %119, %5 : vector<9x32xf32>
    %121 = vector.extract_strided_slice %7 {offsets = [1, 0], sizes = [1, 32], strides = [1, 1]} : vector<3x32xf32> to vector<1x32xf32>
    %122 = vector.extract_strided_slice %9 {offsets = [1, 0], sizes = [1, 32], strides = [1, 1]} : vector<3x32xf32> to vector<1x32xf32>
    %cst_48 = arith.constant dense<0.000000e+00> : vector<9xf32>
    %123 = vector.multi_reduction <add>, %120, %cst_48 [1] : vector<9x32xf32> to vector<9xf32>
    %124 = vector.shape_cast %123 : vector<9xf32> to vector<9x1xf32>
    %cst_49 = arith.constant 3.200000e+01 : f32
    %125 = vector.broadcast %cst_49 : f32 to vector<9x1xf32>
    %126 = arith.divf %124, %125 : vector<9x1xf32>
    %127 = vector.broadcast %126 : vector<9x1xf32> to vector<9x32xf32>
    %128 = arith.subf %120, %127 : vector<9x32xf32>
    %129 = arith.mulf %128, %128 : vector<9x32xf32>
    %cst_50 = arith.constant dense<0.000000e+00> : vector<9xf32>
    %130 = vector.multi_reduction <add>, %129, %cst_50 [1] : vector<9x32xf32> to vector<9xf32>
    %131 = vector.shape_cast %130 : vector<9xf32> to vector<9x1xf32>
    %cst_51 = arith.constant 3.200000e+01 : f32
    %132 = vector.broadcast %cst_51 : f32 to vector<9x1xf32>
    %133 = arith.divf %131, %132 : vector<9x1xf32>
    %134 = vector.broadcast %126 : vector<9x1xf32> to vector<9x32xf32>
    %135 = arith.subf %120, %134 : vector<9x32xf32>
    %cst_52 = arith.constant 9.99999974E-6 : f32
    %136 = vector.broadcast %cst_52 : f32 to vector<9x1xf32>
    %137 = arith.addf %133, %136 : vector<9x1xf32>
    %138 = math.rsqrt %137 : vector<9x1xf32>
    %139 = vector.broadcast %138 : vector<9x1xf32> to vector<9x32xf32>
    %140 = arith.mulf %135, %139 : vector<9x32xf32>
    %141 = vector.broadcast %121 : vector<1x32xf32> to vector<9x32xf32>
    %142 = arith.mulf %140, %141 : vector<9x32xf32>
    %143 = vector.broadcast %122 : vector<1x32xf32> to vector<9x32xf32>
    %144 = arith.addf %142, %143 : vector<9x32xf32>
    %c0_53 = arith.constant 0 : index
    %c0_54 = arith.constant 0 : index
    %c0_55 = arith.constant 0 : index
    %145 = vector.load %arg11[%c0_53, %c0_54, %c0_55] : memref<9x32x64xf32, #tpu.memory_space<vmem>>, vector<1x32x64xf32>
    %146 = vector.shape_cast %145 : vector<1x32x64xf32> to vector<32x64xf32>
    %cst_56 = arith.constant dense<0.000000e+00> : vector<9x64xf32>
    %147 = tpu.matmul %144, %146, %cst_56 {dimension_numbers = #tpu.dot_dimension_numbers<[1], [0], [0], [1], [0, 0, 1, 1], [], []>} : vector<9x32xf32>, vector<32x64xf32>, vector<9x64xf32> -> vector<9x64xf32>
    %c0_57 = arith.constant 0 : index
    %c0_58 = arith.constant 0 : index
    %c0_59 = arith.constant 0 : index
    %148 = vector.load %arg12[%c0_57, %c0_58, %c0_59] : memref<9x1x64xf32, #tpu.memory_space<vmem>>, vector<1x1x64xf32>
    %149 = vector.shape_cast %148 : vector<1x1x64xf32> to vector<1x64xf32>
    %150 = vector.broadcast %149 : vector<1x64xf32> to vector<9x64xf32>
    %151 = arith.addf %147, %150 : vector<9x64xf32>
    %cst_60 = arith.constant 5.000000e-01 : f32
    %152 = vector.broadcast %cst_60 : f32 to vector<9x64xf32>
    %153 = arith.mulf %152, %151 : vector<9x64xf32>
    %cst_61 = arith.constant 0.707106769 : f32
    %154 = vector.broadcast %cst_61 : f32 to vector<9x64xf32>
    %155 = arith.mulf %151, %154 : vector<9x64xf32>
    %cst_62 = arith.constant 0.000000e+00 : f32
    %156 = vector.broadcast %cst_62 : f32 to vector<9x64xf32>
    %157 = arith.cmpf oge, %155, %156 : vector<9x64xf32>
    %cst_63 = arith.constant 1.000000e+00 : f32
    %cst_64 = arith.constant -1.000000e+00 : f32
    %158 = vector.broadcast %cst_63 : f32 to vector<9x64xf32>
    %159 = vector.broadcast %cst_64 : f32 to vector<9x64xf32>
    %160 = arith.select %157, %158, %159 : vector<9x64xi1>, vector<9x64xf32>
    %161 = math.absf %155 : vector<9x64xf32>
    %cst_65 = arith.constant 0.327591091 : f32
    %162 = vector.broadcast %cst_65 : f32 to vector<9x64xf32>
    %163 = arith.mulf %162, %161 : vector<9x64xf32>
    %cst_66 = arith.constant 1.000000e+00 : f32
    %164 = vector.broadcast %cst_66 : f32 to vector<9x64xf32>
    %165 = arith.addf %164, %163 : vector<9x64xf32>
    %cst_67 = arith.constant 1.000000e+00 : f32
    %166 = vector.broadcast %cst_67 : f32 to vector<9x64xf32>
    %167 = arith.divf %166, %165 : vector<9x64xf32>
    %cst_68 = arith.constant 1.06140542 : f32
    %168 = vector.broadcast %cst_68 : f32 to vector<9x64xf32>
    %169 = arith.mulf %168, %167 : vector<9x64xf32>
    %cst_69 = arith.constant -1.45315206 : f32
    %170 = vector.broadcast %cst_69 : f32 to vector<9x64xf32>
    %171 = arith.addf %169, %170 : vector<9x64xf32>
    %172 = arith.mulf %171, %167 : vector<9x64xf32>
    %cst_70 = arith.constant 1.42141378 : f32
    %173 = vector.broadcast %cst_70 : f32 to vector<9x64xf32>
    %174 = arith.addf %172, %173 : vector<9x64xf32>
    %175 = arith.mulf %174, %167 : vector<9x64xf32>
    %cst_71 = arith.constant -0.284496725 : f32
    %176 = vector.broadcast %cst_71 : f32 to vector<9x64xf32>
    %177 = arith.addf %175, %176 : vector<9x64xf32>
    %178 = arith.mulf %177, %167 : vector<9x64xf32>
    %cst_72 = arith.constant 0.254829586 : f32
    %179 = vector.broadcast %cst_72 : f32 to vector<9x64xf32>
    %180 = arith.addf %178, %179 : vector<9x64xf32>
    %181 = arith.mulf %180, %167 : vector<9x64xf32>
    %cst_73 = arith.constant 0.000000e+00 : f32
    %182 = vector.broadcast %cst_73 : f32 to vector<9x64xf32>
    %183 = arith.subf %182, %161 : vector<9x64xf32>
    %184 = arith.mulf %183, %161 : vector<9x64xf32>
    %185 = math.exp %184 : vector<9x64xf32>
    %186 = arith.mulf %181, %185 : vector<9x64xf32>
    %cst_74 = arith.constant 1.000000e+00 : f32
    %187 = vector.broadcast %cst_74 : f32 to vector<9x64xf32>
    %188 = arith.subf %187, %186 : vector<9x64xf32>
    %189 = arith.mulf %160, %188 : vector<9x64xf32>
    %cst_75 = arith.constant 1.000000e+00 : f32
    %190 = vector.broadcast %cst_75 : f32 to vector<9x64xf32>
    %191 = arith.addf %190, %189 : vector<9x64xf32>
    %192 = arith.mulf %153, %191 : vector<9x64xf32>
    %c0_76 = arith.constant 0 : index
    %c0_77 = arith.constant 0 : index
    %c0_78 = arith.constant 0 : index
    %193 = vector.load %arg13[%c0_76, %c0_77, %c0_78] : memref<9x64x32xf32, #tpu.memory_space<vmem>>, vector<1x64x32xf32>
    %194 = vector.shape_cast %193 : vector<1x64x32xf32> to vector<64x32xf32>
    %cst_79 = arith.constant dense<0.000000e+00> : vector<9x32xf32>
    %195 = tpu.matmul %192, %194, %cst_79 {dimension_numbers = #tpu.dot_dimension_numbers<[1], [0], [0], [1], [0, 0, 1, 1], [], []>} : vector<9x64xf32>, vector<64x32xf32>, vector<9x32xf32> -> vector<9x32xf32>
    %c0_80 = arith.constant 0 : index
    %c0_81 = arith.constant 0 : index
    %c0_82 = arith.constant 0 : index
    %196 = vector.load %arg14[%c0_80, %c0_81, %c0_82] : memref<9x1x32xf32, #tpu.memory_space<vmem>>, vector<1x1x32xf32>
    %197 = vector.shape_cast %196 : vector<1x1x32xf32> to vector<1x32xf32>
    %198 = vector.broadcast %197 : vector<1x32xf32> to vector<9x32xf32>
    %199 = arith.addf %195, %198 : vector<9x32xf32>
    %200 = arith.addf %199, %120 : vector<9x32xf32>
    %c1 = arith.constant 1 : index
    %c0_83 = arith.constant 0 : index
    %c0_84 = arith.constant 0 : index
    %201 = vector.load %arg9[%c1, %c0_83, %c0_84] : memref<9x3x32xf32, #tpu.memory_space<vmem>>, vector<1x3x32xf32>
    %202 = vector.shape_cast %201 : vector<1x3x32xf32> to vector<3x32xf32>
    %c1_85 = arith.constant 1 : index
    %c0_86 = arith.constant 0 : index
    %c0_87 = arith.constant 0 : index
    %203 = vector.load %arg10[%c1_85, %c0_86, %c0_87] : memref<9x3x32xf32, #tpu.memory_space<vmem>>, vector<1x3x32xf32>
    %204 = vector.shape_cast %203 : vector<1x3x32xf32> to vector<3x32xf32>
    %205 = vector.extract_strided_slice %202 {offsets = [0, 0], sizes = [1, 32], strides = [1, 1]} : vector<3x32xf32> to vector<1x32xf32>
    %206 = vector.extract_strided_slice %204 {offsets = [0, 0], sizes = [1, 32], strides = [1, 1]} : vector<3x32xf32> to vector<1x32xf32>
    %cst_88 = arith.constant dense<0.000000e+00> : vector<9xf32>
    %207 = vector.multi_reduction <add>, %200, %cst_88 [1] : vector<9x32xf32> to vector<9xf32>
    %208 = vector.shape_cast %207 : vector<9xf32> to vector<9x1xf32>
    %cst_89 = arith.constant 3.200000e+01 : f32
    %209 = vector.broadcast %cst_89 : f32 to vector<9x1xf32>
    %210 = arith.divf %208, %209 : vector<9x1xf32>
    %211 = vector.broadcast %210 : vector<9x1xf32> to vector<9x32xf32>
    %212 = arith.subf %200, %211 : vector<9x32xf32>
    %213 = arith.mulf %212, %212 : vector<9x32xf32>
    %cst_90 = arith.constant dense<0.000000e+00> : vector<9xf32>
    %214 = vector.multi_reduction <add>, %213, %cst_90 [1] : vector<9x32xf32> to vector<9xf32>
    %215 = vector.shape_cast %214 : vector<9xf32> to vector<9x1xf32>
    %cst_91 = arith.constant 3.200000e+01 : f32
    %216 = vector.broadcast %cst_91 : f32 to vector<9x1xf32>
    %217 = arith.divf %215, %216 : vector<9x1xf32>
    %218 = vector.broadcast %210 : vector<9x1xf32> to vector<9x32xf32>
    %219 = arith.subf %200, %218 : vector<9x32xf32>
    %cst_92 = arith.constant 9.99999974E-6 : f32
    %220 = vector.broadcast %cst_92 : f32 to vector<9x1xf32>
    %221 = arith.addf %217, %220 : vector<9x1xf32>
    %222 = math.rsqrt %221 : vector<9x1xf32>
    %223 = vector.broadcast %222 : vector<9x1xf32> to vector<9x32xf32>
    %224 = arith.mulf %219, %223 : vector<9x32xf32>
    %225 = vector.broadcast %205 : vector<1x32xf32> to vector<9x32xf32>
    %226 = arith.mulf %224, %225 : vector<9x32xf32>
    %227 = vector.broadcast %206 : vector<1x32xf32> to vector<9x32xf32>
    %228 = arith.addf %226, %227 : vector<9x32xf32>
    %c1_93 = arith.constant 1 : index
    %c0_94 = arith.constant 0 : index
    %c0_95 = arith.constant 0 : index
    %229 = vector.load %arg7[%c1_93, %c0_94, %c0_95] : memref<9x32x96xf32, #tpu.memory_space<vmem>>, vector<1x32x96xf32>
    %230 = vector.shape_cast %229 : vector<1x32x96xf32> to vector<32x96xf32>
    %cst_96 = arith.constant dense<0.000000e+00> : vector<9x96xf32>
    %231 = tpu.matmul %228, %230, %cst_96 {dimension_numbers = #tpu.dot_dimension_numbers<[1], [0], [0], [1], [0, 0, 1, 1], [], []>} : vector<9x32xf32>, vector<32x96xf32>, vector<9x96xf32> -> vector<9x96xf32>
    %c1_97 = arith.constant 1 : index
    %c0_98 = arith.constant 0 : index
    %c0_99 = arith.constant 0 : index
    %232 = vector.load %arg8[%c1_97, %c0_98, %c0_99] : memref<9x32x32xf32, #tpu.memory_space<vmem>>, vector<1x32x32xf32>
    %233 = vector.shape_cast %232 : vector<1x32x32xf32> to vector<32x32xf32>
    %cst_100 = arith.constant 0.000000e+00 : f32
    %234 = vector.broadcast %cst_100 : f32 to vector<9x32xf32>
    %235 = vector.extract_strided_slice %231 {offsets = [0, 0], sizes = [9, 8], strides = [1, 1]} : vector<9x96xf32> to vector<9x8xf32>
    %cst_101 = arith.constant 0.176776692 : f32
    %236 = vector.broadcast %cst_101 : f32 to vector<9x8xf32>
    %237 = arith.mulf %235, %236 : vector<9x8xf32>
    %238 = vector.extract_strided_slice %231 {offsets = [0, 32], sizes = [9, 8], strides = [1, 1]} : vector<9x96xf32> to vector<9x8xf32>
    %239 = vector.extract_strided_slice %231 {offsets = [0, 64], sizes = [9, 8], strides = [1, 1]} : vector<9x96xf32> to vector<9x8xf32>
    %cst_102 = arith.constant dense<0.000000e+00> : vector<9x9xf32>
    %240 = tpu.matmul %237, %238, %cst_102 {dimension_numbers = #tpu.dot_dimension_numbers<[1], [1], [0], [0], [0, 0, 1, 0], [], []>} : vector<9x8xf32>, vector<9x8xf32>, vector<9x9xf32> -> vector<9x9xf32>
    %cst_103 = arith.constant dense<0xFF800000> : vector<9xf32>
    %241 = vector.multi_reduction <maximumf>, %240, %cst_103 [1] : vector<9x9xf32> to vector<9xf32>
    %242 = vector.shape_cast %241 : vector<9xf32> to vector<9x1xf32>
    %243 = vector.broadcast %242 : vector<9x1xf32> to vector<9x9xf32>
    %244 = arith.subf %240, %243 : vector<9x9xf32>
    %245 = math.exp %244 : vector<9x9xf32>
    %cst_104 = arith.constant dense<0.000000e+00> : vector<9xf32>
    %246 = vector.multi_reduction <add>, %245, %cst_104 [1] : vector<9x9xf32> to vector<9xf32>
    %247 = vector.shape_cast %246 : vector<9xf32> to vector<9x1xf32>
    %248 = tpu.reciprocal %247 {approx = true} : vector<9x1xf32> -> vector<9x1xf32>
    %249 = vector.broadcast %248 : vector<9x1xf32> to vector<9x9xf32>
    %250 = arith.mulf %245, %249 : vector<9x9xf32>
    %cst_105 = arith.constant dense<0.000000e+00> : vector<9x8xf32>
    %251 = tpu.matmul %250, %239, %cst_105 {dimension_numbers = #tpu.dot_dimension_numbers<[1], [0], [0], [1], [0, 0, 1, 1], [], []>} : vector<9x9xf32>, vector<9x8xf32>, vector<9x8xf32> -> vector<9x8xf32>
    %252 = vector.extract_strided_slice %233 {offsets = [0, 0], sizes = [8, 32], strides = [1, 1]} : vector<32x32xf32> to vector<8x32xf32>
    %cst_106 = arith.constant dense<0.000000e+00> : vector<9x32xf32>
    %253 = tpu.matmul %251, %252, %cst_106 {dimension_numbers = #tpu.dot_dimension_numbers<[1], [0], [0], [1], [0, 0, 1, 1], [], []>} : vector<9x8xf32>, vector<8x32xf32>, vector<9x32xf32> -> vector<9x32xf32>
    %254 = arith.addf %234, %253 : vector<9x32xf32>
    %255 = vector.extract_strided_slice %231 {offsets = [0, 8], sizes = [9, 8], strides = [1, 1]} : vector<9x96xf32> to vector<9x8xf32>
    %cst_107 = arith.constant 0.176776692 : f32
    %256 = vector.broadcast %cst_107 : f32 to vector<9x8xf32>
    %257 = arith.mulf %255, %256 : vector<9x8xf32>
    %258 = vector.extract_strided_slice %231 {offsets = [0, 40], sizes = [9, 8], strides = [1, 1]} : vector<9x96xf32> to vector<9x8xf32>
    %259 = vector.extract_strided_slice %231 {offsets = [0, 72], sizes = [9, 8], strides = [1, 1]} : vector<9x96xf32> to vector<9x8xf32>
    %cst_108 = arith.constant dense<0.000000e+00> : vector<9x9xf32>
    %260 = tpu.matmul %257, %258, %cst_108 {dimension_numbers = #tpu.dot_dimension_numbers<[1], [1], [0], [0], [0, 0, 1, 0], [], []>} : vector<9x8xf32>, vector<9x8xf32>, vector<9x9xf32> -> vector<9x9xf32>
    %cst_109 = arith.constant dense<0xFF800000> : vector<9xf32>
    %261 = vector.multi_reduction <maximumf>, %260, %cst_109 [1] : vector<9x9xf32> to vector<9xf32>
    %262 = vector.shape_cast %261 : vector<9xf32> to vector<9x1xf32>
    %263 = vector.broadcast %262 : vector<9x1xf32> to vector<9x9xf32>
    %264 = arith.subf %260, %263 : vector<9x9xf32>
    %265 = math.exp %264 : vector<9x9xf32>
    %cst_110 = arith.constant dense<0.000000e+00> : vector<9xf32>
    %266 = vector.multi_reduction <add>, %265, %cst_110 [1] : vector<9x9xf32> to vector<9xf32>
    %267 = vector.shape_cast %266 : vector<9xf32> to vector<9x1xf32>
    %268 = tpu.reciprocal %267 {approx = true} : vector<9x1xf32> -> vector<9x1xf32>
    %269 = vector.broadcast %268 : vector<9x1xf32> to vector<9x9xf32>
    %270 = arith.mulf %265, %269 : vector<9x9xf32>
    %cst_111 = arith.constant dense<0.000000e+00> : vector<9x8xf32>
    %271 = tpu.matmul %270, %259, %cst_111 {dimension_numbers = #tpu.dot_dimension_numbers<[1], [0], [0], [1], [0, 0, 1, 1], [], []>} : vector<9x9xf32>, vector<9x8xf32>, vector<9x8xf32> -> vector<9x8xf32>
    %272 = vector.extract_strided_slice %233 {offsets = [8, 0], sizes = [8, 32], strides = [1, 1]} : vector<32x32xf32> to vector<8x32xf32>
    %cst_112 = arith.constant dense<0.000000e+00> : vector<9x32xf32>
    %273 = tpu.matmul %271, %272, %cst_112 {dimension_numbers = #tpu.dot_dimension_numbers<[1], [0], [0], [1], [0, 0, 1, 1], [], []>} : vector<9x8xf32>, vector<8x32xf32>, vector<9x32xf32> -> vector<9x32xf32>
    %274 = arith.addf %254, %273 : vector<9x32xf32>
    %275 = vector.extract_strided_slice %231 {offsets = [0, 16], sizes = [9, 8], strides = [1, 1]} : vector<9x96xf32> to vector<9x8xf32>
    %cst_113 = arith.constant 0.176776692 : f32
    %276 = vector.broadcast %cst_113 : f32 to vector<9x8xf32>
    %277 = arith.mulf %275, %276 : vector<9x8xf32>
    %278 = vector.extract_strided_slice %231 {offsets = [0, 48], sizes = [9, 8], strides = [1, 1]} : vector<9x96xf32> to vector<9x8xf32>
    %279 = vector.extract_strided_slice %231 {offsets = [0, 80], sizes = [9, 8], strides = [1, 1]} : vector<9x96xf32> to vector<9x8xf32>
    %cst_114 = arith.constant dense<0.000000e+00> : vector<9x9xf32>
    %280 = tpu.matmul %277, %278, %cst_114 {dimension_numbers = #tpu.dot_dimension_numbers<[1], [1], [0], [0], [0, 0, 1, 0], [], []>} : vector<9x8xf32>, vector<9x8xf32>, vector<9x9xf32> -> vector<9x9xf32>
    %cst_115 = arith.constant dense<0xFF800000> : vector<9xf32>
    %281 = vector.multi_reduction <maximumf>, %280, %cst_115 [1] : vector<9x9xf32> to vector<9xf32>
    %282 = vector.shape_cast %281 : vector<9xf32> to vector<9x1xf32>
    %283 = vector.broadcast %282 : vector<9x1xf32> to vector<9x9xf32>
    %284 = arith.subf %280, %283 : vector<9x9xf32>
    %285 = math.exp %284 : vector<9x9xf32>
    %cst_116 = arith.constant dense<0.000000e+00> : vector<9xf32>
    %286 = vector.multi_reduction <add>, %285, %cst_116 [1] : vector<9x9xf32> to vector<9xf32>
    %287 = vector.shape_cast %286 : vector<9xf32> to vector<9x1xf32>
    %288 = tpu.reciprocal %287 {approx = true} : vector<9x1xf32> -> vector<9x1xf32>
    %289 = vector.broadcast %288 : vector<9x1xf32> to vector<9x9xf32>
    %290 = arith.mulf %285, %289 : vector<9x9xf32>
    %cst_117 = arith.constant dense<0.000000e+00> : vector<9x8xf32>
    %291 = tpu.matmul %290, %279, %cst_117 {dimension_numbers = #tpu.dot_dimension_numbers<[1], [0], [0], [1], [0, 0, 1, 1], [], []>} : vector<9x9xf32>, vector<9x8xf32>, vector<9x8xf32> -> vector<9x8xf32>
    %292 = vector.extract_strided_slice %233 {offsets = [16, 0], sizes = [8, 32], strides = [1, 1]} : vector<32x32xf32> to vector<8x32xf32>
    %cst_118 = arith.constant dense<0.000000e+00> : vector<9x32xf32>
    %293 = tpu.matmul %291, %292, %cst_118 {dimension_numbers = #tpu.dot_dimension_numbers<[1], [0], [0], [1], [0, 0, 1, 1], [], []>} : vector<9x8xf32>, vector<8x32xf32>, vector<9x32xf32> -> vector<9x32xf32>
    %294 = arith.addf %274, %293 : vector<9x32xf32>
    %295 = vector.extract_strided_slice %231 {offsets = [0, 24], sizes = [9, 8], strides = [1, 1]} : vector<9x96xf32> to vector<9x8xf32>
    %cst_119 = arith.constant 0.176776692 : f32
    %296 = vector.broadcast %cst_119 : f32 to vector<9x8xf32>
    %297 = arith.mulf %295, %296 : vector<9x8xf32>
    %298 = vector.extract_strided_slice %231 {offsets = [0, 56], sizes = [9, 8], strides = [1, 1]} : vector<9x96xf32> to vector<9x8xf32>
    %299 = vector.extract_strided_slice %231 {offsets = [0, 88], sizes = [9, 8], strides = [1, 1]} : vector<9x96xf32> to vector<9x8xf32>
    %cst_120 = arith.constant dense<0.000000e+00> : vector<9x9xf32>
    %300 = tpu.matmul %297, %298, %cst_120 {dimension_numbers = #tpu.dot_dimension_numbers<[1], [1], [0], [0], [0, 0, 1, 0], [], []>} : vector<9x8xf32>, vector<9x8xf32>, vector<9x9xf32> -> vector<9x9xf32>
    %cst_121 = arith.constant dense<0xFF800000> : vector<9xf32>
    %301 = vector.multi_reduction <maximumf>, %300, %cst_121 [1] : vector<9x9xf32> to vector<9xf32>
    %302 = vector.shape_cast %301 : vector<9xf32> to vector<9x1xf32>
    %303 = vector.broadcast %302 : vector<9x1xf32> to vector<9x9xf32>
    %304 = arith.subf %300, %303 : vector<9x9xf32>
    %305 = math.exp %304 : vector<9x9xf32>
    %cst_122 = arith.constant dense<0.000000e+00> : vector<9xf32>
    %306 = vector.multi_reduction <add>, %305, %cst_122 [1] : vector<9x9xf32> to vector<9xf32>
    %307 = vector.shape_cast %306 : vector<9xf32> to vector<9x1xf32>
    %308 = tpu.reciprocal %307 {approx = true} : vector<9x1xf32> -> vector<9x1xf32>
    %309 = vector.broadcast %308 : vector<9x1xf32> to vector<9x9xf32>
    %310 = arith.mulf %305, %309 : vector<9x9xf32>
    %cst_123 = arith.constant dense<0.000000e+00> : vector<9x8xf32>
    %311 = tpu.matmul %310, %299, %cst_123 {dimension_numbers = #tpu.dot_dimension_numbers<[1], [0], [0], [1], [0, 0, 1, 1], [], []>} : vector<9x9xf32>, vector<9x8xf32>, vector<9x8xf32> -> vector<9x8xf32>
    %312 = vector.extract_strided_slice %233 {offsets = [24, 0], sizes = [8, 32], strides = [1, 1]} : vector<32x32xf32> to vector<8x32xf32>
    %cst_124 = arith.constant dense<0.000000e+00> : vector<9x32xf32>
    %313 = tpu.matmul %311, %312, %cst_124 {dimension_numbers = #tpu.dot_dimension_numbers<[1], [0], [0], [1], [0, 0, 1, 1], [], []>} : vector<9x8xf32>, vector<8x32xf32>, vector<9x32xf32> -> vector<9x32xf32>
    %314 = arith.addf %294, %313 : vector<9x32xf32>
    %315 = arith.addf %314, %200 : vector<9x32xf32>
    %316 = vector.extract_strided_slice %202 {offsets = [1, 0], sizes = [1, 32], strides = [1, 1]} : vector<3x32xf32> to vector<1x32xf32>
    %317 = vector.extract_strided_slice %204 {offsets = [1, 0], sizes = [1, 32], strides = [1, 1]} : vector<3x32xf32> to vector<1x32xf32>
    %cst_125 = arith.constant dense<0.000000e+00> : vector<9xf32>
    %318 = vector.multi_reduction <add>, %315, %cst_125 [1] : vector<9x32xf32> to vector<9xf32>
    %319 = vector.shape_cast %318 : vector<9xf32> to vector<9x1xf32>
    %cst_126 = arith.constant 3.200000e+01 : f32
    %320 = vector.broadcast %cst_126 : f32 to vector<9x1xf32>
    %321 = arith.divf %319, %320 : vector<9x1xf32>
    %322 = vector.broadcast %321 : vector<9x1xf32> to vector<9x32xf32>
    %323 = arith.subf %315, %322 : vector<9x32xf32>
    %324 = arith.mulf %323, %323 : vector<9x32xf32>
    %cst_127 = arith.constant dense<0.000000e+00> : vector<9xf32>
    %325 = vector.multi_reduction <add>, %324, %cst_127 [1] : vector<9x32xf32> to vector<9xf32>
    %326 = vector.shape_cast %325 : vector<9xf32> to vector<9x1xf32>
    %cst_128 = arith.constant 3.200000e+01 : f32
    %327 = vector.broadcast %cst_128 : f32 to vector<9x1xf32>
    %328 = arith.divf %326, %327 : vector<9x1xf32>
    %329 = vector.broadcast %321 : vector<9x1xf32> to vector<9x32xf32>
    %330 = arith.subf %315, %329 : vector<9x32xf32>
    %cst_129 = arith.constant 9.99999974E-6 : f32
    %331 = vector.broadcast %cst_129 : f32 to vector<9x1xf32>
    %332 = arith.addf %328, %331 : vector<9x1xf32>
    %333 = math.rsqrt %332 : vector<9x1xf32>
    %334 = vector.broadcast %333 : vector<9x1xf32> to vector<9x32xf32>
    %335 = arith.mulf %330, %334 : vector<9x32xf32>
    %336 = vector.broadcast %316 : vector<1x32xf32> to vector<9x32xf32>
    %337 = arith.mulf %335, %336 : vector<9x32xf32>
    %338 = vector.broadcast %317 : vector<1x32xf32> to vector<9x32xf32>
    %339 = arith.addf %337, %338 : vector<9x32xf32>
    %c1_130 = arith.constant 1 : index
    %c0_131 = arith.constant 0 : index
    %c0_132 = arith.constant 0 : index
    %340 = vector.load %arg11[%c1_130, %c0_131, %c0_132] : memref<9x32x64xf32, #tpu.memory_space<vmem>>, vector<1x32x64xf32>
    %341 = vector.shape_cast %340 : vector<1x32x64xf32> to vector<32x64xf32>
    %cst_133 = arith.constant dense<0.000000e+00> : vector<9x64xf32>
    %342 = tpu.matmul %339, %341, %cst_133 {dimension_numbers = #tpu.dot_dimension_numbers<[1], [0], [0], [1], [0, 0, 1, 1], [], []>} : vector<9x32xf32>, vector<32x64xf32>, vector<9x64xf32> -> vector<9x64xf32>
    %c1_134 = arith.constant 1 : index
    %c0_135 = arith.constant 0 : index
    %c0_136 = arith.constant 0 : index
    %343 = vector.load %arg12[%c1_134, %c0_135, %c0_136] : memref<9x1x64xf32, #tpu.memory_space<vmem>>, vector<1x1x64xf32>
    %344 = vector.shape_cast %343 : vector<1x1x64xf32> to vector<1x64xf32>
    %345 = vector.broadcast %344 : vector<1x64xf32> to vector<9x64xf32>
    %346 = arith.addf %342, %345 : vector<9x64xf32>
    %cst_137 = arith.constant 5.000000e-01 : f32
    %347 = vector.broadcast %cst_137 : f32 to vector<9x64xf32>
    %348 = arith.mulf %347, %346 : vector<9x64xf32>
    %cst_138 = arith.constant 0.707106769 : f32
    %349 = vector.broadcast %cst_138 : f32 to vector<9x64xf32>
    %350 = arith.mulf %346, %349 : vector<9x64xf32>
    %cst_139 = arith.constant 0.000000e+00 : f32
    %351 = vector.broadcast %cst_139 : f32 to vector<9x64xf32>
    %352 = arith.cmpf oge, %350, %351 : vector<9x64xf32>
    %cst_140 = arith.constant 1.000000e+00 : f32
    %cst_141 = arith.constant -1.000000e+00 : f32
    %353 = vector.broadcast %cst_140 : f32 to vector<9x64xf32>
    %354 = vector.broadcast %cst_141 : f32 to vector<9x64xf32>
    %355 = arith.select %352, %353, %354 : vector<9x64xi1>, vector<9x64xf32>
    %356 = math.absf %350 : vector<9x64xf32>
    %cst_142 = arith.constant 0.327591091 : f32
    %357 = vector.broadcast %cst_142 : f32 to vector<9x64xf32>
    %358 = arith.mulf %357, %356 : vector<9x64xf32>
    %cst_143 = arith.constant 1.000000e+00 : f32
    %359 = vector.broadcast %cst_143 : f32 to vector<9x64xf32>
    %360 = arith.addf %359, %358 : vector<9x64xf32>
    %cst_144 = arith.constant 1.000000e+00 : f32
    %361 = vector.broadcast %cst_144 : f32 to vector<9x64xf32>
    %362 = arith.divf %361, %360 : vector<9x64xf32>
    %cst_145 = arith.constant 1.06140542 : f32
    %363 = vector.broadcast %cst_145 : f32 to vector<9x64xf32>
    %364 = arith.mulf %363, %362 : vector<9x64xf32>
    %cst_146 = arith.constant -1.45315206 : f32
    %365 = vector.broadcast %cst_146 : f32 to vector<9x64xf32>
    %366 = arith.addf %364, %365 : vector<9x64xf32>
    %367 = arith.mulf %366, %362 : vector<9x64xf32>
    %cst_147 = arith.constant 1.42141378 : f32
    %368 = vector.broadcast %cst_147 : f32 to vector<9x64xf32>
    %369 = arith.addf %367, %368 : vector<9x64xf32>
    %370 = arith.mulf %369, %362 : vector<9x64xf32>
    %cst_148 = arith.constant -0.284496725 : f32
    %371 = vector.broadcast %cst_148 : f32 to vector<9x64xf32>
    %372 = arith.addf %370, %371 : vector<9x64xf32>
    %373 = arith.mulf %372, %362 : vector<9x64xf32>
    %cst_149 = arith.constant 0.254829586 : f32
    %374 = vector.broadcast %cst_149 : f32 to vector<9x64xf32>
    %375 = arith.addf %373, %374 : vector<9x64xf32>
    %376 = arith.mulf %375, %362 : vector<9x64xf32>
    %cst_150 = arith.constant 0.000000e+00 : f32
    %377 = vector.broadcast %cst_150 : f32 to vector<9x64xf32>
    %378 = arith.subf %377, %356 : vector<9x64xf32>
    %379 = arith.mulf %378, %356 : vector<9x64xf32>
    %380 = math.exp %379 : vector<9x64xf32>
    %381 = arith.mulf %376, %380 : vector<9x64xf32>
    %cst_151 = arith.constant 1.000000e+00 : f32
    %382 = vector.broadcast %cst_151 : f32 to vector<9x64xf32>
    %383 = arith.subf %382, %381 : vector<9x64xf32>
    %384 = arith.mulf %355, %383 : vector<9x64xf32>
    %cst_152 = arith.constant 1.000000e+00 : f32
    %385 = vector.broadcast %cst_152 : f32 to vector<9x64xf32>
    %386 = arith.addf %385, %384 : vector<9x64xf32>
    %387 = arith.mulf %348, %386 : vector<9x64xf32>
    %c1_153 = arith.constant 1 : index
    %c0_154 = arith.constant 0 : index
    %c0_155 = arith.constant 0 : index
    %388 = vector.load %arg13[%c1_153, %c0_154, %c0_155] : memref<9x64x32xf32, #tpu.memory_space<vmem>>, vector<1x64x32xf32>
    %389 = vector.shape_cast %388 : vector<1x64x32xf32> to vector<64x32xf32>
    %cst_156 = arith.constant dense<0.000000e+00> : vector<9x32xf32>
    %390 = tpu.matmul %387, %389, %cst_156 {dimension_numbers = #tpu.dot_dimension_numbers<[1], [0], [0], [1], [0, 0, 1, 1], [], []>} : vector<9x64xf32>, vector<64x32xf32>, vector<9x32xf32> -> vector<9x32xf32>
    %c1_157 = arith.constant 1 : index
    %c0_158 = arith.constant 0 : index
    %c0_159 = arith.constant 0 : index
    %391 = vector.load %arg14[%c1_157, %c0_158, %c0_159] : memref<9x1x32xf32, #tpu.memory_space<vmem>>, vector<1x1x32xf32>
    %392 = vector.shape_cast %391 : vector<1x1x32xf32> to vector<1x32xf32>
    %393 = vector.broadcast %392 : vector<1x32xf32> to vector<9x32xf32>
    %394 = arith.addf %390, %393 : vector<9x32xf32>
    %395 = arith.addf %394, %315 : vector<9x32xf32>
    %c1_160 = arith.constant 1 : index
    %c0_161 = arith.constant 0 : index
    %396 = vector.load %arg3[%c1_160, %c0_161] : memref<2x32xf32, #tpu.memory_space<vmem>>, vector<1x32xf32>
    %c0_162 = arith.constant 0 : index
    %c0_163 = arith.constant 0 : index
    %c0_164 = arith.constant 0 : index
    %397 = vector.load %arg2[%c0_162, %c0_163, %c0_164] : memref<1x6x32xf32, #tpu.memory_space<vmem>>, vector<1x6x32xf32>
    %398 = vector.shape_cast %397 : vector<1x6x32xf32> to vector<6x32xf32>
    %399 = tpu.concatenate %396, %398 in 0 : vector<1x32xf32>, vector<6x32xf32> -> vector<7x32xf32>
    %c0_165 = arith.constant 0 : index
    %c0_166 = arith.constant 0 : index
    %400 = vector.load %arg5[%c0_165, %c0_166] : memref<7x32xf32, #tpu.memory_space<vmem>>, vector<7x32xf32>
    %401 = arith.addf %399, %400 : vector<7x32xf32>
    %c2 = arith.constant 2 : index
    %c0_167 = arith.constant 0 : index
    %c0_168 = arith.constant 0 : index
    %402 = vector.load %arg9[%c2, %c0_167, %c0_168] : memref<9x3x32xf32, #tpu.memory_space<vmem>>, vector<1x3x32xf32>
    %403 = vector.shape_cast %402 : vector<1x3x32xf32> to vector<3x32xf32>
    %c2_169 = arith.constant 2 : index
    %c0_170 = arith.constant 0 : index
    %c0_171 = arith.constant 0 : index
    %404 = vector.load %arg10[%c2_169, %c0_170, %c0_171] : memref<9x3x32xf32, #tpu.memory_space<vmem>>, vector<1x3x32xf32>
    %405 = vector.shape_cast %404 : vector<1x3x32xf32> to vector<3x32xf32>
    %406 = vector.extract_strided_slice %403 {offsets = [0, 0], sizes = [1, 32], strides = [1, 1]} : vector<3x32xf32> to vector<1x32xf32>
    %407 = vector.extract_strided_slice %405 {offsets = [0, 0], sizes = [1, 32], strides = [1, 1]} : vector<3x32xf32> to vector<1x32xf32>
    %cst_172 = arith.constant dense<0.000000e+00> : vector<7xf32>
    %408 = vector.multi_reduction <add>, %401, %cst_172 [1] : vector<7x32xf32> to vector<7xf32>
    %409 = vector.shape_cast %408 : vector<7xf32> to vector<7x1xf32>
    %cst_173 = arith.constant 3.200000e+01 : f32
    %410 = vector.broadcast %cst_173 : f32 to vector<7x1xf32>
    %411 = arith.divf %409, %410 : vector<7x1xf32>
    %412 = vector.broadcast %411 : vector<7x1xf32> to vector<7x32xf32>
    %413 = arith.subf %401, %412 : vector<7x32xf32>
    %414 = arith.mulf %413, %413 : vector<7x32xf32>
    %cst_174 = arith.constant dense<0.000000e+00> : vector<7xf32>
    %415 = vector.multi_reduction <add>, %414, %cst_174 [1] : vector<7x32xf32> to vector<7xf32>
    %416 = vector.shape_cast %415 : vector<7xf32> to vector<7x1xf32>
    %cst_175 = arith.constant 3.200000e+01 : f32
    %417 = vector.broadcast %cst_175 : f32 to vector<7x1xf32>
    %418 = arith.divf %416, %417 : vector<7x1xf32>
    %419 = vector.broadcast %411 : vector<7x1xf32> to vector<7x32xf32>
    %420 = arith.subf %401, %419 : vector<7x32xf32>
    %cst_176 = arith.constant 9.99999974E-6 : f32
    %421 = vector.broadcast %cst_176 : f32 to vector<7x1xf32>
    %422 = arith.addf %418, %421 : vector<7x1xf32>
    %423 = math.rsqrt %422 : vector<7x1xf32>
    %424 = vector.broadcast %423 : vector<7x1xf32> to vector<7x32xf32>
    %425 = arith.mulf %420, %424 : vector<7x32xf32>
    %426 = vector.broadcast %406 : vector<1x32xf32> to vector<7x32xf32>
    %427 = arith.mulf %425, %426 : vector<7x32xf32>
    %428 = vector.broadcast %407 : vector<1x32xf32> to vector<7x32xf32>
    %429 = arith.addf %427, %428 : vector<7x32xf32>
    %c2_177 = arith.constant 2 : index
    %c0_178 = arith.constant 0 : index
    %c0_179 = arith.constant 0 : index
    %430 = vector.load %arg7[%c2_177, %c0_178, %c0_179] : memref<9x32x96xf32, #tpu.memory_space<vmem>>, vector<1x32x96xf32>
    %431 = vector.shape_cast %430 : vector<1x32x96xf32> to vector<32x96xf32>
    %cst_180 = arith.constant dense<0.000000e+00> : vector<7x96xf32>
    %432 = tpu.matmul %429, %431, %cst_180 {dimension_numbers = #tpu.dot_dimension_numbers<[1], [0], [0], [1], [0, 0, 1, 1], [], []>} : vector<7x32xf32>, vector<32x96xf32>, vector<7x96xf32> -> vector<7x96xf32>
    %c2_181 = arith.constant 2 : index
    %c0_182 = arith.constant 0 : index
    %c0_183 = arith.constant 0 : index
    %433 = vector.load %arg8[%c2_181, %c0_182, %c0_183] : memref<9x32x32xf32, #tpu.memory_space<vmem>>, vector<1x32x32xf32>
    %434 = vector.shape_cast %433 : vector<1x32x32xf32> to vector<32x32xf32>
    %cst_184 = arith.constant 0.000000e+00 : f32
    %435 = vector.broadcast %cst_184 : f32 to vector<7x32xf32>
    %436 = vector.extract_strided_slice %432 {offsets = [0, 0], sizes = [7, 8], strides = [1, 1]} : vector<7x96xf32> to vector<7x8xf32>
    %cst_185 = arith.constant 0.176776692 : f32
    %437 = vector.broadcast %cst_185 : f32 to vector<7x8xf32>
    %438 = arith.mulf %436, %437 : vector<7x8xf32>
    %439 = vector.extract_strided_slice %432 {offsets = [0, 32], sizes = [7, 8], strides = [1, 1]} : vector<7x96xf32> to vector<7x8xf32>
    %440 = vector.extract_strided_slice %432 {offsets = [0, 64], sizes = [7, 8], strides = [1, 1]} : vector<7x96xf32> to vector<7x8xf32>
    %cst_186 = arith.constant dense<0.000000e+00> : vector<7x7xf32>
    %441 = tpu.matmul %438, %439, %cst_186 {dimension_numbers = #tpu.dot_dimension_numbers<[1], [1], [0], [0], [0, 0, 1, 0], [], []>} : vector<7x8xf32>, vector<7x8xf32>, vector<7x7xf32> -> vector<7x7xf32>
    %cst_187 = arith.constant dense<0xFF800000> : vector<7xf32>
    %442 = vector.multi_reduction <maximumf>, %441, %cst_187 [1] : vector<7x7xf32> to vector<7xf32>
    %443 = vector.shape_cast %442 : vector<7xf32> to vector<7x1xf32>
    %444 = vector.broadcast %443 : vector<7x1xf32> to vector<7x7xf32>
    %445 = arith.subf %441, %444 : vector<7x7xf32>
    %446 = math.exp %445 : vector<7x7xf32>
    %cst_188 = arith.constant dense<0.000000e+00> : vector<7xf32>
    %447 = vector.multi_reduction <add>, %446, %cst_188 [1] : vector<7x7xf32> to vector<7xf32>
    %448 = vector.shape_cast %447 : vector<7xf32> to vector<7x1xf32>
    %449 = tpu.reciprocal %448 {approx = true} : vector<7x1xf32> -> vector<7x1xf32>
    %450 = vector.broadcast %449 : vector<7x1xf32> to vector<7x7xf32>
    %451 = arith.mulf %446, %450 : vector<7x7xf32>
    %cst_189 = arith.constant dense<0.000000e+00> : vector<7x8xf32>
    %452 = tpu.matmul %451, %440, %cst_189 {dimension_numbers = #tpu.dot_dimension_numbers<[1], [0], [0], [1], [0, 0, 1, 1], [], []>} : vector<7x7xf32>, vector<7x8xf32>, vector<7x8xf32> -> vector<7x8xf32>
    %453 = vector.extract_strided_slice %434 {offsets = [0, 0], sizes = [8, 32], strides = [1, 1]} : vector<32x32xf32> to vector<8x32xf32>
    %cst_190 = arith.constant dense<0.000000e+00> : vector<7x32xf32>
    %454 = tpu.matmul %452, %453, %cst_190 {dimension_numbers = #tpu.dot_dimension_numbers<[1], [0], [0], [1], [0, 0, 1, 1], [], []>} : vector<7x8xf32>, vector<8x32xf32>, vector<7x32xf32> -> vector<7x32xf32>
    %455 = arith.addf %435, %454 : vector<7x32xf32>
    %456 = vector.extract_strided_slice %432 {offsets = [0, 8], sizes = [7, 8], strides = [1, 1]} : vector<7x96xf32> to vector<7x8xf32>
    %cst_191 = arith.constant 0.176776692 : f32
    %457 = vector.broadcast %cst_191 : f32 to vector<7x8xf32>
    %458 = arith.mulf %456, %457 : vector<7x8xf32>
    %459 = vector.extract_strided_slice %432 {offsets = [0, 40], sizes = [7, 8], strides = [1, 1]} : vector<7x96xf32> to vector<7x8xf32>
    %460 = vector.extract_strided_slice %432 {offsets = [0, 72], sizes = [7, 8], strides = [1, 1]} : vector<7x96xf32> to vector<7x8xf32>
    %cst_192 = arith.constant dense<0.000000e+00> : vector<7x7xf32>
    %461 = tpu.matmul %458, %459, %cst_192 {dimension_numbers = #tpu.dot_dimension_numbers<[1], [1], [0], [0], [0, 0, 1, 0], [], []>} : vector<7x8xf32>, vector<7x8xf32>, vector<7x7xf32> -> vector<7x7xf32>
    %cst_193 = arith.constant dense<0xFF800000> : vector<7xf32>
    %462 = vector.multi_reduction <maximumf>, %461, %cst_193 [1] : vector<7x7xf32> to vector<7xf32>
    %463 = vector.shape_cast %462 : vector<7xf32> to vector<7x1xf32>
    %464 = vector.broadcast %463 : vector<7x1xf32> to vector<7x7xf32>
    %465 = arith.subf %461, %464 : vector<7x7xf32>
    %466 = math.exp %465 : vector<7x7xf32>
    %cst_194 = arith.constant dense<0.000000e+00> : vector<7xf32>
    %467 = vector.multi_reduction <add>, %466, %cst_194 [1] : vector<7x7xf32> to vector<7xf32>
    %468 = vector.shape_cast %467 : vector<7xf32> to vector<7x1xf32>
    %469 = tpu.reciprocal %468 {approx = true} : vector<7x1xf32> -> vector<7x1xf32>
    %470 = vector.broadcast %469 : vector<7x1xf32> to vector<7x7xf32>
    %471 = arith.mulf %466, %470 : vector<7x7xf32>
    %cst_195 = arith.constant dense<0.000000e+00> : vector<7x8xf32>
    %472 = tpu.matmul %471, %460, %cst_195 {dimension_numbers = #tpu.dot_dimension_numbers<[1], [0], [0], [1], [0, 0, 1, 1], [], []>} : vector<7x7xf32>, vector<7x8xf32>, vector<7x8xf32> -> vector<7x8xf32>
    %473 = vector.extract_strided_slice %434 {offsets = [8, 0], sizes = [8, 32], strides = [1, 1]} : vector<32x32xf32> to vector<8x32xf32>
    %cst_196 = arith.constant dense<0.000000e+00> : vector<7x32xf32>
    %474 = tpu.matmul %472, %473, %cst_196 {dimension_numbers = #tpu.dot_dimension_numbers<[1], [0], [0], [1], [0, 0, 1, 1], [], []>} : vector<7x8xf32>, vector<8x32xf32>, vector<7x32xf32> -> vector<7x32xf32>
    %475 = arith.addf %455, %474 : vector<7x32xf32>
    %476 = vector.extract_strided_slice %432 {offsets = [0, 16], sizes = [7, 8], strides = [1, 1]} : vector<7x96xf32> to vector<7x8xf32>
    %cst_197 = arith.constant 0.176776692 : f32
    %477 = vector.broadcast %cst_197 : f32 to vector<7x8xf32>
    %478 = arith.mulf %476, %477 : vector<7x8xf32>
    %479 = vector.extract_strided_slice %432 {offsets = [0, 48], sizes = [7, 8], strides = [1, 1]} : vector<7x96xf32> to vector<7x8xf32>
    %480 = vector.extract_strided_slice %432 {offsets = [0, 80], sizes = [7, 8], strides = [1, 1]} : vector<7x96xf32> to vector<7x8xf32>
    %cst_198 = arith.constant dense<0.000000e+00> : vector<7x7xf32>
    %481 = tpu.matmul %478, %479, %cst_198 {dimension_numbers = #tpu.dot_dimension_numbers<[1], [1], [0], [0], [0, 0, 1, 0], [], []>} : vector<7x8xf32>, vector<7x8xf32>, vector<7x7xf32> -> vector<7x7xf32>
    %cst_199 = arith.constant dense<0xFF800000> : vector<7xf32>
    %482 = vector.multi_reduction <maximumf>, %481, %cst_199 [1] : vector<7x7xf32> to vector<7xf32>
    %483 = vector.shape_cast %482 : vector<7xf32> to vector<7x1xf32>
    %484 = vector.broadcast %483 : vector<7x1xf32> to vector<7x7xf32>
    %485 = arith.subf %481, %484 : vector<7x7xf32>
    %486 = math.exp %485 : vector<7x7xf32>
    %cst_200 = arith.constant dense<0.000000e+00> : vector<7xf32>
    %487 = vector.multi_reduction <add>, %486, %cst_200 [1] : vector<7x7xf32> to vector<7xf32>
    %488 = vector.shape_cast %487 : vector<7xf32> to vector<7x1xf32>
    %489 = tpu.reciprocal %488 {approx = true} : vector<7x1xf32> -> vector<7x1xf32>
    %490 = vector.broadcast %489 : vector<7x1xf32> to vector<7x7xf32>
    %491 = arith.mulf %486, %490 : vector<7x7xf32>
    %cst_201 = arith.constant dense<0.000000e+00> : vector<7x8xf32>
    %492 = tpu.matmul %491, %480, %cst_201 {dimension_numbers = #tpu.dot_dimension_numbers<[1], [0], [0], [1], [0, 0, 1, 1], [], []>} : vector<7x7xf32>, vector<7x8xf32>, vector<7x8xf32> -> vector<7x8xf32>
    %493 = vector.extract_strided_slice %434 {offsets = [16, 0], sizes = [8, 32], strides = [1, 1]} : vector<32x32xf32> to vector<8x32xf32>
    %cst_202 = arith.constant dense<0.000000e+00> : vector<7x32xf32>
    %494 = tpu.matmul %492, %493, %cst_202 {dimension_numbers = #tpu.dot_dimension_numbers<[1], [0], [0], [1], [0, 0, 1, 1], [], []>} : vector<7x8xf32>, vector<8x32xf32>, vector<7x32xf32> -> vector<7x32xf32>
    %495 = arith.addf %475, %494 : vector<7x32xf32>
    %496 = vector.extract_strided_slice %432 {offsets = [0, 24], sizes = [7, 8], strides = [1, 1]} : vector<7x96xf32> to vector<7x8xf32>
    %cst_203 = arith.constant 0.176776692 : f32
    %497 = vector.broadcast %cst_203 : f32 to vector<7x8xf32>
    %498 = arith.mulf %496, %497 : vector<7x8xf32>
    %499 = vector.extract_strided_slice %432 {offsets = [0, 56], sizes = [7, 8], strides = [1, 1]} : vector<7x96xf32> to vector<7x8xf32>
    %500 = vector.extract_strided_slice %432 {offsets = [0, 88], sizes = [7, 8], strides = [1, 1]} : vector<7x96xf32> to vector<7x8xf32>
    %cst_204 = arith.constant dense<0.000000e+00> : vector<7x7xf32>
    %501 = tpu.matmul %498, %499, %cst_204 {dimension_numbers = #tpu.dot_dimension_numbers<[1], [1], [0], [0], [0, 0, 1, 0], [], []>} : vector<7x8xf32>, vector<7x8xf32>, vector<7x7xf32> -> vector<7x7xf32>
    %cst_205 = arith.constant dense<0xFF800000> : vector<7xf32>
    %502 = vector.multi_reduction <maximumf>, %501, %cst_205 [1] : vector<7x7xf32> to vector<7xf32>
    %503 = vector.shape_cast %502 : vector<7xf32> to vector<7x1xf32>
    %504 = vector.broadcast %503 : vector<7x1xf32> to vector<7x7xf32>
    %505 = arith.subf %501, %504 : vector<7x7xf32>
    %506 = math.exp %505 : vector<7x7xf32>
    %cst_206 = arith.constant dense<0.000000e+00> : vector<7xf32>
    %507 = vector.multi_reduction <add>, %506, %cst_206 [1] : vector<7x7xf32> to vector<7xf32>
    %508 = vector.shape_cast %507 : vector<7xf32> to vector<7x1xf32>
    %509 = tpu.reciprocal %508 {approx = true} : vector<7x1xf32> -> vector<7x1xf32>
    %510 = vector.broadcast %509 : vector<7x1xf32> to vector<7x7xf32>
    %511 = arith.mulf %506, %510 : vector<7x7xf32>
    %cst_207 = arith.constant dense<0.000000e+00> : vector<7x8xf32>
    %512 = tpu.matmul %511, %500, %cst_207 {dimension_numbers = #tpu.dot_dimension_numbers<[1], [0], [0], [1], [0, 0, 1, 1], [], []>} : vector<7x7xf32>, vector<7x8xf32>, vector<7x8xf32> -> vector<7x8xf32>
    %513 = vector.extract_strided_slice %434 {offsets = [24, 0], sizes = [8, 32], strides = [1, 1]} : vector<32x32xf32> to vector<8x32xf32>
    %cst_208 = arith.constant dense<0.000000e+00> : vector<7x32xf32>
    %514 = tpu.matmul %512, %513, %cst_208 {dimension_numbers = #tpu.dot_dimension_numbers<[1], [0], [0], [1], [0, 0, 1, 1], [], []>} : vector<7x8xf32>, vector<8x32xf32>, vector<7x32xf32> -> vector<7x32xf32>
    %515 = arith.addf %495, %514 : vector<7x32xf32>
    %516 = arith.addf %515, %401 : vector<7x32xf32>
    %517 = vector.extract_strided_slice %403 {offsets = [1, 0], sizes = [1, 32], strides = [1, 1]} : vector<3x32xf32> to vector<1x32xf32>
    %518 = vector.extract_strided_slice %405 {offsets = [1, 0], sizes = [1, 32], strides = [1, 1]} : vector<3x32xf32> to vector<1x32xf32>
    %cst_209 = arith.constant dense<0.000000e+00> : vector<7xf32>
    %519 = vector.multi_reduction <add>, %516, %cst_209 [1] : vector<7x32xf32> to vector<7xf32>
    %520 = vector.shape_cast %519 : vector<7xf32> to vector<7x1xf32>
    %cst_210 = arith.constant 3.200000e+01 : f32
    %521 = vector.broadcast %cst_210 : f32 to vector<7x1xf32>
    %522 = arith.divf %520, %521 : vector<7x1xf32>
    %523 = vector.broadcast %522 : vector<7x1xf32> to vector<7x32xf32>
    %524 = arith.subf %516, %523 : vector<7x32xf32>
    %525 = arith.mulf %524, %524 : vector<7x32xf32>
    %cst_211 = arith.constant dense<0.000000e+00> : vector<7xf32>
    %526 = vector.multi_reduction <add>, %525, %cst_211 [1] : vector<7x32xf32> to vector<7xf32>
    %527 = vector.shape_cast %526 : vector<7xf32> to vector<7x1xf32>
    %cst_212 = arith.constant 3.200000e+01 : f32
    %528 = vector.broadcast %cst_212 : f32 to vector<7x1xf32>
    %529 = arith.divf %527, %528 : vector<7x1xf32>
    %530 = vector.broadcast %522 : vector<7x1xf32> to vector<7x32xf32>
    %531 = arith.subf %516, %530 : vector<7x32xf32>
    %cst_213 = arith.constant 9.99999974E-6 : f32
    %532 = vector.broadcast %cst_213 : f32 to vector<7x1xf32>
    %533 = arith.addf %529, %532 : vector<7x1xf32>
    %534 = math.rsqrt %533 : vector<7x1xf32>
    %535 = vector.broadcast %534 : vector<7x1xf32> to vector<7x32xf32>
    %536 = arith.mulf %531, %535 : vector<7x32xf32>
    %537 = vector.broadcast %517 : vector<1x32xf32> to vector<7x32xf32>
    %538 = arith.mulf %536, %537 : vector<7x32xf32>
    %539 = vector.broadcast %518 : vector<1x32xf32> to vector<7x32xf32>
    %540 = arith.addf %538, %539 : vector<7x32xf32>
    %c2_214 = arith.constant 2 : index
    %c0_215 = arith.constant 0 : index
    %c0_216 = arith.constant 0 : index
    %541 = vector.load %arg11[%c2_214, %c0_215, %c0_216] : memref<9x32x64xf32, #tpu.memory_space<vmem>>, vector<1x32x64xf32>
    %542 = vector.shape_cast %541 : vector<1x32x64xf32> to vector<32x64xf32>
    %cst_217 = arith.constant dense<0.000000e+00> : vector<7x64xf32>
    %543 = tpu.matmul %540, %542, %cst_217 {dimension_numbers = #tpu.dot_dimension_numbers<[1], [0], [0], [1], [0, 0, 1, 1], [], []>} : vector<7x32xf32>, vector<32x64xf32>, vector<7x64xf32> -> vector<7x64xf32>
    %c2_218 = arith.constant 2 : index
    %c0_219 = arith.constant 0 : index
    %c0_220 = arith.constant 0 : index
    %544 = vector.load %arg12[%c2_218, %c0_219, %c0_220] : memref<9x1x64xf32, #tpu.memory_space<vmem>>, vector<1x1x64xf32>
    %545 = vector.shape_cast %544 : vector<1x1x64xf32> to vector<1x64xf32>
    %546 = vector.broadcast %545 : vector<1x64xf32> to vector<7x64xf32>
    %547 = arith.addf %543, %546 : vector<7x64xf32>
    %cst_221 = arith.constant 5.000000e-01 : f32
    %548 = vector.broadcast %cst_221 : f32 to vector<7x64xf32>
    %549 = arith.mulf %548, %547 : vector<7x64xf32>
    %cst_222 = arith.constant 0.707106769 : f32
    %550 = vector.broadcast %cst_222 : f32 to vector<7x64xf32>
    %551 = arith.mulf %547, %550 : vector<7x64xf32>
    %cst_223 = arith.constant 0.000000e+00 : f32
    %552 = vector.broadcast %cst_223 : f32 to vector<7x64xf32>
    %553 = arith.cmpf oge, %551, %552 : vector<7x64xf32>
    %cst_224 = arith.constant 1.000000e+00 : f32
    %cst_225 = arith.constant -1.000000e+00 : f32
    %554 = vector.broadcast %cst_224 : f32 to vector<7x64xf32>
    %555 = vector.broadcast %cst_225 : f32 to vector<7x64xf32>
    %556 = arith.select %553, %554, %555 : vector<7x64xi1>, vector<7x64xf32>
    %557 = math.absf %551 : vector<7x64xf32>
    %cst_226 = arith.constant 0.327591091 : f32
    %558 = vector.broadcast %cst_226 : f32 to vector<7x64xf32>
    %559 = arith.mulf %558, %557 : vector<7x64xf32>
    %cst_227 = arith.constant 1.000000e+00 : f32
    %560 = vector.broadcast %cst_227 : f32 to vector<7x64xf32>
    %561 = arith.addf %560, %559 : vector<7x64xf32>
    %cst_228 = arith.constant 1.000000e+00 : f32
    %562 = vector.broadcast %cst_228 : f32 to vector<7x64xf32>
    %563 = arith.divf %562, %561 : vector<7x64xf32>
    %cst_229 = arith.constant 1.06140542 : f32
    %564 = vector.broadcast %cst_229 : f32 to vector<7x64xf32>
    %565 = arith.mulf %564, %563 : vector<7x64xf32>
    %cst_230 = arith.constant -1.45315206 : f32
    %566 = vector.broadcast %cst_230 : f32 to vector<7x64xf32>
    %567 = arith.addf %565, %566 : vector<7x64xf32>
    %568 = arith.mulf %567, %563 : vector<7x64xf32>
    %cst_231 = arith.constant 1.42141378 : f32
    %569 = vector.broadcast %cst_231 : f32 to vector<7x64xf32>
    %570 = arith.addf %568, %569 : vector<7x64xf32>
    %571 = arith.mulf %570, %563 : vector<7x64xf32>
    %cst_232 = arith.constant -0.284496725 : f32
    %572 = vector.broadcast %cst_232 : f32 to vector<7x64xf32>
    %573 = arith.addf %571, %572 : vector<7x64xf32>
    %574 = arith.mulf %573, %563 : vector<7x64xf32>
    %cst_233 = arith.constant 0.254829586 : f32
    %575 = vector.broadcast %cst_233 : f32 to vector<7x64xf32>
    %576 = arith.addf %574, %575 : vector<7x64xf32>
    %577 = arith.mulf %576, %563 : vector<7x64xf32>
    %cst_234 = arith.constant 0.000000e+00 : f32
    %578 = vector.broadcast %cst_234 : f32 to vector<7x64xf32>
    %579 = arith.subf %578, %557 : vector<7x64xf32>
    %580 = arith.mulf %579, %557 : vector<7x64xf32>
    %581 = math.exp %580 : vector<7x64xf32>
    %582 = arith.mulf %577, %581 : vector<7x64xf32>
    %cst_235 = arith.constant 1.000000e+00 : f32
    %583 = vector.broadcast %cst_235 : f32 to vector<7x64xf32>
    %584 = arith.subf %583, %582 : vector<7x64xf32>
    %585 = arith.mulf %556, %584 : vector<7x64xf32>
    %cst_236 = arith.constant 1.000000e+00 : f32
    %586 = vector.broadcast %cst_236 : f32 to vector<7x64xf32>
    %587 = arith.addf %586, %585 : vector<7x64xf32>
    %588 = arith.mulf %549, %587 : vector<7x64xf32>
    %c2_237 = arith.constant 2 : index
    %c0_238 = arith.constant 0 : index
    %c0_239 = arith.constant 0 : index
    %589 = vector.load %arg13[%c2_237, %c0_238, %c0_239] : memref<9x64x32xf32, #tpu.memory_space<vmem>>, vector<1x64x32xf32>
    %590 = vector.shape_cast %589 : vector<1x64x32xf32> to vector<64x32xf32>
    %cst_240 = arith.constant dense<0.000000e+00> : vector<7x32xf32>
    %591 = tpu.matmul %588, %590, %cst_240 {dimension_numbers = #tpu.dot_dimension_numbers<[1], [0], [0], [1], [0, 0, 1, 1], [], []>} : vector<7x64xf32>, vector<64x32xf32>, vector<7x32xf32> -> vector<7x32xf32>
    %c2_241 = arith.constant 2 : index
    %c0_242 = arith.constant 0 : index
    %c0_243 = arith.constant 0 : index
    %592 = vector.load %arg14[%c2_241, %c0_242, %c0_243] : memref<9x1x32xf32, #tpu.memory_space<vmem>>, vector<1x1x32xf32>
    %593 = vector.shape_cast %592 : vector<1x1x32xf32> to vector<1x32xf32>
    %594 = vector.broadcast %593 : vector<1x32xf32> to vector<7x32xf32>
    %595 = arith.addf %591, %594 : vector<7x32xf32>
    %596 = arith.addf %595, %516 : vector<7x32xf32>
    %c3 = arith.constant 3 : index
    %c0_244 = arith.constant 0 : index
    %c0_245 = arith.constant 0 : index
    %597 = vector.load %arg9[%c3, %c0_244, %c0_245] : memref<9x3x32xf32, #tpu.memory_space<vmem>>, vector<1x3x32xf32>
    %598 = vector.shape_cast %597 : vector<1x3x32xf32> to vector<3x32xf32>
    %c3_246 = arith.constant 3 : index
    %c0_247 = arith.constant 0 : index
    %c0_248 = arith.constant 0 : index
    %599 = vector.load %arg10[%c3_246, %c0_247, %c0_248] : memref<9x3x32xf32, #tpu.memory_space<vmem>>, vector<1x3x32xf32>
    %600 = vector.shape_cast %599 : vector<1x3x32xf32> to vector<3x32xf32>
    %601 = vector.extract_strided_slice %598 {offsets = [0, 0], sizes = [1, 32], strides = [1, 1]} : vector<3x32xf32> to vector<1x32xf32>
    %602 = vector.extract_strided_slice %600 {offsets = [0, 0], sizes = [1, 32], strides = [1, 1]} : vector<3x32xf32> to vector<1x32xf32>
    %cst_249 = arith.constant dense<0.000000e+00> : vector<7xf32>
    %603 = vector.multi_reduction <add>, %596, %cst_249 [1] : vector<7x32xf32> to vector<7xf32>
    %604 = vector.shape_cast %603 : vector<7xf32> to vector<7x1xf32>
    %cst_250 = arith.constant 3.200000e+01 : f32
    %605 = vector.broadcast %cst_250 : f32 to vector<7x1xf32>
    %606 = arith.divf %604, %605 : vector<7x1xf32>
    %607 = vector.broadcast %606 : vector<7x1xf32> to vector<7x32xf32>
    %608 = arith.subf %596, %607 : vector<7x32xf32>
    %609 = arith.mulf %608, %608 : vector<7x32xf32>
    %cst_251 = arith.constant dense<0.000000e+00> : vector<7xf32>
    %610 = vector.multi_reduction <add>, %609, %cst_251 [1] : vector<7x32xf32> to vector<7xf32>
    %611 = vector.shape_cast %610 : vector<7xf32> to vector<7x1xf32>
    %cst_252 = arith.constant 3.200000e+01 : f32
    %612 = vector.broadcast %cst_252 : f32 to vector<7x1xf32>
    %613 = arith.divf %611, %612 : vector<7x1xf32>
    %614 = vector.broadcast %606 : vector<7x1xf32> to vector<7x32xf32>
    %615 = arith.subf %596, %614 : vector<7x32xf32>
    %cst_253 = arith.constant 9.99999974E-6 : f32
    %616 = vector.broadcast %cst_253 : f32 to vector<7x1xf32>
    %617 = arith.addf %613, %616 : vector<7x1xf32>
    %618 = math.rsqrt %617 : vector<7x1xf32>
    %619 = vector.broadcast %618 : vector<7x1xf32> to vector<7x32xf32>
    %620 = arith.mulf %615, %619 : vector<7x32xf32>
    %621 = vector.broadcast %601 : vector<1x32xf32> to vector<7x32xf32>
    %622 = arith.mulf %620, %621 : vector<7x32xf32>
    %623 = vector.broadcast %602 : vector<1x32xf32> to vector<7x32xf32>
    %624 = arith.addf %622, %623 : vector<7x32xf32>
    %c3_254 = arith.constant 3 : index
    %c0_255 = arith.constant 0 : index
    %c0_256 = arith.constant 0 : index
    %625 = vector.load %arg7[%c3_254, %c0_255, %c0_256] : memref<9x32x96xf32, #tpu.memory_space<vmem>>, vector<1x32x96xf32>
    %626 = vector.shape_cast %625 : vector<1x32x96xf32> to vector<32x96xf32>
    %cst_257 = arith.constant dense<0.000000e+00> : vector<7x96xf32>
    %627 = tpu.matmul %624, %626, %cst_257 {dimension_numbers = #tpu.dot_dimension_numbers<[1], [0], [0], [1], [0, 0, 1, 1], [], []>} : vector<7x32xf32>, vector<32x96xf32>, vector<7x96xf32> -> vector<7x96xf32>
    %c3_258 = arith.constant 3 : index
    %c0_259 = arith.constant 0 : index
    %c0_260 = arith.constant 0 : index
    %628 = vector.load %arg8[%c3_258, %c0_259, %c0_260] : memref<9x32x32xf32, #tpu.memory_space<vmem>>, vector<1x32x32xf32>
    %629 = vector.shape_cast %628 : vector<1x32x32xf32> to vector<32x32xf32>
    %cst_261 = arith.constant 0.000000e+00 : f32
    %630 = vector.broadcast %cst_261 : f32 to vector<7x32xf32>
    %631 = vector.extract_strided_slice %627 {offsets = [0, 0], sizes = [7, 8], strides = [1, 1]} : vector<7x96xf32> to vector<7x8xf32>
    %cst_262 = arith.constant 0.176776692 : f32
    %632 = vector.broadcast %cst_262 : f32 to vector<7x8xf32>
    %633 = arith.mulf %631, %632 : vector<7x8xf32>
    %634 = vector.extract_strided_slice %627 {offsets = [0, 32], sizes = [7, 8], strides = [1, 1]} : vector<7x96xf32> to vector<7x8xf32>
    %635 = vector.extract_strided_slice %627 {offsets = [0, 64], sizes = [7, 8], strides = [1, 1]} : vector<7x96xf32> to vector<7x8xf32>
    %cst_263 = arith.constant dense<0.000000e+00> : vector<7x7xf32>
    %636 = tpu.matmul %633, %634, %cst_263 {dimension_numbers = #tpu.dot_dimension_numbers<[1], [1], [0], [0], [0, 0, 1, 0], [], []>} : vector<7x8xf32>, vector<7x8xf32>, vector<7x7xf32> -> vector<7x7xf32>
    %cst_264 = arith.constant dense<0xFF800000> : vector<7xf32>
    %637 = vector.multi_reduction <maximumf>, %636, %cst_264 [1] : vector<7x7xf32> to vector<7xf32>
    %638 = vector.shape_cast %637 : vector<7xf32> to vector<7x1xf32>
    %639 = vector.broadcast %638 : vector<7x1xf32> to vector<7x7xf32>
    %640 = arith.subf %636, %639 : vector<7x7xf32>
    %641 = math.exp %640 : vector<7x7xf32>
    %cst_265 = arith.constant dense<0.000000e+00> : vector<7xf32>
    %642 = vector.multi_reduction <add>, %641, %cst_265 [1] : vector<7x7xf32> to vector<7xf32>
    %643 = vector.shape_cast %642 : vector<7xf32> to vector<7x1xf32>
    %644 = tpu.reciprocal %643 {approx = true} : vector<7x1xf32> -> vector<7x1xf32>
    %645 = vector.broadcast %644 : vector<7x1xf32> to vector<7x7xf32>
    %646 = arith.mulf %641, %645 : vector<7x7xf32>
    %cst_266 = arith.constant dense<0.000000e+00> : vector<7x8xf32>
    %647 = tpu.matmul %646, %635, %cst_266 {dimension_numbers = #tpu.dot_dimension_numbers<[1], [0], [0], [1], [0, 0, 1, 1], [], []>} : vector<7x7xf32>, vector<7x8xf32>, vector<7x8xf32> -> vector<7x8xf32>
    %648 = vector.extract_strided_slice %629 {offsets = [0, 0], sizes = [8, 32], strides = [1, 1]} : vector<32x32xf32> to vector<8x32xf32>
    %cst_267 = arith.constant dense<0.000000e+00> : vector<7x32xf32>
    %649 = tpu.matmul %647, %648, %cst_267 {dimension_numbers = #tpu.dot_dimension_numbers<[1], [0], [0], [1], [0, 0, 1, 1], [], []>} : vector<7x8xf32>, vector<8x32xf32>, vector<7x32xf32> -> vector<7x32xf32>
    %650 = arith.addf %630, %649 : vector<7x32xf32>
    %651 = vector.extract_strided_slice %627 {offsets = [0, 8], sizes = [7, 8], strides = [1, 1]} : vector<7x96xf32> to vector<7x8xf32>
    %cst_268 = arith.constant 0.176776692 : f32
    %652 = vector.broadcast %cst_268 : f32 to vector<7x8xf32>
    %653 = arith.mulf %651, %652 : vector<7x8xf32>
    %654 = vector.extract_strided_slice %627 {offsets = [0, 40], sizes = [7, 8], strides = [1, 1]} : vector<7x96xf32> to vector<7x8xf32>
    %655 = vector.extract_strided_slice %627 {offsets = [0, 72], sizes = [7, 8], strides = [1, 1]} : vector<7x96xf32> to vector<7x8xf32>
    %cst_269 = arith.constant dense<0.000000e+00> : vector<7x7xf32>
    %656 = tpu.matmul %653, %654, %cst_269 {dimension_numbers = #tpu.dot_dimension_numbers<[1], [1], [0], [0], [0, 0, 1, 0], [], []>} : vector<7x8xf32>, vector<7x8xf32>, vector<7x7xf32> -> vector<7x7xf32>
    %cst_270 = arith.constant dense<0xFF800000> : vector<7xf32>
    %657 = vector.multi_reduction <maximumf>, %656, %cst_270 [1] : vector<7x7xf32> to vector<7xf32>
    %658 = vector.shape_cast %657 : vector<7xf32> to vector<7x1xf32>
    %659 = vector.broadcast %658 : vector<7x1xf32> to vector<7x7xf32>
    %660 = arith.subf %656, %659 : vector<7x7xf32>
    %661 = math.exp %660 : vector<7x7xf32>
    %cst_271 = arith.constant dense<0.000000e+00> : vector<7xf32>
    %662 = vector.multi_reduction <add>, %661, %cst_271 [1] : vector<7x7xf32> to vector<7xf32>
    %663 = vector.shape_cast %662 : vector<7xf32> to vector<7x1xf32>
    %664 = tpu.reciprocal %663 {approx = true} : vector<7x1xf32> -> vector<7x1xf32>
    %665 = vector.broadcast %664 : vector<7x1xf32> to vector<7x7xf32>
    %666 = arith.mulf %661, %665 : vector<7x7xf32>
    %cst_272 = arith.constant dense<0.000000e+00> : vector<7x8xf32>
    %667 = tpu.matmul %666, %655, %cst_272 {dimension_numbers = #tpu.dot_dimension_numbers<[1], [0], [0], [1], [0, 0, 1, 1], [], []>} : vector<7x7xf32>, vector<7x8xf32>, vector<7x8xf32> -> vector<7x8xf32>
    %668 = vector.extract_strided_slice %629 {offsets = [8, 0], sizes = [8, 32], strides = [1, 1]} : vector<32x32xf32> to vector<8x32xf32>
    %cst_273 = arith.constant dense<0.000000e+00> : vector<7x32xf32>
    %669 = tpu.matmul %667, %668, %cst_273 {dimension_numbers = #tpu.dot_dimension_numbers<[1], [0], [0], [1], [0, 0, 1, 1], [], []>} : vector<7x8xf32>, vector<8x32xf32>, vector<7x32xf32> -> vector<7x32xf32>
    %670 = arith.addf %650, %669 : vector<7x32xf32>
    %671 = vector.extract_strided_slice %627 {offsets = [0, 16], sizes = [7, 8], strides = [1, 1]} : vector<7x96xf32> to vector<7x8xf32>
    %cst_274 = arith.constant 0.176776692 : f32
    %672 = vector.broadcast %cst_274 : f32 to vector<7x8xf32>
    %673 = arith.mulf %671, %672 : vector<7x8xf32>
    %674 = vector.extract_strided_slice %627 {offsets = [0, 48], sizes = [7, 8], strides = [1, 1]} : vector<7x96xf32> to vector<7x8xf32>
    %675 = vector.extract_strided_slice %627 {offsets = [0, 80], sizes = [7, 8], strides = [1, 1]} : vector<7x96xf32> to vector<7x8xf32>
    %cst_275 = arith.constant dense<0.000000e+00> : vector<7x7xf32>
    %676 = tpu.matmul %673, %674, %cst_275 {dimension_numbers = #tpu.dot_dimension_numbers<[1], [1], [0], [0], [0, 0, 1, 0], [], []>} : vector<7x8xf32>, vector<7x8xf32>, vector<7x7xf32> -> vector<7x7xf32>
    %cst_276 = arith.constant dense<0xFF800000> : vector<7xf32>
    %677 = vector.multi_reduction <maximumf>, %676, %cst_276 [1] : vector<7x7xf32> to vector<7xf32>
    %678 = vector.shape_cast %677 : vector<7xf32> to vector<7x1xf32>
    %679 = vector.broadcast %678 : vector<7x1xf32> to vector<7x7xf32>
    %680 = arith.subf %676, %679 : vector<7x7xf32>
    %681 = math.exp %680 : vector<7x7xf32>
    %cst_277 = arith.constant dense<0.000000e+00> : vector<7xf32>
    %682 = vector.multi_reduction <add>, %681, %cst_277 [1] : vector<7x7xf32> to vector<7xf32>
    %683 = vector.shape_cast %682 : vector<7xf32> to vector<7x1xf32>
    %684 = tpu.reciprocal %683 {approx = true} : vector<7x1xf32> -> vector<7x1xf32>
    %685 = vector.broadcast %684 : vector<7x1xf32> to vector<7x7xf32>
    %686 = arith.mulf %681, %685 : vector<7x7xf32>
    %cst_278 = arith.constant dense<0.000000e+00> : vector<7x8xf32>
    %687 = tpu.matmul %686, %675, %cst_278 {dimension_numbers = #tpu.dot_dimension_numbers<[1], [0], [0], [1], [0, 0, 1, 1], [], []>} : vector<7x7xf32>, vector<7x8xf32>, vector<7x8xf32> -> vector<7x8xf32>
    %688 = vector.extract_strided_slice %629 {offsets = [16, 0], sizes = [8, 32], strides = [1, 1]} : vector<32x32xf32> to vector<8x32xf32>
    %cst_279 = arith.constant dense<0.000000e+00> : vector<7x32xf32>
    %689 = tpu.matmul %687, %688, %cst_279 {dimension_numbers = #tpu.dot_dimension_numbers<[1], [0], [0], [1], [0, 0, 1, 1], [], []>} : vector<7x8xf32>, vector<8x32xf32>, vector<7x32xf32> -> vector<7x32xf32>
    %690 = arith.addf %670, %689 : vector<7x32xf32>
    %691 = vector.extract_strided_slice %627 {offsets = [0, 24], sizes = [7, 8], strides = [1, 1]} : vector<7x96xf32> to vector<7x8xf32>
    %cst_280 = arith.constant 0.176776692 : f32
    %692 = vector.broadcast %cst_280 : f32 to vector<7x8xf32>
    %693 = arith.mulf %691, %692 : vector<7x8xf32>
    %694 = vector.extract_strided_slice %627 {offsets = [0, 56], sizes = [7, 8], strides = [1, 1]} : vector<7x96xf32> to vector<7x8xf32>
    %695 = vector.extract_strided_slice %627 {offsets = [0, 88], sizes = [7, 8], strides = [1, 1]} : vector<7x96xf32> to vector<7x8xf32>
    %cst_281 = arith.constant dense<0.000000e+00> : vector<7x7xf32>
    %696 = tpu.matmul %693, %694, %cst_281 {dimension_numbers = #tpu.dot_dimension_numbers<[1], [1], [0], [0], [0, 0, 1, 0], [], []>} : vector<7x8xf32>, vector<7x8xf32>, vector<7x7xf32> -> vector<7x7xf32>
    %cst_282 = arith.constant dense<0xFF800000> : vector<7xf32>
    %697 = vector.multi_reduction <maximumf>, %696, %cst_282 [1] : vector<7x7xf32> to vector<7xf32>
    %698 = vector.shape_cast %697 : vector<7xf32> to vector<7x1xf32>
    %699 = vector.broadcast %698 : vector<7x1xf32> to vector<7x7xf32>
    %700 = arith.subf %696, %699 : vector<7x7xf32>
    %701 = math.exp %700 : vector<7x7xf32>
    %cst_283 = arith.constant dense<0.000000e+00> : vector<7xf32>
    %702 = vector.multi_reduction <add>, %701, %cst_283 [1] : vector<7x7xf32> to vector<7xf32>
    %703 = vector.shape_cast %702 : vector<7xf32> to vector<7x1xf32>
    %704 = tpu.reciprocal %703 {approx = true} : vector<7x1xf32> -> vector<7x1xf32>
    %705 = vector.broadcast %704 : vector<7x1xf32> to vector<7x7xf32>
    %706 = arith.mulf %701, %705 : vector<7x7xf32>
    %cst_284 = arith.constant dense<0.000000e+00> : vector<7x8xf32>
    %707 = tpu.matmul %706, %695, %cst_284 {dimension_numbers = #tpu.dot_dimension_numbers<[1], [0], [0], [1], [0, 0, 1, 1], [], []>} : vector<7x7xf32>, vector<7x8xf32>, vector<7x8xf32> -> vector<7x8xf32>
    %708 = vector.extract_strided_slice %629 {offsets = [24, 0], sizes = [8, 32], strides = [1, 1]} : vector<32x32xf32> to vector<8x32xf32>
    %cst_285 = arith.constant dense<0.000000e+00> : vector<7x32xf32>
    %709 = tpu.matmul %707, %708, %cst_285 {dimension_numbers = #tpu.dot_dimension_numbers<[1], [0], [0], [1], [0, 0, 1, 1], [], []>} : vector<7x8xf32>, vector<8x32xf32>, vector<7x32xf32> -> vector<7x32xf32>
    %710 = arith.addf %690, %709 : vector<7x32xf32>
    %711 = arith.addf %710, %596 : vector<7x32xf32>
    %712 = vector.extract_strided_slice %598 {offsets = [1, 0], sizes = [1, 32], strides = [1, 1]} : vector<3x32xf32> to vector<1x32xf32>
    %713 = vector.extract_strided_slice %600 {offsets = [1, 0], sizes = [1, 32], strides = [1, 1]} : vector<3x32xf32> to vector<1x32xf32>
    %cst_286 = arith.constant dense<0.000000e+00> : vector<7xf32>
    %714 = vector.multi_reduction <add>, %711, %cst_286 [1] : vector<7x32xf32> to vector<7xf32>
    %715 = vector.shape_cast %714 : vector<7xf32> to vector<7x1xf32>
    %cst_287 = arith.constant 3.200000e+01 : f32
    %716 = vector.broadcast %cst_287 : f32 to vector<7x1xf32>
    %717 = arith.divf %715, %716 : vector<7x1xf32>
    %718 = vector.broadcast %717 : vector<7x1xf32> to vector<7x32xf32>
    %719 = arith.subf %711, %718 : vector<7x32xf32>
    %720 = arith.mulf %719, %719 : vector<7x32xf32>
    %cst_288 = arith.constant dense<0.000000e+00> : vector<7xf32>
    %721 = vector.multi_reduction <add>, %720, %cst_288 [1] : vector<7x32xf32> to vector<7xf32>
    %722 = vector.shape_cast %721 : vector<7xf32> to vector<7x1xf32>
    %cst_289 = arith.constant 3.200000e+01 : f32
    %723 = vector.broadcast %cst_289 : f32 to vector<7x1xf32>
    %724 = arith.divf %722, %723 : vector<7x1xf32>
    %725 = vector.broadcast %717 : vector<7x1xf32> to vector<7x32xf32>
    %726 = arith.subf %711, %725 : vector<7x32xf32>
    %cst_290 = arith.constant 9.99999974E-6 : f32
    %727 = vector.broadcast %cst_290 : f32 to vector<7x1xf32>
    %728 = arith.addf %724, %727 : vector<7x1xf32>
    %729 = math.rsqrt %728 : vector<7x1xf32>
    %730 = vector.broadcast %729 : vector<7x1xf32> to vector<7x32xf32>
    %731 = arith.mulf %726, %730 : vector<7x32xf32>
    %732 = vector.broadcast %712 : vector<1x32xf32> to vector<7x32xf32>
    %733 = arith.mulf %731, %732 : vector<7x32xf32>
    %734 = vector.broadcast %713 : vector<1x32xf32> to vector<7x32xf32>
    %735 = arith.addf %733, %734 : vector<7x32xf32>
    %c3_291 = arith.constant 3 : index
    %c0_292 = arith.constant 0 : index
    %c0_293 = arith.constant 0 : index
    %736 = vector.load %arg11[%c3_291, %c0_292, %c0_293] : memref<9x32x64xf32, #tpu.memory_space<vmem>>, vector<1x32x64xf32>
    %737 = vector.shape_cast %736 : vector<1x32x64xf32> to vector<32x64xf32>
    %cst_294 = arith.constant dense<0.000000e+00> : vector<7x64xf32>
    %738 = tpu.matmul %735, %737, %cst_294 {dimension_numbers = #tpu.dot_dimension_numbers<[1], [0], [0], [1], [0, 0, 1, 1], [], []>} : vector<7x32xf32>, vector<32x64xf32>, vector<7x64xf32> -> vector<7x64xf32>
    %c3_295 = arith.constant 3 : index
    %c0_296 = arith.constant 0 : index
    %c0_297 = arith.constant 0 : index
    %739 = vector.load %arg12[%c3_295, %c0_296, %c0_297] : memref<9x1x64xf32, #tpu.memory_space<vmem>>, vector<1x1x64xf32>
    %740 = vector.shape_cast %739 : vector<1x1x64xf32> to vector<1x64xf32>
    %741 = vector.broadcast %740 : vector<1x64xf32> to vector<7x64xf32>
    %742 = arith.addf %738, %741 : vector<7x64xf32>
    %cst_298 = arith.constant 5.000000e-01 : f32
    %743 = vector.broadcast %cst_298 : f32 to vector<7x64xf32>
    %744 = arith.mulf %743, %742 : vector<7x64xf32>
    %cst_299 = arith.constant 0.707106769 : f32
    %745 = vector.broadcast %cst_299 : f32 to vector<7x64xf32>
    %746 = arith.mulf %742, %745 : vector<7x64xf32>
    %cst_300 = arith.constant 0.000000e+00 : f32
    %747 = vector.broadcast %cst_300 : f32 to vector<7x64xf32>
    %748 = arith.cmpf oge, %746, %747 : vector<7x64xf32>
    %cst_301 = arith.constant 1.000000e+00 : f32
    %cst_302 = arith.constant -1.000000e+00 : f32
    %749 = vector.broadcast %cst_301 : f32 to vector<7x64xf32>
    %750 = vector.broadcast %cst_302 : f32 to vector<7x64xf32>
    %751 = arith.select %748, %749, %750 : vector<7x64xi1>, vector<7x64xf32>
    %752 = math.absf %746 : vector<7x64xf32>
    %cst_303 = arith.constant 0.327591091 : f32
    %753 = vector.broadcast %cst_303 : f32 to vector<7x64xf32>
    %754 = arith.mulf %753, %752 : vector<7x64xf32>
    %cst_304 = arith.constant 1.000000e+00 : f32
    %755 = vector.broadcast %cst_304 : f32 to vector<7x64xf32>
    %756 = arith.addf %755, %754 : vector<7x64xf32>
    %cst_305 = arith.constant 1.000000e+00 : f32
    %757 = vector.broadcast %cst_305 : f32 to vector<7x64xf32>
    %758 = arith.divf %757, %756 : vector<7x64xf32>
    %cst_306 = arith.constant 1.06140542 : f32
    %759 = vector.broadcast %cst_306 : f32 to vector<7x64xf32>
    %760 = arith.mulf %759, %758 : vector<7x64xf32>
    %cst_307 = arith.constant -1.45315206 : f32
    %761 = vector.broadcast %cst_307 : f32 to vector<7x64xf32>
    %762 = arith.addf %760, %761 : vector<7x64xf32>
    %763 = arith.mulf %762, %758 : vector<7x64xf32>
    %cst_308 = arith.constant 1.42141378 : f32
    %764 = vector.broadcast %cst_308 : f32 to vector<7x64xf32>
    %765 = arith.addf %763, %764 : vector<7x64xf32>
    %766 = arith.mulf %765, %758 : vector<7x64xf32>
    %cst_309 = arith.constant -0.284496725 : f32
    %767 = vector.broadcast %cst_309 : f32 to vector<7x64xf32>
    %768 = arith.addf %766, %767 : vector<7x64xf32>
    %769 = arith.mulf %768, %758 : vector<7x64xf32>
    %cst_310 = arith.constant 0.254829586 : f32
    %770 = vector.broadcast %cst_310 : f32 to vector<7x64xf32>
    %771 = arith.addf %769, %770 : vector<7x64xf32>
    %772 = arith.mulf %771, %758 : vector<7x64xf32>
    %cst_311 = arith.constant 0.000000e+00 : f32
    %773 = vector.broadcast %cst_311 : f32 to vector<7x64xf32>
    %774 = arith.subf %773, %752 : vector<7x64xf32>
    %775 = arith.mulf %774, %752 : vector<7x64xf32>
    %776 = math.exp %775 : vector<7x64xf32>
    %777 = arith.mulf %772, %776 : vector<7x64xf32>
    %cst_312 = arith.constant 1.000000e+00 : f32
    %778 = vector.broadcast %cst_312 : f32 to vector<7x64xf32>
    %779 = arith.subf %778, %777 : vector<7x64xf32>
    %780 = arith.mulf %751, %779 : vector<7x64xf32>
    %cst_313 = arith.constant 1.000000e+00 : f32
    %781 = vector.broadcast %cst_313 : f32 to vector<7x64xf32>
    %782 = arith.addf %781, %780 : vector<7x64xf32>
    %783 = arith.mulf %744, %782 : vector<7x64xf32>
    %c3_314 = arith.constant 3 : index
    %c0_315 = arith.constant 0 : index
    %c0_316 = arith.constant 0 : index
    %784 = vector.load %arg13[%c3_314, %c0_315, %c0_316] : memref<9x64x32xf32, #tpu.memory_space<vmem>>, vector<1x64x32xf32>
    %785 = vector.shape_cast %784 : vector<1x64x32xf32> to vector<64x32xf32>
    %cst_317 = arith.constant dense<0.000000e+00> : vector<7x32xf32>
    %786 = tpu.matmul %783, %785, %cst_317 {dimension_numbers = #tpu.dot_dimension_numbers<[1], [0], [0], [1], [0, 0, 1, 1], [], []>} : vector<7x64xf32>, vector<64x32xf32>, vector<7x32xf32> -> vector<7x32xf32>
    %c3_318 = arith.constant 3 : index
    %c0_319 = arith.constant 0 : index
    %c0_320 = arith.constant 0 : index
    %787 = vector.load %arg14[%c3_318, %c0_319, %c0_320] : memref<9x1x32xf32, #tpu.memory_space<vmem>>, vector<1x1x32xf32>
    %788 = vector.shape_cast %787 : vector<1x1x32xf32> to vector<1x32xf32>
    %789 = vector.broadcast %788 : vector<1x32xf32> to vector<7x32xf32>
    %790 = arith.addf %786, %789 : vector<7x32xf32>
    %791 = arith.addf %790, %711 : vector<7x32xf32>
    %c1_321 = arith.constant 1 : index
    %c0_322 = arith.constant 0 : index
    %792 = vector.load %arg6[%c1_321, %c0_322] : memref<2x32xf32, #tpu.memory_space<vmem>>, vector<1x32xf32>
    %793 = vector.broadcast %792 : vector<1x32xf32> to vector<9x32xf32>
    %794 = arith.addf %395, %793 : vector<9x32xf32>
    %c0_323 = arith.constant 0 : index
    %c0_324 = arith.constant 0 : index
    %795 = vector.load %arg6[%c0_323, %c0_324] : memref<2x32xf32, #tpu.memory_space<vmem>>, vector<1x32xf32>
    %796 = vector.broadcast %795 : vector<1x32xf32> to vector<7x32xf32>
    %797 = arith.addf %791, %796 : vector<7x32xf32>
    %798 = tpu.concatenate %794, %797 in 0 : vector<9x32xf32>, vector<7x32xf32> -> vector<16x32xf32>
    %c4 = arith.constant 4 : index
    %c0_325 = arith.constant 0 : index
    %c0_326 = arith.constant 0 : index
    %799 = vector.load %arg9[%c4, %c0_325, %c0_326] : memref<9x3x32xf32, #tpu.memory_space<vmem>>, vector<1x3x32xf32>
    %800 = vector.shape_cast %799 : vector<1x3x32xf32> to vector<3x32xf32>
    %c4_327 = arith.constant 4 : index
    %c0_328 = arith.constant 0 : index
    %c0_329 = arith.constant 0 : index
    %801 = vector.load %arg10[%c4_327, %c0_328, %c0_329] : memref<9x3x32xf32, #tpu.memory_space<vmem>>, vector<1x3x32xf32>
    %802 = vector.shape_cast %801 : vector<1x3x32xf32> to vector<3x32xf32>
    %803 = vector.extract_strided_slice %800 {offsets = [0, 0], sizes = [1, 32], strides = [1, 1]} : vector<3x32xf32> to vector<1x32xf32>
    %804 = vector.extract_strided_slice %802 {offsets = [0, 0], sizes = [1, 32], strides = [1, 1]} : vector<3x32xf32> to vector<1x32xf32>
    %cst_330 = arith.constant dense<0.000000e+00> : vector<16xf32>
    %805 = vector.multi_reduction <add>, %798, %cst_330 [1] : vector<16x32xf32> to vector<16xf32>
    %806 = vector.shape_cast %805 : vector<16xf32> to vector<16x1xf32>
    %cst_331 = arith.constant 3.200000e+01 : f32
    %807 = vector.broadcast %cst_331 : f32 to vector<16x1xf32>
    %808 = arith.divf %806, %807 : vector<16x1xf32>
    %809 = vector.broadcast %808 : vector<16x1xf32> to vector<16x32xf32>
    %810 = arith.subf %798, %809 : vector<16x32xf32>
    %811 = arith.mulf %810, %810 : vector<16x32xf32>
    %cst_332 = arith.constant dense<0.000000e+00> : vector<16xf32>
    %812 = vector.multi_reduction <add>, %811, %cst_332 [1] : vector<16x32xf32> to vector<16xf32>
    %813 = vector.shape_cast %812 : vector<16xf32> to vector<16x1xf32>
    %cst_333 = arith.constant 3.200000e+01 : f32
    %814 = vector.broadcast %cst_333 : f32 to vector<16x1xf32>
    %815 = arith.divf %813, %814 : vector<16x1xf32>
    %816 = vector.broadcast %808 : vector<16x1xf32> to vector<16x32xf32>
    %817 = arith.subf %798, %816 : vector<16x32xf32>
    %cst_334 = arith.constant 9.99999974E-6 : f32
    %818 = vector.broadcast %cst_334 : f32 to vector<16x1xf32>
    %819 = arith.addf %815, %818 : vector<16x1xf32>
    %820 = math.rsqrt %819 : vector<16x1xf32>
    %821 = vector.broadcast %820 : vector<16x1xf32> to vector<16x32xf32>
    %822 = arith.mulf %817, %821 : vector<16x32xf32>
    %823 = vector.broadcast %803 : vector<1x32xf32> to vector<16x32xf32>
    %824 = arith.mulf %822, %823 : vector<16x32xf32>
    %825 = vector.broadcast %804 : vector<1x32xf32> to vector<16x32xf32>
    %826 = arith.addf %824, %825 : vector<16x32xf32>
    %c4_335 = arith.constant 4 : index
    %c0_336 = arith.constant 0 : index
    %c0_337 = arith.constant 0 : index
    %827 = vector.load %arg7[%c4_335, %c0_336, %c0_337] : memref<9x32x96xf32, #tpu.memory_space<vmem>>, vector<1x32x96xf32>
    %828 = vector.shape_cast %827 : vector<1x32x96xf32> to vector<32x96xf32>
    %cst_338 = arith.constant dense<0.000000e+00> : vector<16x96xf32>
    %829 = tpu.matmul %826, %828, %cst_338 {dimension_numbers = #tpu.dot_dimension_numbers<[1], [0], [0], [1], [0, 0, 1, 1], [], []>} : vector<16x32xf32>, vector<32x96xf32>, vector<16x96xf32> -> vector<16x96xf32>
    %c4_339 = arith.constant 4 : index
    %c0_340 = arith.constant 0 : index
    %c0_341 = arith.constant 0 : index
    %830 = vector.load %arg8[%c4_339, %c0_340, %c0_341] : memref<9x32x32xf32, #tpu.memory_space<vmem>>, vector<1x32x32xf32>
    %831 = vector.shape_cast %830 : vector<1x32x32xf32> to vector<32x32xf32>
    %cst_342 = arith.constant 0.000000e+00 : f32
    %832 = vector.broadcast %cst_342 : f32 to vector<16x32xf32>
    %833 = vector.extract_strided_slice %829 {offsets = [0, 0], sizes = [16, 8], strides = [1, 1]} : vector<16x96xf32> to vector<16x8xf32>
    %cst_343 = arith.constant 0.176776692 : f32
    %834 = vector.broadcast %cst_343 : f32 to vector<16x8xf32>
    %835 = arith.mulf %833, %834 : vector<16x8xf32>
    %836 = vector.extract_strided_slice %829 {offsets = [0, 32], sizes = [16, 8], strides = [1, 1]} : vector<16x96xf32> to vector<16x8xf32>
    %837 = vector.extract_strided_slice %829 {offsets = [0, 64], sizes = [16, 8], strides = [1, 1]} : vector<16x96xf32> to vector<16x8xf32>
    %cst_344 = arith.constant dense<0.000000e+00> : vector<16x16xf32>
    %838 = tpu.matmul %835, %836, %cst_344 {dimension_numbers = #tpu.dot_dimension_numbers<[1], [1], [0], [0], [0, 0, 1, 0], [], []>} : vector<16x8xf32>, vector<16x8xf32>, vector<16x16xf32> -> vector<16x16xf32>
    %cst_345 = arith.constant dense<0xFF800000> : vector<16xf32>
    %839 = vector.multi_reduction <maximumf>, %838, %cst_345 [1] : vector<16x16xf32> to vector<16xf32>
    %840 = vector.shape_cast %839 : vector<16xf32> to vector<16x1xf32>
    %841 = vector.broadcast %840 : vector<16x1xf32> to vector<16x16xf32>
    %842 = arith.subf %838, %841 : vector<16x16xf32>
    %843 = math.exp %842 : vector<16x16xf32>
    %cst_346 = arith.constant dense<0.000000e+00> : vector<16xf32>
    %844 = vector.multi_reduction <add>, %843, %cst_346 [1] : vector<16x16xf32> to vector<16xf32>
    %845 = vector.shape_cast %844 : vector<16xf32> to vector<16x1xf32>
    %846 = tpu.reciprocal %845 {approx = true} : vector<16x1xf32> -> vector<16x1xf32>
    %847 = vector.broadcast %846 : vector<16x1xf32> to vector<16x16xf32>
    %848 = arith.mulf %843, %847 : vector<16x16xf32>
    %cst_347 = arith.constant dense<0.000000e+00> : vector<16x8xf32>
    %849 = tpu.matmul %848, %837, %cst_347 {dimension_numbers = #tpu.dot_dimension_numbers<[1], [0], [0], [1], [0, 0, 1, 1], [], []>} : vector<16x16xf32>, vector<16x8xf32>, vector<16x8xf32> -> vector<16x8xf32>
    %850 = vector.extract_strided_slice %831 {offsets = [0, 0], sizes = [8, 32], strides = [1, 1]} : vector<32x32xf32> to vector<8x32xf32>
    %cst_348 = arith.constant dense<0.000000e+00> : vector<16x32xf32>
    %851 = tpu.matmul %849, %850, %cst_348 {dimension_numbers = #tpu.dot_dimension_numbers<[1], [0], [0], [1], [0, 0, 1, 1], [], []>} : vector<16x8xf32>, vector<8x32xf32>, vector<16x32xf32> -> vector<16x32xf32>
    %852 = arith.addf %832, %851 : vector<16x32xf32>
    %853 = vector.extract_strided_slice %829 {offsets = [0, 8], sizes = [16, 8], strides = [1, 1]} : vector<16x96xf32> to vector<16x8xf32>
    %cst_349 = arith.constant 0.176776692 : f32
    %854 = vector.broadcast %cst_349 : f32 to vector<16x8xf32>
    %855 = arith.mulf %853, %854 : vector<16x8xf32>
    %856 = vector.extract_strided_slice %829 {offsets = [0, 40], sizes = [16, 8], strides = [1, 1]} : vector<16x96xf32> to vector<16x8xf32>
    %857 = vector.extract_strided_slice %829 {offsets = [0, 72], sizes = [16, 8], strides = [1, 1]} : vector<16x96xf32> to vector<16x8xf32>
    %cst_350 = arith.constant dense<0.000000e+00> : vector<16x16xf32>
    %858 = tpu.matmul %855, %856, %cst_350 {dimension_numbers = #tpu.dot_dimension_numbers<[1], [1], [0], [0], [0, 0, 1, 0], [], []>} : vector<16x8xf32>, vector<16x8xf32>, vector<16x16xf32> -> vector<16x16xf32>
    %cst_351 = arith.constant dense<0xFF800000> : vector<16xf32>
    %859 = vector.multi_reduction <maximumf>, %858, %cst_351 [1] : vector<16x16xf32> to vector<16xf32>
    %860 = vector.shape_cast %859 : vector<16xf32> to vector<16x1xf32>
    %861 = vector.broadcast %860 : vector<16x1xf32> to vector<16x16xf32>
    %862 = arith.subf %858, %861 : vector<16x16xf32>
    %863 = math.exp %862 : vector<16x16xf32>
    %cst_352 = arith.constant dense<0.000000e+00> : vector<16xf32>
    %864 = vector.multi_reduction <add>, %863, %cst_352 [1] : vector<16x16xf32> to vector<16xf32>
    %865 = vector.shape_cast %864 : vector<16xf32> to vector<16x1xf32>
    %866 = tpu.reciprocal %865 {approx = true} : vector<16x1xf32> -> vector<16x1xf32>
    %867 = vector.broadcast %866 : vector<16x1xf32> to vector<16x16xf32>
    %868 = arith.mulf %863, %867 : vector<16x16xf32>
    %cst_353 = arith.constant dense<0.000000e+00> : vector<16x8xf32>
    %869 = tpu.matmul %868, %857, %cst_353 {dimension_numbers = #tpu.dot_dimension_numbers<[1], [0], [0], [1], [0, 0, 1, 1], [], []>} : vector<16x16xf32>, vector<16x8xf32>, vector<16x8xf32> -> vector<16x8xf32>
    %870 = vector.extract_strided_slice %831 {offsets = [8, 0], sizes = [8, 32], strides = [1, 1]} : vector<32x32xf32> to vector<8x32xf32>
    %cst_354 = arith.constant dense<0.000000e+00> : vector<16x32xf32>
    %871 = tpu.matmul %869, %870, %cst_354 {dimension_numbers = #tpu.dot_dimension_numbers<[1], [0], [0], [1], [0, 0, 1, 1], [], []>} : vector<16x8xf32>, vector<8x32xf32>, vector<16x32xf32> -> vector<16x32xf32>
    %872 = arith.addf %852, %871 : vector<16x32xf32>
    %873 = vector.extract_strided_slice %829 {offsets = [0, 16], sizes = [16, 8], strides = [1, 1]} : vector<16x96xf32> to vector<16x8xf32>
    %cst_355 = arith.constant 0.176776692 : f32
    %874 = vector.broadcast %cst_355 : f32 to vector<16x8xf32>
    %875 = arith.mulf %873, %874 : vector<16x8xf32>
    %876 = vector.extract_strided_slice %829 {offsets = [0, 48], sizes = [16, 8], strides = [1, 1]} : vector<16x96xf32> to vector<16x8xf32>
    %877 = vector.extract_strided_slice %829 {offsets = [0, 80], sizes = [16, 8], strides = [1, 1]} : vector<16x96xf32> to vector<16x8xf32>
    %cst_356 = arith.constant dense<0.000000e+00> : vector<16x16xf32>
    %878 = tpu.matmul %875, %876, %cst_356 {dimension_numbers = #tpu.dot_dimension_numbers<[1], [1], [0], [0], [0, 0, 1, 0], [], []>} : vector<16x8xf32>, vector<16x8xf32>, vector<16x16xf32> -> vector<16x16xf32>
    %cst_357 = arith.constant dense<0xFF800000> : vector<16xf32>
    %879 = vector.multi_reduction <maximumf>, %878, %cst_357 [1] : vector<16x16xf32> to vector<16xf32>
    %880 = vector.shape_cast %879 : vector<16xf32> to vector<16x1xf32>
    %881 = vector.broadcast %880 : vector<16x1xf32> to vector<16x16xf32>
    %882 = arith.subf %878, %881 : vector<16x16xf32>
    %883 = math.exp %882 : vector<16x16xf32>
    %cst_358 = arith.constant dense<0.000000e+00> : vector<16xf32>
    %884 = vector.multi_reduction <add>, %883, %cst_358 [1] : vector<16x16xf32> to vector<16xf32>
    %885 = vector.shape_cast %884 : vector<16xf32> to vector<16x1xf32>
    %886 = tpu.reciprocal %885 {approx = true} : vector<16x1xf32> -> vector<16x1xf32>
    %887 = vector.broadcast %886 : vector<16x1xf32> to vector<16x16xf32>
    %888 = arith.mulf %883, %887 : vector<16x16xf32>
    %cst_359 = arith.constant dense<0.000000e+00> : vector<16x8xf32>
    %889 = tpu.matmul %888, %877, %cst_359 {dimension_numbers = #tpu.dot_dimension_numbers<[1], [0], [0], [1], [0, 0, 1, 1], [], []>} : vector<16x16xf32>, vector<16x8xf32>, vector<16x8xf32> -> vector<16x8xf32>
    %890 = vector.extract_strided_slice %831 {offsets = [16, 0], sizes = [8, 32], strides = [1, 1]} : vector<32x32xf32> to vector<8x32xf32>
    %cst_360 = arith.constant dense<0.000000e+00> : vector<16x32xf32>
    %891 = tpu.matmul %889, %890, %cst_360 {dimension_numbers = #tpu.dot_dimension_numbers<[1], [0], [0], [1], [0, 0, 1, 1], [], []>} : vector<16x8xf32>, vector<8x32xf32>, vector<16x32xf32> -> vector<16x32xf32>
    %892 = arith.addf %872, %891 : vector<16x32xf32>
    %893 = vector.extract_strided_slice %829 {offsets = [0, 24], sizes = [16, 8], strides = [1, 1]} : vector<16x96xf32> to vector<16x8xf32>
    %cst_361 = arith.constant 0.176776692 : f32
    %894 = vector.broadcast %cst_361 : f32 to vector<16x8xf32>
    %895 = arith.mulf %893, %894 : vector<16x8xf32>
    %896 = vector.extract_strided_slice %829 {offsets = [0, 56], sizes = [16, 8], strides = [1, 1]} : vector<16x96xf32> to vector<16x8xf32>
    %897 = vector.extract_strided_slice %829 {offsets = [0, 88], sizes = [16, 8], strides = [1, 1]} : vector<16x96xf32> to vector<16x8xf32>
    %cst_362 = arith.constant dense<0.000000e+00> : vector<16x16xf32>
    %898 = tpu.matmul %895, %896, %cst_362 {dimension_numbers = #tpu.dot_dimension_numbers<[1], [1], [0], [0], [0, 0, 1, 0], [], []>} : vector<16x8xf32>, vector<16x8xf32>, vector<16x16xf32> -> vector<16x16xf32>
    %cst_363 = arith.constant dense<0xFF800000> : vector<16xf32>
    %899 = vector.multi_reduction <maximumf>, %898, %cst_363 [1] : vector<16x16xf32> to vector<16xf32>
    %900 = vector.shape_cast %899 : vector<16xf32> to vector<16x1xf32>
    %901 = vector.broadcast %900 : vector<16x1xf32> to vector<16x16xf32>
    %902 = arith.subf %898, %901 : vector<16x16xf32>
    %903 = math.exp %902 : vector<16x16xf32>
    %cst_364 = arith.constant dense<0.000000e+00> : vector<16xf32>
    %904 = vector.multi_reduction <add>, %903, %cst_364 [1] : vector<16x16xf32> to vector<16xf32>
    %905 = vector.shape_cast %904 : vector<16xf32> to vector<16x1xf32>
    %906 = tpu.reciprocal %905 {approx = true} : vector<16x1xf32> -> vector<16x1xf32>
    %907 = vector.broadcast %906 : vector<16x1xf32> to vector<16x16xf32>
    %908 = arith.mulf %903, %907 : vector<16x16xf32>
    %cst_365 = arith.constant dense<0.000000e+00> : vector<16x8xf32>
    %909 = tpu.matmul %908, %897, %cst_365 {dimension_numbers = #tpu.dot_dimension_numbers<[1], [0], [0], [1], [0, 0, 1, 1], [], []>} : vector<16x16xf32>, vector<16x8xf32>, vector<16x8xf32> -> vector<16x8xf32>
    %910 = vector.extract_strided_slice %831 {offsets = [24, 0], sizes = [8, 32], strides = [1, 1]} : vector<32x32xf32> to vector<8x32xf32>
    %cst_366 = arith.constant dense<0.000000e+00> : vector<16x32xf32>
    %911 = tpu.matmul %909, %910, %cst_366 {dimension_numbers = #tpu.dot_dimension_numbers<[1], [0], [0], [1], [0, 0, 1, 1], [], []>} : vector<16x8xf32>, vector<8x32xf32>, vector<16x32xf32> -> vector<16x32xf32>
    %912 = arith.addf %892, %911 : vector<16x32xf32>
    %913 = arith.addf %912, %798 : vector<16x32xf32>
    %914 = vector.extract_strided_slice %800 {offsets = [1, 0], sizes = [1, 32], strides = [1, 1]} : vector<3x32xf32> to vector<1x32xf32>
    %915 = vector.extract_strided_slice %802 {offsets = [1, 0], sizes = [1, 32], strides = [1, 1]} : vector<3x32xf32> to vector<1x32xf32>
    %cst_367 = arith.constant dense<0.000000e+00> : vector<16xf32>
    %916 = vector.multi_reduction <add>, %913, %cst_367 [1] : vector<16x32xf32> to vector<16xf32>
    %917 = vector.shape_cast %916 : vector<16xf32> to vector<16x1xf32>
    %cst_368 = arith.constant 3.200000e+01 : f32
    %918 = vector.broadcast %cst_368 : f32 to vector<16x1xf32>
    %919 = arith.divf %917, %918 : vector<16x1xf32>
    %920 = vector.broadcast %919 : vector<16x1xf32> to vector<16x32xf32>
    %921 = arith.subf %913, %920 : vector<16x32xf32>
    %922 = arith.mulf %921, %921 : vector<16x32xf32>
    %cst_369 = arith.constant dense<0.000000e+00> : vector<16xf32>
    %923 = vector.multi_reduction <add>, %922, %cst_369 [1] : vector<16x32xf32> to vector<16xf32>
    %924 = vector.shape_cast %923 : vector<16xf32> to vector<16x1xf32>
    %cst_370 = arith.constant 3.200000e+01 : f32
    %925 = vector.broadcast %cst_370 : f32 to vector<16x1xf32>
    %926 = arith.divf %924, %925 : vector<16x1xf32>
    %927 = vector.broadcast %919 : vector<16x1xf32> to vector<16x32xf32>
    %928 = arith.subf %913, %927 : vector<16x32xf32>
    %cst_371 = arith.constant 9.99999974E-6 : f32
    %929 = vector.broadcast %cst_371 : f32 to vector<16x1xf32>
    %930 = arith.addf %926, %929 : vector<16x1xf32>
    %931 = math.rsqrt %930 : vector<16x1xf32>
    %932 = vector.broadcast %931 : vector<16x1xf32> to vector<16x32xf32>
    %933 = arith.mulf %928, %932 : vector<16x32xf32>
    %934 = vector.broadcast %914 : vector<1x32xf32> to vector<16x32xf32>
    %935 = arith.mulf %933, %934 : vector<16x32xf32>
    %936 = vector.broadcast %915 : vector<1x32xf32> to vector<16x32xf32>
    %937 = arith.addf %935, %936 : vector<16x32xf32>
    %c4_372 = arith.constant 4 : index
    %c0_373 = arith.constant 0 : index
    %c0_374 = arith.constant 0 : index
    %938 = vector.load %arg11[%c4_372, %c0_373, %c0_374] : memref<9x32x64xf32, #tpu.memory_space<vmem>>, vector<1x32x64xf32>
    %939 = vector.shape_cast %938 : vector<1x32x64xf32> to vector<32x64xf32>
    %cst_375 = arith.constant dense<0.000000e+00> : vector<16x64xf32>
    %940 = tpu.matmul %937, %939, %cst_375 {dimension_numbers = #tpu.dot_dimension_numbers<[1], [0], [0], [1], [0, 0, 1, 1], [], []>} : vector<16x32xf32>, vector<32x64xf32>, vector<16x64xf32> -> vector<16x64xf32>
    %c4_376 = arith.constant 4 : index
    %c0_377 = arith.constant 0 : index
    %c0_378 = arith.constant 0 : index
    %941 = vector.load %arg12[%c4_376, %c0_377, %c0_378] : memref<9x1x64xf32, #tpu.memory_space<vmem>>, vector<1x1x64xf32>
    %942 = vector.shape_cast %941 : vector<1x1x64xf32> to vector<1x64xf32>
    %943 = vector.broadcast %942 : vector<1x64xf32> to vector<16x64xf32>
    %944 = arith.addf %940, %943 : vector<16x64xf32>
    %cst_379 = arith.constant 5.000000e-01 : f32
    %945 = vector.broadcast %cst_379 : f32 to vector<16x64xf32>
    %946 = arith.mulf %945, %944 : vector<16x64xf32>
    %cst_380 = arith.constant 0.707106769 : f32
    %947 = vector.broadcast %cst_380 : f32 to vector<16x64xf32>
    %948 = arith.mulf %944, %947 : vector<16x64xf32>
    %cst_381 = arith.constant 0.000000e+00 : f32
    %949 = vector.broadcast %cst_381 : f32 to vector<16x64xf32>
    %950 = arith.cmpf oge, %948, %949 : vector<16x64xf32>
    %cst_382 = arith.constant 1.000000e+00 : f32
    %cst_383 = arith.constant -1.000000e+00 : f32
    %951 = vector.broadcast %cst_382 : f32 to vector<16x64xf32>
    %952 = vector.broadcast %cst_383 : f32 to vector<16x64xf32>
    %953 = arith.select %950, %951, %952 : vector<16x64xi1>, vector<16x64xf32>
    %954 = math.absf %948 : vector<16x64xf32>
    %cst_384 = arith.constant 0.327591091 : f32
    %955 = vector.broadcast %cst_384 : f32 to vector<16x64xf32>
    %956 = arith.mulf %955, %954 : vector<16x64xf32>
    %cst_385 = arith.constant 1.000000e+00 : f32
    %957 = vector.broadcast %cst_385 : f32 to vector<16x64xf32>
    %958 = arith.addf %957, %956 : vector<16x64xf32>
    %cst_386 = arith.constant 1.000000e+00 : f32
    %959 = vector.broadcast %cst_386 : f32 to vector<16x64xf32>
    %960 = arith.divf %959, %958 : vector<16x64xf32>
    %cst_387 = arith.constant 1.06140542 : f32
    %961 = vector.broadcast %cst_387 : f32 to vector<16x64xf32>
    %962 = arith.mulf %961, %960 : vector<16x64xf32>
    %cst_388 = arith.constant -1.45315206 : f32
    %963 = vector.broadcast %cst_388 : f32 to vector<16x64xf32>
    %964 = arith.addf %962, %963 : vector<16x64xf32>
    %965 = arith.mulf %964, %960 : vector<16x64xf32>
    %cst_389 = arith.constant 1.42141378 : f32
    %966 = vector.broadcast %cst_389 : f32 to vector<16x64xf32>
    %967 = arith.addf %965, %966 : vector<16x64xf32>
    %968 = arith.mulf %967, %960 : vector<16x64xf32>
    %cst_390 = arith.constant -0.284496725 : f32
    %969 = vector.broadcast %cst_390 : f32 to vector<16x64xf32>
    %970 = arith.addf %968, %969 : vector<16x64xf32>
    %971 = arith.mulf %970, %960 : vector<16x64xf32>
    %cst_391 = arith.constant 0.254829586 : f32
    %972 = vector.broadcast %cst_391 : f32 to vector<16x64xf32>
    %973 = arith.addf %971, %972 : vector<16x64xf32>
    %974 = arith.mulf %973, %960 : vector<16x64xf32>
    %cst_392 = arith.constant 0.000000e+00 : f32
    %975 = vector.broadcast %cst_392 : f32 to vector<16x64xf32>
    %976 = arith.subf %975, %954 : vector<16x64xf32>
    %977 = arith.mulf %976, %954 : vector<16x64xf32>
    %978 = math.exp %977 : vector<16x64xf32>
    %979 = arith.mulf %974, %978 : vector<16x64xf32>
    %cst_393 = arith.constant 1.000000e+00 : f32
    %980 = vector.broadcast %cst_393 : f32 to vector<16x64xf32>
    %981 = arith.subf %980, %979 : vector<16x64xf32>
    %982 = arith.mulf %953, %981 : vector<16x64xf32>
    %cst_394 = arith.constant 1.000000e+00 : f32
    %983 = vector.broadcast %cst_394 : f32 to vector<16x64xf32>
    %984 = arith.addf %983, %982 : vector<16x64xf32>
    %985 = arith.mulf %946, %984 : vector<16x64xf32>
    %c4_395 = arith.constant 4 : index
    %c0_396 = arith.constant 0 : index
    %c0_397 = arith.constant 0 : index
    %986 = vector.load %arg13[%c4_395, %c0_396, %c0_397] : memref<9x64x32xf32, #tpu.memory_space<vmem>>, vector<1x64x32xf32>
    %987 = vector.shape_cast %986 : vector<1x64x32xf32> to vector<64x32xf32>
    %cst_398 = arith.constant dense<0.000000e+00> : vector<16x32xf32>
    %988 = tpu.matmul %985, %987, %cst_398 {dimension_numbers = #tpu.dot_dimension_numbers<[1], [0], [0], [1], [0, 0, 1, 1], [], []>} : vector<16x64xf32>, vector<64x32xf32>, vector<16x32xf32> -> vector<16x32xf32>
    %c4_399 = arith.constant 4 : index
    %c0_400 = arith.constant 0 : index
    %c0_401 = arith.constant 0 : index
    %989 = vector.load %arg14[%c4_399, %c0_400, %c0_401] : memref<9x1x32xf32, #tpu.memory_space<vmem>>, vector<1x1x32xf32>
    %990 = vector.shape_cast %989 : vector<1x1x32xf32> to vector<1x32xf32>
    %991 = vector.broadcast %990 : vector<1x32xf32> to vector<16x32xf32>
    %992 = arith.addf %988, %991 : vector<16x32xf32>
    %993 = arith.addf %992, %913 : vector<16x32xf32>
    %c5 = arith.constant 5 : index
    %c0_402 = arith.constant 0 : index
    %c0_403 = arith.constant 0 : index
    %994 = vector.load %arg9[%c5, %c0_402, %c0_403] : memref<9x3x32xf32, #tpu.memory_space<vmem>>, vector<1x3x32xf32>
    %995 = vector.shape_cast %994 : vector<1x3x32xf32> to vector<3x32xf32>
    %c5_404 = arith.constant 5 : index
    %c0_405 = arith.constant 0 : index
    %c0_406 = arith.constant 0 : index
    %996 = vector.load %arg10[%c5_404, %c0_405, %c0_406] : memref<9x3x32xf32, #tpu.memory_space<vmem>>, vector<1x3x32xf32>
    %997 = vector.shape_cast %996 : vector<1x3x32xf32> to vector<3x32xf32>
    %998 = vector.extract_strided_slice %995 {offsets = [0, 0], sizes = [1, 32], strides = [1, 1]} : vector<3x32xf32> to vector<1x32xf32>
    %999 = vector.extract_strided_slice %997 {offsets = [0, 0], sizes = [1, 32], strides = [1, 1]} : vector<3x32xf32> to vector<1x32xf32>
    %cst_407 = arith.constant dense<0.000000e+00> : vector<9xf32>
    %1000 = vector.multi_reduction <add>, %395, %cst_407 [1] : vector<9x32xf32> to vector<9xf32>
    %1001 = vector.shape_cast %1000 : vector<9xf32> to vector<9x1xf32>
    %cst_408 = arith.constant 3.200000e+01 : f32
    %1002 = vector.broadcast %cst_408 : f32 to vector<9x1xf32>
    %1003 = arith.divf %1001, %1002 : vector<9x1xf32>
    %1004 = vector.broadcast %1003 : vector<9x1xf32> to vector<9x32xf32>
    %1005 = arith.subf %395, %1004 : vector<9x32xf32>
    %1006 = arith.mulf %1005, %1005 : vector<9x32xf32>
    %cst_409 = arith.constant dense<0.000000e+00> : vector<9xf32>
    %1007 = vector.multi_reduction <add>, %1006, %cst_409 [1] : vector<9x32xf32> to vector<9xf32>
    %1008 = vector.shape_cast %1007 : vector<9xf32> to vector<9x1xf32>
    %cst_410 = arith.constant 3.200000e+01 : f32
    %1009 = vector.broadcast %cst_410 : f32 to vector<9x1xf32>
    %1010 = arith.divf %1008, %1009 : vector<9x1xf32>
    %1011 = vector.broadcast %1003 : vector<9x1xf32> to vector<9x32xf32>
    %1012 = arith.subf %395, %1011 : vector<9x32xf32>
    %cst_411 = arith.constant 9.99999974E-6 : f32
    %1013 = vector.broadcast %cst_411 : f32 to vector<9x1xf32>
    %1014 = arith.addf %1010, %1013 : vector<9x1xf32>
    %1015 = math.rsqrt %1014 : vector<9x1xf32>
    %1016 = vector.broadcast %1015 : vector<9x1xf32> to vector<9x32xf32>
    %1017 = arith.mulf %1012, %1016 : vector<9x32xf32>
    %1018 = vector.broadcast %998 : vector<1x32xf32> to vector<9x32xf32>
    %1019 = arith.mulf %1017, %1018 : vector<9x32xf32>
    %1020 = vector.broadcast %999 : vector<1x32xf32> to vector<9x32xf32>
    %1021 = arith.addf %1019, %1020 : vector<9x32xf32>
    %1022 = vector.extract_strided_slice %995 {offsets = [1, 0], sizes = [1, 32], strides = [1, 1]} : vector<3x32xf32> to vector<1x32xf32>
    %1023 = vector.extract_strided_slice %997 {offsets = [1, 0], sizes = [1, 32], strides = [1, 1]} : vector<3x32xf32> to vector<1x32xf32>
    %cst_412 = arith.constant dense<0.000000e+00> : vector<16xf32>
    %1024 = vector.multi_reduction <add>, %993, %cst_412 [1] : vector<16x32xf32> to vector<16xf32>
    %1025 = vector.shape_cast %1024 : vector<16xf32> to vector<16x1xf32>
    %cst_413 = arith.constant 3.200000e+01 : f32
    %1026 = vector.broadcast %cst_413 : f32 to vector<16x1xf32>
    %1027 = arith.divf %1025, %1026 : vector<16x1xf32>
    %1028 = vector.broadcast %1027 : vector<16x1xf32> to vector<16x32xf32>
    %1029 = arith.subf %993, %1028 : vector<16x32xf32>
    %1030 = arith.mulf %1029, %1029 : vector<16x32xf32>
    %cst_414 = arith.constant dense<0.000000e+00> : vector<16xf32>
    %1031 = vector.multi_reduction <add>, %1030, %cst_414 [1] : vector<16x32xf32> to vector<16xf32>
    %1032 = vector.shape_cast %1031 : vector<16xf32> to vector<16x1xf32>
    %cst_415 = arith.constant 3.200000e+01 : f32
    %1033 = vector.broadcast %cst_415 : f32 to vector<16x1xf32>
    %1034 = arith.divf %1032, %1033 : vector<16x1xf32>
    %1035 = vector.broadcast %1027 : vector<16x1xf32> to vector<16x32xf32>
    %1036 = arith.subf %993, %1035 : vector<16x32xf32>
    %cst_416 = arith.constant 9.99999974E-6 : f32
    %1037 = vector.broadcast %cst_416 : f32 to vector<16x1xf32>
    %1038 = arith.addf %1034, %1037 : vector<16x1xf32>
    %1039 = math.rsqrt %1038 : vector<16x1xf32>
    %1040 = vector.broadcast %1039 : vector<16x1xf32> to vector<16x32xf32>
    %1041 = arith.mulf %1036, %1040 : vector<16x32xf32>
    %1042 = vector.broadcast %1022 : vector<1x32xf32> to vector<16x32xf32>
    %1043 = arith.mulf %1041, %1042 : vector<16x32xf32>
    %1044 = vector.broadcast %1023 : vector<1x32xf32> to vector<16x32xf32>
    %1045 = arith.addf %1043, %1044 : vector<16x32xf32>
    %c5_417 = arith.constant 5 : index
    %c0_418 = arith.constant 0 : index
    %c0_419 = arith.constant 0 : index
    %1046 = vector.load %arg7[%c5_417, %c0_418, %c0_419] : memref<9x32x96xf32, #tpu.memory_space<vmem>>, vector<1x32x96xf32>
    %1047 = vector.shape_cast %1046 : vector<1x32x96xf32> to vector<32x96xf32>
    %1048 = vector.extract_strided_slice %1047 {offsets = [0, 0], sizes = [32, 32], strides = [1, 1]} : vector<32x96xf32> to vector<32x32xf32>
    %cst_420 = arith.constant dense<0.000000e+00> : vector<9x32xf32>
    %1049 = tpu.matmul %1021, %1048, %cst_420 {dimension_numbers = #tpu.dot_dimension_numbers<[1], [0], [0], [1], [0, 0, 1, 1], [], []>} : vector<9x32xf32>, vector<32x32xf32>, vector<9x32xf32> -> vector<9x32xf32>
    %1050 = vector.extract_strided_slice %1047 {offsets = [0, 32], sizes = [32, 64], strides = [1, 1]} : vector<32x96xf32> to vector<32x64xf32>
    %cst_421 = arith.constant dense<0.000000e+00> : vector<16x64xf32>
    %1051 = tpu.matmul %1045, %1050, %cst_421 {dimension_numbers = #tpu.dot_dimension_numbers<[1], [0], [0], [1], [0, 0, 1, 1], [], []>} : vector<16x32xf32>, vector<32x64xf32>, vector<16x64xf32> -> vector<16x64xf32>
    %c5_422 = arith.constant 5 : index
    %c0_423 = arith.constant 0 : index
    %c0_424 = arith.constant 0 : index
    %1052 = vector.load %arg8[%c5_422, %c0_423, %c0_424] : memref<9x32x32xf32, #tpu.memory_space<vmem>>, vector<1x32x32xf32>
    %1053 = vector.shape_cast %1052 : vector<1x32x32xf32> to vector<32x32xf32>
    %cst_425 = arith.constant 0.000000e+00 : f32
    %1054 = vector.broadcast %cst_425 : f32 to vector<9x32xf32>
    %1055 = vector.extract_strided_slice %1049 {offsets = [0, 0], sizes = [9, 8], strides = [1, 1]} : vector<9x32xf32> to vector<9x8xf32>
    %cst_426 = arith.constant 0.176776692 : f32
    %1056 = vector.broadcast %cst_426 : f32 to vector<9x8xf32>
    %1057 = arith.mulf %1055, %1056 : vector<9x8xf32>
    %1058 = vector.extract_strided_slice %1051 {offsets = [0, 0], sizes = [16, 8], strides = [1, 1]} : vector<16x64xf32> to vector<16x8xf32>
    %1059 = vector.extract_strided_slice %1051 {offsets = [0, 32], sizes = [16, 8], strides = [1, 1]} : vector<16x64xf32> to vector<16x8xf32>
    %cst_427 = arith.constant dense<0.000000e+00> : vector<9x16xf32>
    %1060 = tpu.matmul %1057, %1058, %cst_427 {dimension_numbers = #tpu.dot_dimension_numbers<[1], [1], [0], [0], [0, 0, 1, 0], [], []>} : vector<9x8xf32>, vector<16x8xf32>, vector<9x16xf32> -> vector<9x16xf32>
    %cst_428 = arith.constant dense<0xFF800000> : vector<9xf32>
    %1061 = vector.multi_reduction <maximumf>, %1060, %cst_428 [1] : vector<9x16xf32> to vector<9xf32>
    %1062 = vector.shape_cast %1061 : vector<9xf32> to vector<9x1xf32>
    %1063 = vector.broadcast %1062 : vector<9x1xf32> to vector<9x16xf32>
    %1064 = arith.subf %1060, %1063 : vector<9x16xf32>
    %1065 = math.exp %1064 : vector<9x16xf32>
    %cst_429 = arith.constant dense<0.000000e+00> : vector<9xf32>
    %1066 = vector.multi_reduction <add>, %1065, %cst_429 [1] : vector<9x16xf32> to vector<9xf32>
    %1067 = vector.shape_cast %1066 : vector<9xf32> to vector<9x1xf32>
    %1068 = tpu.reciprocal %1067 {approx = true} : vector<9x1xf32> -> vector<9x1xf32>
    %1069 = vector.broadcast %1068 : vector<9x1xf32> to vector<9x16xf32>
    %1070 = arith.mulf %1065, %1069 : vector<9x16xf32>
    %cst_430 = arith.constant dense<0.000000e+00> : vector<9x8xf32>
    %1071 = tpu.matmul %1070, %1059, %cst_430 {dimension_numbers = #tpu.dot_dimension_numbers<[1], [0], [0], [1], [0, 0, 1, 1], [], []>} : vector<9x16xf32>, vector<16x8xf32>, vector<9x8xf32> -> vector<9x8xf32>
    %1072 = vector.extract_strided_slice %1053 {offsets = [0, 0], sizes = [8, 32], strides = [1, 1]} : vector<32x32xf32> to vector<8x32xf32>
    %cst_431 = arith.constant dense<0.000000e+00> : vector<9x32xf32>
    %1073 = tpu.matmul %1071, %1072, %cst_431 {dimension_numbers = #tpu.dot_dimension_numbers<[1], [0], [0], [1], [0, 0, 1, 1], [], []>} : vector<9x8xf32>, vector<8x32xf32>, vector<9x32xf32> -> vector<9x32xf32>
    %1074 = arith.addf %1054, %1073 : vector<9x32xf32>
    %1075 = vector.extract_strided_slice %1049 {offsets = [0, 8], sizes = [9, 8], strides = [1, 1]} : vector<9x32xf32> to vector<9x8xf32>
    %cst_432 = arith.constant 0.176776692 : f32
    %1076 = vector.broadcast %cst_432 : f32 to vector<9x8xf32>
    %1077 = arith.mulf %1075, %1076 : vector<9x8xf32>
    %1078 = vector.extract_strided_slice %1051 {offsets = [0, 8], sizes = [16, 8], strides = [1, 1]} : vector<16x64xf32> to vector<16x8xf32>
    %1079 = vector.extract_strided_slice %1051 {offsets = [0, 40], sizes = [16, 8], strides = [1, 1]} : vector<16x64xf32> to vector<16x8xf32>
    %cst_433 = arith.constant dense<0.000000e+00> : vector<9x16xf32>
    %1080 = tpu.matmul %1077, %1078, %cst_433 {dimension_numbers = #tpu.dot_dimension_numbers<[1], [1], [0], [0], [0, 0, 1, 0], [], []>} : vector<9x8xf32>, vector<16x8xf32>, vector<9x16xf32> -> vector<9x16xf32>
    %cst_434 = arith.constant dense<0xFF800000> : vector<9xf32>
    %1081 = vector.multi_reduction <maximumf>, %1080, %cst_434 [1] : vector<9x16xf32> to vector<9xf32>
    %1082 = vector.shape_cast %1081 : vector<9xf32> to vector<9x1xf32>
    %1083 = vector.broadcast %1082 : vector<9x1xf32> to vector<9x16xf32>
    %1084 = arith.subf %1080, %1083 : vector<9x16xf32>
    %1085 = math.exp %1084 : vector<9x16xf32>
    %cst_435 = arith.constant dense<0.000000e+00> : vector<9xf32>
    %1086 = vector.multi_reduction <add>, %1085, %cst_435 [1] : vector<9x16xf32> to vector<9xf32>
    %1087 = vector.shape_cast %1086 : vector<9xf32> to vector<9x1xf32>
    %1088 = tpu.reciprocal %1087 {approx = true} : vector<9x1xf32> -> vector<9x1xf32>
    %1089 = vector.broadcast %1088 : vector<9x1xf32> to vector<9x16xf32>
    %1090 = arith.mulf %1085, %1089 : vector<9x16xf32>
    %cst_436 = arith.constant dense<0.000000e+00> : vector<9x8xf32>
    %1091 = tpu.matmul %1090, %1079, %cst_436 {dimension_numbers = #tpu.dot_dimension_numbers<[1], [0], [0], [1], [0, 0, 1, 1], [], []>} : vector<9x16xf32>, vector<16x8xf32>, vector<9x8xf32> -> vector<9x8xf32>
    %1092 = vector.extract_strided_slice %1053 {offsets = [8, 0], sizes = [8, 32], strides = [1, 1]} : vector<32x32xf32> to vector<8x32xf32>
    %cst_437 = arith.constant dense<0.000000e+00> : vector<9x32xf32>
    %1093 = tpu.matmul %1091, %1092, %cst_437 {dimension_numbers = #tpu.dot_dimension_numbers<[1], [0], [0], [1], [0, 0, 1, 1], [], []>} : vector<9x8xf32>, vector<8x32xf32>, vector<9x32xf32> -> vector<9x32xf32>
    %1094 = arith.addf %1074, %1093 : vector<9x32xf32>
    %1095 = vector.extract_strided_slice %1049 {offsets = [0, 16], sizes = [9, 8], strides = [1, 1]} : vector<9x32xf32> to vector<9x8xf32>
    %cst_438 = arith.constant 0.176776692 : f32
    %1096 = vector.broadcast %cst_438 : f32 to vector<9x8xf32>
    %1097 = arith.mulf %1095, %1096 : vector<9x8xf32>
    %1098 = vector.extract_strided_slice %1051 {offsets = [0, 16], sizes = [16, 8], strides = [1, 1]} : vector<16x64xf32> to vector<16x8xf32>
    %1099 = vector.extract_strided_slice %1051 {offsets = [0, 48], sizes = [16, 8], strides = [1, 1]} : vector<16x64xf32> to vector<16x8xf32>
    %cst_439 = arith.constant dense<0.000000e+00> : vector<9x16xf32>
    %1100 = tpu.matmul %1097, %1098, %cst_439 {dimension_numbers = #tpu.dot_dimension_numbers<[1], [1], [0], [0], [0, 0, 1, 0], [], []>} : vector<9x8xf32>, vector<16x8xf32>, vector<9x16xf32> -> vector<9x16xf32>
    %cst_440 = arith.constant dense<0xFF800000> : vector<9xf32>
    %1101 = vector.multi_reduction <maximumf>, %1100, %cst_440 [1] : vector<9x16xf32> to vector<9xf32>
    %1102 = vector.shape_cast %1101 : vector<9xf32> to vector<9x1xf32>
    %1103 = vector.broadcast %1102 : vector<9x1xf32> to vector<9x16xf32>
    %1104 = arith.subf %1100, %1103 : vector<9x16xf32>
    %1105 = math.exp %1104 : vector<9x16xf32>
    %cst_441 = arith.constant dense<0.000000e+00> : vector<9xf32>
    %1106 = vector.multi_reduction <add>, %1105, %cst_441 [1] : vector<9x16xf32> to vector<9xf32>
    %1107 = vector.shape_cast %1106 : vector<9xf32> to vector<9x1xf32>
    %1108 = tpu.reciprocal %1107 {approx = true} : vector<9x1xf32> -> vector<9x1xf32>
    %1109 = vector.broadcast %1108 : vector<9x1xf32> to vector<9x16xf32>
    %1110 = arith.mulf %1105, %1109 : vector<9x16xf32>
    %cst_442 = arith.constant dense<0.000000e+00> : vector<9x8xf32>
    %1111 = tpu.matmul %1110, %1099, %cst_442 {dimension_numbers = #tpu.dot_dimension_numbers<[1], [0], [0], [1], [0, 0, 1, 1], [], []>} : vector<9x16xf32>, vector<16x8xf32>, vector<9x8xf32> -> vector<9x8xf32>
    %1112 = vector.extract_strided_slice %1053 {offsets = [16, 0], sizes = [8, 32], strides = [1, 1]} : vector<32x32xf32> to vector<8x32xf32>
    %cst_443 = arith.constant dense<0.000000e+00> : vector<9x32xf32>
    %1113 = tpu.matmul %1111, %1112, %cst_443 {dimension_numbers = #tpu.dot_dimension_numbers<[1], [0], [0], [1], [0, 0, 1, 1], [], []>} : vector<9x8xf32>, vector<8x32xf32>, vector<9x32xf32> -> vector<9x32xf32>
    %1114 = arith.addf %1094, %1113 : vector<9x32xf32>
    %1115 = vector.extract_strided_slice %1049 {offsets = [0, 24], sizes = [9, 8], strides = [1, 1]} : vector<9x32xf32> to vector<9x8xf32>
    %cst_444 = arith.constant 0.176776692 : f32
    %1116 = vector.broadcast %cst_444 : f32 to vector<9x8xf32>
    %1117 = arith.mulf %1115, %1116 : vector<9x8xf32>
    %1118 = vector.extract_strided_slice %1051 {offsets = [0, 24], sizes = [16, 8], strides = [1, 1]} : vector<16x64xf32> to vector<16x8xf32>
    %1119 = vector.extract_strided_slice %1051 {offsets = [0, 56], sizes = [16, 8], strides = [1, 1]} : vector<16x64xf32> to vector<16x8xf32>
    %cst_445 = arith.constant dense<0.000000e+00> : vector<9x16xf32>
    %1120 = tpu.matmul %1117, %1118, %cst_445 {dimension_numbers = #tpu.dot_dimension_numbers<[1], [1], [0], [0], [0, 0, 1, 0], [], []>} : vector<9x8xf32>, vector<16x8xf32>, vector<9x16xf32> -> vector<9x16xf32>
    %cst_446 = arith.constant dense<0xFF800000> : vector<9xf32>
    %1121 = vector.multi_reduction <maximumf>, %1120, %cst_446 [1] : vector<9x16xf32> to vector<9xf32>
    %1122 = vector.shape_cast %1121 : vector<9xf32> to vector<9x1xf32>
    %1123 = vector.broadcast %1122 : vector<9x1xf32> to vector<9x16xf32>
    %1124 = arith.subf %1120, %1123 : vector<9x16xf32>
    %1125 = math.exp %1124 : vector<9x16xf32>
    %cst_447 = arith.constant dense<0.000000e+00> : vector<9xf32>
    %1126 = vector.multi_reduction <add>, %1125, %cst_447 [1] : vector<9x16xf32> to vector<9xf32>
    %1127 = vector.shape_cast %1126 : vector<9xf32> to vector<9x1xf32>
    %1128 = tpu.reciprocal %1127 {approx = true} : vector<9x1xf32> -> vector<9x1xf32>
    %1129 = vector.broadcast %1128 : vector<9x1xf32> to vector<9x16xf32>
    %1130 = arith.mulf %1125, %1129 : vector<9x16xf32>
    %cst_448 = arith.constant dense<0.000000e+00> : vector<9x8xf32>
    %1131 = tpu.matmul %1130, %1119, %cst_448 {dimension_numbers = #tpu.dot_dimension_numbers<[1], [0], [0], [1], [0, 0, 1, 1], [], []>} : vector<9x16xf32>, vector<16x8xf32>, vector<9x8xf32> -> vector<9x8xf32>
    %1132 = vector.extract_strided_slice %1053 {offsets = [24, 0], sizes = [8, 32], strides = [1, 1]} : vector<32x32xf32> to vector<8x32xf32>
    %cst_449 = arith.constant dense<0.000000e+00> : vector<9x32xf32>
    %1133 = tpu.matmul %1131, %1132, %cst_449 {dimension_numbers = #tpu.dot_dimension_numbers<[1], [0], [0], [1], [0, 0, 1, 1], [], []>} : vector<9x8xf32>, vector<8x32xf32>, vector<9x32xf32> -> vector<9x32xf32>
    %1134 = arith.addf %1114, %1133 : vector<9x32xf32>
    %1135 = arith.addf %1134, %395 : vector<9x32xf32>
    %1136 = vector.extract_strided_slice %995 {offsets = [2, 0], sizes = [1, 32], strides = [1, 1]} : vector<3x32xf32> to vector<1x32xf32>
    %1137 = vector.extract_strided_slice %997 {offsets = [2, 0], sizes = [1, 32], strides = [1, 1]} : vector<3x32xf32> to vector<1x32xf32>
    %cst_450 = arith.constant dense<0.000000e+00> : vector<9xf32>
    %1138 = vector.multi_reduction <add>, %1135, %cst_450 [1] : vector<9x32xf32> to vector<9xf32>
    %1139 = vector.shape_cast %1138 : vector<9xf32> to vector<9x1xf32>
    %cst_451 = arith.constant 3.200000e+01 : f32
    %1140 = vector.broadcast %cst_451 : f32 to vector<9x1xf32>
    %1141 = arith.divf %1139, %1140 : vector<9x1xf32>
    %1142 = vector.broadcast %1141 : vector<9x1xf32> to vector<9x32xf32>
    %1143 = arith.subf %1135, %1142 : vector<9x32xf32>
    %1144 = arith.mulf %1143, %1143 : vector<9x32xf32>
    %cst_452 = arith.constant dense<0.000000e+00> : vector<9xf32>
    %1145 = vector.multi_reduction <add>, %1144, %cst_452 [1] : vector<9x32xf32> to vector<9xf32>
    %1146 = vector.shape_cast %1145 : vector<9xf32> to vector<9x1xf32>
    %cst_453 = arith.constant 3.200000e+01 : f32
    %1147 = vector.broadcast %cst_453 : f32 to vector<9x1xf32>
    %1148 = arith.divf %1146, %1147 : vector<9x1xf32>
    %1149 = vector.broadcast %1141 : vector<9x1xf32> to vector<9x32xf32>
    %1150 = arith.subf %1135, %1149 : vector<9x32xf32>
    %cst_454 = arith.constant 9.99999974E-6 : f32
    %1151 = vector.broadcast %cst_454 : f32 to vector<9x1xf32>
    %1152 = arith.addf %1148, %1151 : vector<9x1xf32>
    %1153 = math.rsqrt %1152 : vector<9x1xf32>
    %1154 = vector.broadcast %1153 : vector<9x1xf32> to vector<9x32xf32>
    %1155 = arith.mulf %1150, %1154 : vector<9x32xf32>
    %1156 = vector.broadcast %1136 : vector<1x32xf32> to vector<9x32xf32>
    %1157 = arith.mulf %1155, %1156 : vector<9x32xf32>
    %1158 = vector.broadcast %1137 : vector<1x32xf32> to vector<9x32xf32>
    %1159 = arith.addf %1157, %1158 : vector<9x32xf32>
    %c5_455 = arith.constant 5 : index
    %c0_456 = arith.constant 0 : index
    %c0_457 = arith.constant 0 : index
    %1160 = vector.load %arg11[%c5_455, %c0_456, %c0_457] : memref<9x32x64xf32, #tpu.memory_space<vmem>>, vector<1x32x64xf32>
    %1161 = vector.shape_cast %1160 : vector<1x32x64xf32> to vector<32x64xf32>
    %cst_458 = arith.constant dense<0.000000e+00> : vector<9x64xf32>
    %1162 = tpu.matmul %1159, %1161, %cst_458 {dimension_numbers = #tpu.dot_dimension_numbers<[1], [0], [0], [1], [0, 0, 1, 1], [], []>} : vector<9x32xf32>, vector<32x64xf32>, vector<9x64xf32> -> vector<9x64xf32>
    %c5_459 = arith.constant 5 : index
    %c0_460 = arith.constant 0 : index
    %c0_461 = arith.constant 0 : index
    %1163 = vector.load %arg12[%c5_459, %c0_460, %c0_461] : memref<9x1x64xf32, #tpu.memory_space<vmem>>, vector<1x1x64xf32>
    %1164 = vector.shape_cast %1163 : vector<1x1x64xf32> to vector<1x64xf32>
    %1165 = vector.broadcast %1164 : vector<1x64xf32> to vector<9x64xf32>
    %1166 = arith.addf %1162, %1165 : vector<9x64xf32>
    %cst_462 = arith.constant 5.000000e-01 : f32
    %1167 = vector.broadcast %cst_462 : f32 to vector<9x64xf32>
    %1168 = arith.mulf %1167, %1166 : vector<9x64xf32>
    %cst_463 = arith.constant 0.707106769 : f32
    %1169 = vector.broadcast %cst_463 : f32 to vector<9x64xf32>
    %1170 = arith.mulf %1166, %1169 : vector<9x64xf32>
    %cst_464 = arith.constant 0.000000e+00 : f32
    %1171 = vector.broadcast %cst_464 : f32 to vector<9x64xf32>
    %1172 = arith.cmpf oge, %1170, %1171 : vector<9x64xf32>
    %cst_465 = arith.constant 1.000000e+00 : f32
    %cst_466 = arith.constant -1.000000e+00 : f32
    %1173 = vector.broadcast %cst_465 : f32 to vector<9x64xf32>
    %1174 = vector.broadcast %cst_466 : f32 to vector<9x64xf32>
    %1175 = arith.select %1172, %1173, %1174 : vector<9x64xi1>, vector<9x64xf32>
    %1176 = math.absf %1170 : vector<9x64xf32>
    %cst_467 = arith.constant 0.327591091 : f32
    %1177 = vector.broadcast %cst_467 : f32 to vector<9x64xf32>
    %1178 = arith.mulf %1177, %1176 : vector<9x64xf32>
    %cst_468 = arith.constant 1.000000e+00 : f32
    %1179 = vector.broadcast %cst_468 : f32 to vector<9x64xf32>
    %1180 = arith.addf %1179, %1178 : vector<9x64xf32>
    %cst_469 = arith.constant 1.000000e+00 : f32
    %1181 = vector.broadcast %cst_469 : f32 to vector<9x64xf32>
    %1182 = arith.divf %1181, %1180 : vector<9x64xf32>
    %cst_470 = arith.constant 1.06140542 : f32
    %1183 = vector.broadcast %cst_470 : f32 to vector<9x64xf32>
    %1184 = arith.mulf %1183, %1182 : vector<9x64xf32>
    %cst_471 = arith.constant -1.45315206 : f32
    %1185 = vector.broadcast %cst_471 : f32 to vector<9x64xf32>
    %1186 = arith.addf %1184, %1185 : vector<9x64xf32>
    %1187 = arith.mulf %1186, %1182 : vector<9x64xf32>
    %cst_472 = arith.constant 1.42141378 : f32
    %1188 = vector.broadcast %cst_472 : f32 to vector<9x64xf32>
    %1189 = arith.addf %1187, %1188 : vector<9x64xf32>
    %1190 = arith.mulf %1189, %1182 : vector<9x64xf32>
    %cst_473 = arith.constant -0.284496725 : f32
    %1191 = vector.broadcast %cst_473 : f32 to vector<9x64xf32>
    %1192 = arith.addf %1190, %1191 : vector<9x64xf32>
    %1193 = arith.mulf %1192, %1182 : vector<9x64xf32>
    %cst_474 = arith.constant 0.254829586 : f32
    %1194 = vector.broadcast %cst_474 : f32 to vector<9x64xf32>
    %1195 = arith.addf %1193, %1194 : vector<9x64xf32>
    %1196 = arith.mulf %1195, %1182 : vector<9x64xf32>
    %cst_475 = arith.constant 0.000000e+00 : f32
    %1197 = vector.broadcast %cst_475 : f32 to vector<9x64xf32>
    %1198 = arith.subf %1197, %1176 : vector<9x64xf32>
    %1199 = arith.mulf %1198, %1176 : vector<9x64xf32>
    %1200 = math.exp %1199 : vector<9x64xf32>
    %1201 = arith.mulf %1196, %1200 : vector<9x64xf32>
    %cst_476 = arith.constant 1.000000e+00 : f32
    %1202 = vector.broadcast %cst_476 : f32 to vector<9x64xf32>
    %1203 = arith.subf %1202, %1201 : vector<9x64xf32>
    %1204 = arith.mulf %1175, %1203 : vector<9x64xf32>
    %cst_477 = arith.constant 1.000000e+00 : f32
    %1205 = vector.broadcast %cst_477 : f32 to vector<9x64xf32>
    %1206 = arith.addf %1205, %1204 : vector<9x64xf32>
    %1207 = arith.mulf %1168, %1206 : vector<9x64xf32>
    %c5_478 = arith.constant 5 : index
    %c0_479 = arith.constant 0 : index
    %c0_480 = arith.constant 0 : index
    %1208 = vector.load %arg13[%c5_478, %c0_479, %c0_480] : memref<9x64x32xf32, #tpu.memory_space<vmem>>, vector<1x64x32xf32>
    %1209 = vector.shape_cast %1208 : vector<1x64x32xf32> to vector<64x32xf32>
    %cst_481 = arith.constant dense<0.000000e+00> : vector<9x32xf32>
    %1210 = tpu.matmul %1207, %1209, %cst_481 {dimension_numbers = #tpu.dot_dimension_numbers<[1], [0], [0], [1], [0, 0, 1, 1], [], []>} : vector<9x64xf32>, vector<64x32xf32>, vector<9x32xf32> -> vector<9x32xf32>
    %c5_482 = arith.constant 5 : index
    %c0_483 = arith.constant 0 : index
    %c0_484 = arith.constant 0 : index
    %1211 = vector.load %arg14[%c5_482, %c0_483, %c0_484] : memref<9x1x32xf32, #tpu.memory_space<vmem>>, vector<1x1x32xf32>
    %1212 = vector.shape_cast %1211 : vector<1x1x32xf32> to vector<1x32xf32>
    %1213 = vector.broadcast %1212 : vector<1x32xf32> to vector<9x32xf32>
    %1214 = arith.addf %1210, %1213 : vector<9x32xf32>
    %1215 = arith.addf %1214, %1135 : vector<9x32xf32>
    %c6 = arith.constant 6 : index
    %c0_485 = arith.constant 0 : index
    %c0_486 = arith.constant 0 : index
    %1216 = vector.load %arg9[%c6, %c0_485, %c0_486] : memref<9x3x32xf32, #tpu.memory_space<vmem>>, vector<1x3x32xf32>
    %1217 = vector.shape_cast %1216 : vector<1x3x32xf32> to vector<3x32xf32>
    %c6_487 = arith.constant 6 : index
    %c0_488 = arith.constant 0 : index
    %c0_489 = arith.constant 0 : index
    %1218 = vector.load %arg10[%c6_487, %c0_488, %c0_489] : memref<9x3x32xf32, #tpu.memory_space<vmem>>, vector<1x3x32xf32>
    %1219 = vector.shape_cast %1218 : vector<1x3x32xf32> to vector<3x32xf32>
    %1220 = vector.extract_strided_slice %1217 {offsets = [0, 0], sizes = [1, 32], strides = [1, 1]} : vector<3x32xf32> to vector<1x32xf32>
    %1221 = vector.extract_strided_slice %1219 {offsets = [0, 0], sizes = [1, 32], strides = [1, 1]} : vector<3x32xf32> to vector<1x32xf32>
    %cst_490 = arith.constant dense<0.000000e+00> : vector<9xf32>
    %1222 = vector.multi_reduction <add>, %1215, %cst_490 [1] : vector<9x32xf32> to vector<9xf32>
    %1223 = vector.shape_cast %1222 : vector<9xf32> to vector<9x1xf32>
    %cst_491 = arith.constant 3.200000e+01 : f32
    %1224 = vector.broadcast %cst_491 : f32 to vector<9x1xf32>
    %1225 = arith.divf %1223, %1224 : vector<9x1xf32>
    %1226 = vector.broadcast %1225 : vector<9x1xf32> to vector<9x32xf32>
    %1227 = arith.subf %1215, %1226 : vector<9x32xf32>
    %1228 = arith.mulf %1227, %1227 : vector<9x32xf32>
    %cst_492 = arith.constant dense<0.000000e+00> : vector<9xf32>
    %1229 = vector.multi_reduction <add>, %1228, %cst_492 [1] : vector<9x32xf32> to vector<9xf32>
    %1230 = vector.shape_cast %1229 : vector<9xf32> to vector<9x1xf32>
    %cst_493 = arith.constant 3.200000e+01 : f32
    %1231 = vector.broadcast %cst_493 : f32 to vector<9x1xf32>
    %1232 = arith.divf %1230, %1231 : vector<9x1xf32>
    %1233 = vector.broadcast %1225 : vector<9x1xf32> to vector<9x32xf32>
    %1234 = arith.subf %1215, %1233 : vector<9x32xf32>
    %cst_494 = arith.constant 9.99999974E-6 : f32
    %1235 = vector.broadcast %cst_494 : f32 to vector<9x1xf32>
    %1236 = arith.addf %1232, %1235 : vector<9x1xf32>
    %1237 = math.rsqrt %1236 : vector<9x1xf32>
    %1238 = vector.broadcast %1237 : vector<9x1xf32> to vector<9x32xf32>
    %1239 = arith.mulf %1234, %1238 : vector<9x32xf32>
    %1240 = vector.broadcast %1220 : vector<1x32xf32> to vector<9x32xf32>
    %1241 = arith.mulf %1239, %1240 : vector<9x32xf32>
    %1242 = vector.broadcast %1221 : vector<1x32xf32> to vector<9x32xf32>
    %1243 = arith.addf %1241, %1242 : vector<9x32xf32>
    %1244 = vector.extract_strided_slice %1217 {offsets = [1, 0], sizes = [1, 32], strides = [1, 1]} : vector<3x32xf32> to vector<1x32xf32>
    %1245 = vector.extract_strided_slice %1219 {offsets = [1, 0], sizes = [1, 32], strides = [1, 1]} : vector<3x32xf32> to vector<1x32xf32>
    %cst_495 = arith.constant dense<0.000000e+00> : vector<16xf32>
    %1246 = vector.multi_reduction <add>, %993, %cst_495 [1] : vector<16x32xf32> to vector<16xf32>
    %1247 = vector.shape_cast %1246 : vector<16xf32> to vector<16x1xf32>
    %cst_496 = arith.constant 3.200000e+01 : f32
    %1248 = vector.broadcast %cst_496 : f32 to vector<16x1xf32>
    %1249 = arith.divf %1247, %1248 : vector<16x1xf32>
    %1250 = vector.broadcast %1249 : vector<16x1xf32> to vector<16x32xf32>
    %1251 = arith.subf %993, %1250 : vector<16x32xf32>
    %1252 = arith.mulf %1251, %1251 : vector<16x32xf32>
    %cst_497 = arith.constant dense<0.000000e+00> : vector<16xf32>
    %1253 = vector.multi_reduction <add>, %1252, %cst_497 [1] : vector<16x32xf32> to vector<16xf32>
    %1254 = vector.shape_cast %1253 : vector<16xf32> to vector<16x1xf32>
    %cst_498 = arith.constant 3.200000e+01 : f32
    %1255 = vector.broadcast %cst_498 : f32 to vector<16x1xf32>
    %1256 = arith.divf %1254, %1255 : vector<16x1xf32>
    %1257 = vector.broadcast %1249 : vector<16x1xf32> to vector<16x32xf32>
    %1258 = arith.subf %993, %1257 : vector<16x32xf32>
    %cst_499 = arith.constant 9.99999974E-6 : f32
    %1259 = vector.broadcast %cst_499 : f32 to vector<16x1xf32>
    %1260 = arith.addf %1256, %1259 : vector<16x1xf32>
    %1261 = math.rsqrt %1260 : vector<16x1xf32>
    %1262 = vector.broadcast %1261 : vector<16x1xf32> to vector<16x32xf32>
    %1263 = arith.mulf %1258, %1262 : vector<16x32xf32>
    %1264 = vector.broadcast %1244 : vector<1x32xf32> to vector<16x32xf32>
    %1265 = arith.mulf %1263, %1264 : vector<16x32xf32>
    %1266 = vector.broadcast %1245 : vector<1x32xf32> to vector<16x32xf32>
    %1267 = arith.addf %1265, %1266 : vector<16x32xf32>
    %c6_500 = arith.constant 6 : index
    %c0_501 = arith.constant 0 : index
    %c0_502 = arith.constant 0 : index
    %1268 = vector.load %arg7[%c6_500, %c0_501, %c0_502] : memref<9x32x96xf32, #tpu.memory_space<vmem>>, vector<1x32x96xf32>
    %1269 = vector.shape_cast %1268 : vector<1x32x96xf32> to vector<32x96xf32>
    %1270 = vector.extract_strided_slice %1269 {offsets = [0, 0], sizes = [32, 32], strides = [1, 1]} : vector<32x96xf32> to vector<32x32xf32>
    %cst_503 = arith.constant dense<0.000000e+00> : vector<9x32xf32>
    %1271 = tpu.matmul %1243, %1270, %cst_503 {dimension_numbers = #tpu.dot_dimension_numbers<[1], [0], [0], [1], [0, 0, 1, 1], [], []>} : vector<9x32xf32>, vector<32x32xf32>, vector<9x32xf32> -> vector<9x32xf32>
    %1272 = vector.extract_strided_slice %1269 {offsets = [0, 32], sizes = [32, 64], strides = [1, 1]} : vector<32x96xf32> to vector<32x64xf32>
    %cst_504 = arith.constant dense<0.000000e+00> : vector<16x64xf32>
    %1273 = tpu.matmul %1267, %1272, %cst_504 {dimension_numbers = #tpu.dot_dimension_numbers<[1], [0], [0], [1], [0, 0, 1, 1], [], []>} : vector<16x32xf32>, vector<32x64xf32>, vector<16x64xf32> -> vector<16x64xf32>
    %c6_505 = arith.constant 6 : index
    %c0_506 = arith.constant 0 : index
    %c0_507 = arith.constant 0 : index
    %1274 = vector.load %arg8[%c6_505, %c0_506, %c0_507] : memref<9x32x32xf32, #tpu.memory_space<vmem>>, vector<1x32x32xf32>
    %1275 = vector.shape_cast %1274 : vector<1x32x32xf32> to vector<32x32xf32>
    %cst_508 = arith.constant 0.000000e+00 : f32
    %1276 = vector.broadcast %cst_508 : f32 to vector<9x32xf32>
    %1277 = vector.extract_strided_slice %1271 {offsets = [0, 0], sizes = [9, 8], strides = [1, 1]} : vector<9x32xf32> to vector<9x8xf32>
    %cst_509 = arith.constant 0.176776692 : f32
    %1278 = vector.broadcast %cst_509 : f32 to vector<9x8xf32>
    %1279 = arith.mulf %1277, %1278 : vector<9x8xf32>
    %1280 = vector.extract_strided_slice %1273 {offsets = [0, 0], sizes = [16, 8], strides = [1, 1]} : vector<16x64xf32> to vector<16x8xf32>
    %1281 = vector.extract_strided_slice %1273 {offsets = [0, 32], sizes = [16, 8], strides = [1, 1]} : vector<16x64xf32> to vector<16x8xf32>
    %cst_510 = arith.constant dense<0.000000e+00> : vector<9x16xf32>
    %1282 = tpu.matmul %1279, %1280, %cst_510 {dimension_numbers = #tpu.dot_dimension_numbers<[1], [1], [0], [0], [0, 0, 1, 0], [], []>} : vector<9x8xf32>, vector<16x8xf32>, vector<9x16xf32> -> vector<9x16xf32>
    %cst_511 = arith.constant dense<0xFF800000> : vector<9xf32>
    %1283 = vector.multi_reduction <maximumf>, %1282, %cst_511 [1] : vector<9x16xf32> to vector<9xf32>
    %1284 = vector.shape_cast %1283 : vector<9xf32> to vector<9x1xf32>
    %1285 = vector.broadcast %1284 : vector<9x1xf32> to vector<9x16xf32>
    %1286 = arith.subf %1282, %1285 : vector<9x16xf32>
    %1287 = math.exp %1286 : vector<9x16xf32>
    %cst_512 = arith.constant dense<0.000000e+00> : vector<9xf32>
    %1288 = vector.multi_reduction <add>, %1287, %cst_512 [1] : vector<9x16xf32> to vector<9xf32>
    %1289 = vector.shape_cast %1288 : vector<9xf32> to vector<9x1xf32>
    %1290 = tpu.reciprocal %1289 {approx = true} : vector<9x1xf32> -> vector<9x1xf32>
    %1291 = vector.broadcast %1290 : vector<9x1xf32> to vector<9x16xf32>
    %1292 = arith.mulf %1287, %1291 : vector<9x16xf32>
    %cst_513 = arith.constant dense<0.000000e+00> : vector<9x8xf32>
    %1293 = tpu.matmul %1292, %1281, %cst_513 {dimension_numbers = #tpu.dot_dimension_numbers<[1], [0], [0], [1], [0, 0, 1, 1], [], []>} : vector<9x16xf32>, vector<16x8xf32>, vector<9x8xf32> -> vector<9x8xf32>
    %1294 = vector.extract_strided_slice %1275 {offsets = [0, 0], sizes = [8, 32], strides = [1, 1]} : vector<32x32xf32> to vector<8x32xf32>
    %cst_514 = arith.constant dense<0.000000e+00> : vector<9x32xf32>
    %1295 = tpu.matmul %1293, %1294, %cst_514 {dimension_numbers = #tpu.dot_dimension_numbers<[1], [0], [0], [1], [0, 0, 1, 1], [], []>} : vector<9x8xf32>, vector<8x32xf32>, vector<9x32xf32> -> vector<9x32xf32>
    %1296 = arith.addf %1276, %1295 : vector<9x32xf32>
    %1297 = vector.extract_strided_slice %1271 {offsets = [0, 8], sizes = [9, 8], strides = [1, 1]} : vector<9x32xf32> to vector<9x8xf32>
    %cst_515 = arith.constant 0.176776692 : f32
    %1298 = vector.broadcast %cst_515 : f32 to vector<9x8xf32>
    %1299 = arith.mulf %1297, %1298 : vector<9x8xf32>
    %1300 = vector.extract_strided_slice %1273 {offsets = [0, 8], sizes = [16, 8], strides = [1, 1]} : vector<16x64xf32> to vector<16x8xf32>
    %1301 = vector.extract_strided_slice %1273 {offsets = [0, 40], sizes = [16, 8], strides = [1, 1]} : vector<16x64xf32> to vector<16x8xf32>
    %cst_516 = arith.constant dense<0.000000e+00> : vector<9x16xf32>
    %1302 = tpu.matmul %1299, %1300, %cst_516 {dimension_numbers = #tpu.dot_dimension_numbers<[1], [1], [0], [0], [0, 0, 1, 0], [], []>} : vector<9x8xf32>, vector<16x8xf32>, vector<9x16xf32> -> vector<9x16xf32>
    %cst_517 = arith.constant dense<0xFF800000> : vector<9xf32>
    %1303 = vector.multi_reduction <maximumf>, %1302, %cst_517 [1] : vector<9x16xf32> to vector<9xf32>
    %1304 = vector.shape_cast %1303 : vector<9xf32> to vector<9x1xf32>
    %1305 = vector.broadcast %1304 : vector<9x1xf32> to vector<9x16xf32>
    %1306 = arith.subf %1302, %1305 : vector<9x16xf32>
    %1307 = math.exp %1306 : vector<9x16xf32>
    %cst_518 = arith.constant dense<0.000000e+00> : vector<9xf32>
    %1308 = vector.multi_reduction <add>, %1307, %cst_518 [1] : vector<9x16xf32> to vector<9xf32>
    %1309 = vector.shape_cast %1308 : vector<9xf32> to vector<9x1xf32>
    %1310 = tpu.reciprocal %1309 {approx = true} : vector<9x1xf32> -> vector<9x1xf32>
    %1311 = vector.broadcast %1310 : vector<9x1xf32> to vector<9x16xf32>
    %1312 = arith.mulf %1307, %1311 : vector<9x16xf32>
    %cst_519 = arith.constant dense<0.000000e+00> : vector<9x8xf32>
    %1313 = tpu.matmul %1312, %1301, %cst_519 {dimension_numbers = #tpu.dot_dimension_numbers<[1], [0], [0], [1], [0, 0, 1, 1], [], []>} : vector<9x16xf32>, vector<16x8xf32>, vector<9x8xf32> -> vector<9x8xf32>
    %1314 = vector.extract_strided_slice %1275 {offsets = [8, 0], sizes = [8, 32], strides = [1, 1]} : vector<32x32xf32> to vector<8x32xf32>
    %cst_520 = arith.constant dense<0.000000e+00> : vector<9x32xf32>
    %1315 = tpu.matmul %1313, %1314, %cst_520 {dimension_numbers = #tpu.dot_dimension_numbers<[1], [0], [0], [1], [0, 0, 1, 1], [], []>} : vector<9x8xf32>, vector<8x32xf32>, vector<9x32xf32> -> vector<9x32xf32>
    %1316 = arith.addf %1296, %1315 : vector<9x32xf32>
    %1317 = vector.extract_strided_slice %1271 {offsets = [0, 16], sizes = [9, 8], strides = [1, 1]} : vector<9x32xf32> to vector<9x8xf32>
    %cst_521 = arith.constant 0.176776692 : f32
    %1318 = vector.broadcast %cst_521 : f32 to vector<9x8xf32>
    %1319 = arith.mulf %1317, %1318 : vector<9x8xf32>
    %1320 = vector.extract_strided_slice %1273 {offsets = [0, 16], sizes = [16, 8], strides = [1, 1]} : vector<16x64xf32> to vector<16x8xf32>
    %1321 = vector.extract_strided_slice %1273 {offsets = [0, 48], sizes = [16, 8], strides = [1, 1]} : vector<16x64xf32> to vector<16x8xf32>
    %cst_522 = arith.constant dense<0.000000e+00> : vector<9x16xf32>
    %1322 = tpu.matmul %1319, %1320, %cst_522 {dimension_numbers = #tpu.dot_dimension_numbers<[1], [1], [0], [0], [0, 0, 1, 0], [], []>} : vector<9x8xf32>, vector<16x8xf32>, vector<9x16xf32> -> vector<9x16xf32>
    %cst_523 = arith.constant dense<0xFF800000> : vector<9xf32>
    %1323 = vector.multi_reduction <maximumf>, %1322, %cst_523 [1] : vector<9x16xf32> to vector<9xf32>
    %1324 = vector.shape_cast %1323 : vector<9xf32> to vector<9x1xf32>
    %1325 = vector.broadcast %1324 : vector<9x1xf32> to vector<9x16xf32>
    %1326 = arith.subf %1322, %1325 : vector<9x16xf32>
    %1327 = math.exp %1326 : vector<9x16xf32>
    %cst_524 = arith.constant dense<0.000000e+00> : vector<9xf32>
    %1328 = vector.multi_reduction <add>, %1327, %cst_524 [1] : vector<9x16xf32> to vector<9xf32>
    %1329 = vector.shape_cast %1328 : vector<9xf32> to vector<9x1xf32>
    %1330 = tpu.reciprocal %1329 {approx = true} : vector<9x1xf32> -> vector<9x1xf32>
    %1331 = vector.broadcast %1330 : vector<9x1xf32> to vector<9x16xf32>
    %1332 = arith.mulf %1327, %1331 : vector<9x16xf32>
    %cst_525 = arith.constant dense<0.000000e+00> : vector<9x8xf32>
    %1333 = tpu.matmul %1332, %1321, %cst_525 {dimension_numbers = #tpu.dot_dimension_numbers<[1], [0], [0], [1], [0, 0, 1, 1], [], []>} : vector<9x16xf32>, vector<16x8xf32>, vector<9x8xf32> -> vector<9x8xf32>
    %1334 = vector.extract_strided_slice %1275 {offsets = [16, 0], sizes = [8, 32], strides = [1, 1]} : vector<32x32xf32> to vector<8x32xf32>
    %cst_526 = arith.constant dense<0.000000e+00> : vector<9x32xf32>
    %1335 = tpu.matmul %1333, %1334, %cst_526 {dimension_numbers = #tpu.dot_dimension_numbers<[1], [0], [0], [1], [0, 0, 1, 1], [], []>} : vector<9x8xf32>, vector<8x32xf32>, vector<9x32xf32> -> vector<9x32xf32>
    %1336 = arith.addf %1316, %1335 : vector<9x32xf32>
    %1337 = vector.extract_strided_slice %1271 {offsets = [0, 24], sizes = [9, 8], strides = [1, 1]} : vector<9x32xf32> to vector<9x8xf32>
    %cst_527 = arith.constant 0.176776692 : f32
    %1338 = vector.broadcast %cst_527 : f32 to vector<9x8xf32>
    %1339 = arith.mulf %1337, %1338 : vector<9x8xf32>
    %1340 = vector.extract_strided_slice %1273 {offsets = [0, 24], sizes = [16, 8], strides = [1, 1]} : vector<16x64xf32> to vector<16x8xf32>
    %1341 = vector.extract_strided_slice %1273 {offsets = [0, 56], sizes = [16, 8], strides = [1, 1]} : vector<16x64xf32> to vector<16x8xf32>
    %cst_528 = arith.constant dense<0.000000e+00> : vector<9x16xf32>
    %1342 = tpu.matmul %1339, %1340, %cst_528 {dimension_numbers = #tpu.dot_dimension_numbers<[1], [1], [0], [0], [0, 0, 1, 0], [], []>} : vector<9x8xf32>, vector<16x8xf32>, vector<9x16xf32> -> vector<9x16xf32>
    %cst_529 = arith.constant dense<0xFF800000> : vector<9xf32>
    %1343 = vector.multi_reduction <maximumf>, %1342, %cst_529 [1] : vector<9x16xf32> to vector<9xf32>
    %1344 = vector.shape_cast %1343 : vector<9xf32> to vector<9x1xf32>
    %1345 = vector.broadcast %1344 : vector<9x1xf32> to vector<9x16xf32>
    %1346 = arith.subf %1342, %1345 : vector<9x16xf32>
    %1347 = math.exp %1346 : vector<9x16xf32>
    %cst_530 = arith.constant dense<0.000000e+00> : vector<9xf32>
    %1348 = vector.multi_reduction <add>, %1347, %cst_530 [1] : vector<9x16xf32> to vector<9xf32>
    %1349 = vector.shape_cast %1348 : vector<9xf32> to vector<9x1xf32>
    %1350 = tpu.reciprocal %1349 {approx = true} : vector<9x1xf32> -> vector<9x1xf32>
    %1351 = vector.broadcast %1350 : vector<9x1xf32> to vector<9x16xf32>
    %1352 = arith.mulf %1347, %1351 : vector<9x16xf32>
    %cst_531 = arith.constant dense<0.000000e+00> : vector<9x8xf32>
    %1353 = tpu.matmul %1352, %1341, %cst_531 {dimension_numbers = #tpu.dot_dimension_numbers<[1], [0], [0], [1], [0, 0, 1, 1], [], []>} : vector<9x16xf32>, vector<16x8xf32>, vector<9x8xf32> -> vector<9x8xf32>
    %1354 = vector.extract_strided_slice %1275 {offsets = [24, 0], sizes = [8, 32], strides = [1, 1]} : vector<32x32xf32> to vector<8x32xf32>
    %cst_532 = arith.constant dense<0.000000e+00> : vector<9x32xf32>
    %1355 = tpu.matmul %1353, %1354, %cst_532 {dimension_numbers = #tpu.dot_dimension_numbers<[1], [0], [0], [1], [0, 0, 1, 1], [], []>} : vector<9x8xf32>, vector<8x32xf32>, vector<9x32xf32> -> vector<9x32xf32>
    %1356 = arith.addf %1336, %1355 : vector<9x32xf32>
    %1357 = arith.addf %1356, %1215 : vector<9x32xf32>
    %1358 = vector.extract_strided_slice %1217 {offsets = [2, 0], sizes = [1, 32], strides = [1, 1]} : vector<3x32xf32> to vector<1x32xf32>
    %1359 = vector.extract_strided_slice %1219 {offsets = [2, 0], sizes = [1, 32], strides = [1, 1]} : vector<3x32xf32> to vector<1x32xf32>
    %cst_533 = arith.constant dense<0.000000e+00> : vector<9xf32>
    %1360 = vector.multi_reduction <add>, %1357, %cst_533 [1] : vector<9x32xf32> to vector<9xf32>
    %1361 = vector.shape_cast %1360 : vector<9xf32> to vector<9x1xf32>
    %cst_534 = arith.constant 3.200000e+01 : f32
    %1362 = vector.broadcast %cst_534 : f32 to vector<9x1xf32>
    %1363 = arith.divf %1361, %1362 : vector<9x1xf32>
    %1364 = vector.broadcast %1363 : vector<9x1xf32> to vector<9x32xf32>
    %1365 = arith.subf %1357, %1364 : vector<9x32xf32>
    %1366 = arith.mulf %1365, %1365 : vector<9x32xf32>
    %cst_535 = arith.constant dense<0.000000e+00> : vector<9xf32>
    %1367 = vector.multi_reduction <add>, %1366, %cst_535 [1] : vector<9x32xf32> to vector<9xf32>
    %1368 = vector.shape_cast %1367 : vector<9xf32> to vector<9x1xf32>
    %cst_536 = arith.constant 3.200000e+01 : f32
    %1369 = vector.broadcast %cst_536 : f32 to vector<9x1xf32>
    %1370 = arith.divf %1368, %1369 : vector<9x1xf32>
    %1371 = vector.broadcast %1363 : vector<9x1xf32> to vector<9x32xf32>
    %1372 = arith.subf %1357, %1371 : vector<9x32xf32>
    %cst_537 = arith.constant 9.99999974E-6 : f32
    %1373 = vector.broadcast %cst_537 : f32 to vector<9x1xf32>
    %1374 = arith.addf %1370, %1373 : vector<9x1xf32>
    %1375 = math.rsqrt %1374 : vector<9x1xf32>
    %1376 = vector.broadcast %1375 : vector<9x1xf32> to vector<9x32xf32>
    %1377 = arith.mulf %1372, %1376 : vector<9x32xf32>
    %1378 = vector.broadcast %1358 : vector<1x32xf32> to vector<9x32xf32>
    %1379 = arith.mulf %1377, %1378 : vector<9x32xf32>
    %1380 = vector.broadcast %1359 : vector<1x32xf32> to vector<9x32xf32>
    %1381 = arith.addf %1379, %1380 : vector<9x32xf32>
    %c6_538 = arith.constant 6 : index
    %c0_539 = arith.constant 0 : index
    %c0_540 = arith.constant 0 : index
    %1382 = vector.load %arg11[%c6_538, %c0_539, %c0_540] : memref<9x32x64xf32, #tpu.memory_space<vmem>>, vector<1x32x64xf32>
    %1383 = vector.shape_cast %1382 : vector<1x32x64xf32> to vector<32x64xf32>
    %cst_541 = arith.constant dense<0.000000e+00> : vector<9x64xf32>
    %1384 = tpu.matmul %1381, %1383, %cst_541 {dimension_numbers = #tpu.dot_dimension_numbers<[1], [0], [0], [1], [0, 0, 1, 1], [], []>} : vector<9x32xf32>, vector<32x64xf32>, vector<9x64xf32> -> vector<9x64xf32>
    %c6_542 = arith.constant 6 : index
    %c0_543 = arith.constant 0 : index
    %c0_544 = arith.constant 0 : index
    %1385 = vector.load %arg12[%c6_542, %c0_543, %c0_544] : memref<9x1x64xf32, #tpu.memory_space<vmem>>, vector<1x1x64xf32>
    %1386 = vector.shape_cast %1385 : vector<1x1x64xf32> to vector<1x64xf32>
    %1387 = vector.broadcast %1386 : vector<1x64xf32> to vector<9x64xf32>
    %1388 = arith.addf %1384, %1387 : vector<9x64xf32>
    %cst_545 = arith.constant 5.000000e-01 : f32
    %1389 = vector.broadcast %cst_545 : f32 to vector<9x64xf32>
    %1390 = arith.mulf %1389, %1388 : vector<9x64xf32>
    %cst_546 = arith.constant 0.707106769 : f32
    %1391 = vector.broadcast %cst_546 : f32 to vector<9x64xf32>
    %1392 = arith.mulf %1388, %1391 : vector<9x64xf32>
    %cst_547 = arith.constant 0.000000e+00 : f32
    %1393 = vector.broadcast %cst_547 : f32 to vector<9x64xf32>
    %1394 = arith.cmpf oge, %1392, %1393 : vector<9x64xf32>
    %cst_548 = arith.constant 1.000000e+00 : f32
    %cst_549 = arith.constant -1.000000e+00 : f32
    %1395 = vector.broadcast %cst_548 : f32 to vector<9x64xf32>
    %1396 = vector.broadcast %cst_549 : f32 to vector<9x64xf32>
    %1397 = arith.select %1394, %1395, %1396 : vector<9x64xi1>, vector<9x64xf32>
    %1398 = math.absf %1392 : vector<9x64xf32>
    %cst_550 = arith.constant 0.327591091 : f32
    %1399 = vector.broadcast %cst_550 : f32 to vector<9x64xf32>
    %1400 = arith.mulf %1399, %1398 : vector<9x64xf32>
    %cst_551 = arith.constant 1.000000e+00 : f32
    %1401 = vector.broadcast %cst_551 : f32 to vector<9x64xf32>
    %1402 = arith.addf %1401, %1400 : vector<9x64xf32>
    %cst_552 = arith.constant 1.000000e+00 : f32
    %1403 = vector.broadcast %cst_552 : f32 to vector<9x64xf32>
    %1404 = arith.divf %1403, %1402 : vector<9x64xf32>
    %cst_553 = arith.constant 1.06140542 : f32
    %1405 = vector.broadcast %cst_553 : f32 to vector<9x64xf32>
    %1406 = arith.mulf %1405, %1404 : vector<9x64xf32>
    %cst_554 = arith.constant -1.45315206 : f32
    %1407 = vector.broadcast %cst_554 : f32 to vector<9x64xf32>
    %1408 = arith.addf %1406, %1407 : vector<9x64xf32>
    %1409 = arith.mulf %1408, %1404 : vector<9x64xf32>
    %cst_555 = arith.constant 1.42141378 : f32
    %1410 = vector.broadcast %cst_555 : f32 to vector<9x64xf32>
    %1411 = arith.addf %1409, %1410 : vector<9x64xf32>
    %1412 = arith.mulf %1411, %1404 : vector<9x64xf32>
    %cst_556 = arith.constant -0.284496725 : f32
    %1413 = vector.broadcast %cst_556 : f32 to vector<9x64xf32>
    %1414 = arith.addf %1412, %1413 : vector<9x64xf32>
    %1415 = arith.mulf %1414, %1404 : vector<9x64xf32>
    %cst_557 = arith.constant 0.254829586 : f32
    %1416 = vector.broadcast %cst_557 : f32 to vector<9x64xf32>
    %1417 = arith.addf %1415, %1416 : vector<9x64xf32>
    %1418 = arith.mulf %1417, %1404 : vector<9x64xf32>
    %cst_558 = arith.constant 0.000000e+00 : f32
    %1419 = vector.broadcast %cst_558 : f32 to vector<9x64xf32>
    %1420 = arith.subf %1419, %1398 : vector<9x64xf32>
    %1421 = arith.mulf %1420, %1398 : vector<9x64xf32>
    %1422 = math.exp %1421 : vector<9x64xf32>
    %1423 = arith.mulf %1418, %1422 : vector<9x64xf32>
    %cst_559 = arith.constant 1.000000e+00 : f32
    %1424 = vector.broadcast %cst_559 : f32 to vector<9x64xf32>
    %1425 = arith.subf %1424, %1423 : vector<9x64xf32>
    %1426 = arith.mulf %1397, %1425 : vector<9x64xf32>
    %cst_560 = arith.constant 1.000000e+00 : f32
    %1427 = vector.broadcast %cst_560 : f32 to vector<9x64xf32>
    %1428 = arith.addf %1427, %1426 : vector<9x64xf32>
    %1429 = arith.mulf %1390, %1428 : vector<9x64xf32>
    %c6_561 = arith.constant 6 : index
    %c0_562 = arith.constant 0 : index
    %c0_563 = arith.constant 0 : index
    %1430 = vector.load %arg13[%c6_561, %c0_562, %c0_563] : memref<9x64x32xf32, #tpu.memory_space<vmem>>, vector<1x64x32xf32>
    %1431 = vector.shape_cast %1430 : vector<1x64x32xf32> to vector<64x32xf32>
    %cst_564 = arith.constant dense<0.000000e+00> : vector<9x32xf32>
    %1432 = tpu.matmul %1429, %1431, %cst_564 {dimension_numbers = #tpu.dot_dimension_numbers<[1], [0], [0], [1], [0, 0, 1, 1], [], []>} : vector<9x64xf32>, vector<64x32xf32>, vector<9x32xf32> -> vector<9x32xf32>
    %c6_565 = arith.constant 6 : index
    %c0_566 = arith.constant 0 : index
    %c0_567 = arith.constant 0 : index
    %1433 = vector.load %arg14[%c6_565, %c0_566, %c0_567] : memref<9x1x32xf32, #tpu.memory_space<vmem>>, vector<1x1x32xf32>
    %1434 = vector.shape_cast %1433 : vector<1x1x32xf32> to vector<1x32xf32>
    %1435 = vector.broadcast %1434 : vector<1x32xf32> to vector<9x32xf32>
    %1436 = arith.addf %1432, %1435 : vector<9x32xf32>
    %1437 = arith.addf %1436, %1357 : vector<9x32xf32>
    %c7 = arith.constant 7 : index
    %c0_568 = arith.constant 0 : index
    %c0_569 = arith.constant 0 : index
    %1438 = vector.load %arg9[%c7, %c0_568, %c0_569] : memref<9x3x32xf32, #tpu.memory_space<vmem>>, vector<1x3x32xf32>
    %1439 = vector.shape_cast %1438 : vector<1x3x32xf32> to vector<3x32xf32>
    %c7_570 = arith.constant 7 : index
    %c0_571 = arith.constant 0 : index
    %c0_572 = arith.constant 0 : index
    %1440 = vector.load %arg10[%c7_570, %c0_571, %c0_572] : memref<9x3x32xf32, #tpu.memory_space<vmem>>, vector<1x3x32xf32>
    %1441 = vector.shape_cast %1440 : vector<1x3x32xf32> to vector<3x32xf32>
    %1442 = vector.extract_strided_slice %1439 {offsets = [0, 0], sizes = [1, 32], strides = [1, 1]} : vector<3x32xf32> to vector<1x32xf32>
    %1443 = vector.extract_strided_slice %1441 {offsets = [0, 0], sizes = [1, 32], strides = [1, 1]} : vector<3x32xf32> to vector<1x32xf32>
    %cst_573 = arith.constant dense<0.000000e+00> : vector<7xf32>
    %1444 = vector.multi_reduction <add>, %791, %cst_573 [1] : vector<7x32xf32> to vector<7xf32>
    %1445 = vector.shape_cast %1444 : vector<7xf32> to vector<7x1xf32>
    %cst_574 = arith.constant 3.200000e+01 : f32
    %1446 = vector.broadcast %cst_574 : f32 to vector<7x1xf32>
    %1447 = arith.divf %1445, %1446 : vector<7x1xf32>
    %1448 = vector.broadcast %1447 : vector<7x1xf32> to vector<7x32xf32>
    %1449 = arith.subf %791, %1448 : vector<7x32xf32>
    %1450 = arith.mulf %1449, %1449 : vector<7x32xf32>
    %cst_575 = arith.constant dense<0.000000e+00> : vector<7xf32>
    %1451 = vector.multi_reduction <add>, %1450, %cst_575 [1] : vector<7x32xf32> to vector<7xf32>
    %1452 = vector.shape_cast %1451 : vector<7xf32> to vector<7x1xf32>
    %cst_576 = arith.constant 3.200000e+01 : f32
    %1453 = vector.broadcast %cst_576 : f32 to vector<7x1xf32>
    %1454 = arith.divf %1452, %1453 : vector<7x1xf32>
    %1455 = vector.broadcast %1447 : vector<7x1xf32> to vector<7x32xf32>
    %1456 = arith.subf %791, %1455 : vector<7x32xf32>
    %cst_577 = arith.constant 9.99999974E-6 : f32
    %1457 = vector.broadcast %cst_577 : f32 to vector<7x1xf32>
    %1458 = arith.addf %1454, %1457 : vector<7x1xf32>
    %1459 = math.rsqrt %1458 : vector<7x1xf32>
    %1460 = vector.broadcast %1459 : vector<7x1xf32> to vector<7x32xf32>
    %1461 = arith.mulf %1456, %1460 : vector<7x32xf32>
    %1462 = vector.broadcast %1442 : vector<1x32xf32> to vector<7x32xf32>
    %1463 = arith.mulf %1461, %1462 : vector<7x32xf32>
    %1464 = vector.broadcast %1443 : vector<1x32xf32> to vector<7x32xf32>
    %1465 = arith.addf %1463, %1464 : vector<7x32xf32>
    %1466 = vector.extract_strided_slice %1439 {offsets = [1, 0], sizes = [1, 32], strides = [1, 1]} : vector<3x32xf32> to vector<1x32xf32>
    %1467 = vector.extract_strided_slice %1441 {offsets = [1, 0], sizes = [1, 32], strides = [1, 1]} : vector<3x32xf32> to vector<1x32xf32>
    %cst_578 = arith.constant dense<0.000000e+00> : vector<16xf32>
    %1468 = vector.multi_reduction <add>, %993, %cst_578 [1] : vector<16x32xf32> to vector<16xf32>
    %1469 = vector.shape_cast %1468 : vector<16xf32> to vector<16x1xf32>
    %cst_579 = arith.constant 3.200000e+01 : f32
    %1470 = vector.broadcast %cst_579 : f32 to vector<16x1xf32>
    %1471 = arith.divf %1469, %1470 : vector<16x1xf32>
    %1472 = vector.broadcast %1471 : vector<16x1xf32> to vector<16x32xf32>
    %1473 = arith.subf %993, %1472 : vector<16x32xf32>
    %1474 = arith.mulf %1473, %1473 : vector<16x32xf32>
    %cst_580 = arith.constant dense<0.000000e+00> : vector<16xf32>
    %1475 = vector.multi_reduction <add>, %1474, %cst_580 [1] : vector<16x32xf32> to vector<16xf32>
    %1476 = vector.shape_cast %1475 : vector<16xf32> to vector<16x1xf32>
    %cst_581 = arith.constant 3.200000e+01 : f32
    %1477 = vector.broadcast %cst_581 : f32 to vector<16x1xf32>
    %1478 = arith.divf %1476, %1477 : vector<16x1xf32>
    %1479 = vector.broadcast %1471 : vector<16x1xf32> to vector<16x32xf32>
    %1480 = arith.subf %993, %1479 : vector<16x32xf32>
    %cst_582 = arith.constant 9.99999974E-6 : f32
    %1481 = vector.broadcast %cst_582 : f32 to vector<16x1xf32>
    %1482 = arith.addf %1478, %1481 : vector<16x1xf32>
    %1483 = math.rsqrt %1482 : vector<16x1xf32>
    %1484 = vector.broadcast %1483 : vector<16x1xf32> to vector<16x32xf32>
    %1485 = arith.mulf %1480, %1484 : vector<16x32xf32>
    %1486 = vector.broadcast %1466 : vector<1x32xf32> to vector<16x32xf32>
    %1487 = arith.mulf %1485, %1486 : vector<16x32xf32>
    %1488 = vector.broadcast %1467 : vector<1x32xf32> to vector<16x32xf32>
    %1489 = arith.addf %1487, %1488 : vector<16x32xf32>
    %c7_583 = arith.constant 7 : index
    %c0_584 = arith.constant 0 : index
    %c0_585 = arith.constant 0 : index
    %1490 = vector.load %arg7[%c7_583, %c0_584, %c0_585] : memref<9x32x96xf32, #tpu.memory_space<vmem>>, vector<1x32x96xf32>
    %1491 = vector.shape_cast %1490 : vector<1x32x96xf32> to vector<32x96xf32>
    %1492 = vector.extract_strided_slice %1491 {offsets = [0, 0], sizes = [32, 32], strides = [1, 1]} : vector<32x96xf32> to vector<32x32xf32>
    %cst_586 = arith.constant dense<0.000000e+00> : vector<7x32xf32>
    %1493 = tpu.matmul %1465, %1492, %cst_586 {dimension_numbers = #tpu.dot_dimension_numbers<[1], [0], [0], [1], [0, 0, 1, 1], [], []>} : vector<7x32xf32>, vector<32x32xf32>, vector<7x32xf32> -> vector<7x32xf32>
    %1494 = vector.extract_strided_slice %1491 {offsets = [0, 32], sizes = [32, 64], strides = [1, 1]} : vector<32x96xf32> to vector<32x64xf32>
    %cst_587 = arith.constant dense<0.000000e+00> : vector<16x64xf32>
    %1495 = tpu.matmul %1489, %1494, %cst_587 {dimension_numbers = #tpu.dot_dimension_numbers<[1], [0], [0], [1], [0, 0, 1, 1], [], []>} : vector<16x32xf32>, vector<32x64xf32>, vector<16x64xf32> -> vector<16x64xf32>
    %c7_588 = arith.constant 7 : index
    %c0_589 = arith.constant 0 : index
    %c0_590 = arith.constant 0 : index
    %1496 = vector.load %arg8[%c7_588, %c0_589, %c0_590] : memref<9x32x32xf32, #tpu.memory_space<vmem>>, vector<1x32x32xf32>
    %1497 = vector.shape_cast %1496 : vector<1x32x32xf32> to vector<32x32xf32>
    %cst_591 = arith.constant 0.000000e+00 : f32
    %1498 = vector.broadcast %cst_591 : f32 to vector<7x32xf32>
    %1499 = vector.extract_strided_slice %1493 {offsets = [0, 0], sizes = [7, 8], strides = [1, 1]} : vector<7x32xf32> to vector<7x8xf32>
    %cst_592 = arith.constant 0.176776692 : f32
    %1500 = vector.broadcast %cst_592 : f32 to vector<7x8xf32>
    %1501 = arith.mulf %1499, %1500 : vector<7x8xf32>
    %1502 = vector.extract_strided_slice %1495 {offsets = [0, 0], sizes = [16, 8], strides = [1, 1]} : vector<16x64xf32> to vector<16x8xf32>
    %1503 = vector.extract_strided_slice %1495 {offsets = [0, 32], sizes = [16, 8], strides = [1, 1]} : vector<16x64xf32> to vector<16x8xf32>
    %cst_593 = arith.constant dense<0.000000e+00> : vector<7x16xf32>
    %1504 = tpu.matmul %1501, %1502, %cst_593 {dimension_numbers = #tpu.dot_dimension_numbers<[1], [1], [0], [0], [0, 0, 1, 0], [], []>} : vector<7x8xf32>, vector<16x8xf32>, vector<7x16xf32> -> vector<7x16xf32>
    %cst_594 = arith.constant dense<0xFF800000> : vector<7xf32>
    %1505 = vector.multi_reduction <maximumf>, %1504, %cst_594 [1] : vector<7x16xf32> to vector<7xf32>
    %1506 = vector.shape_cast %1505 : vector<7xf32> to vector<7x1xf32>
    %1507 = vector.broadcast %1506 : vector<7x1xf32> to vector<7x16xf32>
    %1508 = arith.subf %1504, %1507 : vector<7x16xf32>
    %1509 = math.exp %1508 : vector<7x16xf32>
    %cst_595 = arith.constant dense<0.000000e+00> : vector<7xf32>
    %1510 = vector.multi_reduction <add>, %1509, %cst_595 [1] : vector<7x16xf32> to vector<7xf32>
    %1511 = vector.shape_cast %1510 : vector<7xf32> to vector<7x1xf32>
    %1512 = tpu.reciprocal %1511 {approx = true} : vector<7x1xf32> -> vector<7x1xf32>
    %1513 = vector.broadcast %1512 : vector<7x1xf32> to vector<7x16xf32>
    %1514 = arith.mulf %1509, %1513 : vector<7x16xf32>
    %cst_596 = arith.constant dense<0.000000e+00> : vector<7x8xf32>
    %1515 = tpu.matmul %1514, %1503, %cst_596 {dimension_numbers = #tpu.dot_dimension_numbers<[1], [0], [0], [1], [0, 0, 1, 1], [], []>} : vector<7x16xf32>, vector<16x8xf32>, vector<7x8xf32> -> vector<7x8xf32>
    %1516 = vector.extract_strided_slice %1497 {offsets = [0, 0], sizes = [8, 32], strides = [1, 1]} : vector<32x32xf32> to vector<8x32xf32>
    %cst_597 = arith.constant dense<0.000000e+00> : vector<7x32xf32>
    %1517 = tpu.matmul %1515, %1516, %cst_597 {dimension_numbers = #tpu.dot_dimension_numbers<[1], [0], [0], [1], [0, 0, 1, 1], [], []>} : vector<7x8xf32>, vector<8x32xf32>, vector<7x32xf32> -> vector<7x32xf32>
    %1518 = arith.addf %1498, %1517 : vector<7x32xf32>
    %1519 = vector.extract_strided_slice %1493 {offsets = [0, 8], sizes = [7, 8], strides = [1, 1]} : vector<7x32xf32> to vector<7x8xf32>
    %cst_598 = arith.constant 0.176776692 : f32
    %1520 = vector.broadcast %cst_598 : f32 to vector<7x8xf32>
    %1521 = arith.mulf %1519, %1520 : vector<7x8xf32>
    %1522 = vector.extract_strided_slice %1495 {offsets = [0, 8], sizes = [16, 8], strides = [1, 1]} : vector<16x64xf32> to vector<16x8xf32>
    %1523 = vector.extract_strided_slice %1495 {offsets = [0, 40], sizes = [16, 8], strides = [1, 1]} : vector<16x64xf32> to vector<16x8xf32>
    %cst_599 = arith.constant dense<0.000000e+00> : vector<7x16xf32>
    %1524 = tpu.matmul %1521, %1522, %cst_599 {dimension_numbers = #tpu.dot_dimension_numbers<[1], [1], [0], [0], [0, 0, 1, 0], [], []>} : vector<7x8xf32>, vector<16x8xf32>, vector<7x16xf32> -> vector<7x16xf32>
    %cst_600 = arith.constant dense<0xFF800000> : vector<7xf32>
    %1525 = vector.multi_reduction <maximumf>, %1524, %cst_600 [1] : vector<7x16xf32> to vector<7xf32>
    %1526 = vector.shape_cast %1525 : vector<7xf32> to vector<7x1xf32>
    %1527 = vector.broadcast %1526 : vector<7x1xf32> to vector<7x16xf32>
    %1528 = arith.subf %1524, %1527 : vector<7x16xf32>
    %1529 = math.exp %1528 : vector<7x16xf32>
    %cst_601 = arith.constant dense<0.000000e+00> : vector<7xf32>
    %1530 = vector.multi_reduction <add>, %1529, %cst_601 [1] : vector<7x16xf32> to vector<7xf32>
    %1531 = vector.shape_cast %1530 : vector<7xf32> to vector<7x1xf32>
    %1532 = tpu.reciprocal %1531 {approx = true} : vector<7x1xf32> -> vector<7x1xf32>
    %1533 = vector.broadcast %1532 : vector<7x1xf32> to vector<7x16xf32>
    %1534 = arith.mulf %1529, %1533 : vector<7x16xf32>
    %cst_602 = arith.constant dense<0.000000e+00> : vector<7x8xf32>
    %1535 = tpu.matmul %1534, %1523, %cst_602 {dimension_numbers = #tpu.dot_dimension_numbers<[1], [0], [0], [1], [0, 0, 1, 1], [], []>} : vector<7x16xf32>, vector<16x8xf32>, vector<7x8xf32> -> vector<7x8xf32>
    %1536 = vector.extract_strided_slice %1497 {offsets = [8, 0], sizes = [8, 32], strides = [1, 1]} : vector<32x32xf32> to vector<8x32xf32>
    %cst_603 = arith.constant dense<0.000000e+00> : vector<7x32xf32>
    %1537 = tpu.matmul %1535, %1536, %cst_603 {dimension_numbers = #tpu.dot_dimension_numbers<[1], [0], [0], [1], [0, 0, 1, 1], [], []>} : vector<7x8xf32>, vector<8x32xf32>, vector<7x32xf32> -> vector<7x32xf32>
    %1538 = arith.addf %1518, %1537 : vector<7x32xf32>
    %1539 = vector.extract_strided_slice %1493 {offsets = [0, 16], sizes = [7, 8], strides = [1, 1]} : vector<7x32xf32> to vector<7x8xf32>
    %cst_604 = arith.constant 0.176776692 : f32
    %1540 = vector.broadcast %cst_604 : f32 to vector<7x8xf32>
    %1541 = arith.mulf %1539, %1540 : vector<7x8xf32>
    %1542 = vector.extract_strided_slice %1495 {offsets = [0, 16], sizes = [16, 8], strides = [1, 1]} : vector<16x64xf32> to vector<16x8xf32>
    %1543 = vector.extract_strided_slice %1495 {offsets = [0, 48], sizes = [16, 8], strides = [1, 1]} : vector<16x64xf32> to vector<16x8xf32>
    %cst_605 = arith.constant dense<0.000000e+00> : vector<7x16xf32>
    %1544 = tpu.matmul %1541, %1542, %cst_605 {dimension_numbers = #tpu.dot_dimension_numbers<[1], [1], [0], [0], [0, 0, 1, 0], [], []>} : vector<7x8xf32>, vector<16x8xf32>, vector<7x16xf32> -> vector<7x16xf32>
    %cst_606 = arith.constant dense<0xFF800000> : vector<7xf32>
    %1545 = vector.multi_reduction <maximumf>, %1544, %cst_606 [1] : vector<7x16xf32> to vector<7xf32>
    %1546 = vector.shape_cast %1545 : vector<7xf32> to vector<7x1xf32>
    %1547 = vector.broadcast %1546 : vector<7x1xf32> to vector<7x16xf32>
    %1548 = arith.subf %1544, %1547 : vector<7x16xf32>
    %1549 = math.exp %1548 : vector<7x16xf32>
    %cst_607 = arith.constant dense<0.000000e+00> : vector<7xf32>
    %1550 = vector.multi_reduction <add>, %1549, %cst_607 [1] : vector<7x16xf32> to vector<7xf32>
    %1551 = vector.shape_cast %1550 : vector<7xf32> to vector<7x1xf32>
    %1552 = tpu.reciprocal %1551 {approx = true} : vector<7x1xf32> -> vector<7x1xf32>
    %1553 = vector.broadcast %1552 : vector<7x1xf32> to vector<7x16xf32>
    %1554 = arith.mulf %1549, %1553 : vector<7x16xf32>
    %cst_608 = arith.constant dense<0.000000e+00> : vector<7x8xf32>
    %1555 = tpu.matmul %1554, %1543, %cst_608 {dimension_numbers = #tpu.dot_dimension_numbers<[1], [0], [0], [1], [0, 0, 1, 1], [], []>} : vector<7x16xf32>, vector<16x8xf32>, vector<7x8xf32> -> vector<7x8xf32>
    %1556 = vector.extract_strided_slice %1497 {offsets = [16, 0], sizes = [8, 32], strides = [1, 1]} : vector<32x32xf32> to vector<8x32xf32>
    %cst_609 = arith.constant dense<0.000000e+00> : vector<7x32xf32>
    %1557 = tpu.matmul %1555, %1556, %cst_609 {dimension_numbers = #tpu.dot_dimension_numbers<[1], [0], [0], [1], [0, 0, 1, 1], [], []>} : vector<7x8xf32>, vector<8x32xf32>, vector<7x32xf32> -> vector<7x32xf32>
    %1558 = arith.addf %1538, %1557 : vector<7x32xf32>
    %1559 = vector.extract_strided_slice %1493 {offsets = [0, 24], sizes = [7, 8], strides = [1, 1]} : vector<7x32xf32> to vector<7x8xf32>
    %cst_610 = arith.constant 0.176776692 : f32
    %1560 = vector.broadcast %cst_610 : f32 to vector<7x8xf32>
    %1561 = arith.mulf %1559, %1560 : vector<7x8xf32>
    %1562 = vector.extract_strided_slice %1495 {offsets = [0, 24], sizes = [16, 8], strides = [1, 1]} : vector<16x64xf32> to vector<16x8xf32>
    %1563 = vector.extract_strided_slice %1495 {offsets = [0, 56], sizes = [16, 8], strides = [1, 1]} : vector<16x64xf32> to vector<16x8xf32>
    %cst_611 = arith.constant dense<0.000000e+00> : vector<7x16xf32>
    %1564 = tpu.matmul %1561, %1562, %cst_611 {dimension_numbers = #tpu.dot_dimension_numbers<[1], [1], [0], [0], [0, 0, 1, 0], [], []>} : vector<7x8xf32>, vector<16x8xf32>, vector<7x16xf32> -> vector<7x16xf32>
    %cst_612 = arith.constant dense<0xFF800000> : vector<7xf32>
    %1565 = vector.multi_reduction <maximumf>, %1564, %cst_612 [1] : vector<7x16xf32> to vector<7xf32>
    %1566 = vector.shape_cast %1565 : vector<7xf32> to vector<7x1xf32>
    %1567 = vector.broadcast %1566 : vector<7x1xf32> to vector<7x16xf32>
    %1568 = arith.subf %1564, %1567 : vector<7x16xf32>
    %1569 = math.exp %1568 : vector<7x16xf32>
    %cst_613 = arith.constant dense<0.000000e+00> : vector<7xf32>
    %1570 = vector.multi_reduction <add>, %1569, %cst_613 [1] : vector<7x16xf32> to vector<7xf32>
    %1571 = vector.shape_cast %1570 : vector<7xf32> to vector<7x1xf32>
    %1572 = tpu.reciprocal %1571 {approx = true} : vector<7x1xf32> -> vector<7x1xf32>
    %1573 = vector.broadcast %1572 : vector<7x1xf32> to vector<7x16xf32>
    %1574 = arith.mulf %1569, %1573 : vector<7x16xf32>
    %cst_614 = arith.constant dense<0.000000e+00> : vector<7x8xf32>
    %1575 = tpu.matmul %1574, %1563, %cst_614 {dimension_numbers = #tpu.dot_dimension_numbers<[1], [0], [0], [1], [0, 0, 1, 1], [], []>} : vector<7x16xf32>, vector<16x8xf32>, vector<7x8xf32> -> vector<7x8xf32>
    %1576 = vector.extract_strided_slice %1497 {offsets = [24, 0], sizes = [8, 32], strides = [1, 1]} : vector<32x32xf32> to vector<8x32xf32>
    %cst_615 = arith.constant dense<0.000000e+00> : vector<7x32xf32>
    %1577 = tpu.matmul %1575, %1576, %cst_615 {dimension_numbers = #tpu.dot_dimension_numbers<[1], [0], [0], [1], [0, 0, 1, 1], [], []>} : vector<7x8xf32>, vector<8x32xf32>, vector<7x32xf32> -> vector<7x32xf32>
    %1578 = arith.addf %1558, %1577 : vector<7x32xf32>
    %1579 = arith.addf %1578, %791 : vector<7x32xf32>
    %1580 = vector.extract_strided_slice %1439 {offsets = [2, 0], sizes = [1, 32], strides = [1, 1]} : vector<3x32xf32> to vector<1x32xf32>
    %1581 = vector.extract_strided_slice %1441 {offsets = [2, 0], sizes = [1, 32], strides = [1, 1]} : vector<3x32xf32> to vector<1x32xf32>
    %cst_616 = arith.constant dense<0.000000e+00> : vector<7xf32>
    %1582 = vector.multi_reduction <add>, %1579, %cst_616 [1] : vector<7x32xf32> to vector<7xf32>
    %1583 = vector.shape_cast %1582 : vector<7xf32> to vector<7x1xf32>
    %cst_617 = arith.constant 3.200000e+01 : f32
    %1584 = vector.broadcast %cst_617 : f32 to vector<7x1xf32>
    %1585 = arith.divf %1583, %1584 : vector<7x1xf32>
    %1586 = vector.broadcast %1585 : vector<7x1xf32> to vector<7x32xf32>
    %1587 = arith.subf %1579, %1586 : vector<7x32xf32>
    %1588 = arith.mulf %1587, %1587 : vector<7x32xf32>
    %cst_618 = arith.constant dense<0.000000e+00> : vector<7xf32>
    %1589 = vector.multi_reduction <add>, %1588, %cst_618 [1] : vector<7x32xf32> to vector<7xf32>
    %1590 = vector.shape_cast %1589 : vector<7xf32> to vector<7x1xf32>
    %cst_619 = arith.constant 3.200000e+01 : f32
    %1591 = vector.broadcast %cst_619 : f32 to vector<7x1xf32>
    %1592 = arith.divf %1590, %1591 : vector<7x1xf32>
    %1593 = vector.broadcast %1585 : vector<7x1xf32> to vector<7x32xf32>
    %1594 = arith.subf %1579, %1593 : vector<7x32xf32>
    %cst_620 = arith.constant 9.99999974E-6 : f32
    %1595 = vector.broadcast %cst_620 : f32 to vector<7x1xf32>
    %1596 = arith.addf %1592, %1595 : vector<7x1xf32>
    %1597 = math.rsqrt %1596 : vector<7x1xf32>
    %1598 = vector.broadcast %1597 : vector<7x1xf32> to vector<7x32xf32>
    %1599 = arith.mulf %1594, %1598 : vector<7x32xf32>
    %1600 = vector.broadcast %1580 : vector<1x32xf32> to vector<7x32xf32>
    %1601 = arith.mulf %1599, %1600 : vector<7x32xf32>
    %1602 = vector.broadcast %1581 : vector<1x32xf32> to vector<7x32xf32>
    %1603 = arith.addf %1601, %1602 : vector<7x32xf32>
    %c7_621 = arith.constant 7 : index
    %c0_622 = arith.constant 0 : index
    %c0_623 = arith.constant 0 : index
    %1604 = vector.load %arg11[%c7_621, %c0_622, %c0_623] : memref<9x32x64xf32, #tpu.memory_space<vmem>>, vector<1x32x64xf32>
    %1605 = vector.shape_cast %1604 : vector<1x32x64xf32> to vector<32x64xf32>
    %cst_624 = arith.constant dense<0.000000e+00> : vector<7x64xf32>
    %1606 = tpu.matmul %1603, %1605, %cst_624 {dimension_numbers = #tpu.dot_dimension_numbers<[1], [0], [0], [1], [0, 0, 1, 1], [], []>} : vector<7x32xf32>, vector<32x64xf32>, vector<7x64xf32> -> vector<7x64xf32>
    %c7_625 = arith.constant 7 : index
    %c0_626 = arith.constant 0 : index
    %c0_627 = arith.constant 0 : index
    %1607 = vector.load %arg12[%c7_625, %c0_626, %c0_627] : memref<9x1x64xf32, #tpu.memory_space<vmem>>, vector<1x1x64xf32>
    %1608 = vector.shape_cast %1607 : vector<1x1x64xf32> to vector<1x64xf32>
    %1609 = vector.broadcast %1608 : vector<1x64xf32> to vector<7x64xf32>
    %1610 = arith.addf %1606, %1609 : vector<7x64xf32>
    %cst_628 = arith.constant 5.000000e-01 : f32
    %1611 = vector.broadcast %cst_628 : f32 to vector<7x64xf32>
    %1612 = arith.mulf %1611, %1610 : vector<7x64xf32>
    %cst_629 = arith.constant 0.707106769 : f32
    %1613 = vector.broadcast %cst_629 : f32 to vector<7x64xf32>
    %1614 = arith.mulf %1610, %1613 : vector<7x64xf32>
    %cst_630 = arith.constant 0.000000e+00 : f32
    %1615 = vector.broadcast %cst_630 : f32 to vector<7x64xf32>
    %1616 = arith.cmpf oge, %1614, %1615 : vector<7x64xf32>
    %cst_631 = arith.constant 1.000000e+00 : f32
    %cst_632 = arith.constant -1.000000e+00 : f32
    %1617 = vector.broadcast %cst_631 : f32 to vector<7x64xf32>
    %1618 = vector.broadcast %cst_632 : f32 to vector<7x64xf32>
    %1619 = arith.select %1616, %1617, %1618 : vector<7x64xi1>, vector<7x64xf32>
    %1620 = math.absf %1614 : vector<7x64xf32>
    %cst_633 = arith.constant 0.327591091 : f32
    %1621 = vector.broadcast %cst_633 : f32 to vector<7x64xf32>
    %1622 = arith.mulf %1621, %1620 : vector<7x64xf32>
    %cst_634 = arith.constant 1.000000e+00 : f32
    %1623 = vector.broadcast %cst_634 : f32 to vector<7x64xf32>
    %1624 = arith.addf %1623, %1622 : vector<7x64xf32>
    %cst_635 = arith.constant 1.000000e+00 : f32
    %1625 = vector.broadcast %cst_635 : f32 to vector<7x64xf32>
    %1626 = arith.divf %1625, %1624 : vector<7x64xf32>
    %cst_636 = arith.constant 1.06140542 : f32
    %1627 = vector.broadcast %cst_636 : f32 to vector<7x64xf32>
    %1628 = arith.mulf %1627, %1626 : vector<7x64xf32>
    %cst_637 = arith.constant -1.45315206 : f32
    %1629 = vector.broadcast %cst_637 : f32 to vector<7x64xf32>
    %1630 = arith.addf %1628, %1629 : vector<7x64xf32>
    %1631 = arith.mulf %1630, %1626 : vector<7x64xf32>
    %cst_638 = arith.constant 1.42141378 : f32
    %1632 = vector.broadcast %cst_638 : f32 to vector<7x64xf32>
    %1633 = arith.addf %1631, %1632 : vector<7x64xf32>
    %1634 = arith.mulf %1633, %1626 : vector<7x64xf32>
    %cst_639 = arith.constant -0.284496725 : f32
    %1635 = vector.broadcast %cst_639 : f32 to vector<7x64xf32>
    %1636 = arith.addf %1634, %1635 : vector<7x64xf32>
    %1637 = arith.mulf %1636, %1626 : vector<7x64xf32>
    %cst_640 = arith.constant 0.254829586 : f32
    %1638 = vector.broadcast %cst_640 : f32 to vector<7x64xf32>
    %1639 = arith.addf %1637, %1638 : vector<7x64xf32>
    %1640 = arith.mulf %1639, %1626 : vector<7x64xf32>
    %cst_641 = arith.constant 0.000000e+00 : f32
    %1641 = vector.broadcast %cst_641 : f32 to vector<7x64xf32>
    %1642 = arith.subf %1641, %1620 : vector<7x64xf32>
    %1643 = arith.mulf %1642, %1620 : vector<7x64xf32>
    %1644 = math.exp %1643 : vector<7x64xf32>
    %1645 = arith.mulf %1640, %1644 : vector<7x64xf32>
    %cst_642 = arith.constant 1.000000e+00 : f32
    %1646 = vector.broadcast %cst_642 : f32 to vector<7x64xf32>
    %1647 = arith.subf %1646, %1645 : vector<7x64xf32>
    %1648 = arith.mulf %1619, %1647 : vector<7x64xf32>
    %cst_643 = arith.constant 1.000000e+00 : f32
    %1649 = vector.broadcast %cst_643 : f32 to vector<7x64xf32>
    %1650 = arith.addf %1649, %1648 : vector<7x64xf32>
    %1651 = arith.mulf %1612, %1650 : vector<7x64xf32>
    %c7_644 = arith.constant 7 : index
    %c0_645 = arith.constant 0 : index
    %c0_646 = arith.constant 0 : index
    %1652 = vector.load %arg13[%c7_644, %c0_645, %c0_646] : memref<9x64x32xf32, #tpu.memory_space<vmem>>, vector<1x64x32xf32>
    %1653 = vector.shape_cast %1652 : vector<1x64x32xf32> to vector<64x32xf32>
    %cst_647 = arith.constant dense<0.000000e+00> : vector<7x32xf32>
    %1654 = tpu.matmul %1651, %1653, %cst_647 {dimension_numbers = #tpu.dot_dimension_numbers<[1], [0], [0], [1], [0, 0, 1, 1], [], []>} : vector<7x64xf32>, vector<64x32xf32>, vector<7x32xf32> -> vector<7x32xf32>
    %c7_648 = arith.constant 7 : index
    %c0_649 = arith.constant 0 : index
    %c0_650 = arith.constant 0 : index
    %1655 = vector.load %arg14[%c7_648, %c0_649, %c0_650] : memref<9x1x32xf32, #tpu.memory_space<vmem>>, vector<1x1x32xf32>
    %1656 = vector.shape_cast %1655 : vector<1x1x32xf32> to vector<1x32xf32>
    %1657 = vector.broadcast %1656 : vector<1x32xf32> to vector<7x32xf32>
    %1658 = arith.addf %1654, %1657 : vector<7x32xf32>
    %1659 = arith.addf %1658, %1579 : vector<7x32xf32>
    %c8 = arith.constant 8 : index
    %c0_651 = arith.constant 0 : index
    %c0_652 = arith.constant 0 : index
    %1660 = vector.load %arg9[%c8, %c0_651, %c0_652] : memref<9x3x32xf32, #tpu.memory_space<vmem>>, vector<1x3x32xf32>
    %1661 = vector.shape_cast %1660 : vector<1x3x32xf32> to vector<3x32xf32>
    %c8_653 = arith.constant 8 : index
    %c0_654 = arith.constant 0 : index
    %c0_655 = arith.constant 0 : index
    %1662 = vector.load %arg10[%c8_653, %c0_654, %c0_655] : memref<9x3x32xf32, #tpu.memory_space<vmem>>, vector<1x3x32xf32>
    %1663 = vector.shape_cast %1662 : vector<1x3x32xf32> to vector<3x32xf32>
    %1664 = vector.extract_strided_slice %1661 {offsets = [0, 0], sizes = [1, 32], strides = [1, 1]} : vector<3x32xf32> to vector<1x32xf32>
    %1665 = vector.extract_strided_slice %1663 {offsets = [0, 0], sizes = [1, 32], strides = [1, 1]} : vector<3x32xf32> to vector<1x32xf32>
    %cst_656 = arith.constant dense<0.000000e+00> : vector<7xf32>
    %1666 = vector.multi_reduction <add>, %1659, %cst_656 [1] : vector<7x32xf32> to vector<7xf32>
    %1667 = vector.shape_cast %1666 : vector<7xf32> to vector<7x1xf32>
    %cst_657 = arith.constant 3.200000e+01 : f32
    %1668 = vector.broadcast %cst_657 : f32 to vector<7x1xf32>
    %1669 = arith.divf %1667, %1668 : vector<7x1xf32>
    %1670 = vector.broadcast %1669 : vector<7x1xf32> to vector<7x32xf32>
    %1671 = arith.subf %1659, %1670 : vector<7x32xf32>
    %1672 = arith.mulf %1671, %1671 : vector<7x32xf32>
    %cst_658 = arith.constant dense<0.000000e+00> : vector<7xf32>
    %1673 = vector.multi_reduction <add>, %1672, %cst_658 [1] : vector<7x32xf32> to vector<7xf32>
    %1674 = vector.shape_cast %1673 : vector<7xf32> to vector<7x1xf32>
    %cst_659 = arith.constant 3.200000e+01 : f32
    %1675 = vector.broadcast %cst_659 : f32 to vector<7x1xf32>
    %1676 = arith.divf %1674, %1675 : vector<7x1xf32>
    %1677 = vector.broadcast %1669 : vector<7x1xf32> to vector<7x32xf32>
    %1678 = arith.subf %1659, %1677 : vector<7x32xf32>
    %cst_660 = arith.constant 9.99999974E-6 : f32
    %1679 = vector.broadcast %cst_660 : f32 to vector<7x1xf32>
    %1680 = arith.addf %1676, %1679 : vector<7x1xf32>
    %1681 = math.rsqrt %1680 : vector<7x1xf32>
    %1682 = vector.broadcast %1681 : vector<7x1xf32> to vector<7x32xf32>
    %1683 = arith.mulf %1678, %1682 : vector<7x32xf32>
    %1684 = vector.broadcast %1664 : vector<1x32xf32> to vector<7x32xf32>
    %1685 = arith.mulf %1683, %1684 : vector<7x32xf32>
    %1686 = vector.broadcast %1665 : vector<1x32xf32> to vector<7x32xf32>
    %1687 = arith.addf %1685, %1686 : vector<7x32xf32>
    %1688 = vector.extract_strided_slice %1661 {offsets = [1, 0], sizes = [1, 32], strides = [1, 1]} : vector<3x32xf32> to vector<1x32xf32>
    %1689 = vector.extract_strided_slice %1663 {offsets = [1, 0], sizes = [1, 32], strides = [1, 1]} : vector<3x32xf32> to vector<1x32xf32>
    %cst_661 = arith.constant dense<0.000000e+00> : vector<16xf32>
    %1690 = vector.multi_reduction <add>, %993, %cst_661 [1] : vector<16x32xf32> to vector<16xf32>
    %1691 = vector.shape_cast %1690 : vector<16xf32> to vector<16x1xf32>
    %cst_662 = arith.constant 3.200000e+01 : f32
    %1692 = vector.broadcast %cst_662 : f32 to vector<16x1xf32>
    %1693 = arith.divf %1691, %1692 : vector<16x1xf32>
    %1694 = vector.broadcast %1693 : vector<16x1xf32> to vector<16x32xf32>
    %1695 = arith.subf %993, %1694 : vector<16x32xf32>
    %1696 = arith.mulf %1695, %1695 : vector<16x32xf32>
    %cst_663 = arith.constant dense<0.000000e+00> : vector<16xf32>
    %1697 = vector.multi_reduction <add>, %1696, %cst_663 [1] : vector<16x32xf32> to vector<16xf32>
    %1698 = vector.shape_cast %1697 : vector<16xf32> to vector<16x1xf32>
    %cst_664 = arith.constant 3.200000e+01 : f32
    %1699 = vector.broadcast %cst_664 : f32 to vector<16x1xf32>
    %1700 = arith.divf %1698, %1699 : vector<16x1xf32>
    %1701 = vector.broadcast %1693 : vector<16x1xf32> to vector<16x32xf32>
    %1702 = arith.subf %993, %1701 : vector<16x32xf32>
    %cst_665 = arith.constant 9.99999974E-6 : f32
    %1703 = vector.broadcast %cst_665 : f32 to vector<16x1xf32>
    %1704 = arith.addf %1700, %1703 : vector<16x1xf32>
    %1705 = math.rsqrt %1704 : vector<16x1xf32>
    %1706 = vector.broadcast %1705 : vector<16x1xf32> to vector<16x32xf32>
    %1707 = arith.mulf %1702, %1706 : vector<16x32xf32>
    %1708 = vector.broadcast %1688 : vector<1x32xf32> to vector<16x32xf32>
    %1709 = arith.mulf %1707, %1708 : vector<16x32xf32>
    %1710 = vector.broadcast %1689 : vector<1x32xf32> to vector<16x32xf32>
    %1711 = arith.addf %1709, %1710 : vector<16x32xf32>
    %c8_666 = arith.constant 8 : index
    %c0_667 = arith.constant 0 : index
    %c0_668 = arith.constant 0 : index
    %1712 = vector.load %arg7[%c8_666, %c0_667, %c0_668] : memref<9x32x96xf32, #tpu.memory_space<vmem>>, vector<1x32x96xf32>
    %1713 = vector.shape_cast %1712 : vector<1x32x96xf32> to vector<32x96xf32>
    %1714 = vector.extract_strided_slice %1713 {offsets = [0, 0], sizes = [32, 32], strides = [1, 1]} : vector<32x96xf32> to vector<32x32xf32>
    %cst_669 = arith.constant dense<0.000000e+00> : vector<7x32xf32>
    %1715 = tpu.matmul %1687, %1714, %cst_669 {dimension_numbers = #tpu.dot_dimension_numbers<[1], [0], [0], [1], [0, 0, 1, 1], [], []>} : vector<7x32xf32>, vector<32x32xf32>, vector<7x32xf32> -> vector<7x32xf32>
    %1716 = vector.extract_strided_slice %1713 {offsets = [0, 32], sizes = [32, 64], strides = [1, 1]} : vector<32x96xf32> to vector<32x64xf32>
    %cst_670 = arith.constant dense<0.000000e+00> : vector<16x64xf32>
    %1717 = tpu.matmul %1711, %1716, %cst_670 {dimension_numbers = #tpu.dot_dimension_numbers<[1], [0], [0], [1], [0, 0, 1, 1], [], []>} : vector<16x32xf32>, vector<32x64xf32>, vector<16x64xf32> -> vector<16x64xf32>
    %c8_671 = arith.constant 8 : index
    %c0_672 = arith.constant 0 : index
    %c0_673 = arith.constant 0 : index
    %1718 = vector.load %arg8[%c8_671, %c0_672, %c0_673] : memref<9x32x32xf32, #tpu.memory_space<vmem>>, vector<1x32x32xf32>
    %1719 = vector.shape_cast %1718 : vector<1x32x32xf32> to vector<32x32xf32>
    %cst_674 = arith.constant 0.000000e+00 : f32
    %1720 = vector.broadcast %cst_674 : f32 to vector<7x32xf32>
    %1721 = vector.extract_strided_slice %1715 {offsets = [0, 0], sizes = [7, 8], strides = [1, 1]} : vector<7x32xf32> to vector<7x8xf32>
    %cst_675 = arith.constant 0.176776692 : f32
    %1722 = vector.broadcast %cst_675 : f32 to vector<7x8xf32>
    %1723 = arith.mulf %1721, %1722 : vector<7x8xf32>
    %1724 = vector.extract_strided_slice %1717 {offsets = [0, 0], sizes = [16, 8], strides = [1, 1]} : vector<16x64xf32> to vector<16x8xf32>
    %1725 = vector.extract_strided_slice %1717 {offsets = [0, 32], sizes = [16, 8], strides = [1, 1]} : vector<16x64xf32> to vector<16x8xf32>
    %cst_676 = arith.constant dense<0.000000e+00> : vector<7x16xf32>
    %1726 = tpu.matmul %1723, %1724, %cst_676 {dimension_numbers = #tpu.dot_dimension_numbers<[1], [1], [0], [0], [0, 0, 1, 0], [], []>} : vector<7x8xf32>, vector<16x8xf32>, vector<7x16xf32> -> vector<7x16xf32>
    %cst_677 = arith.constant dense<0xFF800000> : vector<7xf32>
    %1727 = vector.multi_reduction <maximumf>, %1726, %cst_677 [1] : vector<7x16xf32> to vector<7xf32>
    %1728 = vector.shape_cast %1727 : vector<7xf32> to vector<7x1xf32>
    %1729 = vector.broadcast %1728 : vector<7x1xf32> to vector<7x16xf32>
    %1730 = arith.subf %1726, %1729 : vector<7x16xf32>
    %1731 = math.exp %1730 : vector<7x16xf32>
    %cst_678 = arith.constant dense<0.000000e+00> : vector<7xf32>
    %1732 = vector.multi_reduction <add>, %1731, %cst_678 [1] : vector<7x16xf32> to vector<7xf32>
    %1733 = vector.shape_cast %1732 : vector<7xf32> to vector<7x1xf32>
    %1734 = tpu.reciprocal %1733 {approx = true} : vector<7x1xf32> -> vector<7x1xf32>
    %1735 = vector.broadcast %1734 : vector<7x1xf32> to vector<7x16xf32>
    %1736 = arith.mulf %1731, %1735 : vector<7x16xf32>
    %cst_679 = arith.constant dense<0.000000e+00> : vector<7x8xf32>
    %1737 = tpu.matmul %1736, %1725, %cst_679 {dimension_numbers = #tpu.dot_dimension_numbers<[1], [0], [0], [1], [0, 0, 1, 1], [], []>} : vector<7x16xf32>, vector<16x8xf32>, vector<7x8xf32> -> vector<7x8xf32>
    %1738 = vector.extract_strided_slice %1719 {offsets = [0, 0], sizes = [8, 32], strides = [1, 1]} : vector<32x32xf32> to vector<8x32xf32>
    %cst_680 = arith.constant dense<0.000000e+00> : vector<7x32xf32>
    %1739 = tpu.matmul %1737, %1738, %cst_680 {dimension_numbers = #tpu.dot_dimension_numbers<[1], [0], [0], [1], [0, 0, 1, 1], [], []>} : vector<7x8xf32>, vector<8x32xf32>, vector<7x32xf32> -> vector<7x32xf32>
    %1740 = arith.addf %1720, %1739 : vector<7x32xf32>
    %1741 = vector.extract_strided_slice %1715 {offsets = [0, 8], sizes = [7, 8], strides = [1, 1]} : vector<7x32xf32> to vector<7x8xf32>
    %cst_681 = arith.constant 0.176776692 : f32
    %1742 = vector.broadcast %cst_681 : f32 to vector<7x8xf32>
    %1743 = arith.mulf %1741, %1742 : vector<7x8xf32>
    %1744 = vector.extract_strided_slice %1717 {offsets = [0, 8], sizes = [16, 8], strides = [1, 1]} : vector<16x64xf32> to vector<16x8xf32>
    %1745 = vector.extract_strided_slice %1717 {offsets = [0, 40], sizes = [16, 8], strides = [1, 1]} : vector<16x64xf32> to vector<16x8xf32>
    %cst_682 = arith.constant dense<0.000000e+00> : vector<7x16xf32>
    %1746 = tpu.matmul %1743, %1744, %cst_682 {dimension_numbers = #tpu.dot_dimension_numbers<[1], [1], [0], [0], [0, 0, 1, 0], [], []>} : vector<7x8xf32>, vector<16x8xf32>, vector<7x16xf32> -> vector<7x16xf32>
    %cst_683 = arith.constant dense<0xFF800000> : vector<7xf32>
    %1747 = vector.multi_reduction <maximumf>, %1746, %cst_683 [1] : vector<7x16xf32> to vector<7xf32>
    %1748 = vector.shape_cast %1747 : vector<7xf32> to vector<7x1xf32>
    %1749 = vector.broadcast %1748 : vector<7x1xf32> to vector<7x16xf32>
    %1750 = arith.subf %1746, %1749 : vector<7x16xf32>
    %1751 = math.exp %1750 : vector<7x16xf32>
    %cst_684 = arith.constant dense<0.000000e+00> : vector<7xf32>
    %1752 = vector.multi_reduction <add>, %1751, %cst_684 [1] : vector<7x16xf32> to vector<7xf32>
    %1753 = vector.shape_cast %1752 : vector<7xf32> to vector<7x1xf32>
    %1754 = tpu.reciprocal %1753 {approx = true} : vector<7x1xf32> -> vector<7x1xf32>
    %1755 = vector.broadcast %1754 : vector<7x1xf32> to vector<7x16xf32>
    %1756 = arith.mulf %1751, %1755 : vector<7x16xf32>
    %cst_685 = arith.constant dense<0.000000e+00> : vector<7x8xf32>
    %1757 = tpu.matmul %1756, %1745, %cst_685 {dimension_numbers = #tpu.dot_dimension_numbers<[1], [0], [0], [1], [0, 0, 1, 1], [], []>} : vector<7x16xf32>, vector<16x8xf32>, vector<7x8xf32> -> vector<7x8xf32>
    %1758 = vector.extract_strided_slice %1719 {offsets = [8, 0], sizes = [8, 32], strides = [1, 1]} : vector<32x32xf32> to vector<8x32xf32>
    %cst_686 = arith.constant dense<0.000000e+00> : vector<7x32xf32>
    %1759 = tpu.matmul %1757, %1758, %cst_686 {dimension_numbers = #tpu.dot_dimension_numbers<[1], [0], [0], [1], [0, 0, 1, 1], [], []>} : vector<7x8xf32>, vector<8x32xf32>, vector<7x32xf32> -> vector<7x32xf32>
    %1760 = arith.addf %1740, %1759 : vector<7x32xf32>
    %1761 = vector.extract_strided_slice %1715 {offsets = [0, 16], sizes = [7, 8], strides = [1, 1]} : vector<7x32xf32> to vector<7x8xf32>
    %cst_687 = arith.constant 0.176776692 : f32
    %1762 = vector.broadcast %cst_687 : f32 to vector<7x8xf32>
    %1763 = arith.mulf %1761, %1762 : vector<7x8xf32>
    %1764 = vector.extract_strided_slice %1717 {offsets = [0, 16], sizes = [16, 8], strides = [1, 1]} : vector<16x64xf32> to vector<16x8xf32>
    %1765 = vector.extract_strided_slice %1717 {offsets = [0, 48], sizes = [16, 8], strides = [1, 1]} : vector<16x64xf32> to vector<16x8xf32>
    %cst_688 = arith.constant dense<0.000000e+00> : vector<7x16xf32>
    %1766 = tpu.matmul %1763, %1764, %cst_688 {dimension_numbers = #tpu.dot_dimension_numbers<[1], [1], [0], [0], [0, 0, 1, 0], [], []>} : vector<7x8xf32>, vector<16x8xf32>, vector<7x16xf32> -> vector<7x16xf32>
    %cst_689 = arith.constant dense<0xFF800000> : vector<7xf32>
    %1767 = vector.multi_reduction <maximumf>, %1766, %cst_689 [1] : vector<7x16xf32> to vector<7xf32>
    %1768 = vector.shape_cast %1767 : vector<7xf32> to vector<7x1xf32>
    %1769 = vector.broadcast %1768 : vector<7x1xf32> to vector<7x16xf32>
    %1770 = arith.subf %1766, %1769 : vector<7x16xf32>
    %1771 = math.exp %1770 : vector<7x16xf32>
    %cst_690 = arith.constant dense<0.000000e+00> : vector<7xf32>
    %1772 = vector.multi_reduction <add>, %1771, %cst_690 [1] : vector<7x16xf32> to vector<7xf32>
    %1773 = vector.shape_cast %1772 : vector<7xf32> to vector<7x1xf32>
    %1774 = tpu.reciprocal %1773 {approx = true} : vector<7x1xf32> -> vector<7x1xf32>
    %1775 = vector.broadcast %1774 : vector<7x1xf32> to vector<7x16xf32>
    %1776 = arith.mulf %1771, %1775 : vector<7x16xf32>
    %cst_691 = arith.constant dense<0.000000e+00> : vector<7x8xf32>
    %1777 = tpu.matmul %1776, %1765, %cst_691 {dimension_numbers = #tpu.dot_dimension_numbers<[1], [0], [0], [1], [0, 0, 1, 1], [], []>} : vector<7x16xf32>, vector<16x8xf32>, vector<7x8xf32> -> vector<7x8xf32>
    %1778 = vector.extract_strided_slice %1719 {offsets = [16, 0], sizes = [8, 32], strides = [1, 1]} : vector<32x32xf32> to vector<8x32xf32>
    %cst_692 = arith.constant dense<0.000000e+00> : vector<7x32xf32>
    %1779 = tpu.matmul %1777, %1778, %cst_692 {dimension_numbers = #tpu.dot_dimension_numbers<[1], [0], [0], [1], [0, 0, 1, 1], [], []>} : vector<7x8xf32>, vector<8x32xf32>, vector<7x32xf32> -> vector<7x32xf32>
    %1780 = arith.addf %1760, %1779 : vector<7x32xf32>
    %1781 = vector.extract_strided_slice %1715 {offsets = [0, 24], sizes = [7, 8], strides = [1, 1]} : vector<7x32xf32> to vector<7x8xf32>
    %cst_693 = arith.constant 0.176776692 : f32
    %1782 = vector.broadcast %cst_693 : f32 to vector<7x8xf32>
    %1783 = arith.mulf %1781, %1782 : vector<7x8xf32>
    %1784 = vector.extract_strided_slice %1717 {offsets = [0, 24], sizes = [16, 8], strides = [1, 1]} : vector<16x64xf32> to vector<16x8xf32>
    %1785 = vector.extract_strided_slice %1717 {offsets = [0, 56], sizes = [16, 8], strides = [1, 1]} : vector<16x64xf32> to vector<16x8xf32>
    %cst_694 = arith.constant dense<0.000000e+00> : vector<7x16xf32>
    %1786 = tpu.matmul %1783, %1784, %cst_694 {dimension_numbers = #tpu.dot_dimension_numbers<[1], [1], [0], [0], [0, 0, 1, 0], [], []>} : vector<7x8xf32>, vector<16x8xf32>, vector<7x16xf32> -> vector<7x16xf32>
    %cst_695 = arith.constant dense<0xFF800000> : vector<7xf32>
    %1787 = vector.multi_reduction <maximumf>, %1786, %cst_695 [1] : vector<7x16xf32> to vector<7xf32>
    %1788 = vector.shape_cast %1787 : vector<7xf32> to vector<7x1xf32>
    %1789 = vector.broadcast %1788 : vector<7x1xf32> to vector<7x16xf32>
    %1790 = arith.subf %1786, %1789 : vector<7x16xf32>
    %1791 = math.exp %1790 : vector<7x16xf32>
    %cst_696 = arith.constant dense<0.000000e+00> : vector<7xf32>
    %1792 = vector.multi_reduction <add>, %1791, %cst_696 [1] : vector<7x16xf32> to vector<7xf32>
    %1793 = vector.shape_cast %1792 : vector<7xf32> to vector<7x1xf32>
    %1794 = tpu.reciprocal %1793 {approx = true} : vector<7x1xf32> -> vector<7x1xf32>
    %1795 = vector.broadcast %1794 : vector<7x1xf32> to vector<7x16xf32>
    %1796 = arith.mulf %1791, %1795 : vector<7x16xf32>
    %cst_697 = arith.constant dense<0.000000e+00> : vector<7x8xf32>
    %1797 = tpu.matmul %1796, %1785, %cst_697 {dimension_numbers = #tpu.dot_dimension_numbers<[1], [0], [0], [1], [0, 0, 1, 1], [], []>} : vector<7x16xf32>, vector<16x8xf32>, vector<7x8xf32> -> vector<7x8xf32>
    %1798 = vector.extract_strided_slice %1719 {offsets = [24, 0], sizes = [8, 32], strides = [1, 1]} : vector<32x32xf32> to vector<8x32xf32>
    %cst_698 = arith.constant dense<0.000000e+00> : vector<7x32xf32>
    %1799 = tpu.matmul %1797, %1798, %cst_698 {dimension_numbers = #tpu.dot_dimension_numbers<[1], [0], [0], [1], [0, 0, 1, 1], [], []>} : vector<7x8xf32>, vector<8x32xf32>, vector<7x32xf32> -> vector<7x32xf32>
    %1800 = arith.addf %1780, %1799 : vector<7x32xf32>
    %1801 = arith.addf %1800, %1659 : vector<7x32xf32>
    %1802 = vector.extract_strided_slice %1661 {offsets = [2, 0], sizes = [1, 32], strides = [1, 1]} : vector<3x32xf32> to vector<1x32xf32>
    %1803 = vector.extract_strided_slice %1663 {offsets = [2, 0], sizes = [1, 32], strides = [1, 1]} : vector<3x32xf32> to vector<1x32xf32>
    %cst_699 = arith.constant dense<0.000000e+00> : vector<7xf32>
    %1804 = vector.multi_reduction <add>, %1801, %cst_699 [1] : vector<7x32xf32> to vector<7xf32>
    %1805 = vector.shape_cast %1804 : vector<7xf32> to vector<7x1xf32>
    %cst_700 = arith.constant 3.200000e+01 : f32
    %1806 = vector.broadcast %cst_700 : f32 to vector<7x1xf32>
    %1807 = arith.divf %1805, %1806 : vector<7x1xf32>
    %1808 = vector.broadcast %1807 : vector<7x1xf32> to vector<7x32xf32>
    %1809 = arith.subf %1801, %1808 : vector<7x32xf32>
    %1810 = arith.mulf %1809, %1809 : vector<7x32xf32>
    %cst_701 = arith.constant dense<0.000000e+00> : vector<7xf32>
    %1811 = vector.multi_reduction <add>, %1810, %cst_701 [1] : vector<7x32xf32> to vector<7xf32>
    %1812 = vector.shape_cast %1811 : vector<7xf32> to vector<7x1xf32>
    %cst_702 = arith.constant 3.200000e+01 : f32
    %1813 = vector.broadcast %cst_702 : f32 to vector<7x1xf32>
    %1814 = arith.divf %1812, %1813 : vector<7x1xf32>
    %1815 = vector.broadcast %1807 : vector<7x1xf32> to vector<7x32xf32>
    %1816 = arith.subf %1801, %1815 : vector<7x32xf32>
    %cst_703 = arith.constant 9.99999974E-6 : f32
    %1817 = vector.broadcast %cst_703 : f32 to vector<7x1xf32>
    %1818 = arith.addf %1814, %1817 : vector<7x1xf32>
    %1819 = math.rsqrt %1818 : vector<7x1xf32>
    %1820 = vector.broadcast %1819 : vector<7x1xf32> to vector<7x32xf32>
    %1821 = arith.mulf %1816, %1820 : vector<7x32xf32>
    %1822 = vector.broadcast %1802 : vector<1x32xf32> to vector<7x32xf32>
    %1823 = arith.mulf %1821, %1822 : vector<7x32xf32>
    %1824 = vector.broadcast %1803 : vector<1x32xf32> to vector<7x32xf32>
    %1825 = arith.addf %1823, %1824 : vector<7x32xf32>
    %c8_704 = arith.constant 8 : index
    %c0_705 = arith.constant 0 : index
    %c0_706 = arith.constant 0 : index
    %1826 = vector.load %arg11[%c8_704, %c0_705, %c0_706] : memref<9x32x64xf32, #tpu.memory_space<vmem>>, vector<1x32x64xf32>
    %1827 = vector.shape_cast %1826 : vector<1x32x64xf32> to vector<32x64xf32>
    %cst_707 = arith.constant dense<0.000000e+00> : vector<7x64xf32>
    %1828 = tpu.matmul %1825, %1827, %cst_707 {dimension_numbers = #tpu.dot_dimension_numbers<[1], [0], [0], [1], [0, 0, 1, 1], [], []>} : vector<7x32xf32>, vector<32x64xf32>, vector<7x64xf32> -> vector<7x64xf32>
    %c8_708 = arith.constant 8 : index
    %c0_709 = arith.constant 0 : index
    %c0_710 = arith.constant 0 : index
    %1829 = vector.load %arg12[%c8_708, %c0_709, %c0_710] : memref<9x1x64xf32, #tpu.memory_space<vmem>>, vector<1x1x64xf32>
    %1830 = vector.shape_cast %1829 : vector<1x1x64xf32> to vector<1x64xf32>
    %1831 = vector.broadcast %1830 : vector<1x64xf32> to vector<7x64xf32>
    %1832 = arith.addf %1828, %1831 : vector<7x64xf32>
    %cst_711 = arith.constant 5.000000e-01 : f32
    %1833 = vector.broadcast %cst_711 : f32 to vector<7x64xf32>
    %1834 = arith.mulf %1833, %1832 : vector<7x64xf32>
    %cst_712 = arith.constant 0.707106769 : f32
    %1835 = vector.broadcast %cst_712 : f32 to vector<7x64xf32>
    %1836 = arith.mulf %1832, %1835 : vector<7x64xf32>
    %cst_713 = arith.constant 0.000000e+00 : f32
    %1837 = vector.broadcast %cst_713 : f32 to vector<7x64xf32>
    %1838 = arith.cmpf oge, %1836, %1837 : vector<7x64xf32>
    %cst_714 = arith.constant 1.000000e+00 : f32
    %cst_715 = arith.constant -1.000000e+00 : f32
    %1839 = vector.broadcast %cst_714 : f32 to vector<7x64xf32>
    %1840 = vector.broadcast %cst_715 : f32 to vector<7x64xf32>
    %1841 = arith.select %1838, %1839, %1840 : vector<7x64xi1>, vector<7x64xf32>
    %1842 = math.absf %1836 : vector<7x64xf32>
    %cst_716 = arith.constant 0.327591091 : f32
    %1843 = vector.broadcast %cst_716 : f32 to vector<7x64xf32>
    %1844 = arith.mulf %1843, %1842 : vector<7x64xf32>
    %cst_717 = arith.constant 1.000000e+00 : f32
    %1845 = vector.broadcast %cst_717 : f32 to vector<7x64xf32>
    %1846 = arith.addf %1845, %1844 : vector<7x64xf32>
    %cst_718 = arith.constant 1.000000e+00 : f32
    %1847 = vector.broadcast %cst_718 : f32 to vector<7x64xf32>
    %1848 = arith.divf %1847, %1846 : vector<7x64xf32>
    %cst_719 = arith.constant 1.06140542 : f32
    %1849 = vector.broadcast %cst_719 : f32 to vector<7x64xf32>
    %1850 = arith.mulf %1849, %1848 : vector<7x64xf32>
    %cst_720 = arith.constant -1.45315206 : f32
    %1851 = vector.broadcast %cst_720 : f32 to vector<7x64xf32>
    %1852 = arith.addf %1850, %1851 : vector<7x64xf32>
    %1853 = arith.mulf %1852, %1848 : vector<7x64xf32>
    %cst_721 = arith.constant 1.42141378 : f32
    %1854 = vector.broadcast %cst_721 : f32 to vector<7x64xf32>
    %1855 = arith.addf %1853, %1854 : vector<7x64xf32>
    %1856 = arith.mulf %1855, %1848 : vector<7x64xf32>
    %cst_722 = arith.constant -0.284496725 : f32
    %1857 = vector.broadcast %cst_722 : f32 to vector<7x64xf32>
    %1858 = arith.addf %1856, %1857 : vector<7x64xf32>
    %1859 = arith.mulf %1858, %1848 : vector<7x64xf32>
    %cst_723 = arith.constant 0.254829586 : f32
    %1860 = vector.broadcast %cst_723 : f32 to vector<7x64xf32>
    %1861 = arith.addf %1859, %1860 : vector<7x64xf32>
    %1862 = arith.mulf %1861, %1848 : vector<7x64xf32>
    %cst_724 = arith.constant 0.000000e+00 : f32
    %1863 = vector.broadcast %cst_724 : f32 to vector<7x64xf32>
    %1864 = arith.subf %1863, %1842 : vector<7x64xf32>
    %1865 = arith.mulf %1864, %1842 : vector<7x64xf32>
    %1866 = math.exp %1865 : vector<7x64xf32>
    %1867 = arith.mulf %1862, %1866 : vector<7x64xf32>
    %cst_725 = arith.constant 1.000000e+00 : f32
    %1868 = vector.broadcast %cst_725 : f32 to vector<7x64xf32>
    %1869 = arith.subf %1868, %1867 : vector<7x64xf32>
    %1870 = arith.mulf %1841, %1869 : vector<7x64xf32>
    %cst_726 = arith.constant 1.000000e+00 : f32
    %1871 = vector.broadcast %cst_726 : f32 to vector<7x64xf32>
    %1872 = arith.addf %1871, %1870 : vector<7x64xf32>
    %1873 = arith.mulf %1834, %1872 : vector<7x64xf32>
    %c8_727 = arith.constant 8 : index
    %c0_728 = arith.constant 0 : index
    %c0_729 = arith.constant 0 : index
    %1874 = vector.load %arg13[%c8_727, %c0_728, %c0_729] : memref<9x64x32xf32, #tpu.memory_space<vmem>>, vector<1x64x32xf32>
    %1875 = vector.shape_cast %1874 : vector<1x64x32xf32> to vector<64x32xf32>
    %cst_730 = arith.constant dense<0.000000e+00> : vector<7x32xf32>
    %1876 = tpu.matmul %1873, %1875, %cst_730 {dimension_numbers = #tpu.dot_dimension_numbers<[1], [0], [0], [1], [0, 0, 1, 1], [], []>} : vector<7x64xf32>, vector<64x32xf32>, vector<7x32xf32> -> vector<7x32xf32>
    %c8_731 = arith.constant 8 : index
    %c0_732 = arith.constant 0 : index
    %c0_733 = arith.constant 0 : index
    %1877 = vector.load %arg14[%c8_731, %c0_732, %c0_733] : memref<9x1x32xf32, #tpu.memory_space<vmem>>, vector<1x1x32xf32>
    %1878 = vector.shape_cast %1877 : vector<1x1x32xf32> to vector<1x32xf32>
    %1879 = vector.broadcast %1878 : vector<1x32xf32> to vector<7x32xf32>
    %1880 = arith.addf %1876, %1879 : vector<7x32xf32>
    %1881 = arith.addf %1880, %1801 : vector<7x32xf32>
    %1882 = vector.extract_strided_slice %395 {offsets = [0, 0], sizes = [1, 32], strides = [1, 1]} : vector<9x32xf32> to vector<1x32xf32>
    %1883 = vector.extract_strided_slice %791 {offsets = [0, 0], sizes = [1, 32], strides = [1, 1]} : vector<7x32xf32> to vector<1x32xf32>
    %1884 = vector.extract_strided_slice %1437 {offsets = [0, 0], sizes = [1, 32], strides = [1, 1]} : vector<9x32xf32> to vector<1x32xf32>
    %1885 = vector.extract_strided_slice %1881 {offsets = [0, 0], sizes = [1, 32], strides = [1, 1]} : vector<7x32xf32> to vector<1x32xf32>
    %1886 = tpu.concatenate %1882, %1883, %1884, %1885 in 0 : vector<1x32xf32>, vector<1x32xf32>, vector<1x32xf32>, vector<1x32xf32> -> vector<4x32xf32>
    %c0_734 = arith.constant 0 : index
    %c0_735 = arith.constant 0 : index
    %c0_736 = arith.constant 0 : index
    %1887 = vector.load %arg15[%c0_734, %c0_735, %c0_736] : memref<1x4x32xf32, #tpu.memory_space<vmem>>, vector<1x4x32xf32>
    %1888 = vector.shape_cast %1887 : vector<1x4x32xf32> to vector<4x32xf32>
    %1889 = vector.shape_cast %1886 : vector<4x32xf32> to vector<1x4x32xf32>
    tpu.vector_store %arg15[%c0_734, %c0_735, %c0_736], %1889 {strides = array<i32>} : memref<1x4x32xf32, #tpu.memory_space<vmem>>, vector<1x4x32xf32>,
    return
  }
  func.func @transform_0(%arg0: i32) -> (i32, i32, i32) {
    %c0_i32 = arith.constant 0 : i32
    %c0_i32_0 = arith.constant 0 : i32
    %c0_i32_1 = arith.constant 0 : i32
    return %arg0, %c0_i32, %c0_i32_0 : i32, i32, i32
  }
  func.func @transform_1(%arg0: i32) -> (i32, i32, i32) {
    %c0_i32 = arith.constant 0 : i32
    %c0_i32_0 = arith.constant 0 : i32
    %c0_i32_1 = arith.constant 0 : i32
    return %arg0, %c0_i32, %c0_i32_0 : i32, i32, i32
  }
  func.func @transform_2(%arg0: i32) -> (i32, i32) {
    %c0_i32 = arith.constant 0 : i32
    %c0_i32_0 = arith.constant 0 : i32
    %c0_i32_1 = arith.constant 0 : i32
    return %c0_i32, %c0_i32_0 : i32, i32
  }
  func.func @transform_3(%arg0: i32) -> (i32, i32) {
    %c0_i32 = arith.constant 0 : i32
    %c0_i32_0 = arith.constant 0 : i32
    %c0_i32_1 = arith.constant 0 : i32
    return %c0_i32, %c0_i32_0 : i32, i32
  }
  func.func @transform_4(%arg0: i32) -> (i32, i32) {
    %c0_i32 = arith.constant 0 : i32
    %c0_i32_0 = arith.constant 0 : i32
    %c0_i32_1 = arith.constant 0 : i32
    return %c0_i32, %c0_i32_0 : i32, i32
  }
  func.func @transform_5(%arg0: i32) -> (i32, i32) {
    %c0_i32 = arith.constant 0 : i32
    %c0_i32_0 = arith.constant 0 : i32
    %c0_i32_1 = arith.constant 0 : i32
    return %c0_i32, %c0_i32_0 : i32, i32
  }
  func.func @transform_6(%arg0: i32) -> (i32, i32, i32) {
    %c0_i32 = arith.constant 0 : i32
    %c0_i32_0 = arith.constant 0 : i32
    %c0_i32_1 = arith.constant 0 : i32
    %c0_i32_2 = arith.constant 0 : i32
    return %c0_i32, %c0_i32_0, %c0_i32_1 : i32, i32, i32
  }
  func.func @transform_7(%arg0: i32) -> (i32, i32, i32) {
    %c0_i32 = arith.constant 0 : i32
    %c0_i32_0 = arith.constant 0 : i32
    %c0_i32_1 = arith.constant 0 : i32
    %c0_i32_2 = arith.constant 0 : i32
    return %c0_i32, %c0_i32_0, %c0_i32_1 : i32, i32, i32
  }
  func.func @transform_8(%arg0: i32) -> (i32, i32, i32) {
    %c0_i32 = arith.constant 0 : i32
    %c0_i32_0 = arith.constant 0 : i32
    %c0_i32_1 = arith.constant 0 : i32
    %c0_i32_2 = arith.constant 0 : i32
    return %c0_i32, %c0_i32_0, %c0_i32_1 : i32, i32, i32
  }
  func.func @transform_9(%arg0: i32) -> (i32, i32, i32) {
    %c0_i32 = arith.constant 0 : i32
    %c0_i32_0 = arith.constant 0 : i32
    %c0_i32_1 = arith.constant 0 : i32
    %c0_i32_2 = arith.constant 0 : i32
    return %c0_i32, %c0_i32_0, %c0_i32_1 : i32, i32, i32
  }
  func.func @transform_10(%arg0: i32) -> (i32, i32, i32) {
    %c0_i32 = arith.constant 0 : i32
    %c0_i32_0 = arith.constant 0 : i32
    %c0_i32_1 = arith.constant 0 : i32
    %c0_i32_2 = arith.constant 0 : i32
    return %c0_i32, %c0_i32_0, %c0_i32_1 : i32, i32, i32
  }
  func.func @transform_11(%arg0: i32) -> (i32, i32, i32) {
    %c0_i32 = arith.constant 0 : i32
    %c0_i32_0 = arith.constant 0 : i32
    %c0_i32_1 = arith.constant 0 : i32
    %c0_i32_2 = arith.constant 0 : i32
    return %c0_i32, %c0_i32_0, %c0_i32_1 : i32, i32, i32
  }
  func.func @transform_12(%arg0: i32) -> (i32, i32, i32) {
    %c0_i32 = arith.constant 0 : i32
    %c0_i32_0 = arith.constant 0 : i32
    %c0_i32_1 = arith.constant 0 : i32
    %c0_i32_2 = arith.constant 0 : i32
    return %c0_i32, %c0_i32_0, %c0_i32_1 : i32, i32, i32
  }
  func.func @transform_13(%arg0: i32) -> (i32, i32, i32) {
    %c0_i32 = arith.constant 0 : i32
    %c0_i32_0 = arith.constant 0 : i32
    %c0_i32_1 = arith.constant 0 : i32
    %c0_i32_2 = arith.constant 0 : i32
    return %c0_i32, %c0_i32_0, %c0_i32_1 : i32, i32, i32
  }
  func.func @transform_14(%arg0: i32) -> (i32, i32, i32) {
    %c0_i32 = arith.constant 0 : i32
    %c0_i32_0 = arith.constant 0 : i32
    %c0_i32_1 = arith.constant 0 : i32
    return %arg0, %c0_i32, %c0_i32_0 : i32, i32, i32
  }
}

</mosaic_0001>

<bundles_post_ra>
// kernel: tpu_custom_call.1
= control target key start
LH: loop header
LB: loop body
LE: loop exit
PB: predicated region body
PF: predicated region fallthrough
CT: control target
= control target key end

     0   :  { %s20333_s0 = inlined_call_operand.hbm [shape: f32[2,8,32], index: 0, kind: input, shape index: {}]   ;;  %s20334_s1 = inlined_call_operand.hbm [shape: f32[2,6,32], index: 1, kind: input, shape index: {}]   ;;  %s20335_s2 = inlined_call_operand.hbm [shape: f32[2,32], index: 2, kind: input, shape index: {}]   ;;  %s20336_s3 = inlined_call_operand.hbm [shape: f32[9,32], index: 3, kind: input, shape index: {}]   ;;  %s20337_s4 = inlined_call_operand.hbm [shape: f32[7,32], index: 4, kind: input, shape index: {}]   ;;  %s20338_s5 = inlined_call_operand.hbm [shape: f32[2,32], index: 5, kind: input, shape index: {}]   ;;  %s20339_s6 = inlined_call_operand.hbm [shape: f32[9,32,96], index: 6, kind: input, shape index: {}]   ;;  %s20340_s7 = inlined_call_operand.hbm [shape: f32[9,32,32], index: 7, kind: input, shape index: {}]   ;;  %s20341_s8 = inlined_call_operand.hbm [shape: f32[9,3,32], index: 8, kind: input, shape index: {}]   ;;  %s20342_s9 = inlined_call_operand.hbm [shape: f32[9,3,32], index: 9, kind: input, shape index: {}]   ;;  %s20343_s10 = inlined_call_operand.hbm [shape: f32[9,32,64], index: 10, kind: input, shape index: {}]   ;;  %s20344_s11 = inlined_call_operand.hbm [shape: f32[9,1,64], index: 11, kind: input, shape index: {}]   ;;  %s20345_s12 = inlined_call_operand.hbm [shape: f32[9,64,32], index: 12, kind: input, shape index: {}]   ;;  %s20346_s13 = inlined_call_operand.hbm [shape: f32[9,1,32], index: 13, kind: input, shape index: {}]   ;;  %s20347_s14 = inlined_call_operand.hbm [shape: f32[2,4,32], index: 14, kind: output, shape index: {}]  }
   0x1   :  { %20364 = sst [smem:[#allocation37_spill]] %s20333_s0 }
   0x2   :  { %20365 = sst [smem:[#allocation38_spill]] %s20334_s1 }
   0x3   :  { %20366 = sst [smem:[#allocation39_spill]] %s20335_s2 }
   0x4   :  { %20367 = sst [smem:[#allocation40_spill]] %s20336_s3 }
   0x5   :  { %20368 = sst [smem:[#allocation41_spill]] %s20337_s4 }
   0x6   :  { %20369 = sst [smem:[#allocation42_spill]] %s20338_s5 }
   0x7   :  { %20370 = sst [smem:[#allocation43_spill]] %s20339_s6 }
   0x8   :  { %20371 = sst [smem:[#allocation44_spill]] %s20340_s7 }
   0x9   :  { %20372 = sst [smem:[#allocation45_spill]] %s20341_s8 }
   0xa   :  { %20373 = sst [smem:[#allocation46_spill]] %s20342_s9 }
   0xb   :  { %20374 = sst [smem:[#allocation47_spill]] %s20343_s10 }
   0xc   :  { %20375 = sst [smem:[#allocation48_spill]] %s20347_s14 }
   0xd   :  { %19 = vsyncpa [#allocation3], 0 }
   0xe   :  { %21 = vsyncpa [#allocation3 + $0x1], 0 }
   0xf   :  { %22 = vsyncpa [#allocation6], 0 }
  0x10   :  { %24 = vsyncpa [#allocation6 + $0x1], 0 }
  0x11   :  { %25 = vsyncpa [#allocation9], 0 }
  0x12   :  { %26 = vsyncpa [#allocation12], 0 }
  0x13   :  { %27 = vsyncpa [#allocation15], 0 }
  0x14   :  { %28 = vsyncpa [#allocation18], 0 }
  0x15   :  { %29 = vsyncpa [#allocation21], 0 }
  0x16   :  { %30 = vsyncpa [#allocation24], 0 }
  0x17   :  { %31 = vsyncpa [#allocation4], 0 }
  0x18   :  { %33 = vsyncpa [#allocation4 + $0x1], 0  ;;  %s18408_s29 = smov 0   ;;  %s18410_s30 = smov 0  }
  0x19   :  { %s18412_s15 = smov 0   ;;  %s18414_s16 = smov 0  }
  0x1a LB: > { %s18296_s17 = smov [#allocation7]   ;;  %s18429_s19 = sadd.s32 4294967295, %s18294_s16   ;;  %s18294_s16 = sphi %s18414_s16, %s20431_s16   ;;  %s18290_s15 = sphi %s18412_s15, %s20430_s15   ;;  %s18286_s30 = sphi %s18410_s30, %s20429_s30   ;;  %s18282_s29 = sphi %s18408_s29, %s20428_s29  }
  0x1b   : > { %s387_s18 = sshll.u32 %s18296_s17, 4  ;;  %p14413_p0 = scmp.ge.s32.totalorder %s18294_s16, 1  ;;  %s388_s18 = int_to_ptr.vmem [resolvable:$true] %s387_s18 }
  0x1c   : > { %p20350_p1 = scmp.eq.s32.totalorder %s18429_s19, 0  ;;  %p374_p2 = scmp.lt.s32.totalorder %s18294_s16, 3 }
  0x1d   : > { %s18297_s21 = smov [#allocation8]   ;;  %s18298_s24 = smov [#allocation11]  }
  0x1e   : > { %p18434_p3 = pnand %p14413_p0, %p374_p2  ;;  %s397_s22 = sshll.u32 %s18297_s21, 4  ;;  %s18441_s22 = int_to_ptr.vmem [resolvable:$true] %s397_s22 }
  0x1f   : > { %s422_s25 = sshll.u32 %s18298_s24, 4  ;;  %s20379_s2 = sld [smem:[#allocation39_spill]]  ;;  %s18449_s25 = int_to_ptr.vmem [resolvable:$true] %s422_s25 }
  0x20   : > { %s20376_s20 = scalar_select %p18434_p3, 1, 0 }
  0x21   : > { %p17020_p5 = pneg %p18434_p3 }
  0x22   : > { %20377 = sst [smem:[#allocation36_spill]] %s20376_s20 }
  0x23   : > { %p18445_p6 = pnand %p17020_p5, %p20350_p1 }
  0x25   : > { %s17800_s28 = scalar_lea.hbm %s20379_s2, 32  ;;  %p18459_p8 = pneg %p18445_p6 }
  0x26   : > { %p17801_p7 = scmp.ne.s32.totalorder %s20379_s2, %s17800_s28  ;;  %p17807_p11 = scmp.lt.u32.totalorder %s17800_s28, %s20379_s2 }
  0x28   : > { %p17803_p9 = pnand %p18459_p8, %p17801_p7 }
  0x2a   : > { %p17804_p10 = pneg %p17803_p9 }
  0x2c   : > { %p17809_p12 = pnand %p17807_p11, %p17804_p10 }
  0x2e   : > { %17812 = shalt.err (!%p17809_p12)
}
  0x2f   : > { %s17813_s26 = scalar_lea.vmem %s388_s18, 32  ;;  %p17821_p5 = scmp.lt.s32.totalorder %s388_s18, %s388_s18 }
  0x30   : > { %p17814_p13 = scmp.ne.s32.totalorder %s388_s18, %s17813_s26  ;;  %p17822_p4 = scmp.lt.s32.totalorder %s17813_s26, %s17813_s26 }
  0x32   : > { %p17816_p0 = pnand %p17814_p13, %p18459_p8  ;;  %p17823_p1 = por %p17822_p4, %p17821_p5 }
  0x34   : > { %p17817_p2 = pneg %p17816_p0 }
  0x36   : > { %p17824_p3 = pnand %p17823_p1, %p17817_p2 }
  0x38   : > { %17827 = shalt.err (!%p17824_p3)
}
  0x39   : > { %17023 = dma.hbm_to_vmem [thread:$0]  (!%p18445_p6), %s20379_s2, 32, %s388_s18, [#allocation6]  }
  0x3a   : > { %s20381_s3 = sld [smem:[#allocation40_spill]] }
  0x40   : > { %s17828_s17 = scalar_lea.hbm %s20381_s3, 256 }
  0x41   : > { %p17829_p7 = scmp.ne.s32.totalorder %s20381_s3, %s17828_s17  ;;  %p17835_p1 = scmp.lt.u32.totalorder %s17828_s17, %s20381_s3 }
  0x43   : > { %p17831_p9 = pnand %p17829_p7, %p18459_p8 }
  0x45   : > { %p17832_p4 = pneg %p17831_p9 }
  0x47   : > { %p17837_p3 = pnand %p17835_p1, %p17832_p4 }
  0x49   : > { %17840 = shalt.err (!%p17837_p3)
}
  0x4a   : > { %s17841_s18 = scalar_lea.vmem %s18441_s22, 256  ;;  %p17849_p13 = scmp.lt.s32.totalorder %s18441_s22, %s18441_s22 }
  0x4b   : > { %p17842_p10 = scmp.ne.s32.totalorder %s18441_s22, %s17841_s18  ;;  %p17850_p0 = scmp.lt.s32.totalorder %s17841_s18, %s17841_s18 }
  0x4d   : > { %p17844_p11 = pnand %p17842_p10, %p18459_p8  ;;  %p17851_p2 = por %p17850_p0, %p17849_p13 }
  0x4f   : > { %p17845_p12 = pneg %p17844_p11 }
  0x51   : > { %p17852_p5 = pnand %p17851_p2, %p17845_p12 }
  0x53   : > { %17855 = shalt.err (!%p17852_p5)
}
  0x54   : > { %s20354_s1 = smov 128   ;;  %s20356_s0 = smov 8  }
  0x55   : > { %17026 = dma.hbm_to_vmem [thread:$0]  (!%p18445_p6), %s20381_s3, 256, %s18441_s22, [#allocation9], %s20354_s1, %s20354_s1, %s20356_s0  }
  0x56   : > { %s20382_s5 = sld [smem:[#allocation42_spill]] }
  0x5c   : > { %s17856_s17 = scalar_lea.hbm %s20382_s5, 32 }
  0x5d   : > { %p17857_p7 = scmp.ne.s32.totalorder %s20382_s5, %s17856_s17  ;;  %p17863_p1 = scmp.lt.u32.totalorder %s17856_s17, %s20382_s5 }
  0x5f   : > { %p17859_p9 = pnand %p17857_p7, %p18459_p8 }
  0x61   : > { %p17860_p4 = pneg %p17859_p9 }
  0x63   : > { %p17865_p3 = pnand %p17863_p1, %p17860_p4 }
  0x65   : > { %17868 = shalt.err (!%p17865_p3)
}
  0x66   : > { %s17869_s22 = scalar_lea.vmem %s18449_s25, 32  ;;  %p17877_p13 = scmp.lt.s32.totalorder %s18449_s25, %s18449_s25 }
  0x67   : > { %p17870_p10 = scmp.ne.s32.totalorder %s18449_s25, %s17869_s22  ;;  %p17878_p0 = scmp.lt.s32.totalorder %s17869_s22, %s17869_s22 }
  0x69   : > { %p17872_p11 = pnand %p17870_p10, %p18459_p8  ;;  %p17879_p2 = por %p17878_p0, %p17877_p13 }
  0x6b   : > { %p17873_p12 = pneg %p17872_p11 }
  0x6d   : > { %p17880_p5 = pnand %p17879_p2, %p17873_p12 }
  0x6f   : > { %17883 = shalt.err (!%p17880_p5)
}
  0x70   : > { %17032 = dma.hbm_to_vmem [thread:$0]  (!%p18445_p6), %s20382_s5, 32, %s18449_s25, [#allocation12]  }
  0x71   : > { %s18301_s27 = smov [#allocation14]   ;;  %s20383_s7 = sld [smem:[#allocation44_spill]] }
  0x72   : > { %s445_s20 = sshll.u32 %s18301_s27, 4  ;;  %s446_s20 = int_to_ptr.vmem [resolvable:$true] %s445_s20 }
  0x77   : > { %s17884_s24 = scalar_lea.hbm %s20383_s7, 4608 }
  0x78   : > { %p17885_p7 = scmp.ne.s32.totalorder %s20383_s7, %s17884_s24  ;;  %p17891_p1 = scmp.lt.u32.totalorder %s17884_s24, %s20383_s7 }
  0x7a   : > { %p17887_p9 = pnand %p17885_p7, %p18459_p8 }
  0x7c   : > { %p17888_p4 = pneg %p17887_p9 }
  0x7e   : > { %p17893_p3 = pnand %p17891_p1, %p17888_p4 }
  0x80   : > { %17896 = shalt.err (!%p17893_p3)
}
  0x81   : > { %s17897_s25 = scalar_lea.vmem %s446_s20, 4608  ;;  %p17905_p13 = scmp.lt.s32.totalorder %s446_s20, %s446_s20 }
  0x82   : > { %p17898_p10 = scmp.ne.s32.totalorder %s446_s20, %s17897_s25  ;;  %p17906_p0 = scmp.lt.s32.totalorder %s17897_s25, %s17897_s25 }
  0x84   : > { %p17900_p11 = pnand %p17898_p10, %p18459_p8  ;;  %p17907_p2 = por %p17906_p0, %p17905_p13 }
  0x86   : > { %p17901_p12 = pneg %p17900_p11 }
  0x88   : > { %p17908_p5 = pnand %p17907_p2, %p17901_p12 }
  0x8a   : > { %17911 = shalt.err (!%p17908_p5)
}
  0x8b   : > { %s20384_s2 = smov 128   ;;  %s18302_s27 = smov [#allocation17]  }
  0x8c   : > { %17038 = dma.hbm_to_vmem [thread:$0]  (!%p18445_p6), %s20383_s7, 4608, %s446_s20, [#allocation15], %s20384_s2, %s20384_s2, %s20356_s0  }
  0x8d   : > { %s471_s28 = sshll.u32 %s18302_s27, 4  ;;  %s18303_s17 = smov [#allocation20]   ;;  %s472_s28 = int_to_ptr.vmem [resolvable:$true] %s471_s28 }
  0x8e   : > { %s497_s24 = sshll.u32 %s18303_s17, 4  ;;  %s20385_s9 = sld [smem:[#allocation46_spill]]  ;;  %s18545_s24 = int_to_ptr.vmem [resolvable:$true] %s497_s24 }
  0x94   : > { %s17912_s22 = scalar_lea.hbm %s20385_s9, 576 }
  0x95   : > { %p17913_p7 = scmp.ne.s32.totalorder %s20385_s9, %s17912_s22  ;;  %p17919_p1 = scmp.lt.u32.totalorder %s17912_s22, %s20385_s9 }
  0x97   : > { %p17915_p9 = pnand %p17913_p7, %p18459_p8 }
  0x99   : > { %p17916_p4 = pneg %p17915_p9 }
  0x9b   : > { %p17921_p3 = pnand %p17919_p1, %p17916_p4 }
  0x9d   : > { %17924 = shalt.err (!%p17921_p3)
}
  0x9e   : > { %s17925_s14 = scalar_lea.vmem %s472_s28, 576  ;;  %p17933_p13 = scmp.lt.s32.totalorder %s472_s28, %s472_s28 }
  0x9f   : > { %p17926_p10 = scmp.ne.s32.totalorder %s472_s28, %s17925_s14  ;;  %p17934_p0 = scmp.lt.s32.totalorder %s17925_s14, %s17925_s14 }
  0xa1   : > { %p17928_p11 = pnand %p17926_p10, %p18459_p8  ;;  %p17935_p2 = por %p17934_p0, %p17933_p13 }
  0xa3   : > { %p17929_p12 = pneg %p17928_p11 }
  0xa5   : > { %p17936_p5 = pnand %p17935_p2, %p17929_p12 }
  0xa7   : > { %17939 = shalt.err (!%p17936_p5)
}
  0xa8   : > { %s20358_s3 = smov 64   ;;  %s20359_s27 = smov 4  }
  0xa9   : > { %17044 = dma.hbm_to_vmem [thread:$0]  (!%p18445_p6), %s20385_s9, 576, %s472_s28, [#allocation18], %s20358_s3, %s20358_s3, %s20359_s27  }
  0xaa   : > { %s17940_s25 = scalar_lea.hbm %s20344_s11, 144 }
  0xab   : > { %p17941_p7 = scmp.ne.s32.totalorder %s20344_s11, %s17940_s25  ;;  %p17947_p1 = scmp.lt.u32.totalorder %s17940_s25, %s20344_s11 }
  0xad   : > { %p17943_p9 = pnand %p17941_p7, %p18459_p8 }
  0xaf   : > { %p17944_p4 = pneg %p17943_p9 }
  0xb1   : > { %p17949_p3 = pnand %p17947_p1, %p17944_p4 }
  0xb3   : > { %17952 = shalt.err (!%p17949_p3)
}
  0xb4   : > { %s17953_s28 = scalar_lea.vmem %s18545_s24, 144  ;;  %s17960_s17 = scalar_lea.vmem %s18545_s24, 160 }
  0xb5   : > { %p17954_p10 = scmp.ne.s32.totalorder %s18545_s24, %s17953_s28  ;;  %p17961_p13 = scmp.lt.s32.totalorder %s18545_s24, %s18545_s24 }
  0xb6   : > { %p17962_p0 = scmp.lt.s32.totalorder %s17960_s17, %s17953_s28 }
  0xb7   : > { %p17956_p11 = pnand %p17954_p10, %p18459_p8 }
  0xb8   : > { %p17963_p2 = por %p17962_p0, %p17961_p13 }
  0xb9   : > { %p17957_p12 = pneg %p17956_p11 }
  0xbb   : > { %p17964_p5 = pnand %p17963_p2, %p17957_p12 }
  0xbd   : > { %17967 = shalt.err (!%p17964_p5)
}
  0xbe   : > { %s20360_s0 = smov 16   ;;  %s20361_s26 = smov 1  }
  0xbf   : > { %17050 = dma.hbm_to_vmem [thread:$0]  (!%p18445_p6), %s20344_s11, 144, %s18545_s24, [#allocation21], %s20360_s0, %s20360_s0, %s20361_s26  }
  0xc0   : > { %s18308_s25 = smov [#allocation10]   ;;  %s18309_s20 = smov [#allocation13]  }
  0xc1   : > { %s411_s1 = sshll.u32 %s18308_s25, 4  ;;  %s432_s14 = sshll.u32 %s18309_s20, 4  ;;  %s412_s1 = int_to_ptr.vmem [resolvable:$true] %s411_s1  ;;  %s18595_s14 = int_to_ptr.vmem [resolvable:$true] %s432_s14 }
  0xc2   : > { %s20386_s4 = sld [smem:[#allocation41_spill]] }
  0xc8   : > { %s17968_s3 = scalar_lea.hbm %s20386_s4, 128 }
  0xc9   : > { %p17969_p7 = scmp.ne.s32.totalorder %s20386_s4, %s17968_s3  ;;  %p17975_p1 = scmp.lt.u32.totalorder %s17968_s3, %s20386_s4 }
  0xcb   : > { %p17971_p9 = pnand %p17969_p7, %p18459_p8 }
  0xcd   : > { %p17972_p4 = pneg %p17971_p9 }
  0xcf   : > { %p17977_p3 = pnand %p17975_p1, %p17972_p4 }
  0xd1   : > { %17980 = shalt.err (!%p17977_p3)
}
  0xd2   : > { %s17981_s22 = scalar_lea.vmem %s412_s1, 128  ;;  %p17989_p13 = scmp.lt.s32.totalorder %s412_s1, %s412_s1 }
  0xd3   : > { %p17982_p10 = scmp.ne.s32.totalorder %s412_s1, %s17981_s22  ;;  %p17990_p0 = scmp.lt.s32.totalorder %s17981_s22, %s17981_s22 }
  0xd5   : > { %p17984_p11 = pnand %p17982_p10, %p18459_p8  ;;  %p17991_p2 = por %p17990_p0, %p17989_p13 }
  0xd7   : > { %p17985_p12 = pneg %p17984_p11 }
  0xd9   : > { %p17992_p5 = pnand %p17991_p2, %p17985_p12 }
  0xdb   : > { %17995 = shalt.err (!%p17992_p5)
}
  0xdc   : > { %17029 = dma.hbm_to_vmem [thread:$0]  (!%p18445_p6), %s20386_s4, 128, %s412_s1, [#allocation9]  }
  0xdd   : > { %s20387_s6 = sld [smem:[#allocation43_spill]] }
  0xe3   : > { %s17996_s20 = scalar_lea.hbm %s20387_s6, 4608 }
  0xe4   : > { %p17997_p7 = scmp.ne.s32.totalorder %s20387_s6, %s17996_s20  ;;  %p18003_p1 = scmp.lt.u32.totalorder %s17996_s20, %s20387_s6 }
  0xe6   : > { %p17999_p9 = pnand %p17997_p7, %p18459_p8 }
  0xe8   : > { %p18000_p4 = pneg %p17999_p9 }
  0xea   : > { %p18005_p3 = pnand %p18003_p1, %p18000_p4 }
  0xec   : > { %18008 = shalt.err (!%p18005_p3)
}
  0xed   : > { %s18009_s1 = scalar_lea.vmem %s18595_s14, 4608  ;;  %p18017_p13 = scmp.lt.s32.totalorder %s18595_s14, %s18595_s14 }
  0xee   : > { %p18010_p10 = scmp.ne.s32.totalorder %s18595_s14, %s18009_s1  ;;  %p18018_p0 = scmp.lt.s32.totalorder %s18009_s1, %s18009_s1 }
  0xf0   : > { %p18012_p11 = pnand %p18010_p10, %p18459_p8  ;;  %p18019_p2 = por %p18018_p0, %p18017_p13 }
  0xf2   : > { %p18013_p12 = pneg %p18012_p11 }
  0xf4   : > { %p18020_p5 = pnand %p18019_p2, %p18013_p12 }
  0xf6   : > { %18023 = shalt.err (!%p18020_p5)
}
  0xf7   : > { %s20388_s22 = smov 8   ;;  %s18310_s3 = smov [#allocation16]  }
  0xf8   : > { %17035 = dma.hbm_to_vmem [thread:$0]  (!%p18445_p6), %s20387_s6, 4608, %s18595_s14, [#allocation12], %s20384_s2, %s20384_s2, %s20388_s22  }
  0xf9   : > { %s458_s25 = sshll.u32 %s18310_s3, 4  ;;  %s18311_s20 = smov [#allocation19]   ;;  %s459_s25 = int_to_ptr.vmem [resolvable:$true] %s458_s25 }
  0xfa   : > { %s484_s28 = sshll.u32 %s18311_s20, 4  ;;  %s20389_s8 = sld [smem:[#allocation45_spill]]  ;;  %s18641_s28 = int_to_ptr.vmem [resolvable:$true] %s484_s28 }
 0x100   : > { %s18024_s24 = scalar_lea.hbm %s20389_s8, 576 }
 0x101   : > { %p18025_p7 = scmp.ne.s32.totalorder %s20389_s8, %s18024_s24  ;;  %p18031_p1 = scmp.lt.u32.totalorder %s18024_s24, %s20389_s8 }
 0x103   : > { %p18027_p9 = pnand %p18025_p7, %p18459_p8 }
 0x105   : > { %p18028_p4 = pneg %p18027_p9 }
 0x107   : > { %p18033_p3 = pnand %p18031_p1, %p18028_p4 }
 0x109   : > { %18036 = shalt.err (!%p18033_p3)
}
 0x10a   : > { %s18037_s27 = scalar_lea.vmem %s459_s25, 576  ;;  %p18045_p13 = scmp.lt.s32.totalorder %s459_s25, %s459_s25 }
 0x10b   : > { %p18038_p10 = scmp.ne.s32.totalorder %s459_s25, %s18037_s27  ;;  %p18046_p0 = scmp.lt.s32.totalorder %s18037_s27, %s18037_s27 }
 0x10d   : > { %p18040_p11 = pnand %p18038_p10, %p18459_p8  ;;  %p18047_p2 = por %p18046_p0, %p18045_p13 }
 0x10f   : > { %p18041_p12 = pneg %p18040_p11 }
 0x111   : > { %p18048_p5 = pnand %p18047_p2, %p18041_p12 }
 0x113   : > { %18051 = shalt.err (!%p18048_p5)
}
 0x114   : > { %s20390_s0 = smov 4   ;;  %s20391_s3 = smov 64  }
 0x115   : > { %17041 = dma.hbm_to_vmem [thread:$0]  (!%p18445_p6), %s20389_s8, 576, %s459_s25, [#allocation15], %s20391_s3, %s20391_s3, %s20390_s0  }
 0x116   : > { %s20392_s10 = sld [smem:[#allocation47_spill]] }
 0x11c   : > { %s18052_s1 = scalar_lea.hbm %s20392_s10, 4608 }
 0x11d   : > { %p18053_p7 = scmp.ne.s32.totalorder %s20392_s10, %s18052_s1  ;;  %p18059_p1 = scmp.lt.u32.totalorder %s18052_s1, %s20392_s10 }
 0x11f   : > { %p18055_p9 = pnand %p18053_p7, %p18459_p8 }
 0x121   : > { %p18056_p4 = pneg %p18055_p9 }
 0x123   : > { %p18061_p3 = pnand %p18059_p1, %p18056_p4 }
 0x125   : > { %18064 = shalt.err (!%p18061_p3)
}
 0x126   : > { %s18065_s25 = scalar_lea.vmem %s18641_s28, 4608  ;;  %p18073_p13 = scmp.lt.s32.totalorder %s18641_s28, %s18641_s28 }
 0x127   : > { %p18066_p10 = scmp.ne.s32.totalorder %s18641_s28, %s18065_s25  ;;  %p18074_p0 = scmp.lt.s32.totalorder %s18065_s25, %s18065_s25 }
 0x129   : > { %p18068_p11 = pnand %p18066_p10, %p18459_p8  ;;  %p18075_p2 = por %p18074_p0, %p18073_p13 }
 0x12b   : > { %p18069_p12 = pneg %p18068_p11 }
 0x12d   : > { %p18076_p5 = pnand %p18075_p2, %p18069_p12 }
 0x12f   : > { %18079 = shalt.err (!%p18076_p5)
}
 0x130   : > { %17047 = dma.hbm_to_vmem [thread:$0]  (!%p18445_p6), %s20392_s10, 4608, %s18641_s28, [#allocation18], %s20384_s2, %s20384_s2, %s20388_s22  }
 0x131   : > { %s18312_s3 = smov [#allocation22]   ;;  %s18313_s17 = smov [#allocation23]  }
 0x132   : > { %s510_s20 = sshll.u32 %s18312_s3, 4  ;;  %s523_s18 = sshll.u32 %s18313_s17, 4  ;;  %s511_s20 = int_to_ptr.vmem [resolvable:$true] %s510_s20  ;;  %s18690_s18 = int_to_ptr.vmem [resolvable:$true] %s523_s18 }
 0x133   : > { %s18080_s5 = scalar_lea.hbm %s20345_s12, 9216 }
 0x134   : > { %p18081_p7 = scmp.ne.s32.totalorder %s20345_s12, %s18080_s5  ;;  %p18087_p1 = scmp.lt.u32.totalorder %s18080_s5, %s20345_s12 }
 0x136   : > { %p18083_p9 = pnand %p18081_p7, %p18459_p8 }
 0x138   : > { %p18084_p4 = pneg %p18083_p9 }
 0x13a   : > { %p18089_p3 = pnand %p18087_p1, %p18084_p4 }
 0x13c   : > { %18092 = shalt.err (!%p18089_p3)
}
 0x13d   : > { %s18093_s26 = scalar_lea.vmem %s511_s20, 9216  ;;  %p18101_p13 = scmp.lt.s32.totalorder %s511_s20, %s511_s20 }
 0x13e   : > { %p18094_p10 = scmp.ne.s32.totalorder %s511_s20, %s18093_s26  ;;  %p18102_p0 = scmp.lt.s32.totalorder %s18093_s26, %s18093_s26 }
 0x140   : > { %p18096_p11 = pnand %p18094_p10, %p18459_p8  ;;  %p18103_p2 = por %p18102_p0, %p18101_p13 }
 0x142   : > { %p18097_p12 = pneg %p18096_p11 }
 0x144   : > { %p18104_p5 = pnand %p18103_p2, %p18097_p12 }
 0x146   : > { %18107 = shalt.err (!%p18104_p5)
}
 0x147   : > { %17053 = dma.hbm_to_vmem [thread:$0]  (!%p18445_p6), %s20345_s12, 9216, %s511_s20, [#allocation21], %s20384_s2, %s20384_s2, %s20388_s22  }
 0x148   : > { %s18108_s1 = scalar_lea.hbm %s20346_s13, 144 }
 0x149   : > { %p18109_p7 = scmp.ne.s32.totalorder %s20346_s13, %s18108_s1  ;;  %p18115_p1 = scmp.lt.u32.totalorder %s18108_s1, %s20346_s13 }
 0x14b   : > { %p18111_p9 = pnand %p18109_p7, %p18459_p8 }
 0x14d   : > { %p18112_p4 = pneg %p18111_p9 }
 0x14f   : > { %p18117_p3 = pnand %p18115_p1, %p18112_p4 }
 0x151   : > { %18120 = shalt.err (!%p18117_p3)
}
 0x152   : > { %s18121_s2 = scalar_lea.vmem %s18690_s18, 144  ;;  %s18128_s22 = scalar_lea.vmem %s18690_s18, 160 }
 0x153   : > { %p18122_p10 = scmp.ne.s32.totalorder %s18690_s18, %s18121_s2  ;;  %p18129_p13 = scmp.lt.s32.totalorder %s18690_s18, %s18690_s18 }
 0x154   : > { %p18130_p0 = scmp.lt.s32.totalorder %s18128_s22, %s18121_s2 }
 0x155   : > { %p18124_p11 = pnand %p18122_p10, %p18459_p8 }
 0x156   : > { %p18131_p2 = por %p18130_p0, %p18129_p13 }
 0x157   : > { %p18125_p12 = pneg %p18124_p11 }
 0x159   : > { %p18132_p5 = pnand %p18131_p2, %p18125_p12 }
 0x15b   : > { %18135 = shalt.err (!%p18132_p5)
}
 0x15c   : > { %s20393_s20 = smov 1   ;;  %s20394_s28 = smov 16  }
 0x15d   : > { %17056 = dma.hbm_to_vmem [thread:$0]  (!%p18445_p6), %s20346_s13, 144, %s18690_s18, [#allocation24], %s20394_s28, %s20394_s28, %s20393_s20  }
 0x15e   : > { %s14412_s23 = sadd.s32 4294967294, %s18294_s16   ;;  %s18742_s21 = sadd.s32 1, %s18294_s16  }
 0x15f   : > { %s43_s3 = ssub.s32 %s18294_s16, %s18742_s21  ;;  %s46_s17 = sadd.s32 1, %s18290_s15 }
 0x160   : > { %p44_p8 = scmp.eq.s32.totalorder %s43_s3, 0  ;;  %p53_p7 = scmp.ne.s32.totalorder %s18290_s15, %s18286_s30 }
 0x161   : > { %p54_p9 = scmp.eq.s32.totalorder %s18294_s16, 0  ;;  %p59_p4 = scmp.ne.s32.totalorder %s18286_s30, %s18282_s29 }
 0x162   : > { %s18753_s24 = scalar_select %p44_p8, %s18290_s15, %s46_s17  }
 0x163   : > { %p18755_p1 = por %p54_p9, %p53_p7  ;;  %p20396_p3 = scmp.eq.s32.totalorder %s18429_s19, 0 }
 0x164   : > { %p361_p10 = scmp.eq.s32.totalorder %s18429_s19, 1  ;;  %p367_p11 = scmp.eq.s32.totalorder %s14412_s23, 1 }
 0x165   : > { %p18761_p6 = por %p20396_p3, %p59_p4  ;;  %p17080_p12 = scmp.lt.s32.totalorder %s18294_s16, 2 }
 0x166   : > { %s537_s5 = sand.u32 1, %s18290_s15   ;;  %p18768_p13 = por %p361_p10, %p53_p7 }
 0x167   : > { %s20397_s18 = scalar_select %p18761_p6, 1, 0 }
 0x168   : > { %s20398_s14 = scalar_select %p18768_p13, 1, 0 }
 0x169   : > { %p18772_p0 = por %p367_p11, %p59_p4  ;;  %s18776_s25 = sshll.u32 %s537_s5, 3 }
 0x16a   : > { %s14428_s2 = sshll.u32 %s18294_s16, 7  ;;  %s20400_s28 = sld [smem:[#allocation37_spill]] }
 0x16b   : > { %s20399_s27 = scalar_select %p18772_p0, 1, 0 }
 0x16c   : > { %s541_s0 = scalar_lea.vmem [#allocation2], %s18776_s25  ;;  %p18789_p2 = pnand %p17080_p12, %p18755_p1 }
 0x16d   : > { %s548_s23 = sshll.u32 %s541_s0, 4  ;;  %s20402_s6 = sld [smem:[#allocation38_spill]]  ;;  %s18785_s23 = int_to_ptr.vmem [resolvable:$true] %s548_s23 }
 0x16e   : > { %s555_s20 = sand.u32 1, %s18294_s16   ;;  %s538_s7 = scalar_lea.sflag [#allocation3], %s537_s5 }
 0x16f   : > { %p18138_p8 = pneg %p18789_p2 }
 0x170   : > { %s18782_s26 = scalar_lea.hbm %s20400_s28, %s14428_s2  ;;  %s18141_s9 = scalar_lea.hbm %s20400_s28, 256 }
 0x171   : > { %s18136_s8 = scalar_lea.hbm %s18782_s26, 128  ;;  %p18142_p4 = scmp.lt.u32.totalorder %s18782_s26, %s20400_s28 }
 0x172   : > { %p18137_p5 = scmp.ne.s32.totalorder %s18782_s26, %s18136_s8  ;;  %p18143_p1 = scmp.lt.u32.totalorder %s18141_s9, %s18136_s8 }
 0x173   : > { %s18796_s22 = scalar_lea.hbm %s20402_s6, %s14428_s2  ;;  %p18145_p10 = scmp.lt.u32.totalorder %s18136_s8, %s18782_s26 }
 0x174   : > { %p18139_p7 = pnand %p18138_p8, %p18137_p5  ;;  %p18144_p3 = por %p18143_p1, %p18142_p4 }
 0x176   : > { %p18140_p9 = pneg %p18139_p7  ;;  %p18146_p11 = por %p18145_p10, %p18144_p3 }
 0x178   : > { %p18147_p12 = pnand %p18146_p11, %p18140_p9 }
 0x17a   : > { %18150 = shalt.err (!%p18147_p12)
}
 0x17b   : > { %s18151_s5 = scalar_lea.vmem %s18785_s23, 128  ;;  %s18314_s2 = smov [#allocation2]  }
 0x17c   : > { %p18152_p5 = scmp.ne.s32.totalorder %s18785_s23, %s18151_s5  ;;  %s18156_s17 = sshll.u32 %s18314_s2, 4  ;;  %s18157_s17 = int_to_ptr.vmem [resolvable:$false] %s18156_s17 }
 0x17d   : > { %s18158_s10 = scalar_lea.vmem %s18157_s17, 256  ;;  %p18159_p13 = scmp.lt.s32.totalorder %s18785_s23, %s18157_s17 }
 0x17e   : > { %p18154_p7 = pnand %p18152_p5, %p18138_p8  ;;  %p18160_p4 = scmp.lt.s32.totalorder %s18158_s10, %s18151_s5 }
 0x180   : > { %p18155_p0 = pneg %p18154_p7  ;;  %p18161_p1 = por %p18160_p4, %p18159_p13 }
 0x182   : > { %p18162_p3 = pnand %p18161_p1, %p18155_p0 }
 0x184   : > { %18165 = shalt.err (!%p18162_p3)
}
 0x185   : > { %17060 = dma.hbm_to_vmem [thread:$0]  (!%p18789_p2), %s18782_s26, 128, %s18785_s23, %s538_s7  }
 0x186   : > { %s559_s8 = scalar_lea.vmem [#allocation5], %s18776_s25  ;;  %s556_s1 = scalar_lea.sflag [#allocation6], %s555_s20 }
 0x187   : > { %s566_s9 = sshll.u32 %s559_s8, 4  ;;  %s18166_s0 = scalar_lea.hbm %s18796_s22, 128  ;;  %s567_s9 = int_to_ptr.vmem [resolvable:$true] %s566_s9 }
 0x188   : > { %p18167_p13 = scmp.ne.s32.totalorder %s18796_s22, %s18166_s0  ;;  %s18171_s2 = scalar_lea.hbm %s20402_s6, 256 }
 0x189   : > { %p18172_p10 = scmp.lt.u32.totalorder %s18796_s22, %s20402_s6  ;;  %p18173_p11 = scmp.lt.u32.totalorder %s18171_s2, %s18166_s0 }
 0x18a   : > { %p18169_p0 = pnand %p18167_p13, %p18138_p8  ;;  %p18175_p5 = scmp.lt.u32.totalorder %s18166_s0, %s18796_s22 }
 0x18b   : > { %p18174_p12 = por %p18173_p11, %p18172_p10 }
 0x18c   : > { %p18170_p9 = pneg %p18169_p0 }
 0x18d   : > { %p18176_p7 = por %p18175_p5, %p18174_p12 }
 0x18f   : > { %p18177_p4 = pnand %p18176_p7, %p18170_p9 }
 0x191   : > { %18180 = shalt.err (!%p18177_p4)
}
 0x192   : > { %s18181_s7 = scalar_lea.vmem %s567_s9, 128  ;;  %s18315_s25 = smov [#allocation5]  }
 0x193   : > { %p18182_p1 = scmp.ne.s32.totalorder %s567_s9, %s18181_s7  ;;  %s18186_s26 = sshll.u32 %s18315_s25, 4  ;;  %s18187_s26 = int_to_ptr.vmem [resolvable:$false] %s18186_s26 }
 0x194   : > { %s18188_s23 = scalar_lea.vmem %s18187_s26, 256  ;;  %p18189_p0 = scmp.lt.s32.totalorder %s567_s9, %s18187_s26 }
 0x195   : > { %p18184_p3 = pnand %p18182_p1, %p18138_p8  ;;  %p18190_p6 = scmp.lt.s32.totalorder %s18188_s23, %s18181_s7 }
 0x197   : > { %p18185_p13 = pneg %p18184_p3  ;;  %p18191_p10 = por %p18190_p6, %p18189_p0 }
 0x199   : > { %p18192_p11 = pnand %p18191_p10, %p18185_p13 }
 0x19b   : > { %18195 = shalt.err (!%p18192_p11)
}
 0x19c   : > { %17063 = dma.hbm_to_vmem [thread:$0]  (!%p18789_p2), %s18796_s22, 128, %s567_s9, %s556_s1  }
 0x19d   : > { %s20403_s20 = sld [smem:[#allocation36_spill]] }
 0x1a3   : > { %p20404_p9 = scmp.ne.s32.totalorder %s20403_s20, 0 }
 0x1a4   : > { %s18849_s8 = sand.u32 (!%p20404_p9), 1, %s18286_s30   ;;  %p20405_p8 = scmp.ne.s32.totalorder (!%p20404_p9), %s20397_s18, 0 }
 0x1a5   : > { %575 = sbr.rel (%p20404_p9) target bundleno = 29497 (0x7339), region = 76  ;;  %s14432_s0 = sshll.u32 (!%p20404_p9), %s18849_s8, 3 }
 0x1a6   : > { %s578_s4 = scalar_lea.sflag (!%p20404_p9), [#allocation3], %s18849_s8  ;;  %s581_s5 = scalar_lea.vmem (!%p20404_p9), [#allocation2], %s14432_s0 }
 0x1ac   : > { %18241 = dma.done.wait (%p20405_p8), %s578_s4, 128  }
 0x1ad   : > { %18243 = vsyncadd (%p20405_p8), %s578_s4, 4294967168  ;;  %s586_s3 = sand.u32 1, %s18429_s19   ;;  %s18858_s9 = scalar_lea.vmem [#allocation5], %s14432_s0 }
 0x1ae   : > { %s587_s22 = scalar_lea.sflag [#allocation6], %s586_s3 }
 0x1af   : > { %18245 = dma.done.wait (%p20405_p8), %s587_s22, 128  }
 0x1b0   : > { %18247 = vsyncadd (%p20405_p8), %s587_s22, 4294967168  ;;  %p20406_p6 = scmp.eq.s32.totalorder %s18429_s19, 0 }
 0x1b2   : > { %18249 = dma.done.wait (%p20406_p6), [#allocation6], 32   ;;  %p20407_p2 = pmov %p20406_p6 }
 0x1b4   : > { %18251 = vsyncadd (%p20407_p2), [#allocation6], 4294967264  ;;  %p20408_p12 = pmov %p20407_p2 }
 0x1b5   : > { %p20409_p5 = pmov %p20407_p2 }
 0x1b6   : > { %18253 = dma.done.wait (%p20408_p12), [#allocation9], 384  }
 0x1b7   : > { %18255 = vsyncadd (%p20409_p5), [#allocation9], 4294966912  ;;  %p20410_p7 = pmov %p20407_p2 }
 0x1b8   : > { %p20411_p4 = pmov %p20407_p2 }
 0x1b9   : > { %18257 = dma.done.wait (%p20410_p7), [#allocation12], 4640  }
 0x1ba   : > { %18259 = vsyncadd (%p20411_p4), [#allocation12], 4294962656  ;;  %p20412_p1 = pmov %p20407_p2 }
 0x1bc   : > { %18261 = dma.done.wait (%p20412_p1), [#allocation15], 5184   ;;  %p20413_p3 = pmov %p20412_p1 }
 0x1bd   : > { %p20414_p13 = pmov %p20412_p1 }
 0x1be   : > { %18263 = vsyncadd (%p20413_p3), [#allocation15], 4294962112 }
 0x1bf   : > { %18265 = dma.done.wait (%p20414_p13), [#allocation18], 5184   ;;  %p20415_p0 = pmov %p20412_p1 }
 0x1c1   : > { %18267 = vsyncadd (%p20415_p0), [#allocation18], 4294962112  ;;  %p20416_p10 = pmov %p20415_p0 }
 0x1c2   : > { %p20417_p11 = pmov %p20415_p0 }
 0x1c3   : > { %18269 = dma.done.wait (%p20416_p10), [#allocation21], 9360  }
 0x1c4   : > { %18271 = vsyncadd (%p20417_p11), [#allocation21], 4294957936  ;;  %p20418_p9 = pmov %p20415_p0 }
 0x1c5   : > { %p20419_p8 = pmov %p20415_p0 }
 0x1c6   : > { %18273 = dma.done.wait (%p20418_p9), [#allocation24], 144  }
 0x1c7   : > { %18275 = vsyncadd (%p20419_p8), [#allocation24], 4294967152  ;;  %v688_v0 = vld [vmem:[#allocation7] sm:$0x1]  ;;  %vm693_vm0 = vcmask 1040384   ;;  %v695_v3 = vld [vmem:[#allocation8] sm:$0xff]  ;;  %v730_v28 = vlaneseq }
 0x1c8   : > { %v689_v1 = vld [vmem:[%s581_s5] sm:$0xff]  ;;  %vm701_vm1 = vcmask 261120   ;;  %vm705_vm2 = vcmask 253952   ;;  %v745_v24 = vld [vmem:[#allocation13 + $0x18] sm:$0xff]  ;;  %v18910_v35 = vld [vmem:[#allocation16] sm:$0x7] }
 0x1c9   : > { %v691_v2 = vrot.slane %v689_v1, 7  ;;  %v696_v4 = vld [vmem:[#allocation8 + $0x8] sm:$0x1]  ;;  %v742_v20 = vld [vmem:[#allocation13] sm:$0xff]  ;;  %v744_v22 = vld [vmem:[#allocation13 + $0x10] sm:$0xff]  ;;  %v18905_v32 = vshrl.u32 %v730_v28, 7 }
 0x1ca   : > { %v743_v21 = vld [vmem:[#allocation13 + $0x8] sm:$0xff]  ;;  %v16380_v25 = vpack.c.bf16 %v745_v24, %v744_v22  ;;  %v18912_v36 = vld [vmem:[#allocation17] sm:$0x7]  ;;  %vm839_vm3 = vcmask 64512   ;;  %s18316_s18 = smov 88   ;;  %s18317_s1 = smov 96  }
 0x1cb   : > { %v694_v5 = vsel %vm693_vm0, %v688_v0, %v691_v2  ;;  %v18895_v7 = vadd.f32 %v696_v4, %v691_v2  ;;  %v16376_v23 = vpack.c.bf16 %v743_v21, %v742_v20  ;;  %v18908_v34 = vsub.s32 0, %v18905_v32  ;;  %s18318_s2 = smov 80   ;;  %s18319_s17 = smov 120   ;;  %vm18944_vm4 = vmpackc.low %vm839_vm3, %vm839_vm3 }
 0x1cc   : > { %v18893_v6 = vadd.f32 %v695_v3, %v694_v5  ;;  %s18320_s10 = smov 112   ;;  %vm929_vm5 = vcmask 65536   ;;  %vm925_vm6 = vcmask 72704   ;;  %s18321_s7 = smov 64   ;;  %vm18325_vm7 = vmmov 1  }
 0x1cd   : > { %v706_v9 = vsel %vm705_vm2, %v18895_v7, 0.0  ;;  %16377 = vmatprep.subr.bf16.mxu0 %v16376_v23  ;;  %v733_v37 = vrot.slane %v18910_v35, %v18908_v34  ;;  %v739_v40 = vrot.slane %v18912_v36, %v18908_v34  ;;  %s18322_s25 = smov 72   ;;  %s18323_s26 = smov 104   ;;  %vm18993_vm8 = vmpackc.low %vm693_vm0, %vm18325_vm7  ;;  %vm2169_vm11 = vcmask 523264  }
 0x1ce   : > { %v702_v8 = vsel %vm701_vm1, %v18893_v6, 0.0  ;;  %16379 = vmatpush3.bf16.msra.mxu0 %v16376_v23  ;;  %s18324_s23 = smov 56   ;;  %s18326_s20 = smov 48   ;;  %vm3820_vm12 = vcmask 260096   ;;  %vm18330_vm13 = vmmov 0   ;;  %vm4020_vm7 = vcmask 56320  }
 0x1cf   : > { %703 = vadd.xlane.f32.xlu0 %v702_v8  ;;  %16381 = vmatprep.subr.bf16.mxu0 %v16380_v25  ;;  %s18327_s0 = smov 40   ;;  %s14446_s4 = sshll.u32 %s18849_s8, 2 }
 0x1d0   : > { %s14766_s5 = sshll.u32 %s18429_s19, 6  ;;  %s687_s3 = scalar_lea.vmem [#allocation25], %s14446_s4 }
 0x1d1   : > { %s14205_s22 = sshll.u32 %s687_s3, 4  ;;  %s14192_s19 = scalar_lea.sflag [#allocation4], %s18849_s8  ;;  %s20291_s22 = int_to_ptr.vmem [resolvable:$true] %s14205_s22 }
 0x1d2   : > { %16383 = vmatpush3.bf16.msra.mxu0 %v16380_v25  ;;  %p20425_p2 = scmp.ne.s32.totalorder %s20398_s14, 0 }
 0x1d3   : > { %707 = vadd.xlane.f32.xlu0 %v706_v9 }
 0x25c   : > { %v704_v10 = vpop.xlane.xlu0 %703 }
 0x25d   : > { %v710_v11 = vmul.f32 0.03125, %v704_v10 }
 0x25f   : > { %v712_v12 = vsub.f32 %v18893_v6, %v710_v11 }
 0x260   : > { %v708_v13 = vpop.xlane.xlu0 %707 }
 0x261   : > { %v711_v14 = vmul.f32 0.03125, %v708_v13  ;;  %v714_v15 = vmul.f32 %v712_v12, %v712_v12 }
 0x263   : > { %v713_v16 = vsub.f32 %v18895_v7, %v711_v14  ;;  %v716_v17 = vsel %vm701_vm1, %v714_v15, 0.0 }
 0x264   : > { %717 = vadd.xlane.f32.xlu1 %v716_v17 }
 0x265   : > { %v715_v18 = vmul.f32 %v713_v16, %v713_v16 }
 0x267   : > { %v719_v19 = vsel %vm705_vm2, %v715_v18, 0.0 }
 0x268   : > { %720 = vadd.xlane.f32.xlu1 %v719_v19 }
 0x2f1   : > { %v718_v26 = vpop.xlane.xlu1 %717 }
 0x2f2   : > { %v722_v27 = vmul.f32 0.03125, %v718_v26 }
 0x2f4   : > { %v724_v29 = vadd.f32 1e-05, %v722_v27 }
 0x2f5   : > { %v721_v30 = vpop.xlane.xlu1 %720 }
 0x2f6   : > { %17460 = vrsqrt.f32 %v724_v29  ;;  %v723_v31 = vmul.f32 0.03125, %v721_v30 }
 0x2f8   : > { %v725_v33 = vadd.f32 1e-05, %v723_v31 }
 0x2fa   : > { %17462 = vrsqrt.f32 %v725_v33 }
 0x300   : > { %v17461_v38 = vpop.eup %17460 }
 0x301   : > { %v728_v39 = vmul.f32 %v17461_v38, %v712_v12 }
 0x303   : > { %v734_v41 = vmul.f32 %v733_v37, %v728_v39 }
 0x304   : > { %v17463_v42 = vpop.eup %17462 }
 0x305   : > { %v729_v43 = vmul.f32 %v17463_v42, %v713_v16  ;;  %v740_v44 = vadd.f32 %v739_v40, %v734_v41 }
 0x307   : > { %v735_v45 = vmul.f32 %v733_v37, %v729_v43  ;;  %15319 = vmatprep.mubr.msk.f32.mxu0 %vm701_vm1, %v740_v44 }
 0x309   : > { %v741_v46 = vadd.f32 %v739_v40, %v735_v45 }
 0x30b   : > { %15320 = vmatmul.mubr.msk.f32.vlgmr.msra.gmra.mrb[0].mxu0 %vm701_vm1, %v741_v46 }
 0x3de   : > { %v15321_v47 = vpop.f32.mrb[0].mxu0 }
 0x3df   : > { %v818_v48 = vpop.f32.mrb[1].mxu0  ;;  %v18934_v51 = vmul.f32 0.17677669, %v15321_v47 }
 0x3e0   : > { %v18920_v49 = vpack.i.bf16 %v15321_v47, %v818_v48  ;;  %v18922_v50 = vmul.f32 0.17677669, %v818_v48 }
 0x3e2   : > { %17166 = vrot.lane.b32.xlu1 %v18920_v49, %s18316_s18  ;;  %17161 = vrot.lane.b32.xlu0 %v18920_v49, %s18317_s1 }
 0x3e3   : > { %15326 = vmatprep.mubr.msk.f32.mxu1 %vm839_vm3, %v18922_v50 }
 0x3e6   : > { %17171 = vrot.lane.b32.xlu0 %v18920_v49, %s18318_s2  ;;  %1037 = vrot.lane.b32.xlu1 %v18922_v50, %s18319_s17 }
 0x3ea   : > { %1402 = vrot.lane.b32.xlu0 %v18934_v51, %s18320_s10  ;;  %1039 = vrot.lane.b32.xlu1 %v18934_v51, %s18319_s17 }
 0x3ee   : > { %1400 = vrot.lane.b32.xlu1 %v18922_v50, %s18320_s10 }
 0x454   : > { %v17167_v52 = vpop.permute.xlu1 %17166  ;;  %v17162_v53 = vpop.permute.xlu0 %17161 }
 0x455   : > { %v17169_v54 = vunpack.i.h.bf16 %v17167_v52  ;;  %v17168_v55 = vunpack.i.l.bf16 %v17167_v52  ;;  %v17164_v56 = vunpack.i.h.bf16 %v17162_v53  ;;  %v17163_v57 = vunpack.i.l.bf16 %v17162_v53 }
 0x457   : > { %v16384_v59 = vpack.c.bf16 %v17164_v56, %v17163_v57  ;;  %v16396_v60 = vpack.c.bf16 %v17169_v54, %v17168_v55 }
 0x458   : > { %v17172_v61 = vpop.permute.xlu0 %17171  ;;  %v1038_v0 = vpop.permute.xlu1 %1037 }
 0x459   : > { %16386 = vmatprep.subr.msk.bf16.mxu1 %vm18944_vm4, %v16384_v59  ;;  %v17174_v62 = vunpack.i.h.bf16 %v17172_v61  ;;  %v17173_v63 = vunpack.i.l.bf16 %v17172_v61 }
 0x45a   : > { %16389 = vmatpush3.bf16.xpose.msk.msra.mxu1 %vm18944_vm4, %v16384_v59 }
 0x45b   : > { %16398 = vmatprep.subr.msk.bf16.mxu1 %vm18944_vm4, %v16396_v60  ;;  %v16408_v1 = vpack.c.bf16 %v17174_v62, %v17173_v63 }
 0x45c   : > { %v1040_v2 = vpop.permute.xlu1 %1039  ;;  %v1403_v4 = vpop.permute.xlu0 %1402 }
 0x460   : > { %v1401_v3 = vpop.permute.xlu1 %1400 }
 0x461   : > { %15327 = vmatmul.mubr.msk.f32.vlgmr.msra.gmra.mrb[0].mxu1 %vm839_vm3, %v18934_v51 }
 0x462   : > { %16401 = vmatpush3.bf16.xpose.msk.msra.mxu1 %vm18944_vm4, %v16396_v60  ;;  %15340 = vmatprep.mubr.msk.f32.mxu1 %vm839_vm3, %v1038_v0 }
 0x463   : > { %16410 = vmatprep.subr.msk.bf16.mxu1 %vm18944_vm4, %v16408_v1 }
 0x469   : > { %15341 = vmatmul.mubr.msk.f32.vlgmr.msra.gmra.mrb[2].mxu1 %vm839_vm3, %v1040_v2 }
 0x46a   : > { %16413 = vmatpush3.bf16.xpose.msk.msra.mxu1 %vm18944_vm4, %v16408_v1  ;;  %15364 = vmatprep.mubr.msk.f32.mxu1 %vm839_vm3, %v1401_v3 }
 0x471   : > { %15365 = vmatmul.mubr.msk.f32.vlgmr.msra.gmra.mrb[4].mxu1 %vm839_vm3, %v1403_v4 }
 0x534   : > { %v15328_v5 = vpop.f32.mrb[0].mxu1 }
 0x535   : > { %v916_v8 = vpop.f32.mrb[1].mxu1  ;;  %v930_v9 = vsel %vm929_vm5, %v15328_v5, -inf }
 0x536   : > { %931 = vmax.xlane.f32.xlu0 %v930_v9  ;;  %v926_v10 = vsel %vm925_vm6, %v916_v8, -inf }
 0x537   : > { %927 = vmax.xlane.f32.xlu1 %v926_v10 }
 0x53c   : > { %v15342_v11 = vpop.f32.mrb[2].mxu1 }
 0x53d   : > { %v1119_v12 = vpop.f32.mrb[3].mxu1  ;;  %v1131_v14 = vsel %vm929_vm5, %v15342_v11, -inf }
 0x53e   : > { %v1128_v13 = vsel %vm925_vm6, %v1119_v12, -inf }
 0x53f   : > { %1129 = vmax.xlane.f32.xlu0 %v1128_v13 }
 0x543   : > { %1132 = vmax.xlane.f32.xlu0 %v1131_v14 }
 0x544   : > { %v18970_v15 = vpop.f32.mrb[4].mxu1 }
 0x545   : > { %v18972_v16 = vpop.f32.mrb[5].mxu1  ;;  %v1494_v42 = vsel %vm929_vm5, %v18970_v15, -inf }
 0x546   : > { %v1491_v41 = vsel %vm925_vm6, %v18972_v16, -inf }
 0x5c3   : > { %v932_v17 = vpop.xlane.xlu0 %931 }
 0x5c4   : > { %v934_v18 = vsub.f32 %v15328_v5, %v932_v17  ;;  %v928_v19 = vpop.xlane.xlu1 %927 }
 0x5c5   : > { %v933_v20 = vsub.f32 %v916_v8, %v928_v19 }
 0x5c6   : > { %v937_v21 = vmul.f32 1.442695, %v934_v18 }
 0x5c7   : > { %v935_v22 = vmul.f32 1.442695, %v933_v20 }
 0x5c8   : > { %17464 = vpow2.f32 %v937_v21 }
 0x5c9   : > { %17466 = vpow2.f32 %v935_v22  ;;  %v828_v22 = vld [vmem:[#allocation14 + $0x8] sm:$0xff] }
 0x5cc   : > { %v1130_v23 = vpop.xlane.xlu0 %1129 }
 0x5cd   : > { %v1134_v24 = vsub.f32 %v1119_v12, %v1130_v23  ;;  %v827_v23 = vld [vmem:[#allocation14] sm:$0xff] }
 0x5cf   : > { %v1136_v25 = vmul.f32 1.442695, %v1134_v24 }
 0x5d0   : > { %v1133_v26 = vpop.xlane.xlu0 %1132 }
 0x5d1   : > { %17468 = vpow2.f32 %v1136_v25  ;;  %v1135_v27 = vsub.f32 %v15342_v11, %v1133_v26 }
 0x5d2   : > { %v17465_v28 = vpop.eup %17464 }
 0x5d3   : > { %v17467_v29 = vpop.eup %17466  ;;  %v1138_v30 = vmul.f32 1.442695, %v1135_v27  ;;  %v942_v31 = vsel %vm929_vm5, %v17465_v28, 0.0 }
 0x5d4   : > { %943 = vadd.xlane.f32.xlu0 %v942_v31  ;;  %v939_v33 = vsel %vm925_vm6, %v17467_v29, 0.0 }
 0x5d5   : > { %17470 = vpow2.f32 %v1138_v30  ;;  %940 = vadd.xlane.f32.xlu1 %v939_v33 }
 0x5db   : > { %v17469_v37 = vpop.eup %17468 }
 0x5dc   : > { %v1140_v38 = vsel %vm925_vm6, %v17469_v37, 0.0 }
 0x5dd   : > { %1141 = vadd.xlane.f32.xlu1 %v1140_v38 }
 0x5df   : > { %v17471_v39 = vpop.eup %17470 }
 0x5e0   : > { %v1143_v40 = vsel %vm929_vm5, %v17471_v39, 0.0 }
 0x5e1   : > { %1144 = vadd.xlane.f32.xlu0 %v1143_v40 }
 0x5ee   : > { %17176 = vrot.lane.b32.xlu1 %v18920_v49, %s18321_s7 }
 0x5f2   : > { %17186 = vrot.lane.b32.xlu1 %v18920_v49, %s18322_s25 }
 0x5f6   : > { %1684 = vrot.lane.b32.xlu1 %v18922_v50, %s18323_s26 }
 0x5f7   : > { %17181 = vrot.lane.b32.xlu0 %v18920_v49, %s18324_s23 }
 0x5fa   : > { %1686 = vrot.lane.b32.xlu1 %v18934_v51, %s18323_s26 }
 0x616   : > { %1492 = vmax.xlane.f32.xlu0 %v1491_v41 }
 0x61e   : > { %1495 = vmax.xlane.f32.xlu1 %v1494_v42 }
 0x661   : > { %v944_v44 = vpop.xlane.xlu0 %943 }
 0x662   : > { %v941_v43 = vpop.xlane.xlu1 %940 }
 0x663   : > { %17472 = vrcp.f32 %v941_v43 }
 0x664   : > { %17474 = vrcp.f32 %v944_v44  ;;  %v829_v44 = vld [vmem:[#allocation14 + $0x10] sm:$0xff] }
 0x66a   : > { %v1142_v45 = vpop.xlane.xlu1 %1141 }
 0x66b   : > { %17476 = vrcp.f32 %v1142_v45 }
 0x66d   : > { %v17473_v46 = vpop.eup %17472 }
 0x66e   : > { %v1145_v47 = vpop.xlane.xlu0 %1144  ;;  %v17177_v48 = vpop.permute.xlu1 %17176  ;;  %v947_v50 = vmul.f32 %v17473_v46, %v17467_v29 }
 0x66f   : > { %17478 = vrcp.f32 %v1145_v47  ;;  %v17179_v51 = vunpack.i.h.bf16 %v17177_v48  ;;  %v17178_v52 = vunpack.i.l.bf16 %v17177_v48  ;;  %v17475_v55 = vpop.eup %17474 }
 0x670   : > { %15333 = vmatprep.mubr.msk.f32.mxu0 %vm925_vm6, %v947_v50  ;;  %v948_v2 = vmul.f32 %v17475_v55, %v17465_v28 }
 0x671   : > { %v16390_v54 = vpack.c.bf16 %v17179_v51, %v17178_v52 }
 0x672   : > { %v17182_v56 = vpop.permute.xlu0 %17181  ;;  %v17187_v57 = vpop.permute.xlu1 %17186 }
 0x673   : > { %v17184_v59 = vunpack.i.h.bf16 %v17182_v56  ;;  %v17183_v60 = vunpack.i.l.bf16 %v17182_v56  ;;  %v17189_v61 = vunpack.i.h.bf16 %v17187_v57  ;;  %v17188_v62 = vunpack.i.l.bf16 %v17187_v57  ;;  %16392 = vmatprep.subr.msk.bf16.mxu0 %vm18993_vm8, %v16390_v54 }
 0x674   : > { %16395 = vmatpush3.bf16.msk.msra.mxu0 %vm18993_vm8, %v16390_v54 }
 0x675   : > { %v17477_v63 = vpop.eup %17476  ;;  %v16402_v0 = vpack.c.bf16 %v17184_v59, %v17183_v60  ;;  %v16420_v1 = vpack.c.bf16 %v17189_v61, %v17188_v62 }
 0x676   : > { %v1685_v3 = vpop.permute.xlu1 %1684  ;;  %v1148_v4 = vmul.f32 %v17477_v63, %v17469_v37 }
 0x677   : > { %15334 = vmatmul.mubr.msk.f32.vlgmr.msra.gmra.mrb[2].mxu0 %vm925_vm6, %v948_v2  ;;  %16404 = vmatprep.subr.msk.bf16.mxu0 %vm18993_vm8, %v16402_v0  ;;  %v830_v2 = vld [vmem:[#allocation14 + $0x18] sm:$0xff] }
 0x678   : > { %16422 = vmatprep.subr.msk.bf16.mxu1 %vm18944_vm4, %v16420_v1  ;;  %15383 = vmatprep.mubr.msk.f32.mxu1 %vm839_vm3, %v1685_v3 }
 0x679   : > { %v17479_v5 = vpop.eup %17478  ;;  %16407 = vmatpush3.bf16.msk.msra.mxu0 %vm18993_vm8, %v16402_v0  ;;  %15347 = vmatprep.mubr.msk.f32.mxu0 %vm925_vm6, %v1148_v4 }
 0x67a   : > { %16425 = vmatpush3.bf16.xpose.msk.msra.mxu1 %vm18944_vm4, %v16420_v1  ;;  %v1149_v8 = vmul.f32 %v17479_v5, %v17471_v39  ;;  %v1687_v9 = vpop.permute.xlu1 %1686  ;;  %15350 = vmatprep.subr.mxu0 %v828_v22 }
 0x67c   : > { %15348 = vmatmul.mubr.msk.f32.vlgmr.msra.gmra.mrb[4].mxu0 %vm925_vm6, %v1149_v8 }
 0x67d   : > { %15351 = vmatpush3.msra.mxu0 %v828_v22 }
 0x67e   : > { %15355 = vmatprep.subr.mxu0 %v827_v23 }
 0x681   : > { %15384 = vmatmul.mubr.msk.f32.vlgmr.msra.gmra.mrb[6].mxu1 %vm839_vm3, %v1687_v9 }
 0x6a3   : > { %v1493_v10 = vpop.xlane.xlu0 %1492 }
 0x6a4   : > { %v1497_v11 = vsub.f32 %v18972_v16, %v1493_v10 }
 0x6a6   : > { %v1499_v14 = vmul.f32 1.442695, %v1497_v11 }
 0x6ab   : > { %v1496_v12 = vpop.xlane.xlu1 %1495 }
 0x6ac   : > { %v1498_v13 = vsub.f32 %v18970_v15, %v1496_v12 }
 0x6ae   : > { %v1501_v17 = vmul.f32 1.442695, %v1498_v13 }
 0x6b0   : > { %17480 = vpow2.f32 %v1501_v17 }
 0x6b1   : > { %17482 = vpow2.f32 %v1499_v14 }
 0x6ba   : > { %v17481_v18 = vpop.eup %17480 }
 0x6bb   : > { %v1506_v19 = vsel %vm929_vm5, %v17481_v18, 0.0  ;;  %v17483_v20 = vpop.eup %17482 }
 0x6bc   : > { %1507 = vadd.xlane.f32.xlu0 %v1506_v19  ;;  %v1503_v21 = vsel %vm925_vm6, %v17483_v20, 0.0 }
 0x6c0   : > { %1504 = vadd.xlane.f32.xlu0 %v1503_v21 }
 0x6d6   : > { %17191 = vrot.lane.b32.xlu0 %v18920_v49, %s18326_s20 }
 0x749   : > { %v1508_v15 = vpop.xlane.xlu0 %1507 }
 0x74a   : > { %v15335_v16 = vpop.f32.mrb[2].mxu0 }
 0x74b   : > { %v1028_v24 = vpop.f32.mrb[3].mxu0 }
 0x74d   : > { %v1505_v25 = vpop.xlane.xlu0 %1504 }
 0x74e   : > { %17484 = vrcp.f32 %v1505_v25  ;;  %v2009_v25 = vld [vmem:[#allocation19 + $0x8] sm:$0xff] }
 0x74f   : > { %17486 = vrcp.f32 %v1508_v15  ;;  %v15349_v26 = vpop.f32.mrb[4].mxu0 }
 0x750   : > { %v1229_v27 = vpop.f32.mrb[5].mxu0 }
 0x751   : > { %v17192_v28 = vpop.permute.xlu0 %17191  ;;  %15352 = vmatprep.mubr.msk.f32.mxu0 %vm839_vm3, %v1229_v27  ;;  %v2010_v27 = vld [vmem:[#allocation19 + $0x10] sm:$0xff] }
 0x752   : > { %v17194_v29 = vunpack.i.h.bf16 %v17192_v28  ;;  %v17193_v30 = vunpack.i.l.bf16 %v17192_v28  ;;  %15353 = vmatmul.mubr.msk.f32.vlgmr.msra.gmra.mrb[6].mxu0 %vm839_vm3, %v15349_v26  ;;  %v2011_v28 = vld [vmem:[#allocation19 + $0x18] sm:$0xff] }
 0x753   : > { %15357 = vmatprep.mubr.msk.f32.mxu0 %vm839_vm3, %v1028_v24  ;;  %15356 = vmatpush3.msra.mxu0 %v827_v23  ;;  %v2008_v24 = vld [vmem:[#allocation19] sm:$0xff] }
 0x754   : > { %v16414_v31 = vpack.c.bf16 %v17194_v29, %v17193_v30  ;;  %v15385_v33 = vpop.f32.mrb[6].mxu1  ;;  %v16432_v26 = vpack.c.bf16 %v2009_v25, %v2008_v24  ;;  %v16436_v29 = vpack.c.bf16 %v2011_v28, %v2010_v27 }
 0x755   : > { %v1766_v37 = vpop.f32.mrb[7].mxu1  ;;  %v1778_v42 = vsel %vm929_vm5, %v15385_v33, -inf }
 0x756   : > { %v1775_v38 = vsel %vm925_vm6, %v1766_v37, -inf  ;;  %16416 = vmatprep.subr.msk.bf16.mxu0 %vm18993_vm8, %v16414_v31  ;;  %16433 = vmatprep.subr.bf16.mxu1 %v16432_v26 }
 0x757   : > { %1776 = vmax.xlane.f32.xlu1 %v1775_v38  ;;  %16435 = vmatpush3.bf16.msra.mxu1 %v16432_v26 }
 0x758   : > { %v17485_v39 = vpop.eup %17484  ;;  %16437 = vmatprep.subr.bf16.mxu1 %v16436_v29 }
 0x759   : > { %v17487_v40 = vpop.eup %17486  ;;  %v1511_v41 = vmul.f32 %v17485_v39, %v17483_v20 }
 0x75a   : > { %15358 = vmatmul.mubr.msk.f32.vlgmr.msra.gmra.mrb[6].mxu0 %vm839_vm3, %v15335_v16  ;;  %v1512_v43 = vmul.f32 %v17487_v40, %v17481_v18  ;;  %v19062_v40 = vsub.s32 1, %v18905_v32 }
 0x75b   : > { %1779 = vmax.xlane.f32.xlu1 %v1778_v42  ;;  %16419 = vmatpush3.bf16.msk.msra.mxu0 %vm18993_vm8, %v16414_v31 }
 0x75c   : > { %15371 = vmatprep.mubr.msk.f32.mxu0 %vm925_vm6, %v1511_v41  ;;  %15374 = vmatprep.subr.mxu0 %v829_v44  ;;  %v1999_v41 = vrot.slane %v18910_v35, %v19062_v40  ;;  %v2156_v35 = vld [vmem:[#allocation22 + $0x10] sm:$0xff] }
 0x75d   : > { %16439 = vmatpush3.bf16.msra.mxu1 %v16436_v29 }
 0x75e   : > { %15372 = vmatmul.mubr.msk.f32.vlgmr.msra.gmra.mrb[8].mxu0 %vm925_vm6, %v1512_v43  ;;  %v2005_v43 = vrot.slane %v18912_v36, %v19062_v40  ;;  %v2158_v36 = vld [vmem:[#allocation22 + $0x20] sm:$0xff] }
 0x75f   : > { %15375 = vmatpush3.msra.mxu0 %v829_v44 }
 0x7e4   : > { %v1777_v45 = vpop.xlane.xlu1 %1776 }
 0x7e5   : > { %v1781_v46 = vsub.f32 %v1766_v37, %v1777_v45 }
 0x7e7   : > { %v1783_v50 = vmul.f32 1.442695, %v1781_v46 }
 0x7e8   : > { %v1780_v47 = vpop.xlane.xlu1 %1779 }
 0x7e9   : > { %v1782_v48 = vsub.f32 %v15385_v33, %v1780_v47 }
 0x7eb   : > { %v1785_v51 = vmul.f32 1.442695, %v1782_v48 }
 0x7ed   : > { %17488 = vpow2.f32 %v1785_v51 }
 0x7ee   : > { %17490 = vpow2.f32 %v1783_v50 }
 0x7f7   : > { %v17489_v52 = vpop.eup %17488 }
 0x7f8   : > { %v1790_v54 = vsel %vm929_vm5, %v17489_v52, 0.0  ;;  %v17491_v55 = vpop.eup %17490 }
 0x7f9   : > { %1791 = vadd.xlane.f32.xlu1 %v1790_v54  ;;  %v1787_v56 = vsel %vm925_vm6, %v17491_v55, 0.0  ;;  %v2155_v54 = vld [vmem:[#allocation22 + $0x8] sm:$0xff] }
 0x7fd   : > { %1788 = vadd.xlane.f32.xlu1 %v1787_v56  ;;  %v2157_v56 = vld [vmem:[#allocation22 + $0x18] sm:$0xff] }
 0x80e   : > { %17196 = vrot.lane.b32.xlu1 %v18920_v49, %s18327_s0 }
 0x831   : > { %v15373_v57 = vpop.f32.mrb[8].mxu0 }
 0x832   : > { %v1592_v59 = vpop.f32.mrb[9].mxu0 }
 0x833   : > { %15376 = vmatprep.mubr.msk.f32.mxu0 %vm839_vm3, %v1592_v59  ;;  %v2159_v59 = vld [vmem:[#allocation22 + $0x28] sm:$0xff] }
 0x834   : > { %15377 = vmatmul.mubr.msk.f32.vlgmr.msra.gmra.mrb[6].mxu0 %vm839_vm3, %v15373_v57  ;;  %v16444_v57 = vpack.c.bf16 %v2157_v56, %v2156_v35 }
 0x886   : > { %v1792_v60 = vpop.xlane.xlu1 %1791 }
 0x887   : > { %17492 = vrcp.f32 %v1792_v60  ;;  %v16448_v60 = vpack.c.bf16 %v2159_v59, %v2158_v36 }
 0x88a   : > { %v1789_v61 = vpop.xlane.xlu1 %1788 }
 0x88b   : > { %17494 = vrcp.f32 %v1789_v61  ;;  %v2160_v61 = vld [vmem:[#allocation22 + $0x30] sm:$0xff] }
 0x88e   : > { %v17197_v62 = vpop.permute.xlu1 %17196 }
 0x88f   : > { %v17199_v63 = vunpack.i.h.bf16 %v17197_v62  ;;  %v17198_v0 = vunpack.i.l.bf16 %v17197_v62  ;;  %v2161_v62 = vld [vmem:[#allocation22 + $0x38] sm:$0xff] }
 0x891   : > { %v16426_v1 = vpack.c.bf16 %v17199_v63, %v17198_v0  ;;  %v17493_v3 = vpop.eup %17492  ;;  %v16452_v63 = vpack.c.bf16 %v2161_v62, %v2160_v61  ;;  %v14485_v0 = vld [vmem:[#allocation20] ss:$0 sm:$0xff] }
 0x892   : > { %v1796_v5 = vmul.f32 %v17493_v3, %v17489_v52  ;;  %v2154_v52 = vld [vmem:[#allocation22] sm:$0xff] }
 0x893   : > { %16428 = vmatprep.subr.msk.bf16.mxu0 %vm18993_vm8, %v16426_v1 }
 0x894   : > { %16431 = vmatpush3.bf16.msk.msra.mxu0 %vm18993_vm8, %v16426_v1 }
 0x895   : > { %v17495_v49 = vpop.eup %17494  ;;  %15393 = vmatprep.subr.mxu0 %v830_v2 }
 0x896   : > { %v1795_v4 = vmul.f32 %v17495_v49, %v17491_v55  ;;  %v16440_v55 = vpack.c.bf16 %v2155_v54, %v2154_v52 }
 0x898   : > { %15390 = vmatprep.mubr.msk.f32.mxu0 %vm925_vm6, %v1795_v4 }
 0x899   : > { %15391 = vmatmul.mubr.msk.f32.vlgmr.msra.gmra.mrb[10].mxu0 %vm925_vm6, %v1796_v5 }
 0x89a   : > { %15394 = vmatpush3.msra.mxu0 %v830_v2 }
 0x89b   : > { %16441 = vmatprep.subr.bf16.mxu0 %v16440_v55 }
 0x96c   : > { %v15392_v8 = vpop.f32.mrb[10].mxu0 }
 0x96d   : > { %v1876_v9 = vpop.f32.mrb[11].mxu0 }
 0x96e   : > { %15395 = vmatprep.mubr.msk.f32.mxu0 %vm839_vm3, %v1876_v9 }
 0x96f   : > { %15396 = vmatmul.mubr.msk.f32.vlgmr.msra.gmra.mrb[6].mxu0 %vm839_vm3, %v15392_v8 }
 0x970   : > { %16443 = vmatpush3.bf16.msra.mxu0 %v16440_v55 }
 0x971   : > { %16445 = vmatprep.subr.bf16.mxu0 %v16444_v57 }
 0x974   : > { %16447 = vmatpush3.bf16.msra.mxu0 %v16444_v57 }
 0x975   : > { %16449 = vmatprep.subr.bf16.mxu0 %v16448_v60 }
 0x978   : > { %16451 = vmatpush3.bf16.msra.mxu0 %v16448_v60 }
 0x979   : > { %16453 = vmatprep.subr.bf16.mxu0 %v16452_v63 }
 0x97c   : > { %16455 = vmatpush3.bf16.msra.mxu0 %v16452_v63  ;;  %v14488_v63 = vld [vmem:[#allocation23] ss:$0 sm:$0xff] }
 0xa42   : > { %v15397_v10 = vpop.f32.mrb[6].mxu0 }
 0xa43   : > { %v19048_v11 = vadd.f32 %v15397_v10, %v18895_v7  ;;  %v1957_v12 = vpop.f32.mrb[7].mxu0 }
 0xa44   : > { %v19051_v13 = vadd.f32 %v1957_v12, %v18893_v6 }
 0xa45   : > { %v1973_v14 = vsel %vm705_vm2, %v19048_v11, 0.0 }
 0xa46   : > { %1974 = vadd.xlane.f32.xlu1 %v1973_v14  ;;  %v1970_v17 = vsel %vm701_vm1, %v19051_v13, 0.0 }
 0xa47   : > { %1971 = vadd.xlane.f32.xlu0 %v1970_v17 }
 0xad3   : > { %v1975_v18 = vpop.xlane.xlu1 %1974 }
 0xad4   : > { %v1977_v19 = vmul.f32 0.03125, %v1975_v18  ;;  %v1972_v20 = vpop.xlane.xlu0 %1971 }
 0xad5   : > { %v1976_v21 = vmul.f32 0.03125, %v1972_v20 }
 0xad6   : > { %v1979_v22 = vsub.f32 %v19048_v11, %v1977_v19 }
 0xad7   : > { %v1978_v7 = vsub.f32 %v19051_v13, %v1976_v21 }
 0xad8   : > { %v1981_v15 = vmul.f32 %v1979_v22, %v1979_v22 }
 0xad9   : > { %v1980_v23 = vmul.f32 %v1978_v7, %v1978_v7 }
 0xada   : > { %v1985_v16 = vsel %vm705_vm2, %v1981_v15, 0.0 }
 0xadb   : > { %v1982_v6 = vsel %vm701_vm1, %v1980_v23, 0.0 }
 0xadc   : > { %1983 = vadd.xlane.f32.xlu0 %v1982_v6 }
 0xae0   : > { %1986 = vadd.xlane.f32.xlu0 %v1985_v16 }
 0xb69   : > { %v1984_v30 = vpop.xlane.xlu0 %1983 }
 0xb6a   : > { %v1988_v31 = vmul.f32 0.03125, %v1984_v30 }
 0xb6c   : > { %v1990_v33 = vadd.f32 1e-05, %v1988_v31 }
 0xb6d   : > { %v1987_v37 = vpop.xlane.xlu0 %1986 }
 0xb6e   : > { %17496 = vrsqrt.f32 %v1990_v33  ;;  %v1989_v38 = vmul.f32 0.03125, %v1987_v37 }
 0xb70   : > { %v1991_v39 = vadd.f32 1e-05, %v1989_v38 }
 0xb72   : > { %17498 = vrsqrt.f32 %v1991_v39 }
 0xb78   : > { %v17497_v42 = vpop.eup %17496 }
 0xb79   : > { %v1994_v44 = vmul.f32 %v17497_v42, %v1978_v7 }
 0xb7b   : > { %v2000_v45 = vmul.f32 %v1999_v41, %v1994_v44 }
 0xb7c   : > { %v17499_v46 = vpop.eup %17498 }
 0xb7d   : > { %v1995_v47 = vmul.f32 %v17499_v46, %v1979_v22  ;;  %v2006_v48 = vadd.f32 %v2005_v43, %v2000_v45 }
 0xb7f   : > { %15406 = vmatprep.mubr.msk.f32.mxu1 %vm701_vm1, %v2006_v48  ;;  %v2001_v50 = vmul.f32 %v1999_v41, %v1995_v47 }
 0xb81   : > { %v2007_v51 = vadd.f32 %v2005_v43, %v2001_v50 }
 0xb83   : > { %15407 = vmatmul.mubr.msk.f32.vlgmr.msra.gmra.mrb[8].mxu1 %vm701_vm1, %v2007_v51  ;;  %v18328_v51 = vmov -1.0  }
 0xc56   : > { %v15408_v1 = vpop.f32.mrb[8].mxu1 }
 0xc57   : > { %v2097_v2 = vadd.f32 %v15408_v1, %v14485_v0  ;;  %v2091_v3 = vpop.f32.mrb[9].mxu1 }
 0xc58   : > { %v2092_v49 = vadd.f32 %v14485_v0, %v2091_v3 }
 0xc59   : > { %v2103_v4 = vmul.f32 0.70710677, %v2097_v2  ;;  %v2101_v60 = vmul.f32 0.5, %v2097_v2 }
 0xc5a   : > { %v2102_v5 = vmul.f32 0.70710677, %v2092_v49  ;;  %v2100_v36 = vmul.f32 0.5, %v2092_v49 }
 0xc5b   : > { %v2109_v8 = vand.u32 2147483647, %v2103_v4  ;;  %vm2105_vm9 = vcmp.ge.f32.partialorder %v2103_v4, 0.0 }
 0xc5c   : > { %v2108_v9 = vand.u32 2147483647, %v2102_v5  ;;  %vm2104_vm10 = vcmp.ge.f32.partialorder %v2102_v5, 0.0  ;;  %v2107_v52 = vsel %vm2105_vm9, 1.0, %v18328_v51 }
 0xc5d   : > { %v2111_v10 = vmul.f32 0.3275911, %v2109_v8  ;;  %v2137_v18 = vsub.f32 0.0, %v2109_v8  ;;  %v2106_v35 = vsel %vm2104_vm10, 1.0, %v18328_v51  ;;  %vm6657_vm10 = vcmask 130048  }
 0xc5e   : > { %v2110_v12 = vmul.f32 0.3275911, %v2108_v9  ;;  %v2136_v19 = vsub.f32 0.0, %v2108_v9 }
 0xc5f   : > { %v2113_v14 = vadd.f32 1.0, %v2111_v10  ;;  %v2139_v21 = vmul.f32 %v2137_v18, %v2109_v8 }
 0xc60   : > { %v2112_v17 = vadd.f32 1.0, %v2110_v12  ;;  %v2138_v23 = vmul.f32 %v2136_v19, %v2108_v9 }
 0xc61   : > { %17500 = vrcp.f32 %v2113_v14  ;;  %v2142_v16 = vmul.f32 1.442695, %v2139_v21  ;;  %v2296_v21 = vld [vmem:[#allocation13 + $0x20] sm:$0xff] }
 0xc62   : > { %17502 = vrcp.f32 %v2112_v17  ;;  %v2140_v26 = vmul.f32 1.442695, %v2138_v23  ;;  %v2298_v23 = vld [vmem:[#allocation13 + $0x30] sm:$0xff] }
 0xc63   : > { %17504 = vpow2.f32 %v2142_v16 }
 0xc64   : > { %17506 = vpow2.f32 %v2140_v26 }
 0xc6b   : > { %v17501_v20 = vpop.eup %17500 }
 0xc6c   : > { %v17503_v22 = vpop.eup %17502  ;;  %v2119_v7 = vmul.f32 1.0614054, %v17501_v20 }
 0xc6d   : > { %v2118_v6 = vmul.f32 1.0614054, %v17503_v22  ;;  %v17505_v44 = vpop.eup %17504 }
 0xc6e   : > { %v2121_v15 = vadd.f32 -1.4531521, %v2119_v7  ;;  %v17507_v46 = vpop.eup %17506 }
 0xc6f   : > { %v2120_v24 = vadd.f32 -1.4531521, %v2118_v6  ;;  %v2299_v6 = vld [vmem:[#allocation13 + $0x38] sm:$0xff] }
 0xc70   : > { %v2123_v25 = vmul.f32 %v17501_v20, %v2121_v15  ;;  %v16460_v15 = vpack.c.bf16 %v2299_v6, %v2298_v23 }
 0xc71   : > { %v2122_v27 = vmul.f32 %v17503_v22, %v2120_v24 }
 0xc72   : > { %v2125_v28 = vadd.f32 1.4214138, %v2123_v25 }
 0xc73   : > { %v2124_v29 = vadd.f32 1.4214138, %v2122_v27 }
 0xc74   : > { %v2127_v30 = vmul.f32 %v17501_v20, %v2125_v28 }
 0xc75   : > { %v2126_v31 = vmul.f32 %v17503_v22, %v2124_v29  ;;  %v19088_v29 = vld [vmem:[#allocation16 + $0x4] sm:$0x7] }
 0xc76   : > { %v2129_v33 = vadd.f32 -0.28449672, %v2127_v30  ;;  %v19090_v30 = vld [vmem:[#allocation17 + $0x4] sm:$0x7] }
 0xc77   : > { %v2128_v37 = vadd.f32 -0.28449672, %v2126_v31  ;;  %v2286_v31 = vrot.slane %v19088_v29, %v18908_v34 }
 0xc78   : > { %v2131_v38 = vmul.f32 %v17501_v20, %v2129_v33 }
 0xc79   : > { %v2130_v39 = vmul.f32 %v17503_v22, %v2128_v37 }
 0xc7a   : > { %v2133_v41 = vadd.f32 0.2548296, %v2131_v38  ;;  %v2292_v38 = vrot.slane %v19090_v30, %v18908_v34 }
 0xc7b   : > { %v2132_v42 = vadd.f32 0.2548296, %v2130_v39 }
 0xc7c   : > { %v2135_v43 = vmul.f32 %v17501_v20, %v2133_v41 }
 0xc7d   : > { %v2134_v45 = vmul.f32 %v17503_v22, %v2132_v42  ;;  %v2297_v22 = vld [vmem:[#allocation13 + $0x28] sm:$0xff] }
 0xc7e   : > { %v2145_v47 = vmul.f32 %v17505_v44, %v2135_v43  ;;  %v16456_v7 = vpack.c.bf16 %v2297_v22, %v2296_v21 }
 0xc7f   : > { %v2144_v48 = vmul.f32 %v17507_v46, %v2134_v45 }
 0xc80   : > { %v2147_v50 = vsub.f32 1.0, %v2145_v47  ;;  %16457 = vmatprep.subr.bf16.mxu1 %v16456_v7 }
 0xc81   : > { %v2146_v54 = vsub.f32 1.0, %v2144_v48  ;;  %16459 = vmatpush3.bf16.msra.mxu1 %v16456_v7 }
 0xc82   : > { %v2149_v55 = vmul.f32 %v2147_v50, %v2107_v52  ;;  %16461 = vmatprep.subr.bf16.mxu1 %v16460_v15 }
 0xc83   : > { %v2148_v56 = vmul.f32 %v2146_v54, %v2106_v35 }
 0xc84   : > { %v2151_v57 = vadd.f32 1.0, %v2149_v55 }
 0xc85   : > { %v2150_v59 = vadd.f32 1.0, %v2148_v56  ;;  %16463 = vmatpush3.bf16.msra.mxu1 %v16460_v15 }
 0xc86   : > { %v2153_v62 = vmul.f32 %v2151_v57, %v2101_v60 }
 0xc87   : > { %v2152_v61 = vmul.f32 %v2150_v59, %v2100_v36 }
 0xc89   : > { %15425 = vmatprep.mubr.msk.f32.mxu0 %vm2169_vm11, %v2152_v61 }
 0xc8a   : > { %15426 = vmatmul.mubr.msk.f32.vlgmr.msra.gmra.mrb[12].mxu0 %vm2169_vm11, %v2153_v62 }
 0xd5d   : > { %v15427_v0 = vpop.f32.mrb[12].mxu0 }
 0xd5e   : > { %v2242_v1 = vpop.f32.mrb[13].mxu0  ;;  %v2248_v3 = vadd.f32 %v15427_v0, %v14488_v63 }
 0xd5f   : > { %v2243_v4 = vadd.f32 %v14488_v63, %v2242_v1 }
 0xd60   : > { %v19078_v8 = vadd.f32 %v2248_v3, %v19048_v11 }
 0xd61   : > { %v19075_v5 = vadd.f32 %v2243_v4, %v19051_v13 }
 0xd62   : > { %v2260_v49 = vsel %vm705_vm2, %v19078_v8, 0.0 }
 0xd63   : > { %v2257_v2 = vsel %vm701_vm1, %v19075_v5, 0.0 }
 0xd64   : > { %2258 = vadd.xlane.f32.xlu0 %v2257_v2 }
 0xd68   : > { %2261 = vadd.xlane.f32.xlu0 %v2260_v49 }
 0xdf1   : > { %v2259_v9 = vpop.xlane.xlu0 %2258 }
 0xdf2   : > { %v2263_v10 = vmul.f32 0.03125, %v2259_v9 }
 0xdf4   : > { %v2265_v12 = vsub.f32 %v19075_v5, %v2263_v10 }
 0xdf5   : > { %v2262_v14 = vpop.xlane.xlu0 %2261 }
 0xdf6   : > { %v2264_v17 = vmul.f32 0.03125, %v2262_v14  ;;  %v2267_v18 = vmul.f32 %v2265_v12, %v2265_v12 }
 0xdf8   : > { %v2266_v13 = vsub.f32 %v19078_v8, %v2264_v17  ;;  %v2269_v11 = vsel %vm701_vm1, %v2267_v18, 0.0 }
 0xdf9   : > { %2270 = vadd.xlane.f32.xlu0 %v2269_v11 }
 0xdfa   : > { %v2268_v19 = vmul.f32 %v2266_v13, %v2266_v13 }
 0xdfc   : > { %v2272_v20 = vsel %vm705_vm2, %v2268_v19, 0.0 }
 0xdfd   : > { %2273 = vadd.xlane.f32.xlu1 %v2272_v20 }
 0xe86   : > { %v2271_v16 = vpop.xlane.xlu0 %2270 }
 0xe87   : > { %v2275_v24 = vmul.f32 0.03125, %v2271_v16 }
 0xe89   : > { %v2277_v25 = vadd.f32 1e-05, %v2275_v24 }
 0xe8a   : > { %v2274_v26 = vpop.xlane.xlu1 %2273 }
 0xe8b   : > { %17508 = vrsqrt.f32 %v2277_v25  ;;  %v2276_v27 = vmul.f32 0.03125, %v2274_v26 }
 0xe8d   : > { %v2278_v28 = vadd.f32 1e-05, %v2276_v27 }
 0xe8f   : > { %17510 = vrsqrt.f32 %v2278_v28 }
 0xe95   : > { %v17509_v33 = vpop.eup %17508 }
 0xe96   : > { %v2281_v37 = vmul.f32 %v17509_v33, %v2265_v12 }
 0xe98   : > { %v2287_v39 = vmul.f32 %v2286_v31, %v2281_v37 }
 0xe99   : > { %v17511_v41 = vpop.eup %17510 }
 0xe9a   : > { %v2282_v42 = vmul.f32 %v17511_v41, %v2266_v13  ;;  %v2293_v43 = vadd.f32 %v2292_v38, %v2287_v39 }
 0xe9c   : > { %v2288_v44 = vmul.f32 %v2286_v31, %v2282_v42  ;;  %15436 = vmatprep.mubr.msk.f32.mxu1 %vm701_vm1, %v2293_v43 }
 0xe9e   : > { %v2294_v45 = vadd.f32 %v2292_v38, %v2288_v44 }
 0xea0   : > { %15437 = vmatmul.mubr.msk.f32.vlgmr.msra.gmra.mrb[10].mxu1 %vm701_vm1, %v2294_v45 }
 0xf73   : > { %v15438_v46 = vpop.f32.mrb[10].mxu1 }
 0xf74   : > { %v2372_v47 = vpop.f32.mrb[11].mxu1  ;;  %v19112_v52 = vmul.f32 0.17677669, %v15438_v46 }
 0xf75   : > { %v19098_v48 = vpack.i.bf16 %v15438_v46, %v2372_v47  ;;  %v19100_v50 = vmul.f32 0.17677669, %v2372_v47 }
 0xf77   : > { %17206 = vrot.lane.b32.xlu1 %v19098_v48, %s18316_s18  ;;  %17201 = vrot.lane.b32.xlu0 %v19098_v48, %s18317_s1 }
 0xf78   : > { %15443 = vmatprep.mubr.msk.f32.mxu1 %vm839_vm3, %v19100_v50 }
 0xf7b   : > { %17211 = vrot.lane.b32.xlu0 %v19098_v48, %s18318_s2  ;;  %2589 = vrot.lane.b32.xlu1 %v19100_v50, %s18319_s17 }
 0xf7f   : > { %2954 = vrot.lane.b32.xlu0 %v19112_v52, %s18320_s10  ;;  %2591 = vrot.lane.b32.xlu1 %v19112_v52, %s18319_s17 }
 0xf83   : > { %2952 = vrot.lane.b32.xlu1 %v19100_v50, %s18320_s10 }
 0xfe9   : > { %v17207_v54 = vpop.permute.xlu1 %17206  ;;  %v17202_v55 = vpop.permute.xlu0 %17201 }
 0xfea   : > { %v17209_v35 = vunpack.i.h.bf16 %v17207_v54  ;;  %v17208_v56 = vunpack.i.l.bf16 %v17207_v54  ;;  %v17204_v57 = vunpack.i.h.bf16 %v17202_v55  ;;  %v17203_v36 = vunpack.i.l.bf16 %v17202_v55 }
 0xfec   : > { %v16464_v59 = vpack.c.bf16 %v17204_v57, %v17203_v36  ;;  %v16476_v60 = vpack.c.bf16 %v17209_v35, %v17208_v56 }
 0xfed   : > { %v17212_v61 = vpop.permute.xlu0 %17211  ;;  %v2590_v0 = vpop.permute.xlu1 %2589 }
 0xfee   : > { %16466 = vmatprep.subr.msk.bf16.mxu1 %vm18944_vm4, %v16464_v59  ;;  %v17214_v62 = vunpack.i.h.bf16 %v17212_v61  ;;  %v17213_v63 = vunpack.i.l.bf16 %v17212_v61 }
 0xfef   : > { %16469 = vmatpush3.bf16.xpose.msk.msra.mxu1 %vm18944_vm4, %v16464_v59 }
 0xff0   : > { %16478 = vmatprep.subr.msk.bf16.mxu1 %vm18944_vm4, %v16476_v60  ;;  %v16488_v1 = vpack.c.bf16 %v17214_v62, %v17213_v63 }
 0xff1   : > { %v2592_v3 = vpop.permute.xlu1 %2591  ;;  %v2955_v2 = vpop.permute.xlu0 %2954 }
 0xff5   : > { %v2953_v4 = vpop.permute.xlu1 %2952 }
 0xff6   : > { %15444 = vmatmul.mubr.msk.f32.vlgmr.msra.gmra.mrb[12].mxu1 %vm839_vm3, %v19112_v52 }
 0xff7   : > { %16481 = vmatpush3.bf16.xpose.msk.msra.mxu1 %vm18944_vm4, %v16476_v60  ;;  %15457 = vmatprep.mubr.msk.f32.mxu1 %vm839_vm3, %v2590_v0 }
 0xff8   : > { %16490 = vmatprep.subr.msk.bf16.mxu1 %vm18944_vm4, %v16488_v1 }
 0xffe   : > { %15458 = vmatmul.mubr.msk.f32.vlgmr.msra.gmra.mrb[14].mxu1 %vm839_vm3, %v2592_v3 }
 0xfff   : > { %16493 = vmatpush3.bf16.xpose.msk.msra.mxu1 %vm18944_vm4, %v16488_v1  ;;  %15481 = vmatprep.mubr.msk.f32.mxu1 %vm839_vm3, %v2953_v4 }
0x1006   : > { %15482 = vmatmul.mubr.msk.f32.vlgmr.msra.gmra.mrb[16].mxu1 %vm839_vm3, %v2955_v2 }
0x10c9   : > { %v15445_v49 = vpop.f32.mrb[12].mxu1 }
0x10ca   : > { %v2470_v9 = vpop.f32.mrb[13].mxu1  ;;  %v2482_v10 = vsel %vm929_vm5, %v15445_v49, -inf }
0x10cb   : > { %2483 = vmax.xlane.f32.xlu0 %v2482_v10  ;;  %v2479_v12 = vsel %vm925_vm6, %v2470_v9, -inf }
0x10cc   : > { %2480 = vmax.xlane.f32.xlu1 %v2479_v12 }
0x10d1   : > { %v15459_v14 = vpop.f32.mrb[14].mxu1 }
0x10d2   : > { %v2671_v17 = vpop.f32.mrb[15].mxu1  ;;  %v2683_v13 = vsel %vm929_vm5, %v15459_v14, -inf }
0x10d3   : > { %v2680_v18 = vsel %vm925_vm6, %v2671_v17, -inf }
0x10d4   : > { %2681 = vmax.xlane.f32.xlu0 %v2680_v18 }
0x10d8   : > { %2684 = vmax.xlane.f32.xlu0 %v2683_v13 }
0x10d9   : > { %v19142_v11 = vpop.f32.mrb[16].mxu1 }
0x10da   : > { %v19144_v19 = vpop.f32.mrb[17].mxu1  ;;  %v3046_v44 = vsel %vm929_vm5, %v19142_v11, -inf }
0x10db   : > { %v3043_v43 = vsel %vm925_vm6, %v19144_v19, -inf }
0x1158   : > { %v2484_v20 = vpop.xlane.xlu0 %2483 }
0x1159   : > { %v2486_v21 = vsub.f32 %v15445_v49, %v2484_v20  ;;  %v2481_v22 = vpop.xlane.xlu1 %2480 }
0x115a   : > { %v2485_v7 = vsub.f32 %v2470_v9, %v2481_v22 }
0x115b   : > { %v2489_v23 = vmul.f32 1.442695, %v2486_v21 }
0x115c   : > { %v2487_v6 = vmul.f32 1.442695, %v2485_v7 }
0x115d   : > { %17512 = vpow2.f32 %v2489_v23 }
0x115e   : > { %17514 = vpow2.f32 %v2487_v6 }
0x1161   : > { %v2682_v15 = vpop.xlane.xlu0 %2681 }
0x1162   : > { %v2686_v16 = vsub.f32 %v2671_v17, %v2682_v15 }
0x1164   : > { %v2688_v24 = vmul.f32 1.442695, %v2686_v16  ;;  %v2383_v16 = vld [vmem:[#allocation14 + $0x28] sm:$0xff] }
0x1165   : > { %v2685_v25 = vpop.xlane.xlu0 %2684 }
0x1166   : > { %17516 = vpow2.f32 %v2688_v24  ;;  %v2687_v26 = vsub.f32 %v15459_v14, %v2685_v25  ;;  %v2382_v24 = vld [vmem:[#allocation14 + $0x20] sm:$0xff] }
0x1167   : > { %v17513_v27 = vpop.eup %17512 }
0x1168   : > { %v17515_v28 = vpop.eup %17514  ;;  %v2690_v31 = vmul.f32 1.442695, %v2687_v26  ;;  %v2494_v33 = vsel %vm929_vm5, %v17513_v27, 0.0 }
0x1169   : > { %2495 = vadd.xlane.f32.xlu0 %v2494_v33  ;;  %v2491_v37 = vsel %vm925_vm6, %v17515_v28, 0.0 }
0x116a   : > { %17518 = vpow2.f32 %v2690_v31  ;;  %2492 = vadd.xlane.f32.xlu1 %v2491_v37 }
0x1170   : > { %v17517_v38 = vpop.eup %17516 }
0x1171   : > { %v2692_v39 = vsel %vm925_vm6, %v17517_v38, 0.0 }
0x1172   : > { %2693 = vadd.xlane.f32.xlu1 %v2692_v39 }
0x1174   : > { %v17519_v41 = vpop.eup %17518 }
0x1175   : > { %v2695_v42 = vsel %vm929_vm5, %v17519_v41, 0.0 }
0x1176   : > { %2696 = vadd.xlane.f32.xlu0 %v2695_v42 }
0x1183   : > { %17216 = vrot.lane.b32.xlu1 %v19098_v48, %s18321_s7 }
0x1187   : > { %17226 = vrot.lane.b32.xlu1 %v19098_v48, %s18322_s25 }
0x118b   : > { %3236 = vrot.lane.b32.xlu1 %v19100_v50, %s18323_s26 }
0x118c   : > { %17221 = vrot.lane.b32.xlu0 %v19098_v48, %s18324_s23 }
0x118f   : > { %3238 = vrot.lane.b32.xlu1 %v19112_v52, %s18323_s26 }
0x11ab   : > { %3044 = vmax.xlane.f32.xlu0 %v3043_v43 }
0x11b3   : > { %3047 = vmax.xlane.f32.xlu1 %v3046_v44 }
0x11f6   : > { %v2496_v46 = vpop.xlane.xlu0 %2495 }
0x11f7   : > { %v2493_v45 = vpop.xlane.xlu1 %2492 }
0x11f8   : > { %17520 = vrcp.f32 %v2493_v45 }
0x11f9   : > { %17522 = vrcp.f32 %v2496_v46 }
0x11ff   : > { %v2694_v47 = vpop.xlane.xlu1 %2693 }
0x1200   : > { %17524 = vrcp.f32 %v2694_v47 }
0x1202   : > { %v17521_v50 = vpop.eup %17520 }
0x1203   : > { %v2697_v54 = vpop.xlane.xlu0 %2696  ;;  %v17217_v55 = vpop.permute.xlu1 %17216  ;;  %v2499_v35 = vmul.f32 %v17521_v50, %v17515_v28  ;;  %v2384_v50 = vld [vmem:[#allocation14 + $0x30] sm:$0xff] }
0x1204   : > { %17526 = vrcp.f32 %v2697_v54  ;;  %v17219_v52 = vunpack.i.h.bf16 %v17217_v55  ;;  %v17218_v56 = vunpack.i.l.bf16 %v17217_v55  ;;  %v17523_v36 = vpop.eup %17522 }
0x1205   : > { %15450 = vmatprep.mubr.msk.f32.mxu0 %vm925_vm6, %v2499_v35  ;;  %v2500_v2 = vmul.f32 %v17523_v36, %v17513_v27 }
0x1206   : > { %v16470_v57 = vpack.c.bf16 %v17219_v52, %v17218_v56 }
0x1207   : > { %v17222_v59 = vpop.permute.xlu0 %17221  ;;  %v17227_v60 = vpop.permute.xlu1 %17226 }
0x1208   : > { %v17224_v61 = vunpack.i.h.bf16 %v17222_v59  ;;  %v17223_v62 = vunpack.i.l.bf16 %v17222_v59  ;;  %v17229_v63 = vunpack.i.h.bf16 %v17227_v60  ;;  %v17228_v0 = vunpack.i.l.bf16 %v17227_v60  ;;  %16472 = vmatprep.subr.msk.bf16.mxu0 %vm18993_vm8, %v16470_v57 }
0x1209   : > { %16475 = vmatpush3.bf16.msk.msra.mxu0 %vm18993_vm8, %v16470_v57 }
0x120a   : > { %v17525_v1 = vpop.eup %17524  ;;  %v16482_v3 = vpack.c.bf16 %v17224_v61, %v17223_v62  ;;  %v16500_v4 = vpack.c.bf16 %v17229_v63, %v17228_v0 }
0x120b   : > { %v3237_v49 = vpop.permute.xlu1 %3236  ;;  %v2700_v9 = vmul.f32 %v17525_v1, %v17517_v38 }
0x120c   : > { %15451 = vmatmul.mubr.msk.f32.vlgmr.msra.gmra.mrb[14].mxu0 %vm925_vm6, %v2500_v2  ;;  %16484 = vmatprep.subr.msk.bf16.mxu0 %vm18993_vm8, %v16482_v3 }
0x120d   : > { %16502 = vmatprep.subr.msk.bf16.mxu1 %vm18944_vm4, %v16500_v4  ;;  %15500 = vmatprep.mubr.msk.f32.mxu1 %vm839_vm3, %v3237_v49 }
0x120e   : > { %v17527_v10 = vpop.eup %17526  ;;  %16487 = vmatpush3.bf16.msk.msra.mxu0 %vm18993_vm8, %v16482_v3  ;;  %15464 = vmatprep.mubr.msk.f32.mxu0 %vm925_vm6, %v2700_v9  ;;  %v2385_v9 = vld [vmem:[#allocation14 + $0x38] sm:$0xff] }
0x120f   : > { %16505 = vmatpush3.bf16.xpose.msk.msra.mxu1 %vm18944_vm4, %v16500_v4  ;;  %v2701_v12 = vmul.f32 %v17527_v10, %v17519_v41  ;;  %v3239_v14 = vpop.permute.xlu1 %3238  ;;  %15467 = vmatprep.subr.mxu0 %v2383_v16 }
0x1211   : > { %15465 = vmatmul.mubr.msk.f32.vlgmr.msra.gmra.mrb[16].mxu0 %vm925_vm6, %v2701_v12 }
0x1212   : > { %15468 = vmatpush3.msra.mxu0 %v2383_v16 }
0x1213   : > { %15472 = vmatprep.subr.mxu0 %v2382_v24 }
0x1216   : > { %15501 = vmatmul.mubr.msk.f32.vlgmr.msra.gmra.mrb[18].mxu1 %vm839_vm3, %v3239_v14 }
0x1238   : > { %v3045_v17 = vpop.xlane.xlu0 %3044 }
0x1239   : > { %v3049_v18 = vsub.f32 %v19144_v19, %v3045_v17 }
0x123b   : > { %v3051_v21 = vmul.f32 1.442695, %v3049_v18 }
0x1240   : > { %v3048_v13 = vpop.xlane.xlu1 %3047 }
0x1241   : > { %v3050_v20 = vsub.f32 %v19142_v11, %v3048_v13  ;;  %v3809_v13 = vld [vmem:[%s18858_s9] sm:$0x3f] }
0x1243   : > { %v3053_v22 = vmul.f32 1.442695, %v3050_v20  ;;  %v3811_v20 = vrot.slane %v3809_v13, 7 }
0x1245   : > { %17528 = vpow2.f32 %v3053_v22  ;;  %v3814_v22 = vld [vmem:[#allocation10] sm:$0x7f] }
0x1246   : > { %17530 = vpow2.f32 %v3051_v21  ;;  %v3808_v21 = vld [vmem:[#allocation7 + $0x1] sm:$0x1] }
0x1247   : > { %v3813_v53 = vsel %vm693_vm0, %v3808_v21, %v3811_v20 }
0x1248   : > { %v19222_v16 = vadd.f32 %v3814_v22, %v3813_v53  ;;  %v3847_v53 = vld [vmem:[#allocation13 + $0x50] sm:$0xff]  ;;  %v19246_v22 = vld [vmem:[#allocation17 + $0x8] sm:$0x7] }
0x124f   : > { %v17529_v7 = vpop.eup %17528 }
0x1250   : > { %v3058_v23 = vsel %vm929_vm5, %v17529_v7, 0.0  ;;  %v17531_v6 = vpop.eup %17530 }
0x1251   : > { %3059 = vadd.xlane.f32.xlu0 %v3058_v23  ;;  %v3055_v15 = vsel %vm925_vm6, %v17531_v6, 0.0 }
0x1255   : > { %3056 = vadd.xlane.f32.xlu0 %v3055_v15 }
0x126b   : > { %17231 = vrot.lane.b32.xlu0 %v19098_v48, %s18326_s20 }
0x12de   : > { %v3060_v11 = vpop.xlane.xlu0 %3059 }
0x12df   : > { %v15452_v19 = vpop.f32.mrb[14].mxu0 }
0x12e0   : > { %v2580_v25 = vpop.f32.mrb[15].mxu0 }
0x12e2   : > { %v3057_v26 = vpop.xlane.xlu0 %3056 }
0x12e3   : > { %17532 = vrcp.f32 %v3057_v26 }
0x12e4   : > { %17534 = vrcp.f32 %v3060_v11  ;;  %v15466_v27 = vpop.f32.mrb[16].mxu0 }
0x12e5   : > { %v2781_v28 = vpop.f32.mrb[17].mxu0 }
0x12e6   : > { %v17232_v31 = vpop.permute.xlu0 %17231  ;;  %15469 = vmatprep.mubr.msk.f32.mxu0 %vm839_vm3, %v2781_v28 }
0x12e7   : > { %v17234_v33 = vunpack.i.h.bf16 %v17232_v31  ;;  %v17233_v37 = vunpack.i.l.bf16 %v17232_v31  ;;  %15470 = vmatmul.mubr.msk.f32.vlgmr.msra.gmra.mrb[18].mxu0 %vm839_vm3, %v15466_v27 }
0x12e8   : > { %15474 = vmatprep.mubr.msk.f32.mxu0 %vm839_vm3, %v2580_v25  ;;  %15473 = vmatpush3.msra.mxu0 %v2382_v24 }
0x12e9   : > { %v16494_v38 = vpack.c.bf16 %v17234_v33, %v17233_v37  ;;  %v15502_v39 = vpop.f32.mrb[18].mxu1 }
0x12ea   : > { %v3318_v41 = vpop.f32.mrb[19].mxu1  ;;  %v3330_v46 = vsel %vm929_vm5, %v15502_v39, -inf }
0x12eb   : > { %v3327_v42 = vsel %vm925_vm6, %v3318_v41, -inf  ;;  %16496 = vmatprep.subr.msk.bf16.mxu0 %vm18993_vm8, %v16494_v38 }
0x12ec   : > { %3328 = vmax.xlane.f32.xlu1 %v3327_v42 }
0x12ed   : > { %v17533_v43 = vpop.eup %17532 }
0x12ee   : > { %v17535_v44 = vpop.eup %17534  ;;  %v3063_v45 = vmul.f32 %v17533_v43, %v17531_v6 }
0x12ef   : > { %15475 = vmatmul.mubr.msk.f32.vlgmr.msra.gmra.mrb[18].mxu0 %vm839_vm3, %v15452_v19  ;;  %v3064_v47 = vmul.f32 %v17535_v44, %v17529_v7  ;;  %v3821_v19 = vsel %vm3820_vm12, %v19222_v16, 0.0 }
0x12f0   : > { %3331 = vmax.xlane.f32.xlu1 %v3330_v46  ;;  %16499 = vmatpush3.bf16.msk.msra.mxu0 %vm18993_vm8, %v16494_v38  ;;  %v3562_v46 = vld [vmem:[#allocation19 + $0x28] sm:$0xff] }
0x12f1   : > { %15488 = vmatprep.mubr.msk.f32.mxu0 %vm925_vm6, %v3063_v45  ;;  %15491 = vmatprep.subr.mxu0 %v2384_v50  ;;  %v3561_v45 = vld [vmem:[#allocation19 + $0x20] sm:$0xff] }
0x12f3   : > { %15489 = vmatmul.mubr.msk.f32.vlgmr.msra.gmra.mrb[20].mxu0 %vm925_vm6, %v3064_v47  ;;  %v16512_v47 = vpack.c.bf16 %v3562_v46, %v3561_v45 }
0x12f4   : > { %15492 = vmatpush3.msra.mxu0 %v2384_v50  ;;  %v3563_v50 = vld [vmem:[#allocation19 + $0x30] sm:$0xff] }
0x12f5   : > { %16513 = vmatprep.subr.bf16.mxu1 %v16512_v47 }
0x12f6   : > { %16515 = vmatpush3.bf16.msra.mxu1 %v16512_v47 }
0x1379   : > { %v3329_v54 = vpop.xlane.xlu1 %3328 }
0x137a   : > { %v3333_v55 = vsub.f32 %v3318_v41, %v3329_v54  ;;  %v3564_v54 = vld [vmem:[#allocation19 + $0x38] sm:$0xff] }
0x137c   : > { %v3335_v56 = vmul.f32 1.442695, %v3333_v55  ;;  %v16516_v55 = vpack.c.bf16 %v3564_v54, %v3563_v50 }
0x137d   : > { %v3332_v35 = vpop.xlane.xlu1 %3331 }
0x137e   : > { %v3334_v52 = vsub.f32 %v15502_v39, %v3332_v35  ;;  %16517 = vmatprep.subr.bf16.mxu1 %v16516_v55  ;;  %v18329_v35 = vmov 0.0|0.0  }
0x137f   : > { %16519 = vmatpush3.bf16.msra.mxu1 %v16516_v55 }
0x1380   : > { %v3337_v57 = vmul.f32 1.442695, %v3334_v52  ;;  %16536 = vmatprep.subr.bf16.mxu1 %v18329_v35 }
0x1382   : > { %17536 = vpow2.f32 %v3337_v57 }
0x1383   : > { %17538 = vpow2.f32 %v3335_v56 }
0x138c   : > { %v17537_v36 = vpop.eup %17536 }
0x138d   : > { %v3342_v59 = vsel %vm929_vm5, %v17537_v36, 0.0  ;;  %v17539_v60 = vpop.eup %17538  ;;  %vm4006_vm5 = vcmask 55296  }
0x138e   : > { %3343 = vadd.xlane.f32.xlu1 %v3342_v59  ;;  %v3339_v61 = vsel %vm925_vm6, %v17539_v60, 0.0 }
0x1392   : > { %3340 = vadd.xlane.f32.xlu1 %v3339_v61 }
0x13a3   : > { %17236 = vrot.lane.b32.xlu1 %v19098_v48, %s18327_s0 }
0x13c6   : > { %v15490_v62 = vpop.f32.mrb[20].mxu0 }
0x13c7   : > { %v3144_v63 = vpop.f32.mrb[21].mxu0 }
0x13c8   : > { %15493 = vmatprep.mubr.msk.f32.mxu0 %vm839_vm3, %v3144_v63 }
0x13c9   : > { %15494 = vmatmul.mubr.msk.f32.vlgmr.msra.gmra.mrb[18].mxu0 %vm839_vm3, %v15490_v62 }
0x141b   : > { %v3344_v0 = vpop.xlane.xlu1 %3343 }
0x141c   : > { %17540 = vrcp.f32 %v3344_v0  ;;  %v3551_v0 = vrot.slane %v19088_v29, %v19062_v40 }
0x141f   : > { %v3341_v1 = vpop.xlane.xlu1 %3340 }
0x1420   : > { %17542 = vrcp.f32 %v3341_v1 }
0x1423   : > { %v17237_v3 = vpop.permute.xlu1 %17236 }
0x1424   : > { %v17239_v4 = vunpack.i.h.bf16 %v17237_v3  ;;  %v17238_v2 = vunpack.i.l.bf16 %v17237_v3 }
0x1426   : > { %v16506_v49 = vpack.c.bf16 %v17239_v4, %v17238_v2  ;;  %v17541_v48 = vpop.eup %17540  ;;  %v3557_v4 = vrot.slane %v19090_v30, %v19062_v40  ;;  %v3848_v30 = vld [vmem:[#allocation13 + $0x58] sm:$0xff] }
0x1427   : > { %v3348_v14 = vmul.f32 %v17541_v48, %v17537_v36 }
0x1428   : > { %16508 = vmatprep.subr.msk.bf16.mxu0 %vm18993_vm8, %v16506_v49 }
0x1429   : > { %16511 = vmatpush3.bf16.msk.msra.mxu0 %vm18993_vm8, %v16506_v49 }
0x142a   : > { %v17543_v10 = vpop.eup %17542  ;;  %15510 = vmatprep.subr.mxu0 %v2385_v9 }
0x142b   : > { %v3347_v12 = vmul.f32 %v17543_v10, %v17539_v60  ;;  %v3845_v10 = vld [vmem:[#allocation13 + $0x40] sm:$0xff] }
0x142d   : > { %15507 = vmatprep.mubr.msk.f32.mxu0 %vm925_vm6, %v3347_v12  ;;  %v3846_v12 = vld [vmem:[#allocation13 + $0x48] sm:$0xff] }
0x142e   : > { %15508 = vmatmul.mubr.msk.f32.vlgmr.msra.gmra.mrb[22].mxu0 %vm925_vm6, %v3348_v14  ;;  %v19241_v14 = vld [vmem:[#allocation16 + $0x8] sm:$0x7]  ;;  %v16537_v13 = vpack.c.bf16 %v3846_v12, %v3845_v10  ;;  %vm4024_vm6 = vcmask 1046528  }
0x142f   : > { %15511 = vmatpush3.msra.mxu0 %v2385_v9  ;;  %v3837_v29 = vrot.slane %v19241_v14, %v18908_v34 }
0x1501   : > { %v15509_v17 = vpop.f32.mrb[22].mxu0 }
0x1502   : > { %v3428_v18 = vpop.f32.mrb[23].mxu0 }
0x1503   : > { %15512 = vmatprep.mubr.msk.f32.mxu0 %vm839_vm3, %v3428_v18 }
0x1504   : > { %15513 = vmatmul.mubr.msk.f32.vlgmr.msra.gmra.mrb[18].mxu0 %vm839_vm3, %v15509_v17 }
0x15d7   : > { %v15514_v7 = vpop.f32.mrb[18].mxu0 }
0x15d8   : > { %v19217_v23 = vadd.f32 %v15514_v7, %v19078_v8  ;;  %v3509_v6 = vpop.f32.mrb[19].mxu0  ;;  %v16540_v7 = vpack.c.bf16 %v3848_v30, %v3847_v53 }
0x15d9   : > { %v19220_v15 = vadd.f32 %v3509_v6, %v19075_v5  ;;  %v18331_v6 = vmov 0.0  }
0x15da   : > { %v3525_v24 = vsel %vm705_vm2, %v19217_v23, 0.0 }
0x15db   : > { %3526 = vadd.xlane.f32.xlu1 %v3525_v24  ;;  %v3522_v11 = vsel %vm701_vm1, %v19220_v15, 0.0 }
0x15dc   : > { %3523 = vadd.xlane.f32.xlu0 %v3522_v11  ;;  %v3842_v11 = vrot.slane %v19246_v22, %v18908_v34 }
0x15e0   : > { %3822 = vadd.xlane.f32.xlu0 %v3821_v19 }
0x1668   : > { %v3527_v8 = vpop.xlane.xlu1 %3526 }
0x1669   : > { %v3529_v25 = vmul.f32 0.03125, %v3527_v8  ;;  %v3524_v26 = vpop.xlane.xlu0 %3523  ;;  %v3709_v8 = vld [vmem:[#allocation22 + $0x40] sm:$0xff] }
0x166a   : > { %v3528_v5 = vmul.f32 0.03125, %v3524_v26 }
0x166b   : > { %v3531_v27 = vsub.f32 %v19217_v23, %v3529_v25  ;;  %v3710_v25 = vld [vmem:[#allocation22 + $0x48] sm:$0xff] }
0x166c   : > { %v3530_v28 = vsub.f32 %v19220_v15, %v3528_v5  ;;  %v16520_v26 = vpack.c.bf16 %v3710_v25, %v3709_v8  ;;  %v3711_v5 = vld [vmem:[#allocation22 + $0x50] sm:$0xff] }
0x166d   : > { %v3823_v31 = vpop.xlane.xlu0 %3822  ;;  %v3533_v41 = vmul.f32 %v3531_v27, %v3531_v27 }
0x166e   : > { %v3532_v33 = vmul.f32 %v3530_v28, %v3530_v28  ;;  %v3824_v37 = vmul.f32 0.03125, %v3823_v31  ;;  %16521 = vmatprep.subr.bf16.mxu0 %v16520_v26  ;;  %v3713_v31 = vld [vmem:[#allocation22 + $0x60] sm:$0xff] }
0x166f   : > { %v3537_v43 = vsel %vm705_vm2, %v3533_v41, 0.0  ;;  %16523 = vmatpush3.bf16.msra.mxu0 %v16520_v26 }
0x1670   : > { %v3534_v38 = vsel %vm701_vm1, %v3532_v33, 0.0  ;;  %v3825_v39 = vsub.f32 %v19222_v16, %v3824_v37  ;;  %v3714_v33 = vld [vmem:[#allocation22 + $0x68] sm:$0xff] }
0x1671   : > { %3535 = vadd.xlane.f32.xlu0 %v3534_v38  ;;  %v16528_v37 = vpack.c.bf16 %v3714_v33, %v3713_v31  ;;  %v3715_v38 = vld [vmem:[#allocation22 + $0x70] sm:$0xff] }
0x1672   : > { %v3826_v42 = vmul.f32 %v3825_v39, %v3825_v39 }
0x1674   : > { %v3827_v44 = vsel %vm3820_vm12, %v3826_v42, 0.0  ;;  %v14529_v42 = vld [vmem:[#allocation20 + $0x1] ss:$0 sm:$0xff] }
0x1675   : > { %3538 = vadd.xlane.f32.xlu0 %v3537_v43 }
0x1679   : > { %3828 = vadd.xlane.f32.xlu0 %v3827_v44 }
0x16fe   : > { %v3536_v52 = vpop.xlane.xlu0 %3535 }
0x16ff   : > { %v3540_v56 = vmul.f32 0.03125, %v3536_v52 }
0x1701   : > { %v3542_v57 = vadd.f32 1e-05, %v3540_v56 }
0x1702   : > { %v3539_v36 = vpop.xlane.xlu0 %3538 }
0x1703   : > { %17544 = vrsqrt.f32 %v3542_v57  ;;  %v3541_v59 = vmul.f32 0.03125, %v3539_v36 }
0x1705   : > { %v3543_v60 = vadd.f32 1e-05, %v3541_v59 }
0x1706   : > { %v3829_v61 = vpop.xlane.xlu0 %3828 }
0x1707   : > { %17546 = vrsqrt.f32 %v3543_v60  ;;  %v3830_v62 = vmul.f32 0.03125, %v3829_v61 }
0x1709   : > { %v3831_v63 = vadd.f32 1e-05, %v3830_v62 }
0x170b   : > { %17548 = vrsqrt.f32 %v3831_v63 }
0x170d   : > { %v17545_v1 = vpop.eup %17544 }
0x170e   : > { %v3546_v3 = vmul.f32 %v17545_v1, %v3530_v28 }
0x1710   : > { %v3552_v2 = vmul.f32 %v3551_v0, %v3546_v3 }
0x1711   : > { %v17547_v49 = vpop.eup %17546 }
0x1712   : > { %v3547_v9 = vmul.f32 %v17547_v49, %v3531_v27  ;;  %v3558_v48 = vadd.f32 %v3557_v4, %v3552_v2  ;;  %v3712_v27 = vld [vmem:[#allocation22 + $0x58] sm:$0xff] }
0x1713   : > { %v16524_v28 = vpack.c.bf16 %v3712_v27, %v3711_v5 }
0x1714   : > { %v3553_v17 = vmul.f32 %v3551_v0, %v3547_v9  ;;  %15523 = vmatprep.mubr.msk.f32.mxu1 %vm701_vm1, %v3558_v48 }
0x1715   : > { %v17549_v18 = vpop.eup %17548  ;;  %16525 = vmatprep.subr.bf16.mxu0 %v16524_v28 }
0x1716   : > { %v3833_v20 = vmul.f32 %v17549_v18, %v3825_v39  ;;  %v3559_v21 = vadd.f32 %v3557_v4, %v3553_v17  ;;  %16527 = vmatpush3.bf16.msra.mxu0 %v16524_v28  ;;  %v3716_v39 = vld [vmem:[#allocation22 + $0x78] sm:$0xff] }
0x1717   : > { %16529 = vmatprep.subr.bf16.mxu0 %v16528_v37  ;;  %v16532_v41 = vpack.c.bf16 %v3716_v39, %v3715_v38 }
0x1718   : > { %15524 = vmatmul.mubr.msk.f32.vlgmr.msra.gmra.mrb[20].mxu1 %vm701_vm1, %v3559_v21  ;;  %v3838_v24 = vmul.f32 %v3837_v29, %v3833_v20 }
0x1719   : > { %16538 = vmatpush3.bf16.msra.mxu1 %v16537_v13  ;;  %15553 = vmatprep.mubr.msk.f32.mxu1 %vm18330_vm13, %v18331_v6 }
0x171a   : > { %16539 = vmatprep.subr.bf16.mxu1 %v18329_v35  ;;  %v3843_v19 = vadd.f32 %v3842_v11, %v3838_v24  ;;  %16531 = vmatpush3.bf16.msra.mxu0 %v16528_v37 }
0x171b   : > { %16533 = vmatprep.subr.bf16.mxu0 %v16532_v41 }
0x171d   : > { %16541 = vmatpush3.bf16.msra.mxu1 %v16540_v7 }
0x171e   : > { %15561 = vmatprep.subr.mxu1 %v18331_v6  ;;  %16535 = vmatpush3.bf16.msra.mxu0 %v16532_v41 }
0x171f   : > { %15556 = vmatprep.subr.mxu0 %v18331_v6 }
0x1720   : > { %15554 = vmatmul.mubr.msk.f32.vlgmr.msra.gmra.mrb[22].mxu1 %vm701_vm1, %v3843_v19 }
0x1721   : > { %15563 = vmatprep.mubr.msk.f32.mxu1 %vm18330_vm13, %v18331_v6 }
0x17eb   : > { %v15525_v43 = vpop.f32.mrb[20].mxu1 }
0x17ec   : > { %v3651_v44 = vadd.f32 %v15525_v43, %v14529_v42  ;;  %v3645_v45 = vpop.f32.mrb[21].mxu1 }
0x17ed   : > { %v3646_v46 = vadd.f32 %v14529_v42, %v3645_v45 }
0x17ee   : > { %v3657_v47 = vmul.f32 0.70710677, %v3651_v44 }
0x17ef   : > { %v3656_v50 = vmul.f32 0.70710677, %v3646_v46  ;;  %v3654_v43 = vmul.f32 0.5, %v3646_v46  ;;  %v19287_v46 = vld [vmem:[#allocation23 + $0x1] ss:$0 sm:$0xff] }
0x17f0   : > { %v3663_v54 = vand.u32 2147483647, %v3657_v47  ;;  %vm3659_vm14 = vcmp.ge.f32.partialorder %v3657_v47, 0.0 }
0x17f1   : > { %v3662_v55 = vand.u32 2147483647, %v3656_v50  ;;  %vm3658_vm15 = vcmp.ge.f32.partialorder %v3656_v50, 0.0  ;;  %v3661_v33 = vsel %vm3659_vm14, 1.0, %v18328_v51 }
0x17f2   : > { %v3665_v52 = vmul.f32 0.3275911, %v3663_v54  ;;  %v3691_v62 = vsub.f32 0.0, %v3663_v54  ;;  %v3660_v39 = vsel %vm3658_vm15, 1.0, %v18328_v51 }
0x17f3   : > { %v3664_v56 = vmul.f32 0.3275911, %v3662_v55  ;;  %v19259_v57 = vpop.f32.mrb[22].mxu1  ;;  %v3690_v63 = vsub.f32 0.0, %v3662_v55 }
0x17f4   : > { %v3667_v36 = vadd.f32 1.0, %v3665_v52  ;;  %4099 = vrot.lane.b32.xlu1 %v19259_v57, %s18316_s18  ;;  %3929 = vrot.lane.b32.xlu0 %v19259_v57, %s18317_s1  ;;  %v15555_v59 = vpop.f32.mrb[23].mxu1  ;;  %v19266_v61 = vmul.f32 0.17677669, %v19259_v57  ;;  %v3693_v1 = vmul.f32 %v3691_v62, %v3663_v54  ;;  %v3655_v54 = vmul.f32 0.5, %v3651_v44 }
0x17f5   : > { %v3666_v60 = vadd.f32 1.0, %v3664_v56  ;;  %v3692_v2 = vmul.f32 %v3690_v63, %v3662_v55 }
0x17f6   : > { %17550 = vrcp.f32 %v3667_v36  ;;  %v3696_v48 = vmul.f32 1.442695, %v3693_v1 }
0x17f7   : > { %17552 = vrcp.f32 %v3666_v60  ;;  %v3694_v17 = vmul.f32 1.442695, %v3692_v2 }
0x17f8   : > { %4097 = vrot.lane.b32.xlu1 %v19266_v61, %s18319_s17  ;;  %17554 = vpow2.f32 %v3696_v48 }
0x17f9   : > { %17556 = vpow2.f32 %v3694_v17 }
0x1800   : > { %v17551_v0 = vpop.eup %17550 }
0x1801   : > { %v17553_v3 = vpop.eup %17552  ;;  %v3673_v4 = vmul.f32 1.0614054, %v17551_v0 }
0x1802   : > { %v3672_v49 = vmul.f32 1.0614054, %v17553_v3  ;;  %v17555_v25 = vpop.eup %17554 }
0x1803   : > { %v3675_v9 = vadd.f32 -1.4531521, %v3673_v4  ;;  %v17557_v5 = vpop.eup %17556 }
0x1804   : > { %v3674_v10 = vadd.f32 -1.4531521, %v3672_v49 }
0x1805   : > { %v3677_v12 = vmul.f32 %v17551_v0, %v3675_v9 }
0x1806   : > { %v3676_v18 = vmul.f32 %v17553_v3, %v3674_v10 }
0x1807   : > { %v3679_v13 = vadd.f32 1.4214138, %v3677_v12 }
0x1808   : > { %v3678_v29 = vadd.f32 1.4214138, %v3676_v18 }
0x1809   : > { %v3681_v20 = vmul.f32 %v17551_v0, %v3679_v13 }
0x180a   : > { %v3680_v21 = vmul.f32 %v17553_v3, %v3678_v29 }
0x180b   : > { %v3683_v53 = vadd.f32 -0.28449672, %v3681_v20  ;;  %v3924_v20 = vld [vmem:[#allocation14 + $0x48] sm:$0xff] }
0x180c   : > { %v3682_v30 = vadd.f32 -0.28449672, %v3680_v21 }
0x180d   : > { %v3685_v7 = vmul.f32 %v17551_v0, %v3683_v53 }
0x180e   : > { %v3684_v24 = vmul.f32 %v17553_v3, %v3682_v30 }
0x180f   : > { %v3687_v11 = vadd.f32 0.2548296, %v3685_v7 }
0x1810   : > { %v3686_v19 = vadd.f32 0.2548296, %v3684_v24 }
0x1811   : > { %v3689_v8 = vmul.f32 %v17551_v0, %v3687_v11 }
0x1812   : > { %v3688_v26 = vmul.f32 %v17553_v3, %v3686_v19 }
0x1813   : > { %v3699_v27 = vmul.f32 %v17555_v25, %v3689_v8  ;;  %v3923_v8 = vld [vmem:[#allocation14 + $0x40] sm:$0xff] }
0x1814   : > { %v3698_v28 = vmul.f32 %v17557_v5, %v3688_v26 }
0x1815   : > { %v3701_v31 = vsub.f32 1.0, %v3699_v27 }
0x1816   : > { %v3700_v37 = vsub.f32 1.0, %v3698_v28 }
0x1817   : > { %v3703_v38 = vmul.f32 %v3701_v31, %v3661_v33 }
0x1818   : > { %v3702_v41 = vmul.f32 %v3700_v37, %v3660_v39 }
0x1819   : > { %v3705_v42 = vadd.f32 1.0, %v3703_v38 }
0x181a   : > { %v3704_v45 = vadd.f32 1.0, %v3702_v41 }
0x181b   : > { %v3707_v52 = vmul.f32 %v3705_v42, %v3655_v54 }
0x181c   : > { %v3706_v55 = vmul.f32 %v3704_v45, %v3654_v43 }
0x181e   : > { %15542 = vmatprep.mubr.msk.f32.mxu0 %vm2169_vm11, %v3706_v55 }
0x181f   : > { %15543 = vmatmul.mubr.msk.f32.vlgmr.msra.gmra.mrb[24].mxu0 %vm2169_vm11, %v3707_v52 }
0x1820   : > { %15558 = vmatprep.mubr.msk.f32.mxu0 %vm18330_vm13, %v18331_v6 }
0x1866   : > { %v3930_v47 = vpop.permute.xlu0 %3929  ;;  %v4100_v50 = vpop.permute.xlu1 %4099 }
0x1867   : > { %15557 = vmatpush3.xpose.msk.msra.mxu0 %vm839_vm3, %v3930_v47 }
0x1868   : > { %15566 = vmatprep.subr.mxu0 %v18331_v6 }
0x186a   : > { %15559 = vmatmul.mubr.msk.f32.vlgmr.msra.gmra.mrb[26].mxu0 %vm839_vm3, %v19266_v61  ;;  %v4098_v44 = vpop.permute.xlu1 %4097 }
0x186b   : > { %15567 = vmatpush3.xpose.msk.msra.mxu0 %vm839_vm3, %v4100_v50  ;;  %15568 = vmatprep.mubr.msk.f32.mxu0 %vm18330_vm13, %v18331_v6 }
0x186c   : > { %15576 = vmatprep.subr.mxu0 %v18331_v6 }
0x186e   : > { %15569 = vmatmul.mubr.msk.f32.vlgmr.msra.gmra.mrb[28].mxu0 %vm839_vm3, %v4098_v44 }
0x186f   : > { %15578 = vmatprep.mubr.msk.f32.mxu0 %vm18330_vm13, %v18331_v6  ;;  %15577 = vmatpush3.msra.mxu0 %v3924_v20 }
0x1870   : > { %15586 = vmatprep.subr.mxu0 %v18331_v6 }
0x18f2   : > { %v15544_v56 = vpop.f32.mrb[24].mxu0 }
0x18f3   : > { %v19290_v36 = vadd.f32 %v15544_v56, %v19287_v46  ;;  %v19292_v59 = vpop.f32.mrb[25].mxu0 }
0x193d   : > { %v4002_v60 = vpop.f32.mrb[26].mxu0 }
0x193e   : > { %v15560_v62 = vpop.f32.mrb[27].mxu0  ;;  %v4007_v63 = vsel %vm4006_vm5, %v4002_v60, -inf }
0x193f   : > { %4008 = vmax.xlane.f32.xlu1 %v4007_v63 }
0x1941   : > { %v4171_v0 = vpop.f32.mrb[28].mxu0 }
0x1942   : > { %v15570_v1 = vpop.f32.mrb[29].mxu0  ;;  %v4175_v3 = vsel %vm4006_vm5, %v4171_v0, -inf }
0x1943   : > { %4176 = vmax.xlane.f32.xlu0 %v4175_v3 }
0x1950   : > { %4018 = vrot.lane.b32.xlu1 %v19259_v57, %s18321_s7 }
0x1954   : > { %4411 = vrot.lane.b32.xlu1 %v19259_v57, %s18318_s2 }
0x1958   : > { %4409 = vrot.lane.b32.xlu1 %v19266_v61, %s18320_s10 }
0x19cc   : > { %v4009_v4 = vpop.xlane.xlu1 %4008 }
0x19cd   : > { %v4010_v2 = vsub.f32 %v4002_v60, %v4009_v4 }
0x19cf   : > { %v4011_v49 = vmul.f32 1.442695, %v4010_v2 }
0x19d0   : > { %v4019_v9 = vpop.permute.xlu1 %4018  ;;  %v4177_v48 = vpop.xlane.xlu0 %4176 }
0x19d1   : > { %17558 = vpow2.f32 %v4011_v49  ;;  %v4178_v10 = vsub.f32 %v4171_v0, %v4177_v48  ;;  %15562 = vmatpush3.msk.msra.mxu1 %vm4024_vm6, %v4019_v9  ;;  %v3925_v0 = vld [vmem:[#allocation14 + $0x50] sm:$0xff] }
0x19d2   : > { %15571 = vmatprep.subr.mxu1 %v18331_v6 }
0x19d3   : > { %v4179_v12 = vmul.f32 1.442695, %v4178_v10 }
0x19d4   : > { %v4412_v5 = vpop.permute.xlu1 %4411 }
0x19d5   : > { %17560 = vpow2.f32 %v4179_v12 }
0x19d8   : > { %v4410_v31 = vpop.permute.xlu1 %4409 }
0x19db   : > { %v17559_v17 = vpop.eup %17558 }
0x19dc   : > { %v4013_v18 = vsel %vm4006_vm5, %v17559_v17, 0.0 }
0x19dd   : > { %4014 = vadd.xlane.f32.xlu0 %v4013_v18 }
0x19df   : > { %v17561_v13 = vpop.eup %17560 }
0x19e0   : > { %v4181_v29 = vsel %vm4006_vm5, %v17561_v13, 0.0 }
0x19e1   : > { %4182 = vadd.xlane.f32.xlu0 %v4181_v29 }
0x19f7   : > { %4186 = vrot.lane.b32.xlu0 %v19259_v57, %s18324_s23 }
0x1a6a   : > { %v4015_v21 = vpop.xlane.xlu0 %4014 }
0x1a6b   : > { %17562 = vrcp.f32 %v4015_v21 }
0x1a6e   : > { %v4183_v53 = vpop.xlane.xlu0 %4182 }
0x1a6f   : > { %17564 = vrcp.f32 %v4183_v53 }
0x1a72   : > { %v4187_v24 = vpop.permute.xlu0 %4186 }
0x1a75   : > { %v17563_v30 = vpop.eup %17562 }
0x1a76   : > { %v4017_v7 = vmul.f32 %v17563_v30, %v17559_v17 }
0x1a78   : > { %15564 = vmatmul.mubr.msk.f32.vlgmr.msra.gmra.mrb[24].mxu1 %vm4020_vm7, %v4017_v7 }
0x1a79   : > { %v17565_v11 = vpop.eup %17564  ;;  %15572 = vmatpush3.msk.msra.mxu1 %vm4024_vm6, %v4187_v24  ;;  %15573 = vmatprep.mubr.msk.f32.mxu1 %vm18330_vm13, %v18331_v6 }
0x1a7a   : > { %v4185_v19 = vmul.f32 %v17565_v11, %v17561_v13  ;;  %15581 = vmatprep.subr.mxu1 %v18331_v6  ;;  %v3926_v13 = vld [vmem:[#allocation14 + $0x58] sm:$0xff] }
0x1a7c   : > { %15574 = vmatmul.mubr.msk.f32.vlgmr.msra.gmra.mrb[26].mxu1 %vm4020_vm7, %v4185_v19 }
0x1a7d   : > { %15583 = vmatprep.mubr.msk.f32.mxu1 %vm18330_vm13, %v18331_v6  ;;  %15582 = vmatpush3.msra.mxu1 %v3923_v8 }
0x1a7e   : > { %15591 = vmatprep.subr.mxu1 %v18331_v6 }
0x1b4b   : > { %v4093_v25 = vpop.f32.mrb[24].mxu1 }
0x1b4c   : > { %v15565_v26 = vpop.f32.mrb[25].mxu1  ;;  %15584 = vmatmul.mubr.msk.f32.vlgmr.msra.gmra.mrb[28].mxu1 %vm839_vm3, %v4093_v25 }
0x1b4d   : > { %15593 = vmatprep.mubr.msk.f32.mxu1 %vm18330_vm13, %v18331_v6 }
0x1b4f   : > { %v4259_v27 = vpop.f32.mrb[26].mxu1 }
0x1b50   : > { %v15575_v28 = vpop.f32.mrb[27].mxu1  ;;  %15579 = vmatmul.mubr.msk.f32.vlgmr.msra.gmra.mrb[30].mxu0 %vm839_vm3, %v4259_v27 }
0x1b51   : > { %15587 = vmatpush3.xpose.msk.msra.mxu0 %vm839_vm3, %v4412_v5  ;;  %15588 = vmatprep.mubr.msk.f32.mxu0 %vm18330_vm13, %v18331_v6 }
0x1b52   : > { %15596 = vmatprep.subr.mxu0 %v18331_v6 }
0x1b54   : > { %15589 = vmatmul.mubr.msk.f32.vlgmr.msra.gmra.mrb[32].mxu0 %vm839_vm3, %v4410_v31 }
0x1b55   : > { %15598 = vmatprep.mubr.msk.f32.mxu0 %vm18330_vm13, %v18331_v6  ;;  %15597 = vmatpush3.msra.mxu0 %v3925_v0 }
0x1b56   : > { %15606 = vmatprep.subr.mxu0 %v18331_v6 }
0x1c1f   : > { %v4405_v33 = vpop.f32.mrb[28].mxu1 }
0x1c20   : > { %v15585_v37 = vpop.f32.mrb[29].mxu1 }
0x1c21   : > { %v4914_v37 = vld [vmem:[#allocation19 + $0x40] sm:$0xff] }
0x1c23   : > { %v4332_v38 = vpop.f32.mrb[30].mxu0 }
0x1c24   : > { %v4406_v39 = vadd.f32 %v4405_v33, %v4332_v38  ;;  %v15580_v41 = vpop.f32.mrb[31].mxu0  ;;  %v4915_v38 = vld [vmem:[#allocation19 + $0x48] sm:$0xff] }
0x1c25   : > { %v4916_v41 = vld [vmem:[#allocation19 + $0x50] sm:$0xff] }
0x1c27   : > { %v4483_v42 = vpop.f32.mrb[32].mxu0 }
0x1c28   : > { %v15590_v43 = vpop.f32.mrb[33].mxu0  ;;  %v4487_v45 = vsel %vm4006_vm5, %v4483_v42, -inf }
0x1c29   : > { %4488 = vmax.xlane.f32.xlu1 %v4487_v45 }
0x1c3a   : > { %4651 = vrot.lane.b32.xlu1 %v19259_v57, %s18322_s25 }
0x1c3e   : > { %4649 = vrot.lane.b32.xlu1 %v19266_v61, %s18323_s26 }
0x1cb6   : > { %v4489_v54 = vpop.xlane.xlu1 %4488 }
0x1cb7   : > { %v4490_v55 = vsub.f32 %v4483_v42, %v4489_v54  ;;  %v4917_v42 = vld [vmem:[#allocation19 + $0x58] sm:$0xff] }
0x1cb9   : > { %v4491_v52 = vmul.f32 1.442695, %v4490_v55  ;;  %v4906_v55 = vrot.slane %v19241_v14, %v19062_v40  ;;  %v5030_v14 = vld [vmem:[#allocation22 + $0x98] sm:$0xff] }
0x1cba   : > { %v4652_v61 = vpop.permute.xlu1 %4651 }
0x1cbb   : > { %17566 = vpow2.f32 %v4491_v52 }
0x1cbe   : > { %v4650_v63 = vpop.permute.xlu1 %4649 }
0x1cc5   : > { %v17567_v47 = vpop.eup %17566 }
0x1cc6   : > { %v4493_v50 = vsel %vm4006_vm5, %v17567_v47, 0.0 }
0x1cc7   : > { %4494 = vadd.xlane.f32.xlu0 %v4493_v50  ;;  %v4911_v50 = vrot.slane %v19246_v22, %v19062_v40  ;;  %v5031_v22 = vld [vmem:[#allocation22 + $0xa0] sm:$0xff] }
0x1cdd   : > { %4498 = vrot.lane.b32.xlu0 %v19259_v57, %s18326_s20 }
0x1d54   : > { %v4495_v44 = vpop.xlane.xlu0 %4494 }
0x1d55   : > { %17568 = vrcp.f32 %v4495_v44 }
0x1d58   : > { %v4499_v56 = vpop.permute.xlu0 %4498 }
0x1d59   : > { %15592 = vmatpush3.msk.msra.mxu1 %vm4024_vm6, %v4499_v56 }
0x1d5a   : > { %15601 = vmatprep.subr.mxu1 %v18331_v6 }
0x1d5f   : > { %v17569_v60 = vpop.eup %17568 }
0x1d60   : > { %v4497_v62 = vmul.f32 %v17569_v60, %v17567_v47  ;;  %v5027_v60 = vld [vmem:[#allocation22 + $0x80] sm:$0xff] }
0x1d62   : > { %15594 = vmatmul.mubr.msk.f32.vlgmr.msra.gmra.mrb[30].mxu1 %vm4020_vm7, %v4497_v62 }
0x1d63   : > { %15602 = vmatpush3.xpose.msk.msra.mxu1 %vm839_vm3, %v4652_v61  ;;  %15603 = vmatprep.mubr.msk.f32.mxu1 %vm18330_vm13, %v18331_v6  ;;  %v5028_v61 = vld [vmem:[#allocation22 + $0x88] sm:$0xff] }
0x1d64   : > { %15611 = vmatprep.subr.mxu1 %v18331_v6  ;;  %v16549_v62 = vpack.c.bf16 %v5028_v61, %v5027_v60  ;;  %v5145_v61 = vld [vmem:[#allocation13 + $0x60] sm:$0xff] }
0x1d66   : > { %15604 = vmatmul.mubr.msk.f32.vlgmr.msra.gmra.mrb[32].mxu1 %vm839_vm3, %v4650_v63  ;;  %v5029_v63 = vld [vmem:[#allocation22 + $0x90] sm:$0xff] }
0x1d67   : > { %15613 = vmatprep.mubr.msk.f32.mxu1 %vm18330_vm13, %v18331_v6  ;;  %15612 = vmatpush3.msra.mxu1 %v3926_v13  ;;  %v16552_v0 = vpack.c.bf16 %v5030_v14, %v5029_v63  ;;  %v5147_v14 = vld [vmem:[#allocation13 + $0x70] sm:$0xff] }
0x1d68   : > { %16548 = vmatprep.subr.bf16.mxu1 %v18329_v35 }
0x1e35   : > { %v4571_v1 = vpop.f32.mrb[30].mxu1 }
0x1e36   : > { %v15595_v3 = vpop.f32.mrb[31].mxu1  ;;  %15599 = vmatmul.mubr.msk.f32.vlgmr.msra.gmra.mrb[34].mxu0 %vm839_vm3, %v4571_v1  ;;  %v5032_v1 = vld [vmem:[#allocation22 + $0xa8] sm:$0xff] }
0x1e37   : > { %15608 = vmatprep.mubr.msk.f32.mxu0 %vm18330_vm13, %v18331_v6  ;;  %v16555_v3 = vpack.c.bf16 %v5032_v1, %v5031_v22 }
0x1e39   : > { %v4723_v4 = vpop.f32.mrb[32].mxu1 }
0x1e3a   : > { %v15605_v2 = vpop.f32.mrb[33].mxu1  ;;  %v4727_v49 = vsel %vm4006_vm5, %v4723_v4, -inf }
0x1e3b   : > { %4728 = vmax.xlane.f32.xlu0 %v4727_v49  ;;  %v5034_v2 = vld [vmem:[#allocation22 + $0xb8] sm:$0xff] }
0x1e51   : > { %4738 = vrot.lane.b32.xlu0 %v19259_v57, %s18327_s0 }
0x1ec8   : > { %v4729_v9 = vpop.xlane.xlu0 %4728 }
0x1ec9   : > { %v4730_v48 = vsub.f32 %v4723_v4, %v4729_v9  ;;  %v5033_v4 = vld [vmem:[#allocation22 + $0xb0] sm:$0xff]  ;;  %v14556_v9 = vld [vmem:[#allocation20 + $0x2] ss:$0 sm:$0xff] }
0x1eca   : > { %v16558_v49 = vpack.c.bf16 %v5034_v2, %v5033_v4  ;;  %v19397_v4 = vld [vmem:[#allocation16 + $0xc] sm:$0x7]  ;;  %v19399_v2 = vld [vmem:[#allocation17 + $0xc] sm:$0x7] }
0x1ecb   : > { %v4731_v10 = vmul.f32 1.442695, %v4730_v48 }
0x1ecc   : > { %v4739_v12 = vpop.permute.xlu0 %4738 }
0x1ecd   : > { %17570 = vpow2.f32 %v4731_v10  ;;  %15607 = vmatpush3.msk.msra.mxu0 %vm4024_vm6, %v4739_v12 }
0x1ece   : > { %16542 = vmatprep.subr.bf16.mxu0 %v18329_v35 }
0x1ed7   : > { %v17571_v17 = vpop.eup %17570 }
0x1ed8   : > { %v4733_v18 = vsel %vm4006_vm5, %v17571_v17, 0.0 }
0x1ed9   : > { %4734 = vadd.xlane.f32.xlu1 %v4733_v18 }
0x1f09   : > { %v4644_v29 = vpop.f32.mrb[34].mxu0 }
0x1f0a   : > { %v4648_v20 = vadd.f32 %v4644_v29, %v4406_v39  ;;  %v15600_v57 = vpop.f32.mrb[35].mxu0  ;;  %v16543_v39 = vpack.c.bf16 %v4915_v38, %v4914_v37 }
0x1f66   : > { %v4735_v21 = vpop.xlane.xlu1 %4734 }
0x1f67   : > { %17572 = vrcp.f32 %v4735_v21 }
0x1f71   : > { %v17573_v53 = vpop.eup %17572 }
0x1f72   : > { %v4737_v30 = vmul.f32 %v17573_v53, %v17571_v17 }
0x1f74   : > { %15609 = vmatmul.mubr.msk.f32.vlgmr.msra.gmra.mrb[36].mxu0 %vm4020_vm7, %v4737_v30 }
0x1f75   : > { %15624 = vmatprep.mubr.msk.f32.mxu0 %vm18330_vm13, %v18331_v6  ;;  %16544 = vmatpush3.bf16.msra.mxu0 %v16543_v39 }
0x1f76   : > { %16545 = vmatprep.subr.bf16.mxu0 %v18329_v35 }
0x2047   : > { %v4811_v7 = vpop.f32.mrb[36].mxu0 }
0x2048   : > { %v15610_v24 = vpop.f32.mrb[37].mxu0  ;;  %15614 = vmatmul.mubr.msk.f32.vlgmr.msra.gmra.mrb[34].mxu1 %vm839_vm3, %v4811_v7 }
0x2049   : > { %15643 = vmatprep.mubr.msk.f32.mxu1 %vm18330_vm13, %v18331_v6  ;;  %16550 = vmatpush3.bf16.msra.mxu1 %v16549_v62  ;;  %v5146_v62 = vld [vmem:[#allocation13 + $0x68] sm:$0xff] }
0x204a   : > { %16551 = vmatprep.subr.bf16.mxu1 %v18329_v35  ;;  %v16561_v63 = vpack.c.bf16 %v5146_v62, %v5145_v61 }
0x204d   : > { %16553 = vmatpush3.bf16.msra.mxu1 %v16552_v0  ;;  %v5148_v0 = vld [vmem:[#allocation13 + $0x78] sm:$0xff] }
0x204e   : > { %16554 = vmatprep.subr.bf16.mxu1 %v18329_v35 }
0x2051   : > { %16556 = vmatpush3.bf16.msra.mxu1 %v16555_v3 }
0x2052   : > { %16557 = vmatprep.subr.bf16.mxu1 %v18329_v35 }
0x2055   : > { %16559 = vmatpush3.bf16.msra.mxu1 %v16558_v49  ;;  %v5137_v49 = vrot.slane %v19397_v4, %v18908_v34 }
0x2056   : > { %15662 = vmatprep.subr.mxu1 %v18331_v6 }
0x211b   : > { %v4884_v11 = vpop.f32.mrb[34].mxu1 }
0x211c   : > { %v4888_v19 = vadd.f32 %v4884_v11, %v4648_v20  ;;  %v15615_v8 = vpop.f32.mrb[35].mxu1 }
0x211e   : > { %v19365_v25 = vadd.f32 %v4888_v19, %v19222_v16  ;;  %v16546_v16 = vpack.c.bf16 %v4917_v42, %v4916_v41 }
0x2120   : > { %v4890_v26 = vsel %vm3820_vm12, %v19365_v25, 0.0  ;;  %16547 = vmatpush3.bf16.msra.mxu0 %v16546_v16  ;;  %v14558_v16 = vld [vmem:[#allocation23 + $0x2] ss:$0 sm:$0xff] }
0x2121   : > { %4891 = vadd.xlane.f32.xlu1 %v4890_v26  ;;  %16560 = vmatprep.subr.bf16.mxu0 %v18329_v35 }
0x21ae   : > { %v4892_v5 = vpop.xlane.xlu1 %4891 }
0x21af   : > { %v4893_v27 = vmul.f32 0.03125, %v4892_v5 }
0x21b1   : > { %v4894_v28 = vsub.f32 %v19365_v25, %v4893_v27 }
0x21b3   : > { %v4895_v31 = vmul.f32 %v4894_v28, %v4894_v28 }
0x21b5   : > { %v4896_v33 = vsel %vm3820_vm12, %v4895_v31, 0.0 }
0x21b6   : > { %4897 = vadd.xlane.f32.xlu1 %v4896_v33 }
0x2243   : > { %v4898_v43 = vpop.xlane.xlu1 %4897 }
0x2244   : > { %v4899_v45 = vmul.f32 0.03125, %v4898_v43 }
0x2246   : > { %v4900_v54 = vadd.f32 1e-05, %v4899_v45 }
0x2248   : > { %17574 = vrsqrt.f32 %v4900_v54 }
0x2252   : > { %v17575_v52 = vpop.eup %17574 }
0x2253   : > { %v4902_v47 = vmul.f32 %v17575_v52, %v4894_v28 }
0x2255   : > { %v4907_v44 = vmul.f32 %v4906_v55, %v4902_v47 }
0x2257   : > { %v4912_v56 = vadd.f32 %v4911_v50, %v4907_v44 }
0x2259   : > { %15625 = vmatmul.mubr.msk.f32.vlgmr.msra.gmra.mrb[38].mxu0 %vm701_vm1, %v4912_v56 }
0x225a   : > { %15654 = vmatprep.mubr.msk.f32.mxu0 %vm18330_vm13, %v18331_v6  ;;  %16562 = vmatpush3.bf16.msra.mxu0 %v16561_v63 }
0x225b   : > { %16563 = vmatprep.subr.bf16.mxu0 %v18329_v35 }
0x232c   : > { %v4995_v48 = vpop.f32.mrb[38].mxu0 }
0x232d   : > { %v4996_v10 = vadd.f32 %v14556_v9, %v4995_v48  ;;  %v15626_v12 = vpop.f32.mrb[39].mxu0 }
0x232f   : > { %v5000_v17 = vmul.f32 0.70710677, %v4996_v10  ;;  %v4999_v39 = vmul.f32 0.5, %v4996_v10  ;;  %v5142_v10 = vrot.slane %v19399_v2, %v18908_v34 }
0x2331   : > { %v5003_v18 = vand.u32 2147483647, %v5000_v17  ;;  %vm5001_vm8 = vcmp.ge.f32.partialorder %v5000_v17, 0.0 }
0x2332   : > { %v5002_v37 = vsel %vm5001_vm8, 1.0, %v18328_v51 }
0x2333   : > { %v5004_v13 = vmul.f32 0.3275911, %v5003_v18  ;;  %v5017_v20 = vsub.f32 0.0, %v5003_v18 }
0x2335   : > { %v5005_v29 = vadd.f32 1.0, %v5004_v13  ;;  %v5018_v21 = vmul.f32 %v5017_v20, %v5003_v18 }
0x2337   : > { %17576 = vrcp.f32 %v5005_v29  ;;  %v5019_v7 = vmul.f32 1.442695, %v5018_v21 }
0x2339   : > { %17578 = vpow2.f32 %v5019_v7 }
0x2341   : > { %v17577_v57 = vpop.eup %17576 }
0x2342   : > { %v5008_v53 = vmul.f32 1.0614054, %v17577_v57 }
0x2343   : > { %v17579_v28 = vpop.eup %17578 }
0x2344   : > { %v5009_v30 = vadd.f32 -1.4531521, %v5008_v53 }
0x2346   : > { %v5010_v24 = vmul.f32 %v17577_v57, %v5009_v30 }
0x2348   : > { %v5011_v11 = vadd.f32 1.4214138, %v5010_v24 }
0x234a   : > { %v5012_v19 = vmul.f32 %v17577_v57, %v5011_v11 }
0x234c   : > { %v5013_v8 = vadd.f32 -0.28449672, %v5012_v19 }
0x234e   : > { %v5014_v26 = vmul.f32 %v17577_v57, %v5013_v8 }
0x2350   : > { %v5015_v5 = vadd.f32 0.2548296, %v5014_v26 }
0x2352   : > { %v5016_v27 = vmul.f32 %v17577_v57, %v5015_v5 }
0x2354   : > { %v5021_v31 = vmul.f32 %v17579_v28, %v5016_v27 }
0x2356   : > { %v5022_v33 = vsub.f32 1.0, %v5021_v31 }
0x2358   : > { %v5023_v38 = vmul.f32 %v5022_v33, %v5002_v37 }
0x235a   : > { %v5024_v41 = vadd.f32 1.0, %v5023_v38 }
0x235c   : > { %v5025_v42 = vmul.f32 %v5024_v41, %v4999_v39  ;;  %v5224_v41 = vld [vmem:[#allocation14 + $0x68] sm:$0xff] }
0x235e   : > { %15644 = vmatmul.mubr.msk.f32.vlgmr.msra.gmra.mrb[36].mxu1 %vm2169_vm11, %v5025_v42 }
0x235f   : > { %15664 = vmatprep.mubr.msk.f32.mxu1 %vm18330_vm13, %v18331_v6 }
0x2431   : > { %v5112_v43 = vpop.f32.mrb[36].mxu1 }
0x2432   : > { %v5113_v45 = vadd.f32 %v14558_v16, %v5112_v43  ;;  %v15645_v54 = vpop.f32.mrb[37].mxu1 }
0x2434   : > { %v19389_v55 = vadd.f32 %v5113_v45, %v19365_v25  ;;  %v16564_v25 = vpack.c.bf16 %v5148_v0, %v5147_v14 }
0x2436   : > { %v5121_v52 = vsel %vm3820_vm12, %v19389_v55, 0.0  ;;  %16565 = vmatpush3.bf16.msra.mxu0 %v16564_v25 }
0x2437   : > { %5122 = vadd.xlane.f32.xlu1 %v5121_v52  ;;  %15657 = vmatprep.subr.mxu0 %v18331_v6 }
0x24c4   : > { %v5123_v47 = vpop.xlane.xlu1 %5122 }
0x24c5   : > { %v5124_v50 = vmul.f32 0.03125, %v5123_v47 }
0x24c7   : > { %v5125_v44 = vsub.f32 %v19389_v55, %v5124_v50 }
0x24c9   : > { %v5126_v56 = vmul.f32 %v5125_v44, %v5125_v44 }
0x24cb   : > { %v5127_v60 = vsel %vm3820_vm12, %v5126_v56, 0.0 }
0x24cc   : > { %5128 = vadd.xlane.f32.xlu1 %v5127_v60 }
0x2559   : > { %v5129_v22 = vpop.xlane.xlu1 %5128 }
0x255a   : > { %v5130_v1 = vmul.f32 0.03125, %v5129_v22 }
0x255c   : > { %v5131_v3 = vadd.f32 1e-05, %v5130_v1 }
0x255e   : > { %17580 = vrsqrt.f32 %v5131_v3 }
0x2568   : > { %v17581_v9 = vpop.eup %17580 }
0x2569   : > { %v5133_v48 = vmul.f32 %v17581_v9, %v5125_v44  ;;  %v5223_v44 = vld [vmem:[#allocation14 + $0x60] sm:$0xff] }
0x256b   : > { %v5138_v12 = vmul.f32 %v5137_v49, %v5133_v48 }
0x256d   : > { %v5143_v17 = vadd.f32 %v5142_v10, %v5138_v12 }
0x256f   : > { %15655 = vmatmul.mubr.msk.f32.vlgmr.msra.gmra.mrb[40].mxu0 %vm701_vm1, %v5143_v17 }
0x2570   : > { %15659 = vmatprep.mubr.msk.f32.mxu0 %vm18330_vm13, %v18331_v6 }
0x2642   : > { %v19408_v18 = vpop.f32.mrb[40].mxu0 }
0x2643   : > { %5396 = vrot.lane.b32.xlu1 %v19408_v18, %s18316_s18  ;;  %5229 = vrot.lane.b32.xlu0 %v19408_v18, %s18317_s1  ;;  %v15656_v13 = vpop.f32.mrb[41].mxu0  ;;  %v19415_v29 = vmul.f32 0.17677669, %v19408_v18 }
0x2647   : > { %5394 = vrot.lane.b32.xlu0 %v19415_v29, %s18319_s17 }
0x26b5   : > { %v5230_v20 = vpop.permute.xlu0 %5229  ;;  %v5397_v57 = vpop.permute.xlu1 %5396 }
0x26b6   : > { %15658 = vmatpush3.xpose.msk.msra.mxu0 %vm839_vm3, %v5230_v20 }
0x26b7   : > { %15667 = vmatprep.subr.mxu0 %v18331_v6 }
0x26b9   : > { %15660 = vmatmul.mubr.msk.f32.vlgmr.msra.gmra.mrb[42].mxu0 %vm839_vm3, %v19415_v29  ;;  %v5395_v21 = vpop.permute.xlu0 %5394 }
0x26ba   : > { %15668 = vmatpush3.xpose.msk.msra.mxu0 %vm839_vm3, %v5397_v57  ;;  %15669 = vmatprep.mubr.msk.f32.mxu0 %vm18330_vm13, %v18331_v6 }
0x26bb   : > { %15677 = vmatprep.subr.mxu0 %v18331_v6 }
0x26bd   : > { %15670 = vmatmul.mubr.msk.f32.vlgmr.msra.gmra.mrb[44].mxu0 %vm839_vm3, %v5395_v21 }
0x26be   : > { %15679 = vmatprep.mubr.msk.f32.mxu0 %vm18330_vm13, %v18331_v6  ;;  %15678 = vmatpush3.msra.mxu0 %v5224_v41 }
0x26bf   : > { %15687 = vmatprep.subr.mxu0 %v18331_v6 }
0x278c   : > { %v5302_v53 = vpop.f32.mrb[42].mxu0 }
0x278d   : > { %v15661_v30 = vpop.f32.mrb[43].mxu0  ;;  %v5306_v7 = vsel %vm4006_vm5, %v5302_v53, -inf }
0x278e   : > { %5307 = vmax.xlane.f32.xlu0 %v5306_v7 }
0x2790   : > { %v5468_v24 = vpop.f32.mrb[44].mxu0 }
0x2791   : > { %v15671_v11 = vpop.f32.mrb[45].mxu0  ;;  %v5472_v19 = vsel %vm4006_vm5, %v5468_v24, -inf }
0x2792   : > { %5473 = vmax.xlane.f32.xlu1 %v5472_v19 }
0x27a3   : > { %5483 = vrot.lane.b32.xlu1 %v19408_v18, %s18324_s23 }
0x27a7   : > { %5706 = vrot.lane.b32.xlu1 %v19415_v29, %s18320_s10 }
0x281b   : > { %v5308_v8 = vpop.xlane.xlu0 %5307 }
0x281c   : > { %v5309_v26 = vsub.f32 %v5302_v53, %v5308_v8 }
0x281e   : > { %v5310_v5 = vmul.f32 1.442695, %v5309_v26 }
0x281f   : > { %v5474_v27 = vpop.xlane.xlu1 %5473 }
0x2820   : > { %17582 = vpow2.f32 %v5310_v5  ;;  %v5475_v28 = vsub.f32 %v5468_v24, %v5474_v27  ;;  %v5225_v24 = vld [vmem:[#allocation14 + $0x70] sm:$0xff] }
0x2822   : > { %v5476_v31 = vmul.f32 1.442695, %v5475_v28 }
0x2823   : > { %v5484_v52 = vpop.permute.xlu1 %5483 }
0x2824   : > { %17584 = vpow2.f32 %v5476_v31 }
0x2827   : > { %v5707_v14 = vpop.permute.xlu1 %5706 }
0x282a   : > { %v17583_v33 = vpop.eup %17582 }
0x282b   : > { %v5312_v37 = vsel %vm4006_vm5, %v17583_v33, 0.0 }
0x282c   : > { %5313 = vadd.xlane.f32.xlu0 %v5312_v37 }
0x282e   : > { %v17585_v38 = vpop.eup %17584 }
0x282f   : > { %v5478_v39 = vsel %vm4006_vm5, %v17585_v38, 0.0 }
0x2830   : > { %5479 = vadd.xlane.f32.xlu0 %v5478_v39 }
0x2846   : > { %5317 = vrot.lane.b32.xlu0 %v19408_v18, %s18321_s7 }
0x284a   : > { %5708 = vrot.lane.b32.xlu0 %v19408_v18, %s18318_s2 }
0x28b9   : > { %v5314_v42 = vpop.xlane.xlu0 %5313 }
0x28ba   : > { %17586 = vrcp.f32 %v5314_v42 }
0x28bd   : > { %v5480_v16 = vpop.xlane.xlu0 %5479 }
0x28be   : > { %17588 = vrcp.f32 %v5480_v16 }
0x28c1   : > { %v5318_v43 = vpop.permute.xlu0 %5317 }
0x28c2   : > { %15663 = vmatpush3.msk.msra.mxu1 %vm4024_vm6, %v5318_v43 }
0x28c3   : > { %15672 = vmatprep.subr.mxu1 %v18331_v6 }
0x28c4   : > { %v17587_v45 = vpop.eup %17586 }
0x28c5   : > { %v5316_v54 = vmul.f32 %v17587_v45, %v17583_v33  ;;  %v5709_v62 = vpop.permute.xlu0 %5708 }
0x28c7   : > { %15665 = vmatmul.mubr.msk.f32.vlgmr.msra.gmra.mrb[38].mxu1 %vm4020_vm7, %v5316_v54 }
0x28c8   : > { %v17589_v47 = vpop.eup %17588  ;;  %15673 = vmatpush3.msk.msra.mxu1 %vm4024_vm6, %v5484_v52  ;;  %15674 = vmatprep.mubr.msk.f32.mxu1 %vm18330_vm13, %v18331_v6 }
0x28c9   : > { %v5482_v50 = vmul.f32 %v17589_v47, %v17585_v38  ;;  %15682 = vmatprep.subr.mxu1 %v18331_v6  ;;  %v5226_v38 = vld [vmem:[#allocation14 + $0x78] sm:$0xff] }
0x28cb   : > { %15675 = vmatmul.mubr.msk.f32.vlgmr.msra.gmra.mrb[40].mxu1 %vm4020_vm7, %v5482_v50 }
0x28cc   : > { %15684 = vmatprep.mubr.msk.f32.mxu1 %vm18330_vm13, %v18331_v6  ;;  %15683 = vmatpush3.msra.mxu1 %v5223_v44 }
0x28cd   : > { %15692 = vmatprep.subr.mxu1 %v18331_v6 }
0x299a   : > { %v5390_v56 = vpop.f32.mrb[38].mxu1 }
0x299b   : > { %v15666_v60 = vpop.f32.mrb[39].mxu1  ;;  %15685 = vmatmul.mubr.msk.f32.vlgmr.msra.gmra.mrb[42].mxu1 %vm839_vm3, %v5390_v56 }
0x299c   : > { %15694 = vmatprep.mubr.msk.f32.mxu1 %vm18330_vm13, %v18331_v6 }
0x299e   : > { %v5556_v61 = vpop.f32.mrb[40].mxu1 }
0x299f   : > { %v15676_v63 = vpop.f32.mrb[41].mxu1  ;;  %15680 = vmatmul.mubr.msk.f32.vlgmr.msra.gmra.mrb[46].mxu0 %vm839_vm3, %v5556_v61  ;;  %v3798_v61 = vadd.f32 %v19287_v46, %v19292_v59  ;;  %v6211_v59 = vld [vmem:[#allocation19 + $0x60] sm:$0xff] }
0x29a0   : > { %15688 = vmatpush3.xpose.msk.msra.mxu0 %vm839_vm3, %v5709_v62  ;;  %15689 = vmatprep.mubr.msk.f32.mxu0 %vm18330_vm13, %v18331_v6 }
0x29a1   : > { %15697 = vmatprep.subr.mxu0 %v18331_v6 }
0x29a3   : > { %15690 = vmatmul.mubr.msk.f32.vlgmr.msra.gmra.mrb[48].mxu0 %vm839_vm3, %v5707_v14  ;;  %v19508_v14 = vadd.f32 %v3798_v61, %v19220_v15 }
0x29a4   : > { %15699 = vmatprep.mubr.msk.f32.mxu0 %vm18330_vm13, %v18331_v6  ;;  %15698 = vmatpush3.msra.mxu0 %v5225_v24 }
0x29a5   : > { %15707 = vmatprep.subr.mxu0 %v18331_v6 }
0x2a6e   : > { %v5702_v0 = vpop.f32.mrb[42].mxu1 }
0x2a6f   : > { %v15686_v25 = vpop.f32.mrb[43].mxu1 }
0x2a70   : > { %v19511_v25 = vld [vmem:[#allocation11 + $0x1] ss:$0 sm:$0xff] }
0x2a72   : > { %v5629_v22 = vpop.f32.mrb[46].mxu0 }
0x2a73   : > { %v5703_v1 = vadd.f32 %v5702_v0, %v5629_v22  ;;  %v15681_v3 = vpop.f32.mrb[47].mxu0 }
0x2a74   : > { %v6212_v3 = vld [vmem:[#allocation19 + $0x68] sm:$0xff] }
0x2a75   : > { %v16567_v15 = vpack.c.bf16 %v6212_v3, %v6211_v59 }
0x2a76   : > { %v5780_v49 = vpop.f32.mrb[48].mxu0 }
0x2a77   : > { %v15691_v9 = vpop.f32.mrb[49].mxu0  ;;  %v5784_v48 = vsel %vm4006_vm5, %v5780_v49, -inf }
0x2a78   : > { %5785 = vmax.xlane.f32.xlu0 %v5784_v48  ;;  %v6214_v9 = vld [vmem:[#allocation19 + $0x78] sm:$0xff] }
0x2a8e   : > { %5795 = vrot.lane.b32.xlu0 %v19408_v18, %s18326_s20 }
0x2a92   : > { %5946 = vrot.lane.b32.xlu0 %v19415_v29, %s18323_s26 }
0x2b05   : > { %v5786_v10 = vpop.xlane.xlu0 %5785 }
0x2b06   : > { %v5787_v12 = vsub.f32 %v5780_v49, %v5786_v10  ;;  %v6213_v49 = vld [vmem:[#allocation19 + $0x70] sm:$0xff] }
0x2b07   : > { %v16570_v48 = vpack.c.bf16 %v6214_v9, %v6213_v49 }
0x2b08   : > { %v5788_v17 = vmul.f32 1.442695, %v5787_v12 }
0x2b09   : > { %v5796_v13 = vpop.permute.xlu0 %5795 }
0x2b0a   : > { %17590 = vpow2.f32 %v5788_v17  ;;  %15693 = vmatpush3.msk.msra.mxu1 %vm4024_vm6, %v5796_v13  ;;  %v6203_v13 = vrot.slane %v19397_v4, %v19062_v40  ;;  %v6328_v4 = vld [vmem:[#allocation22 + $0xe0] sm:$0xff] }
0x2b0b   : > { %15702 = vmatprep.subr.mxu1 %v18331_v6 }
0x2b0d   : > { %v5947_v7 = vpop.permute.xlu0 %5946 }
0x2b14   : > { %v17591_v20 = vpop.eup %17590 }
0x2b15   : > { %v5790_v57 = vsel %vm4006_vm5, %v17591_v20, 0.0 }
0x2b16   : > { %5791 = vadd.xlane.f32.xlu1 %v5790_v57 }
0x2b27   : > { %5948 = vrot.lane.b32.xlu1 %v19408_v18, %s18322_s25 }
0x2ba3   : > { %v5792_v21 = vpop.xlane.xlu1 %5791 }
0x2ba4   : > { %17592 = vrcp.f32 %v5792_v21  ;;  %v6208_v21 = vrot.slane %v19399_v2, %v19062_v40  ;;  %v6330_v2 = vld [vmem:[#allocation22 + $0xf0] sm:$0xff] }
0x2ba7   : > { %v5949_v30 = vpop.permute.xlu1 %5948 }
0x2bae   : > { %v17593_v53 = vpop.eup %17592 }
0x2baf   : > { %v5794_v29 = vmul.f32 %v17593_v53, %v17591_v20 }
0x2bb1   : > { %15695 = vmatmul.mubr.msk.f32.vlgmr.msra.gmra.mrb[44].mxu1 %vm4020_vm7, %v5794_v29 }
0x2bb2   : > { %15703 = vmatpush3.xpose.msk.msra.mxu1 %vm839_vm3, %v5949_v30  ;;  %15704 = vmatprep.mubr.msk.f32.mxu1 %vm18330_vm13, %v18331_v6  ;;  %v6324_v30 = vld [vmem:[#allocation22 + $0xc0] sm:$0xff] }
0x2bb3   : > { %15712 = vmatprep.subr.mxu1 %v18331_v6 }
0x2bb5   : > { %15705 = vmatmul.mubr.msk.f32.vlgmr.msra.gmra.mrb[46].mxu1 %vm839_vm3, %v5947_v7  ;;  %v6325_v7 = vld [vmem:[#allocation22 + $0xc8] sm:$0xff] }
0x2bb6   : > { %15714 = vmatprep.mubr.msk.f32.mxu1 %vm18330_vm13, %v18331_v6  ;;  %15713 = vmatpush3.msra.mxu1 %v5226_v38  ;;  %v16573_v24 = vpack.c.bf16 %v6325_v7, %v6324_v30 }
0x2bb7   : > { %16572 = vmatprep.subr.bf16.mxu1 %v18329_v35 }
0x2c84   : > { %v5868_v11 = vpop.f32.mrb[44].mxu1 }
0x2c85   : > { %v15696_v19 = vpop.f32.mrb[45].mxu1  ;;  %15700 = vmatmul.mubr.msk.f32.vlgmr.msra.gmra.mrb[50].mxu0 %vm839_vm3, %v5868_v11  ;;  %v6326_v11 = vld [vmem:[#allocation22 + $0xd0] sm:$0xff] }
0x2c86   : > { %15709 = vmatprep.mubr.msk.f32.mxu0 %vm18330_vm13, %v18331_v6  ;;  %v6327_v19 = vld [vmem:[#allocation22 + $0xd8] sm:$0xff] }
0x2c88   : > { %v6020_v8 = vpop.f32.mrb[46].mxu1 }
0x2c89   : > { %v15706_v26 = vpop.f32.mrb[47].mxu1  ;;  %v6024_v5 = vsel %vm4006_vm5, %v6020_v8, -inf }
0x2c8a   : > { %6025 = vmax.xlane.f32.xlu1 %v6024_v5  ;;  %v6329_v26 = vld [vmem:[#allocation22 + $0xe8] sm:$0xff] }
0x2c8b   : > { %v16579_v5 = vpack.c.bf16 %v6329_v26, %v6328_v4 }
0x2d17   : > { %v6026_v27 = vpop.xlane.xlu1 %6025 }
0x2d18   : > { %v6027_v28 = vsub.f32 %v6020_v8, %v6026_v27  ;;  %v16576_v8 = vpack.c.bf16 %v6327_v19, %v6326_v11  ;;  %v6331_v27 = vld [vmem:[#allocation22 + $0xf8] sm:$0xff] }
0x2d1a   : > { %v6028_v31 = vmul.f32 1.442695, %v6027_v28  ;;  %v16582_v28 = vpack.c.bf16 %v6331_v27, %v6330_v2 }
0x2d1c   : > { %17594 = vpow2.f32 %v6028_v31  ;;  %v14581_v31 = vld [vmem:[#allocation20 + $0x3] ss:$0 sm:$0xff] }
0x2d26   : > { %v17595_v33 = vpop.eup %17594 }
0x2d27   : > { %v6030_v37 = vsel %vm4006_vm5, %v17595_v33, 0.0  ;;  %vm8343_vm5 = vcmask 122880  }
0x2d28   : > { %6031 = vadd.xlane.f32.xlu0 %v6030_v37 }
0x2d3e   : > { %6035 = vrot.lane.b32.xlu0 %v19408_v18, %s18327_s0 }
0x2d58   : > { %v5941_v39 = vpop.f32.mrb[50].mxu0 }
0x2d59   : > { %v5945_v41 = vadd.f32 %v5941_v39, %v5703_v1  ;;  %v15701_v42 = vpop.f32.mrb[51].mxu0  ;;  %v19516_v1 = vadd.f32 %v19511_v25, %v19508_v14 }
0x2d5b   : > { %v6435_v46 = vsel %vm701_vm1, %v19516_v1, 0.0 }
0x2db5   : > { %v6032_v16 = vpop.xlane.xlu0 %6031 }
0x2db6   : > { %17596 = vrcp.f32 %v6032_v16 }
0x2db9   : > { %v6036_v43 = vpop.permute.xlu0 %6035 }
0x2dba   : > { %15708 = vmatpush3.msk.msra.mxu0 %vm4024_vm6, %v6036_v43 }
0x2dbb   : > { %16566 = vmatprep.subr.bf16.mxu0 %v18329_v35 }
0x2dc0   : > { %v17597_v45 = vpop.eup %17596 }
0x2dc1   : > { %v6034_v54 = vmul.f32 %v17597_v45, %v17595_v33 }
0x2dc3   : > { %15710 = vmatmul.mubr.msk.f32.vlgmr.msra.gmra.mrb[52].mxu0 %vm4020_vm7, %v6034_v54 }
0x2dc4   : > { %15725 = vmatprep.mubr.msk.f32.mxu0 %vm18330_vm13, %v18331_v6  ;;  %16568 = vmatpush3.bf16.msra.mxu0 %v16567_v15 }
0x2dc5   : > { %16569 = vmatprep.subr.bf16.mxu0 %v18329_v35 }
0x2dc8   : > { %16571 = vmatpush3.bf16.msra.mxu0 %v16570_v48  ;;  %v14583_v48 = vld [vmem:[#allocation23 + $0x3] ss:$0 sm:$0xff] }
0x2e96   : > { %v6108_v18 = vpop.f32.mrb[52].mxu0 }
0x2e97   : > { %v15711_v52 = vpop.f32.mrb[53].mxu0  ;;  %15715 = vmatmul.mubr.msk.f32.vlgmr.msra.gmra.mrb[48].mxu1 %vm839_vm3, %v6108_v18 }
0x2e98   : > { %15744 = vmatprep.mubr.msk.f32.mxu1 %vm18330_vm13, %v18331_v6  ;;  %16574 = vmatpush3.bf16.msra.mxu1 %v16573_v24 }
0x2e99   : > { %16575 = vmatprep.subr.bf16.mxu1 %v18329_v35 }
0x2e9c   : > { %16577 = vmatpush3.bf16.msra.mxu1 %v16576_v8 }
0x2e9d   : > { %16578 = vmatprep.subr.bf16.mxu1 %v18329_v35 }
0x2ea0   : > { %16580 = vmatpush3.bf16.msra.mxu1 %v16579_v5 }
0x2ea1   : > { %16581 = vmatprep.subr.bf16.mxu1 %v18329_v35 }
0x2ea4   : > { %16583 = vmatpush3.bf16.msra.mxu1 %v16582_v28  ;;  %v19550_v28 = vld [vmem:[#allocation16 + $0x10] sm:$0x7] }
0x2f6a   : > { %v6181_v47 = vpop.f32.mrb[48].mxu1 }
0x2f6b   : > { %v6185_v50 = vadd.f32 %v6181_v47, %v5945_v41  ;;  %v15716_v44 = vpop.f32.mrb[49].mxu1 }
0x2f6d   : > { %v19501_v56 = vadd.f32 %v6185_v50, %v19389_v55 }
0x2f6f   : > { %v6187_v60 = vsel %vm3820_vm12, %v19501_v56, 0.0 }
0x2f70   : > { %6188 = vadd.xlane.f32.xlu1 %v6187_v60 }
0x2ffd   : > { %v6189_v62 = vpop.xlane.xlu1 %6188 }
0x2ffe   : > { %v6190_v63 = vmul.f32 0.03125, %v6189_v62 }
0x3000   : > { %v6191_v0 = vsub.f32 %v19501_v56, %v6190_v63 }
0x3002   : > { %v6192_v22 = vmul.f32 %v6191_v0, %v6191_v0 }
0x3004   : > { %v6193_v55 = vsel %vm3820_vm12, %v6192_v22, 0.0 }
0x3005   : > { %6194 = vadd.xlane.f32.xlu1 %v6193_v55 }
0x3009   : > { %6436 = vadd.xlane.f32.xlu1 %v6435_v46 }
0x3092   : > { %v6195_v10 = vpop.xlane.xlu1 %6194 }
0x3093   : > { %v6196_v12 = vmul.f32 0.03125, %v6195_v10 }
0x3095   : > { %v6197_v17 = vadd.f32 1e-05, %v6196_v12 }
0x3096   : > { %v6437_v10 = vpop.xlane.xlu1 %6436 }
0x3097   : > { %17598 = vrsqrt.f32 %v6197_v17 }
0x30a1   : > { %v17599_v20 = vpop.eup %17598 }
0x30a2   : > { %v6199_v57 = vmul.f32 %v17599_v20, %v6191_v0  ;;  %v6441_v20 = vmul.f32 0.03125, %v6437_v10 }
0x30a4   : > { %v6204_v53 = vmul.f32 %v6203_v13, %v6199_v57  ;;  %v14586_v57 = vld [vmem:[#allocation11] ss:$0 sm:$0xff]  ;;  %v6443_v30 = vsub.f32 %v19516_v1, %v6441_v20 }
0x30a6   : > { %v6209_v29 = vadd.f32 %v6208_v21, %v6204_v53  ;;  %v19533_v21 = vadd.f32 %v19290_v36, %v19217_v23  ;;  %v6445_v8 = vmul.f32 %v6443_v30, %v6443_v30 }
0x30a8   : > { %15726 = vmatmul.mubr.msk.f32.vlgmr.msra.gmra.mrb[54].mxu0 %vm701_vm1, %v6209_v29  ;;  %v6420_v7 = vadd.f32 %v19511_v25, %v19533_v21  ;;  %v6447_v23 = vsel %vm701_vm1, %v6445_v8, 0.0 }
0x317b   : > { %v6292_v33 = vpop.f32.mrb[54].mxu0 }
0x317c   : > { %v6293_v37 = vadd.f32 %v14581_v31, %v6292_v33  ;;  %v15727_v38 = vpop.f32.mrb[55].mxu0  ;;  %v19552_v31 = vld [vmem:[#allocation17 + $0x10] sm:$0x7]  ;;  %v6464_v33 = vrot.slane %v19550_v28, %v18908_v34 }
0x317e   : > { %v6297_v39 = vmul.f32 0.70710677, %v6293_v37  ;;  %v6296_v15 = vmul.f32 0.5, %v6293_v37 }
0x3180   : > { %v6300_v41 = vand.u32 2147483647, %v6297_v39  ;;  %vm6298_vm9 = vcmp.ge.f32.partialorder %v6297_v39, 0.0  ;;  %v6470_v39 = vrot.slane %v19552_v31, %v18908_v34 }
0x3181   : > { %v6299_v59 = vsel %vm6298_vm9, 1.0, %v18328_v51  ;;  %vm11619_vm9 = vcmask 129024  }
0x3182   : > { %v6301_v42 = vmul.f32 0.3275911, %v6300_v41  ;;  %v6314_v43 = vsub.f32 0.0, %v6300_v41 }
0x3184   : > { %v6302_v16 = vadd.f32 1.0, %v6301_v42  ;;  %v6315_v54 = vmul.f32 %v6314_v43, %v6300_v41  ;;  %v6475_v43 = vld [vmem:[#allocation13 + $0x88] sm:$0xff] }
0x3186   : > { %17600 = vrcp.f32 %v6302_v16  ;;  %v6316_v47 = vmul.f32 1.442695, %v6315_v54  ;;  %v6474_v16 = vld [vmem:[#allocation13 + $0x80] sm:$0xff]  ;;  %v6476_v54 = vld [vmem:[#allocation13 + $0x90] sm:$0xff] }
0x3188   : > { %17602 = vpow2.f32 %v6316_v47 }
0x3190   : > { %v17601_v45 = vpop.eup %17600 }
0x3191   : > { %v6305_v18 = vmul.f32 1.0614054, %v17601_v45 }
0x3192   : > { %v17603_v22 = vpop.eup %17602 }
0x3193   : > { %v6306_v52 = vadd.f32 -1.4531521, %v6305_v18  ;;  %v6477_v18 = vld [vmem:[#allocation13 + $0x98] sm:$0xff] }
0x3195   : > { %v6307_v50 = vmul.f32 %v17601_v45, %v6306_v52  ;;  %v16588_v52 = vpack.c.bf16 %v6477_v18, %v6476_v54 }
0x3197   : > { %v6308_v44 = vadd.f32 1.4214138, %v6307_v50 }
0x3199   : > { %v6309_v60 = vmul.f32 %v17601_v45, %v6308_v44 }
0x319b   : > { %v6310_v61 = vadd.f32 -0.28449672, %v6309_v60 }
0x319d   : > { %v6311_v62 = vmul.f32 %v17601_v45, %v6310_v61 }
0x319f   : > { %v6312_v63 = vadd.f32 0.2548296, %v6311_v62 }
0x31a1   : > { %v6313_v0 = vmul.f32 %v17601_v45, %v6312_v63  ;;  %v16584_v45 = vpack.c.bf16 %v6475_v43, %v6474_v16 }
0x31a3   : > { %v6318_v55 = vmul.f32 %v17603_v22, %v6313_v0  ;;  %16585 = vmatprep.subr.bf16.mxu0 %v16584_v45 }
0x31a4   : > { %16587 = vmatpush3.bf16.msra.mxu0 %v16584_v45 }
0x31a5   : > { %v6319_v46 = vsub.f32 1.0, %v6318_v55  ;;  %16589 = vmatprep.subr.bf16.mxu0 %v16588_v52 }
0x31a7   : > { %v6320_v3 = vmul.f32 %v6319_v46, %v6299_v59 }
0x31a8   : > { %16591 = vmatpush3.bf16.msra.mxu0 %v16588_v52 }
0x31a9   : > { %v6321_v49 = vadd.f32 1.0, %v6320_v3 }
0x31ab   : > { %v6322_v9 = vmul.f32 %v6321_v49, %v6296_v15 }
0x31ad   : > { %15745 = vmatmul.mubr.msk.f32.vlgmr.msra.gmra.mrb[50].mxu1 %vm2169_vm11, %v6322_v9 }
0x3280   : > { %v6409_v12 = vpop.f32.mrb[50].mxu1 }
0x3281   : > { %v6410_v17 = vadd.f32 %v14583_v48, %v6409_v12  ;;  %v15746_v13 = vpop.f32.mrb[51].mxu1 }
0x3283   : > { %v19536_v53 = vadd.f32 %v6410_v17, %v19501_v56 }
0x3285   : > { %v6426_v29 = vadd.f32 %v14586_v57, %v19536_v53 }
0x3287   : > { %v6428_v24 = vrot.slane %v6426_v29, 7 }
0x3289   : > { %v19543_v11 = vsel %vm693_vm0, %v6420_v7, %v6428_v24 }
0x328a   : > { %v6438_v19 = vsel %vm701_vm1, %v19543_v11, 0.0 }
0x328b   : > { %6439 = vadd.xlane.f32.xlu1 %v6438_v19 }
0x328f   : > { %6448 = vadd.xlane.f32.xlu1 %v6447_v23 }
0x3318   : > { %v6440_v36 = vpop.xlane.xlu1 %6439 }
0x3319   : > { %v6442_v56 = vmul.f32 0.03125, %v6440_v36 }
0x331b   : > { %v6444_v4 = vsub.f32 %v19543_v11, %v6442_v56 }
0x331c   : > { %v6449_v26 = vpop.xlane.xlu1 %6448 }
0x331d   : > { %v6453_v5 = vmul.f32 0.03125, %v6449_v26  ;;  %v6446_v2 = vmul.f32 %v6444_v4, %v6444_v4 }
0x331f   : > { %v6455_v25 = vadd.f32 1e-05, %v6453_v5  ;;  %v6450_v27 = vsel %vm701_vm1, %v6446_v2, 0.0 }
0x3320   : > { %6451 = vadd.xlane.f32.xlu0 %v6450_v27 }
0x3321   : > { %17604 = vrsqrt.f32 %v6455_v25 }
0x332b   : > { %v17605_v37 = vpop.eup %17604 }
0x332c   : > { %v6459_v38 = vmul.f32 %v17605_v37, %v6443_v30 }
0x332e   : > { %v6465_v41 = vmul.f32 %v6464_v33, %v6459_v38 }
0x3330   : > { %v6471_v42 = vadd.f32 %v6470_v39, %v6465_v41 }
0x3332   : > { %15755 = vmatprep.mubr.msk.f32.mxu0 %vm701_vm1, %v6471_v42 }
0x33ad   : > { %v6452_v47 = vpop.xlane.xlu0 %6451 }
0x33ae   : > { %v6454_v50 = vmul.f32 0.03125, %v6452_v47 }
0x33b0   : > { %v6456_v44 = vadd.f32 1e-05, %v6454_v50 }
0x33b2   : > { %17606 = vrsqrt.f32 %v6456_v44 }
0x33bc   : > { %v17607_v60 = vpop.eup %17606 }
0x33bd   : > { %v6460_v61 = vmul.f32 %v17607_v60, %v6444_v4 }
0x33bf   : > { %v6466_v62 = vmul.f32 %v6464_v33, %v6460_v61 }
0x33c1   : > { %v6472_v63 = vadd.f32 %v6470_v39, %v6466_v62 }
0x33c3   : > { %15756 = vmatmul.mubr.msk.f32.vlgmr.msra.gmra.mrb[56].mxu0 %vm701_vm1, %v6472_v63 }
0x3496   : > { %v15757_v0 = vpop.f32.mrb[56].mxu0 }
0x3497   : > { %v6550_v22 = vpop.f32.mrb[57].mxu0  ;;  %v19572_v9 = vmul.f32 0.17677669, %v15757_v0 }
0x3498   : > { %v19560_v55 = vpack.i.bf16 %v15757_v0, %v6550_v22  ;;  %v19562_v46 = vmul.f32 0.17677669, %v6550_v22 }
0x349a   : > { %17241 = vrot.lane.b32.xlu1 %v19560_v55, %s18317_s1  ;;  %15762 = vmatprep.mubr.msk.f32.mxu0 %vm839_vm3, %v19562_v46 }
0x350c   : > { %v17242_v59 = vpop.permute.xlu1 %17241 }
0x350d   : > { %v17244_v3 = vunpack.i.h.bf16 %v17242_v59  ;;  %v17243_v15 = vunpack.i.l.bf16 %v17242_v59 }
0x350f   : > { %v16592_v49 = vpack.c.bf16 %v17244_v3, %v17243_v15 }
0x3511   : > { %16594 = vmatprep.subr.msk.bf16.mxu0 %vm18944_vm4, %v16592_v49 }
0x3512   : > { %16597 = vmatpush3.bf16.xpose.msk.msra.mxu0 %vm18944_vm4, %v16592_v49 }
0x3519   : > { %15763 = vmatmul.mubr.msk.f32.vlgmr.msra.gmra.mrb[58].mxu0 %vm839_vm3, %v19572_v9 }
0x35ec   : > { %v15764_v48 = vpop.f32.mrb[58].mxu0 }
0x35ed   : > { %v6648_v10 = vpop.f32.mrb[59].mxu0  ;;  %v6661_v12 = vsel %vm6657_vm10, %v15764_v48, -inf }
0x35ee   : > { %6662 = vmax.xlane.f32.xlu0 %v6661_v12  ;;  %v6658_v17 = vsel %vm6657_vm10, %v6648_v10, -inf }
0x35ef   : > { %6659 = vmax.xlane.f32.xlu1 %v6658_v17 }
0x3600   : > { %17251 = vrot.lane.b32.xlu1 %v19560_v55, %s18316_s18 }
0x3604   : > { %17246 = vrot.lane.b32.xlu0 %v19560_v55, %s18321_s7  ;;  %17256 = vrot.lane.b32.xlu1 %v19560_v55, %s18318_s2 }
0x3608   : > { %7131 = vrot.lane.b32.xlu1 %v19572_v9, %s18320_s10 }
0x367b   : > { %v6663_v13 = vpop.xlane.xlu0 %6662 }
0x367c   : > { %v6665_v20 = vsub.f32 %v15764_v48, %v6663_v13  ;;  %v6660_v57 = vpop.xlane.xlu1 %6659 }
0x367d   : > { %v6664_v29 = vsub.f32 %v6648_v10, %v6660_v57 }
0x367e   : > { %v6668_v30 = vmul.f32 1.442695, %v6665_v20 }
0x367f   : > { %v6666_v7 = vmul.f32 1.442695, %v6664_v29  ;;  %v17247_v24 = vpop.permute.xlu0 %17246 }
0x3680   : > { %17608 = vpow2.f32 %v6668_v30  ;;  %v17249_v19 = vunpack.i.h.bf16 %v17247_v24  ;;  %v17248_v8 = vunpack.i.l.bf16 %v17247_v24  ;;  %v17252_v23 = vpop.permute.xlu1 %17251 }
0x3681   : > { %v17254_v36 = vunpack.i.h.bf16 %v17252_v23  ;;  %v17253_v56 = vunpack.i.l.bf16 %v17252_v23  ;;  %17610 = vpow2.f32 %v6666_v7 }
0x3682   : > { %v16598_v4 = vpack.c.bf16 %v17249_v19, %v17248_v8 }
0x3683   : > { %v16602_v26 = vpack.c.bf16 %v17254_v36, %v17253_v56 }
0x3684   : > { %16599 = vmatprep.subr.bf16.mxu1 %v16598_v4  ;;  %v17257_v38 = vpop.permute.xlu1 %17256 }
0x3685   : > { %16601 = vmatpush3.bf16.msra.mxu1 %v16598_v4  ;;  %v17259_v42 = vunpack.i.h.bf16 %v17257_v38  ;;  %v17258_v16 = vunpack.i.l.bf16 %v17257_v38 }
0x3686   : > { %16604 = vmatprep.subr.msk.bf16.mxu1 %vm18944_vm4, %v16602_v26 }
0x3687   : > { %v16612_v18 = vpack.c.bf16 %v17259_v42, %v17258_v16 }
0x3688   : > { %v7132_v50 = vpop.permute.xlu1 %7131 }
0x368a   : > { %v17609_v5 = vpop.eup %17608 }
0x368b   : > { %v6673_v2 = vsel %vm6657_vm10, %v17609_v5, 0.0  ;;  %v17611_v25 = vpop.eup %17610 }
0x368c   : > { %6674 = vadd.xlane.f32.xlu0 %v6673_v2  ;;  %v6670_v27 = vsel %vm6657_vm10, %v17611_v25, 0.0 }
0x3690   : > { %6671 = vadd.xlane.f32.xlu0 %v6670_v27 }
0x36a6   : > { %6767 = vrot.lane.b32.xlu0 %v19562_v46, %s18319_s17 }
0x36aa   : > { %6769 = vrot.lane.b32.xlu0 %v19572_v9, %s18319_s17 }
0x36ae   : > { %7129 = vrot.lane.b32.xlu0 %v19562_v46, %s18320_s10 }
0x3719   : > { %v6675_v33 = vpop.xlane.xlu0 %6674 }
0x371a   : > { %17612 = vrcp.f32 %v6675_v33 }
0x371d   : > { %v6672_v37 = vpop.xlane.xlu0 %6671 }
0x371e   : > { %17614 = vrcp.f32 %v6672_v37 }
0x3721   : > { %v6768_v43 = vpop.permute.xlu0 %6767 }
0x3724   : > { %v17613_v39 = vpop.eup %17612 }
0x3725   : > { %v6679_v54 = vmul.f32 %v17613_v39, %v17609_v5  ;;  %v6770_v52 = vpop.permute.xlu0 %6769 }
0x3728   : > { %v17615_v41 = vpop.eup %17614 }
0x3729   : > { %v6678_v45 = vmul.f32 %v17615_v41, %v17611_v25  ;;  %v7130_v47 = vpop.permute.xlu0 %7129 }
0x372b   : > { %15769 = vmatprep.mubr.msk.f32.mxu1 %vm6657_vm10, %v6678_v45 }
0x372c   : > { %15770 = vmatmul.mubr.msk.f32.vlgmr.msra.gmra.mrb[52].mxu1 %vm6657_vm10, %v6679_v54 }
0x372d   : > { %16607 = vmatpush3.bf16.xpose.msk.msra.mxu1 %vm18944_vm4, %v16602_v26  ;;  %15776 = vmatprep.mubr.msk.f32.mxu1 %vm839_vm3, %v6768_v43 }
0x372e   : > { %16614 = vmatprep.subr.msk.bf16.mxu1 %vm18944_vm4, %v16612_v18 }
0x3734   : > { %15777 = vmatmul.mubr.msk.f32.vlgmr.msra.gmra.mrb[54].mxu1 %vm839_vm3, %v6770_v52 }
0x3735   : > { %16617 = vmatpush3.bf16.xpose.msk.msra.mxu1 %vm18944_vm4, %v16612_v18  ;;  %15800 = vmatprep.mubr.msk.f32.mxu1 %vm839_vm3, %v7130_v47 }
0x373c   : > { %15801 = vmatmul.mubr.msk.f32.vlgmr.msra.gmra.mrb[56].mxu1 %vm839_vm3, %v7132_v50 }
0x37ff   : > { %v19608_v44 = vpop.f32.mrb[52].mxu1 }
0x3800   : > { %v19610_v60 = vpop.f32.mrb[53].mxu1 }
0x3807   : > { %v15778_v61 = vpop.f32.mrb[54].mxu1 }
0x3808   : > { %v6849_v62 = vpop.f32.mrb[55].mxu1  ;;  %v6861_v63 = vsel %vm6657_vm10, %v15778_v61, -inf }
0x3809   : > { %6862 = vmax.xlane.f32.xlu1 %v6861_v63  ;;  %v6858_v0 = vsel %vm6657_vm10, %v6849_v62, -inf  ;;  %v6560_v63 = vld [vmem:[#allocation14 + $0x80] sm:$0xff] }
0x380a   : > { %6859 = vmax.xlane.f32.xlu0 %v6858_v0 }
0x380f   : > { %v15802_v22 = vpop.f32.mrb[56].mxu1 }
0x3810   : > { %v7211_v59 = vpop.f32.mrb[57].mxu1  ;;  %v7223_v3 = vsel %vm6657_vm10, %v15802_v22, -inf }
0x3811   : > { %v7220_v56 = vsel %vm6657_vm10, %v7211_v59, -inf }
0x381a   : > { %17266 = vrot.lane.b32.xlu1 %v19560_v55, %s18322_s25 }
0x381e   : > { %7412 = vrot.lane.b32.xlu1 %v19562_v46, %s18323_s26 }
0x3822   : > { %7414 = vrot.lane.b32.xlu1 %v19572_v9, %s18323_s26 }
0x3846   : > { %7224 = vmax.xlane.f32.xlu1 %v7223_v3 }
0x3896   : > { %v6863_v15 = vpop.xlane.xlu1 %6862 }
0x3897   : > { %v6865_v49 = vsub.f32 %v15778_v61, %v6863_v15  ;;  %v6860_v48 = vpop.xlane.xlu0 %6859 }
0x3898   : > { %v6864_v10 = vsub.f32 %v6849_v62, %v6860_v48  ;;  %v6561_v62 = vld [vmem:[#allocation14 + $0x88] sm:$0xff] }
0x3899   : > { %v6868_v12 = vmul.f32 1.442695, %v6865_v49 }
0x389a   : > { %v6866_v17 = vmul.f32 1.442695, %v6864_v10  ;;  %v17267_v13 = vpop.permute.xlu1 %17266 }
0x389b   : > { %17616 = vpow2.f32 %v6868_v12  ;;  %v17269_v20 = vunpack.i.h.bf16 %v17267_v13  ;;  %v17268_v57 = vunpack.i.l.bf16 %v17267_v13 }
0x389c   : > { %17618 = vpow2.f32 %v6866_v17 }
0x389d   : > { %v16622_v29 = vpack.c.bf16 %v17269_v20, %v17268_v57 }
0x389e   : > { %v7413_v30 = vpop.permute.xlu1 %7412 }
0x389f   : > { %16624 = vmatprep.subr.msk.bf16.mxu1 %vm18944_vm4, %v16622_v29  ;;  %15819 = vmatprep.mubr.msk.f32.mxu1 %vm839_vm3, %v7413_v30 }
0x38a0   : > { %16627 = vmatpush3.bf16.xpose.msk.msra.mxu1 %vm18944_vm4, %v16622_v29 }
0x38a2   : > { %v7415_v9 = vpop.permute.xlu1 %7414 }
0x38a5   : > { %v17617_v46 = vpop.eup %17616 }
0x38a6   : > { %v6873_v7 = vsel %vm6657_vm10, %v17617_v46, 0.0  ;;  %v17619_v24 = vpop.eup %17618 }
0x38a7   : > { %15820 = vmatmul.mubr.msk.f32.vlgmr.msra.gmra.mrb[58].mxu1 %vm839_vm3, %v7415_v9  ;;  %6874 = vadd.xlane.f32.xlu0 %v6873_v7  ;;  %v6870_v19 = vsel %vm6657_vm10, %v17619_v24, 0.0 }
0x38ab   : > { %6871 = vadd.xlane.f32.xlu0 %v6870_v19 }
0x38c1   : > { %17261 = vrot.lane.b32.xlu0 %v19560_v55, %s18324_s23 }
0x38d3   : > { %v7225_v8 = vpop.xlane.xlu1 %7224 }
0x38d4   : > { %v7227_v23 = vsub.f32 %v15802_v22, %v7225_v8 }
0x38d6   : > { %v7230_v36 = vmul.f32 1.442695, %v7227_v23 }
0x38d8   : > { %17620 = vpow2.f32 %v7230_v36 }
0x38e0   : > { %7221 = vmax.xlane.f32.xlu0 %v7220_v56 }
0x38e2   : > { %v19632_v4 = vpop.eup %17620 }
0x38e3   : > { %v7235_v26 = vsel %vm6657_vm10, %v19632_v4, 0.0 }
0x38e4   : > { %7236 = vadd.xlane.f32.xlu0 %v7235_v26 }
0x3934   : > { %v6875_v5 = vpop.xlane.xlu0 %6874 }
0x3935   : > { %17622 = vrcp.f32 %v6875_v5 }
0x3938   : > { %v6872_v2 = vpop.xlane.xlu0 %6871 }
0x3939   : > { %17624 = vrcp.f32 %v6872_v2 }
0x393c   : > { %v17262_v25 = vpop.permute.xlu0 %17261 }
0x393d   : > { %v17264_v27 = vunpack.i.h.bf16 %v17262_v25  ;;  %v17263_v33 = vunpack.i.l.bf16 %v17262_v25 }
0x393f   : > { %v16608_v37 = vpack.c.bf16 %v17264_v27, %v17263_v33  ;;  %v17623_v38 = vpop.eup %17622 }
0x3940   : > { %v6879_v42 = vmul.f32 %v17623_v38, %v17617_v46 }
0x3941   : > { %16609 = vmatprep.subr.bf16.mxu0 %v16608_v37 }
0x3942   : > { %16611 = vmatpush3.bf16.msra.mxu0 %v16608_v37 }
0x3943   : > { %v17625_v39 = vpop.eup %17624  ;;  %15786 = vmatprep.subr.mxu0 %v6561_v62 }
0x3944   : > { %v6878_v41 = vmul.f32 %v17625_v39, %v17619_v24 }
0x3946   : > { %15783 = vmatprep.mubr.msk.f32.mxu0 %vm6657_vm10, %v6878_v41 }
0x3947   : > { %15784 = vmatmul.mubr.msk.f32.vlgmr.msra.gmra.mrb[60].mxu0 %vm6657_vm10, %v6879_v42 }
0x3948   : > { %15787 = vmatpush3.msra.mxu0 %v6561_v62 }
0x3949   : > { %15791 = vmatprep.subr.mxu0 %v6560_v63 }
0x396d   : > { %v7222_v16 = vpop.xlane.xlu0 %7221 }
0x396e   : > { %v7226_v43 = vsub.f32 %v7211_v59, %v7222_v16 }
0x3970   : > { %v7228_v45 = vmul.f32 1.442695, %v7226_v43 }
0x3971   : > { %v7237_v22 = vpop.xlane.xlu0 %7236 }
0x3972   : > { %17626 = vpow2.f32 %v7228_v45 }
0x397a   : > { %v15821_v54 = vpop.f32.mrb[58].mxu1 }
0x397b   : > { %v7494_v18 = vpop.f32.mrb[59].mxu1  ;;  %v7506_v61 = vsel %vm6657_vm10, %v15821_v54, -inf }
0x397c   : > { %v17627_v52 = vpop.eup %17626  ;;  %v7503_v47 = vsel %vm6657_vm10, %v7494_v18, -inf }
0x397d   : > { %7504 = vmax.xlane.f32.xlu1 %v7503_v47  ;;  %v7232_v50 = vsel %vm6657_vm10, %v17627_v52, 0.0 }
0x397e   : > { %7233 = vadd.xlane.f32.xlu0 %v7232_v50 }
0x3981   : > { %7507 = vmax.xlane.f32.xlu1 %v7506_v61 }
0x3994   : > { %17271 = vrot.lane.b32.xlu0 %v19560_v55, %s18326_s20 }
0x3a0a   : > { %v7505_v0 = vpop.xlane.xlu1 %7504 }
0x3a0b   : > { %v7509_v59 = vsub.f32 %v7494_v18, %v7505_v0  ;;  %v7234_v49 = vpop.xlane.xlu0 %7233 }
0x3a0d   : > { %v7511_v48 = vmul.f32 1.442695, %v7509_v59  ;;  %v7987_v59 = vsel %vm701_vm1, %v19508_v14, 0.0 }
0x3a0e   : > { %v7508_v3 = vpop.xlane.xlu1 %7507 }
0x3a0f   : > { %v7510_v15 = vsub.f32 %v15821_v54, %v7508_v3  ;;  %v17272_v12 = vpop.permute.xlu0 %17271  ;;  %v7990_v3 = vsel %vm705_vm2, %v19533_v21, 0.0 }
0x3a10   : > { %v17274_v17 = vunpack.i.h.bf16 %v17272_v12  ;;  %v17273_v13 = vunpack.i.l.bf16 %v17272_v12  ;;  %v7739_v12 = vld [vmem:[#allocation19 + $0x98] sm:$0xff] }
0x3a11   : > { %v7513_v10 = vmul.f32 1.442695, %v7510_v15  ;;  %v7736_v15 = vld [vmem:[#allocation19 + $0x80] sm:$0xff] }
0x3a12   : > { %v16618_v30 = vpack.c.bf16 %v17274_v17, %v17273_v13 }
0x3a13   : > { %17628 = vpow2.f32 %v7513_v10  ;;  %v7738_v10 = vld [vmem:[#allocation19 + $0x90] sm:$0xff] }
0x3a14   : > { %17630 = vpow2.f32 %v7511_v48  ;;  %v16636_v17 = vpack.c.bf16 %v7739_v12, %v7738_v10 }
0x3a15   : > { %17632 = vrcp.f32 %v7234_v49  ;;  %v7737_v49 = vld [vmem:[#allocation19 + $0x88] sm:$0xff] }
0x3a16   : > { %17634 = vrcp.f32 %v7237_v22  ;;  %v16632_v48 = vpack.c.bf16 %v7737_v49, %v7736_v15 }
0x3a18   : > { %16633 = vmatprep.subr.bf16.mxu1 %v16632_v48 }
0x3a19   : > { %16635 = vmatpush3.bf16.msra.mxu1 %v16632_v48 }
0x3a1a   : > { %v15785_v20 = vpop.f32.mrb[60].mxu0  ;;  %16637 = vmatprep.subr.bf16.mxu1 %v16636_v17 }
0x3a1b   : > { %v6958_v57 = vpop.f32.mrb[61].mxu0 }
0x3a1c   : > { %15788 = vmatprep.mubr.msk.f32.mxu0 %vm839_vm3, %v6958_v57 }
0x3a1d   : > { %v17629_v29 = vpop.eup %17628  ;;  %15789 = vmatmul.mubr.msk.f32.vlgmr.msra.gmra.mrb[62].mxu0 %vm839_vm3, %v15785_v20  ;;  %16639 = vmatpush3.bf16.msra.mxu1 %v16636_v17 }
0x3a1e   : > { %15792 = vmatpush3.msra.mxu0 %v6560_v63  ;;  %15793 = vmatprep.mubr.msk.f32.mxu0 %vm839_vm3, %v19610_v60  ;;  %v7518_v46 = vsel %vm6657_vm10, %v17629_v29, 0.0  ;;  %v17631_v9 = vpop.eup %17630  ;;  %v6562_v60 = vld [vmem:[#allocation14 + $0x90] sm:$0xff] }
0x3a1f   : > { %16619 = vmatprep.subr.bf16.mxu0 %v16618_v30  ;;  %7519 = vadd.xlane.f32.xlu1 %v7518_v46  ;;  %v17633_v7 = vpop.eup %17632  ;;  %v7515_v24 = vsel %vm6657_vm10, %v17631_v9, 0.0 }
0x3a20   : > { %v17635_v19 = vpop.eup %17634  ;;  %v7240_v8 = vmul.f32 %v17633_v7, %v17627_v52 }
0x3a21   : > { %v7241_v23 = vmul.f32 %v17635_v19, %v19632_v4  ;;  %v7732_v19 = vrot.slane %v19552_v31, %v19062_v40  ;;  %v7888_v31 = vld [vmem:[#allocation22 + $0x120] sm:$0xff] }
0x3a23   : > { %7516 = vadd.xlane.f32.xlu1 %v7515_v24 }
0x3a25   : > { %15794 = vmatmul.mubr.msk.f32.vlgmr.msra.gmra.mrb[62].mxu0 %vm839_vm3, %v19608_v44 }
0x3a26   : > { %16621 = vmatpush3.bf16.msra.mxu0 %v16618_v30  ;;  %15807 = vmatprep.mubr.msk.f32.mxu0 %vm6657_vm10, %v7240_v8 }
0x3a27   : > { %15810 = vmatprep.subr.mxu0 %v6562_v60 }
0x3a29   : > { %15808 = vmatmul.mubr.msk.f32.vlgmr.msra.gmra.mrb[64].mxu0 %vm6657_vm10, %v7241_v23 }
0x3a2a   : > { %15811 = vmatpush3.msra.mxu0 %v6562_v60 }
0x3a34   : > { %17276 = vrot.lane.b32.xlu1 %v19560_v55, %s18327_s0  ;;  %v6563_v55 = vld [vmem:[#allocation14 + $0x98] sm:$0xff] }
0x3aac   : > { %v7520_v36 = vpop.xlane.xlu1 %7519 }
0x3ab0   : > { %v7517_v56 = vpop.xlane.xlu1 %7516 }
0x3ab1   : > { %17636 = vrcp.f32 %v7517_v56 }
0x3ab2   : > { %17638 = vrcp.f32 %v7520_v36 }
0x3ab4   : > { %v17277_v26 = vpop.permute.xlu1 %17276 }
0x3ab5   : > { %v17279_v5 = vunpack.i.h.bf16 %v17277_v26  ;;  %v17278_v2 = vunpack.i.l.bf16 %v17277_v26 }
0x3ab7   : > { %v16628_v25 = vpack.c.bf16 %v17279_v5, %v17278_v2  ;;  %v7884_v5 = vld [vmem:[#allocation22 + $0x100] sm:$0xff]  ;;  %v7885_v2 = vld [vmem:[#allocation22 + $0x108] sm:$0xff] }
0x3ab9   : > { %16629 = vmatprep.subr.bf16.mxu0 %v16628_v25 }
0x3abb   : > { %v17637_v44 = vpop.eup %17636 }
0x3abc   : > { %v17639_v33 = vpop.eup %17638  ;;  %v7523_v37 = vmul.f32 %v17637_v44, %v17631_v9  ;;  %v7726_v9 = vrot.slane %v19550_v28, %v19062_v40  ;;  %v7886_v28 = vld [vmem:[#allocation22 + $0x110] sm:$0xff]  ;;  %v7887_v44 = vld [vmem:[#allocation22 + $0x118] sm:$0xff] }
0x3abd   : > { %v7524_v38 = vmul.f32 %v17639_v33, %v17629_v29 }
0x3afc   : > { %v15809_v27 = vpop.f32.mrb[64].mxu0 }
0x3afd   : > { %v7320_v4 = vpop.f32.mrb[65].mxu0 }
0x3afe   : > { %15812 = vmatprep.mubr.msk.f32.mxu0 %vm839_vm3, %v7320_v4  ;;  %v7889_v4 = vld [vmem:[#allocation22 + $0x128] sm:$0xff] }
0x3aff   : > { %15813 = vmatmul.mubr.msk.f32.vlgmr.msra.gmra.mrb[62].mxu0 %vm839_vm3, %v15809_v27  ;;  %v16644_v27 = vpack.c.bf16 %v7887_v44, %v7886_v28  ;;  %v16648_v33 = vpack.c.bf16 %v7889_v4, %v7888_v31 }
0x3b00   : > { %16631 = vmatpush3.bf16.msra.mxu0 %v16628_v25  ;;  %15826 = vmatprep.mubr.msk.f32.mxu0 %vm6657_vm10, %v7523_v37  ;;  %v16640_v25 = vpack.c.bf16 %v7885_v2, %v7884_v5  ;;  %v7890_v37 = vld [vmem:[#allocation22 + $0x130] sm:$0xff] }
0x3b01   : > { %15829 = vmatprep.subr.mxu0 %v6563_v55 }
0x3b03   : > { %15827 = vmatmul.mubr.msk.f32.vlgmr.msra.gmra.mrb[66].mxu0 %vm6657_vm10, %v7524_v38 }
0x3b04   : > { %15830 = vmatpush3.msra.mxu0 %v6563_v55  ;;  %v7891_v55 = vld [vmem:[#allocation22 + $0x138] sm:$0xff] }
0x3b05   : > { %16641 = vmatprep.subr.bf16.mxu0 %v16640_v25  ;;  %v16652_v38 = vpack.c.bf16 %v7891_v55, %v7890_v37 }
0x3bd6   : > { %v15828_v39 = vpop.f32.mrb[66].mxu0 }
0x3bd7   : > { %v7603_v41 = vpop.f32.mrb[67].mxu0 }
0x3bd8   : > { %15831 = vmatprep.mubr.msk.f32.mxu0 %vm839_vm3, %v7603_v41 }
0x3bd9   : > { %15832 = vmatmul.mubr.msk.f32.vlgmr.msra.gmra.mrb[62].mxu0 %vm839_vm3, %v15828_v39  ;;  %v14621_v39 = vld [vmem:[#allocation20 + $0x4] ss:$0 sm:$0xff] }
0x3bda   : > { %16643 = vmatpush3.bf16.msra.mxu0 %v16640_v25 }
0x3bdb   : > { %16645 = vmatprep.subr.bf16.mxu0 %v16644_v27 }
0x3bde   : > { %16647 = vmatpush3.bf16.msra.mxu0 %v16644_v27 }
0x3bdf   : > { %16649 = vmatprep.subr.bf16.mxu0 %v16648_v33 }
0x3be2   : > { %16651 = vmatpush3.bf16.msra.mxu0 %v16648_v33 }
0x3be3   : > { %16653 = vmatprep.subr.bf16.mxu0 %v16652_v38 }
0x3be6   : > { %16655 = vmatpush3.bf16.msra.mxu0 %v16652_v38 }
0x3cac   : > { %v15833_v42 = vpop.f32.mrb[62].mxu0 }
0x3cad   : > { %v19663_v16 = vadd.f32 %v15833_v42, %v19543_v11  ;;  %v7684_v43 = vpop.f32.mrb[63].mxu0 }
0x3cae   : > { %v19666_v45 = vadd.f32 %v7684_v43, %v19516_v1 }
0x3caf   : > { %v7700_v54 = vsel %vm701_vm1, %v19663_v16, 0.0 }
0x3cb0   : > { %7701 = vadd.xlane.f32.xlu1 %v7700_v54  ;;  %v7697_v18 = vsel %vm701_vm1, %v19666_v45, 0.0 }
0x3cb1   : > { %7698 = vadd.xlane.f32.xlu0 %v7697_v18 }
0x3d3d   : > { %v7702_v52 = vpop.xlane.xlu1 %7701 }
0x3d3e   : > { %v7704_v47 = vmul.f32 0.03125, %v7702_v52  ;;  %v7699_v50 = vpop.xlane.xlu0 %7698 }
0x3d3f   : > { %v7703_v61 = vmul.f32 0.03125, %v7699_v50 }
0x3d40   : > { %v7706_v62 = vsub.f32 %v19663_v16, %v7704_v47 }
0x3d41   : > { %v7705_v11 = vsub.f32 %v19666_v45, %v7703_v61 }
0x3d42   : > { %v7708_v0 = vmul.f32 %v7706_v62, %v7706_v62 }
0x3d43   : > { %v7707_v63 = vmul.f32 %v7705_v11, %v7705_v11 }
0x3d44   : > { %v7712_v22 = vsel %vm701_vm1, %v7708_v0, 0.0 }
0x3d45   : > { %v7709_v1 = vsel %vm701_vm1, %v7707_v63, 0.0 }
0x3d46   : > { %7710 = vadd.xlane.f32.xlu0 %v7709_v1 }
0x3d4a   : > { %7713 = vadd.xlane.f32.xlu0 %v7712_v22 }
0x3d4e   : > { %7988 = vadd.xlane.f32.xlu0 %v7987_v59 }
0x3d52   : > { %7991 = vadd.xlane.f32.xlu0 %v7990_v3 }
0x3dd3   : > { %v7711_v13 = vpop.xlane.xlu0 %7710 }
0x3dd4   : > { %v7715_v20 = vmul.f32 0.03125, %v7711_v13 }
0x3dd6   : > { %v7717_v57 = vadd.f32 1e-05, %v7715_v20 }
0x3dd7   : > { %v7714_v29 = vpop.xlane.xlu0 %7713 }
0x3dd8   : > { %17640 = vrsqrt.f32 %v7717_v57  ;;  %v7716_v30 = vmul.f32 0.03125, %v7714_v29 }
0x3dda   : > { %v7718_v46 = vadd.f32 1e-05, %v7716_v30 }
0x3ddc   : > { %17642 = vrsqrt.f32 %v7718_v46 }
0x3de2   : > { %v17641_v7 = vpop.eup %17640 }
0x3de3   : > { %v7721_v24 = vmul.f32 %v17641_v7, %v7705_v11 }
0x3de5   : > { %v7727_v8 = vmul.f32 %v7726_v9, %v7721_v24 }
0x3de6   : > { %v17643_v23 = vpop.eup %17642 }
0x3de7   : > { %v7722_v60 = vmul.f32 %v17643_v23, %v7706_v62  ;;  %v7733_v36 = vadd.f32 %v7732_v19, %v7727_v8 }
0x3de9   : > { %v7728_v56 = vmul.f32 %v7726_v9, %v7722_v60  ;;  %15842 = vmatprep.mubr.msk.f32.mxu1 %vm701_vm1, %v7733_v36 }
0x3deb   : > { %v7734_v26 = vadd.f32 %v7732_v19, %v7728_v56 }
0x3ded   : > { %15843 = vmatmul.mubr.msk.f32.vlgmr.msra.gmra.mrb[60].mxu1 %vm701_vm1, %v7734_v26 }
0x3ec0   : > { %v15844_v41 = vpop.f32.mrb[60].mxu1 }
0x3ec1   : > { %v7826_v42 = vadd.f32 %v15844_v41, %v14621_v39  ;;  %v7820_v43 = vpop.f32.mrb[61].mxu1 }
0x3ec2   : > { %v7821_v54 = vadd.f32 %v14621_v39, %v7820_v43 }
0x3ec3   : > { %v7832_v18 = vmul.f32 0.70710677, %v7826_v42  ;;  %v7830_v39 = vmul.f32 0.5, %v7826_v42 }
0x3ec4   : > { %v7831_v52 = vmul.f32 0.70710677, %v7821_v54  ;;  %v7829_v55 = vmul.f32 0.5, %v7821_v54 }
0x3ec5   : > { %v7838_v47 = vand.u32 2147483647, %v7832_v18  ;;  %vm7834_vm14 = vcmp.ge.f32.partialorder %v7832_v18, 0.0  ;;  %v7989_v18 = vpop.xlane.xlu0 %7988 }
0x3ec6   : > { %v7837_v50 = vand.u32 2147483647, %v7831_v52  ;;  %vm7833_vm15 = vcmp.ge.f32.partialorder %v7831_v52, 0.0  ;;  %v7836_v44 = vsel %vm7834_vm14, 1.0, %v18328_v51 }
0x3ec7   : > { %v7840_v61 = vmul.f32 0.3275911, %v7838_v47  ;;  %v7866_v1 = vsub.f32 0.0, %v7838_v47  ;;  %v7835_v4 = vsel %vm7833_vm15, 1.0, %v18328_v51 }
0x3ec8   : > { %v7839_v62 = vmul.f32 0.3275911, %v7837_v50  ;;  %v7865_v0 = vsub.f32 0.0, %v7837_v50 }
0x3ec9   : > { %v7842_v11 = vadd.f32 1.0, %v7840_v61  ;;  %v7868_v59 = vmul.f32 %v7866_v1, %v7838_v47  ;;  %v7992_v52 = vpop.xlane.xlu0 %7991  ;;  %v14624_v61 = vld [vmem:[#allocation23 + $0x4] ss:$0 sm:$0xff] }
0x3eca   : > { %v7841_v63 = vadd.f32 1.0, %v7839_v62  ;;  %v7867_v49 = vmul.f32 %v7865_v0, %v7837_v50  ;;  %v7994_v47 = vmul.f32 0.03125, %v7992_v52  ;;  %v7993_v50 = vmul.f32 0.03125, %v7989_v18 }
0x3ecb   : > { %17644 = vrcp.f32 %v7842_v11  ;;  %v7871_v12 = vmul.f32 1.442695, %v7868_v59 }
0x3ecc   : > { %17646 = vrcp.f32 %v7841_v63  ;;  %v7869_v20 = vmul.f32 1.442695, %v7867_v49  ;;  %v7996_v11 = vsub.f32 %v19533_v21, %v7994_v47  ;;  %v7995_v54 = vsub.f32 %v19508_v14, %v7993_v50 }
0x3ecd   : > { %17648 = vpow2.f32 %v7871_v12  ;;  %v8064_v12 = vld [vmem:[#allocation13 + $0xa0] sm:$0xff] }
0x3ece   : > { %17650 = vpow2.f32 %v7869_v20  ;;  %v7997_v49 = vmul.f32 %v7995_v54, %v7995_v54  ;;  %v8066_v20 = vld [vmem:[#allocation13 + $0xb0] sm:$0xff] }
0x3ed5   : > { %v17645_v22 = vpop.eup %17644 }
0x3ed6   : > { %v17647_v3 = vpop.eup %17646  ;;  %v7848_v15 = vmul.f32 1.0614054, %v17645_v22 }
0x3ed7   : > { %v7847_v48 = vmul.f32 1.0614054, %v17647_v3  ;;  %v17649_v56 = vpop.eup %17648 }
0x3ed8   : > { %v7850_v10 = vadd.f32 -1.4531521, %v7848_v15  ;;  %v17651_v5 = vpop.eup %17650 }
0x3ed9   : > { %v7849_v17 = vadd.f32 -1.4531521, %v7847_v48 }
0x3eda   : > { %v7852_v13 = vmul.f32 %v17645_v22, %v7850_v10  ;;  %v7999_v10 = vsel %vm701_vm1, %v7997_v49, 0.0 }
0x3edb   : > { %v7851_v57 = vmul.f32 %v17647_v3, %v7849_v17  ;;  %v8065_v17 = vld [vmem:[#allocation13 + $0xa8] sm:$0xff] }
0x3edc   : > { %v7854_v29 = vadd.f32 1.4214138, %v7852_v13  ;;  %v16656_v13 = vpack.c.bf16 %v8065_v17, %v8064_v12 }
0x3edd   : > { %v7853_v30 = vadd.f32 1.4214138, %v7851_v57 }
0x3ede   : > { %v7856_v46 = vmul.f32 %v17645_v22, %v7854_v29  ;;  %16657 = vmatprep.subr.bf16.mxu1 %v16656_v13 }
0x3edf   : > { %v7855_v9 = vmul.f32 %v17647_v3, %v7853_v30  ;;  %16659 = vmatpush3.bf16.msra.mxu1 %v16656_v13 }
0x3ee0   : > { %v7858_v7 = vadd.f32 -0.28449672, %v7856_v46 }
0x3ee1   : > { %v7857_v24 = vadd.f32 -0.28449672, %v7855_v9 }
0x3ee2   : > { %v7860_v19 = vmul.f32 %v17645_v22, %v7858_v7 }
0x3ee3   : > { %v7859_v8 = vmul.f32 %v17647_v3, %v7857_v24 }
0x3ee4   : > { %v7862_v23 = vadd.f32 0.2548296, %v7860_v19 }
0x3ee5   : > { %v7861_v60 = vadd.f32 0.2548296, %v7859_v8 }
0x3ee6   : > { %v7864_v36 = vmul.f32 %v17645_v22, %v7862_v23 }
0x3ee7   : > { %v7863_v26 = vmul.f32 %v17647_v3, %v7861_v60  ;;  %v7998_v3 = vmul.f32 %v7996_v11, %v7996_v11 }
0x3ee8   : > { %v7874_v2 = vmul.f32 %v17649_v56, %v7864_v36 }
0x3ee9   : > { %v7873_v25 = vmul.f32 %v17651_v5, %v7863_v26  ;;  %v8002_v48 = vsel %vm705_vm2, %v7998_v3, 0.0 }
0x3eea   : > { %v7876_v28 = vsub.f32 1.0, %v7874_v2 }
0x3eeb   : > { %v7875_v27 = vsub.f32 1.0, %v7873_v25 }
0x3eec   : > { %v7878_v31 = vmul.f32 %v7876_v28, %v7836_v44  ;;  %v19700_v44 = vld [vmem:[#allocation16 + $0x14] sm:$0x7] }
0x3eed   : > { %v7877_v33 = vmul.f32 %v7875_v27, %v7835_v4  ;;  %v19702_v27 = vld [vmem:[#allocation17 + $0x14] sm:$0x7] }
0x3eee   : > { %v7880_v37 = vadd.f32 1.0, %v7878_v31  ;;  %v8016_v31 = vrot.slane %v19700_v44, %v18908_v34 }
0x3eef   : > { %v7879_v38 = vadd.f32 1.0, %v7877_v33 }
0x3ef0   : > { %v7882_v43 = vmul.f32 %v7880_v37, %v7830_v39 }
0x3ef1   : > { %v7881_v41 = vmul.f32 %v7879_v38, %v7829_v55  ;;  %v8022_v38 = vrot.slane %v19702_v27, %v18908_v34 }
0x3ef3   : > { %15861 = vmatprep.mubr.msk.f32.mxu0 %vm2169_vm11, %v7881_v41 }
0x3ef4   : > { %15862 = vmatmul.mubr.msk.f32.vlgmr.msra.gmra.mrb[68].mxu0 %vm2169_vm11, %v7882_v43 }
0x3fc7   : > { %v15863_v62 = vpop.f32.mrb[68].mxu0 }
0x3fc8   : > { %v7978_v63 = vadd.f32 %v15863_v62, %v14624_v61  ;;  %v7972_v1 = vpop.f32.mrb[69].mxu0 }
0x3fc9   : > { %v7973_v0 = vadd.f32 %v14624_v61, %v7972_v1 }
0x3fca   : > { %v7982_v42 = vadd.f32 %v7978_v63, %v19663_v16  ;;  %v17280_v16 = vpack.i.bf16 %v8065_v17, %v8064_v12  ;;  %v8060_v17 = vrot.slane %v19702_v27, %v19062_v40 }
0x3fcb   : > { %v7981_v22 = vadd.f32 %v7973_v0, %v19666_v45  ;;  %v8067_v45 = vld [vmem:[#allocation13 + $0xb8] sm:$0xff] }
0x3fcc   : > { %v8028_v59 = vsel %vm701_vm1, %v7982_v42, 0.0  ;;  %v17285_v57 = vpack.i.bf16 %v8067_v45, %v8066_v20  ;;  %v16660_v29 = vpack.c.bf16 %v8067_v45, %v8066_v20 }
0x3fcd   : > { %8029 = vadd.xlane.f32.xlu1 %v8028_v59  ;;  %v8025_v15 = vsel %vm701_vm1, %v7981_v22, 0.0 }
0x3fce   : > { %8026 = vadd.xlane.f32.xlu0 %v8025_v15  ;;  %16661 = vmatprep.subr.bf16.mxu1 %v16660_v29  ;;  %v8054_v15 = vrot.slane %v19700_v44, %v19062_v40 }
0x3fcf   : > { %16663 = vmatpush3.bf16.msra.mxu1 %v16660_v29 }
0x3fd1   : > { %8003 = vadd.xlane.f32.xlu1 %v8002_v48 }
0x3fd2   : > { %8000 = vadd.xlane.f32.xlu0 %v7999_v10 }
0x405a   : > { %v8030_v30 = vpop.xlane.xlu1 %8029 }
0x405b   : > { %v8032_v46 = vmul.f32 0.03125, %v8030_v30  ;;  %v8027_v9 = vpop.xlane.xlu0 %8026 }
0x405c   : > { %v8031_v7 = vmul.f32 0.03125, %v8027_v9 }
0x405d   : > { %v8034_v24 = vsub.f32 %v7982_v42, %v8032_v46 }
0x405e   : > { %v8033_v19 = vsub.f32 %v7981_v22, %v8031_v7  ;;  %v8004_v8 = vpop.xlane.xlu1 %8003 }
0x405f   : > { %v8006_v23 = vmul.f32 0.03125, %v8004_v8  ;;  %v8001_v60 = vpop.xlane.xlu0 %8000  ;;  %v8036_v36 = vmul.f32 %v8034_v24, %v8034_v24 }
0x4060   : > { %v8005_v56 = vmul.f32 0.03125, %v8001_v60  ;;  %v8035_v26 = vmul.f32 %v8033_v19, %v8033_v19 }
0x4061   : > { %v8008_v5 = vadd.f32 1e-05, %v8006_v23  ;;  %v8040_v2 = vsel %vm701_vm1, %v8036_v36, 0.0 }
0x4062   : > { %v8007_v25 = vadd.f32 1e-05, %v8005_v56  ;;  %8041 = vadd.xlane.f32.xlu1 %v8040_v2  ;;  %v8037_v28 = vsel %vm701_vm1, %v8035_v26, 0.0 }
0x4063   : > { %17652 = vrsqrt.f32 %v8008_v5  ;;  %8038 = vadd.xlane.f32.xlu0 %v8037_v28 }
0x4064   : > { %17654 = vrsqrt.f32 %v8007_v25 }
0x406d   : > { %v17653_v4 = vpop.eup %17652 }
0x406e   : > { %v17655_v33 = vpop.eup %17654  ;;  %v8012_v37 = vmul.f32 %v17653_v4, %v7996_v11 }
0x406f   : > { %v8011_v55 = vmul.f32 %v17655_v33, %v7995_v54 }
0x4070   : > { %v8018_v39 = vmul.f32 %v8016_v31, %v8012_v37 }
0x4071   : > { %v8017_v41 = vmul.f32 %v8016_v31, %v8011_v55 }
0x4072   : > { %v8024_v18 = vadd.f32 %v8022_v38, %v8018_v39 }
0x4073   : > { %v8023_v43 = vadd.f32 %v8022_v38, %v8017_v41  ;;  %17286 = vrot.lane.b32.xlu1 %v17285_v57, %s18317_s1 }
0x4075   : > { %15872 = vmatprep.mubr.msk.f32.mxu1 %vm701_vm1, %v8023_v43 }
0x4076   : > { %15873 = vmatmul.mubr.msk.f32.vlgmr.msra.gmra.mrb[62].mxu1 %vm701_vm1, %v8024_v18 }
0x4079   : > { %17281 = vrot.lane.b32.xlu0 %v17280_v16, %s18317_s1 }
0x40ef   : > { %v8042_v52 = vpop.xlane.xlu1 %8041 }
0x40f0   : > { %v8044_v47 = vmul.f32 0.03125, %v8042_v52  ;;  %v8039_v50 = vpop.xlane.xlu0 %8038 }
0x40f1   : > { %v8043_v61 = vmul.f32 0.03125, %v8039_v50 }
0x40f2   : > { %v8046_v62 = vadd.f32 1e-05, %v8044_v47 }
0x40f3   : > { %v8045_v11 = vadd.f32 1e-05, %v8043_v61  ;;  %v17287_v63 = vpop.permute.xlu1 %17286 }
0x40f4   : > { %17656 = vrsqrt.f32 %v8046_v62  ;;  %v17282_v1 = vpop.permute.xlu0 %17281  ;;  %v17289_v54 = vunpack.i.h.bf16 %v17287_v63  ;;  %v17288_v0 = vunpack.i.l.bf16 %v17287_v63 }
0x40f5   : > { %17658 = vrsqrt.f32 %v8045_v11  ;;  %v17284_v42 = vunpack.i.h.bf16 %v17282_v1  ;;  %v17283_v22 = vunpack.i.l.bf16 %v17282_v1 }
0x40f6   : > { %v16668_v3 = vpack.c.bf16 %v17289_v54, %v17288_v0 }
0x40f7   : > { %v16664_v59 = vpack.c.bf16 %v17284_v42, %v17283_v22 }
0x40f9   : > { %16665 = vmatprep.subr.bf16.mxu1 %v16664_v59 }
0x40fa   : > { %16667 = vmatpush3.bf16.msra.mxu1 %v16664_v59 }
0x40fb   : > { %16669 = vmatprep.subr.bf16.mxu1 %v16668_v3 }
0x40fe   : > { %v17657_v49 = vpop.eup %17656  ;;  %16671 = vmatpush3.bf16.msra.mxu1 %v16668_v3 }
0x40ff   : > { %v17659_v48 = vpop.eup %17658  ;;  %v19714_v10 = vmul.f32 %v17657_v49, %v8034_v24 }
0x4100   : > { %v19716_v12 = vmul.f32 %v17659_v48, %v8033_v19 }
0x4101   : > { %v8056_v13 = vmul.f32 %v8054_v15, %v19714_v10 }
0x4102   : > { %v8055_v16 = vmul.f32 %v8054_v15, %v19716_v12 }
0x4103   : > { %v8062_v45 = vadd.f32 %v8060_v17, %v8056_v13 }
0x4104   : > { %v8061_v20 = vadd.f32 %v8060_v17, %v8055_v16 }
0x4106   : > { %15883 = vmatprep.mubr.msk.f32.mxu1 %vm701_vm1, %v8061_v20 }
0x4107   : > { %15884 = vmatmul.mubr.msk.f32.vlgmr.msra.gmra.mrb[64].mxu1 %vm701_vm1, %v8062_v45 }
0x4149   : > { %v15874_v57 = vpop.f32.mrb[62].mxu1 }
0x414a   : > { %v8140_v29 = vpop.f32.mrb[63].mxu1  ;;  %v19734_v19 = vmul.f32 0.17677669, %v15874_v57 }
0x414b   : > { %v19724_v30 = vmul.f32 0.17677669, %v8140_v29 }
0x414d   : > { %15890 = vmatprep.mubr.msk.f32.mxu0 %vm839_vm3, %v19724_v30 }
0x41da   : > { %v15885_v46 = vpop.f32.mrb[64].mxu1 }
0x41db   : > { %v8237_v9 = vpop.f32.mrb[65].mxu1 }
0x41dc   : > { %v16672_v7 = vpack.c.bf16 %v15885_v46, %v8237_v9  ;;  %v19728_v24 = vpack.i.bf16 %v15885_v46, %v8237_v9 }
0x41de   : > { %16674 = vmatprep.subr.msk.bf16.mxu0 %vm18944_vm4, %v16672_v7 }
0x41df   : > { %16677 = vmatpush3.bf16.xpose.msk.msra.mxu0 %vm18944_vm4, %v16672_v7 }
0x41e6   : > { %15891 = vmatmul.mubr.msk.f32.vlgmr.msra.gmra.mrb[70].mxu0 %vm839_vm3, %v19734_v19 }
0x42b9   : > { %v15892_v8 = vpop.f32.mrb[70].mxu0 }
0x42ba   : > { %v8331_v23 = vpop.f32.mrb[71].mxu0  ;;  %v8344_v60 = vsel %vm8343_vm5, %v15892_v8, -inf }
0x42bb   : > { %8345 = vmax.xlane.f32.xlu0 %v8344_v60  ;;  %v8340_v36 = vsel %vm6657_vm10, %v8331_v23, -inf }
0x42bc   : > { %8341 = vmax.xlane.f32.xlu1 %v8340_v36 }
0x4348   : > { %v8346_v56 = vpop.xlane.xlu0 %8345 }
0x4349   : > { %v8348_v26 = vsub.f32 %v15892_v8, %v8346_v56  ;;  %v8342_v5 = vpop.xlane.xlu1 %8341 }
0x434a   : > { %v8347_v2 = vsub.f32 %v8331_v23, %v8342_v5 }
0x434b   : > { %v8351_v25 = vmul.f32 1.442695, %v8348_v26 }
0x434c   : > { %v8349_v28 = vmul.f32 1.442695, %v8347_v2 }
0x434d   : > { %17660 = vpow2.f32 %v8351_v25 }
0x434e   : > { %17662 = vpow2.f32 %v8349_v28 }
0x4357   : > { %v17661_v31 = vpop.eup %17660 }
0x4358   : > { %v17663_v4 = vpop.eup %17662  ;;  %v8356_v33 = vsel %vm8343_vm5, %v17661_v31, 0.0 }
0x4359   : > { %8357 = vadd.xlane.f32.xlu1 %v8356_v33  ;;  %v8353_v37 = vsel %vm6657_vm10, %v17663_v4, 0.0 }
0x435a   : > { %8354 = vadd.xlane.f32.xlu0 %v8353_v37 }
0x436a   : > { %17296 = vrot.lane.b32.xlu1 %v19728_v24, %s18319_s17 }
0x436e   : > { %8450 = vrot.lane.b32.xlu1 %v19724_v30, %s18319_s17 }
0x4370   : > { %17291 = vrot.lane.b32.xlu0 %v19728_v24, %s18317_s1 }
0x4372   : > { %8452 = vrot.lane.b32.xlu1 %v19734_v19, %s18319_s17 }
0x4374   : > { %17301 = vrot.lane.b32.xlu0 %v19728_v24, %s18320_s10 }
0x4376   : > { %8812 = vrot.lane.b32.xlu1 %v19724_v30, %s18320_s10 }
0x4378   : > { %8814 = vrot.lane.b32.xlu0 %v19734_v19, %s18320_s10 }
0x43e6   : > { %v8358_v55 = vpop.xlane.xlu1 %8357 }
0x43e7   : > { %17664 = vrcp.f32 %v8358_v55  ;;  %v8355_v38 = vpop.xlane.xlu0 %8354 }
0x43e8   : > { %17666 = vrcp.f32 %v8355_v38 }
0x43ea   : > { %v17297_v39 = vpop.permute.xlu1 %17296 }
0x43eb   : > { %v17292_v41 = vpop.permute.xlu0 %17291  ;;  %v17299_v43 = vunpack.i.h.bf16 %v17297_v39  ;;  %v17298_v18 = vunpack.i.l.bf16 %v17297_v39 }
0x43ec   : > { %v17294_v52 = vunpack.i.h.bf16 %v17292_v41  ;;  %v17293_v47 = vunpack.i.l.bf16 %v17292_v41 }
0x43ed   : > { %v16682_v61 = vpack.c.bf16 %v17299_v43, %v17298_v18 }
0x43ee   : > { %v16678_v50 = vpack.c.bf16 %v17294_v52, %v17293_v47  ;;  %v8451_v0 = vpop.permute.xlu1 %8450 }
0x43ef   : > { %v17302_v63 = vpop.permute.xlu0 %17301 }
0x43f0   : > { %16679 = vmatprep.subr.bf16.mxu1 %v16678_v50  ;;  %v17304_v42 = vunpack.i.h.bf16 %v17302_v63  ;;  %v17303_v22 = vunpack.i.l.bf16 %v17302_v63 }
0x43f1   : > { %v17665_v62 = vpop.eup %17664  ;;  %16681 = vmatpush3.bf16.msra.mxu1 %v16678_v50 }
0x43f2   : > { %v17667_v11 = vpop.eup %17666  ;;  %16684 = vmatprep.subr.msk.bf16.mxu1 %vm18944_vm4, %v16682_v61  ;;  %v8362_v54 = vmul.f32 %v17665_v62, %v17661_v31  ;;  %v16692_v59 = vpack.c.bf16 %v17304_v42, %v17303_v22  ;;  %v8453_v3 = vpop.permute.xlu1 %8452 }
0x43f3   : > { %v8361_v1 = vmul.f32 %v17667_v11, %v17663_v4  ;;  %v8815_v49 = vpop.permute.xlu0 %8814 }
0x43f5   : > { %15897 = vmatprep.mubr.msk.f32.mxu1 %vm6657_vm10, %v8361_v1 }
0x43f6   : > { %15898 = vmatmul.mubr.msk.f32.vlgmr.msra.gmra.mrb[66].mxu1 %vm6657_vm10, %v8362_v54  ;;  %v8813_v15 = vpop.permute.xlu1 %8812 }
0x43f7   : > { %15904 = vmatprep.mubr.msk.f32.mxu1 %vm839_vm3, %v8451_v0 }
0x43fa   : > { %16687 = vmatpush3.bf16.xpose.msk.msra.mxu1 %vm18944_vm4, %v16682_v61 }
0x43fb   : > { %16694 = vmatprep.subr.msk.bf16.mxu1 %vm18944_vm4, %v16692_v59 }
0x4401   : > { %15905 = vmatmul.mubr.msk.f32.vlgmr.msra.gmra.mrb[68].mxu1 %vm839_vm3, %v8453_v3  ;;  %v8247_v3 = vld [vmem:[#allocation14 + $0xa0] sm:$0xff] }
0x4402   : > { %16697 = vmatpush3.bf16.xpose.msk.msra.mxu1 %vm18944_vm4, %v16692_v59  ;;  %15928 = vmatprep.mubr.msk.f32.mxu1 %vm839_vm3, %v8813_v15  ;;  %v8248_v59 = vld [vmem:[#allocation14 + $0xa8] sm:$0xff] }
0x4409   : > { %15929 = vmatmul.mubr.msk.f32.vlgmr.msra.gmra.mrb[70].mxu1 %vm839_vm3, %v8815_v49 }
0x44c9   : > { %v19770_v48 = vpop.f32.mrb[66].mxu1 }
0x44ca   : > { %v19772_v17 = vpop.f32.mrb[67].mxu1 }
0x44d4   : > { %v15906_v13 = vpop.f32.mrb[68].mxu1 }
0x44d5   : > { %v8532_v16 = vpop.f32.mrb[69].mxu1  ;;  %v8544_v20 = vsel %vm8343_vm5, %v15906_v13, -inf }
0x44d6   : > { %8545 = vmax.xlane.f32.xlu0 %v8544_v20  ;;  %v8541_v45 = vsel %vm6657_vm10, %v8532_v16, -inf }
0x44d7   : > { %8542 = vmax.xlane.f32.xlu1 %v8541_v45 }
0x44dc   : > { %v15930_v57 = vpop.f32.mrb[70].mxu1 }
0x44dd   : > { %v8894_v29 = vpop.f32.mrb[71].mxu1  ;;  %v8906_v38 = vsel %vm8343_vm5, %v15930_v57, -inf }
0x44de   : > { %v8903_v46 = vsel %vm6657_vm10, %v8894_v29, -inf }
0x44e8   : > { %17306 = vrot.lane.b32.xlu1 %v19728_v24, %s18316_s18 }
0x44ec   : > { %9095 = vrot.lane.b32.xlu1 %v19724_v30, %s18323_s26 }
0x44f0   : > { %9097 = vrot.lane.b32.xlu1 %v19734_v19, %s18323_s26 }
0x4514   : > { %8904 = vmax.xlane.f32.xlu1 %v8903_v46 }
0x4525   : > { %17316 = vrot.lane.b32.xlu1 %v19728_v24, %s18318_s2 }
0x4529   : > { %17321 = vrot.lane.b32.xlu1 %v19728_v24, %s18322_s25 }
0x4563   : > { %v8546_v9 = vpop.xlane.xlu0 %8545 }
0x4564   : > { %v8548_v7 = vsub.f32 %v15906_v13, %v8546_v9  ;;  %v8543_v8 = vpop.xlane.xlu1 %8542 }
0x4565   : > { %v8547_v23 = vsub.f32 %v8532_v16, %v8543_v8 }
0x4566   : > { %v8551_v60 = vmul.f32 1.442695, %v8548_v7 }
0x4567   : > { %v8549_v36 = vmul.f32 1.442695, %v8547_v23 }
0x4568   : > { %v17307_v56 = vpop.permute.xlu1 %17306 }
0x4569   : > { %17668 = vpow2.f32 %v8549_v36  ;;  %v17309_v30 = vunpack.i.h.bf16 %v17307_v56  ;;  %v17308_v26 = vunpack.i.l.bf16 %v17307_v56 }
0x456a   : > { %17670 = vpow2.f32 %v8551_v60 }
0x456b   : > { %v16688_v19 = vpack.c.bf16 %v17309_v30, %v17308_v26  ;;  %v8249_v30 = vld [vmem:[#allocation14 + $0xb0] sm:$0xff] }
0x456c   : > { %v9096_v5 = vpop.permute.xlu1 %9095 }
0x456d   : > { %16689 = vmatprep.subr.bf16.mxu0 %v16688_v19  ;;  %15947 = vmatprep.mubr.msk.f32.mxu1 %vm839_vm3, %v9096_v5 }
0x456e   : > { %16691 = vmatpush3.bf16.msra.mxu0 %v16688_v19 }
0x456f   : > { %15914 = vmatprep.subr.mxu0 %v8248_v59 }
0x4570   : > { %v9098_v4 = vpop.permute.xlu1 %9097 }
0x4573   : > { %v17669_v2 = vpop.eup %17668 }
0x4574   : > { %v8553_v25 = vsel %vm6657_vm10, %v17669_v2, 0.0  ;;  %v17671_v28 = vpop.eup %17670 }
0x4575   : > { %8554 = vadd.xlane.f32.xlu0 %v8553_v25  ;;  %v8556_v31 = vsel %vm8343_vm5, %v17671_v28, 0.0 }
0x4579   : > { %8557 = vadd.xlane.f32.xlu0 %v8556_v31 }
0x458f   : > { %17311 = vrot.lane.b32.xlu0 %v19728_v24, %s18323_s26 }
0x45a1   : > { %v8905_v33 = vpop.xlane.xlu1 %8904 }
0x45a2   : > { %v8909_v37 = vsub.f32 %v8894_v29, %v8905_v33 }
0x45a4   : > { %v8911_v55 = vmul.f32 1.442695, %v8909_v37 }
0x45a5   : > { %v17317_v49 = vpop.permute.xlu1 %17316 }
0x45a6   : > { %17672 = vpow2.f32 %v8911_v55  ;;  %v17319_v16 = vunpack.i.h.bf16 %v17317_v49  ;;  %v17318_v20 = vunpack.i.l.bf16 %v17317_v49 }
0x45a8   : > { %v16698_v29 = vpack.c.bf16 %v17319_v16, %v17318_v20 }
0x45a9   : > { %v17322_v23 = vpop.permute.xlu1 %17321 }
0x45aa   : > { %v17324_v26 = vunpack.i.h.bf16 %v17322_v23  ;;  %v17323_v19 = vunpack.i.l.bf16 %v17322_v23 }
0x45ac   : > { %v16708_v5 = vpack.c.bf16 %v17324_v26, %v17323_v19 }
0x45ae   : > { %8907 = vmax.xlane.f32.xlu0 %v8906_v38 }
0x45b0   : > { %v17673_v39 = vpop.eup %17672 }
0x45b1   : > { %v8915_v41 = vsel %vm6657_vm10, %v17673_v39, 0.0 }
0x45b2   : > { %8916 = vadd.xlane.f32.xlu0 %v8915_v41 }
0x4602   : > { %v8555_v43 = vpop.xlane.xlu0 %8554 }
0x4603   : > { %17674 = vrcp.f32 %v8555_v43  ;;  %v8250_v43 = vld [vmem:[#allocation14 + $0xb8] sm:$0xff] }
0x4606   : > { %v8558_v18 = vpop.xlane.xlu0 %8557 }
0x4607   : > { %17676 = vrcp.f32 %v8558_v18 }
0x460a   : > { %v17312_v52 = vpop.permute.xlu0 %17311 }
0x460b   : > { %v17314_v47 = vunpack.i.h.bf16 %v17312_v52  ;;  %v17313_v50 = vunpack.i.l.bf16 %v17312_v52 }
0x460d   : > { %v17675_v24 = vpop.eup %17674  ;;  %v16702_v61 = vpack.c.bf16 %v17314_v47, %v17313_v50 }
0x460e   : > { %v8561_v62 = vmul.f32 %v17675_v24, %v17669_v2 }
0x460f   : > { %16704 = vmatprep.subr.msk.bf16.mxu1 %vm18944_vm4, %v16702_v61 }
0x4610   : > { %15911 = vmatprep.mubr.msk.f32.mxu0 %vm6657_vm10, %v8561_v62  ;;  %16707 = vmatpush3.bf16.xpose.msk.msra.mxu1 %vm18944_vm4, %v16702_v61 }
0x4611   : > { %v17677_v11 = vpop.eup %17676 }
0x4612   : > { %v8562_v63 = vmul.f32 %v17677_v11, %v17671_v28 }
0x4614   : > { %15912 = vmatmul.mubr.msk.f32.vlgmr.msra.gmra.mrb[72].mxu0 %vm6657_vm10, %v8562_v63 }
0x4615   : > { %15915 = vmatpush3.msra.mxu0 %v8248_v59 }
0x4616   : > { %15919 = vmatprep.subr.mxu0 %v8247_v3 }
0x4617   : > { %15948 = vmatmul.mubr.msk.f32.vlgmr.msra.gmra.mrb[72].mxu1 %vm839_vm3, %v9098_v4 }
0x463b   : > { %v8908_v1 = vpop.xlane.xlu0 %8907 }
0x463c   : > { %v8910_v54 = vsub.f32 %v15930_v57, %v8908_v1 }
0x463e   : > { %v8913_v0 = vmul.f32 1.442695, %v8910_v54 }
0x463f   : > { %v8917_v15 = vpop.xlane.xlu0 %8916 }
0x4640   : > { %17678 = vpow2.f32 %v8913_v0 }
0x4641   : > { %17680 = vrcp.f32 %v8917_v15 }
0x464a   : > { %v17679_v42 = vpop.eup %17678 }
0x464b   : > { %v8918_v22 = vsel %vm8343_vm5, %v17679_v42, 0.0  ;;  %v17681_v8 = vpop.eup %17680 }
0x464c   : > { %8919 = vadd.xlane.f32.xlu0 %v8918_v22  ;;  %v8923_v56 = vmul.f32 %v17681_v8, %v17673_v39  ;;  %v9422_v8 = vld [vmem:[#allocation19 + $0xb8] sm:$0xff] }
0x46d9   : > { %v8920_v13 = vpop.xlane.xlu0 %8919 }
0x46da   : > { %17682 = vrcp.f32 %v8920_v13 }
0x46e4   : > { %v17683_v36 = vpop.eup %17682 }
0x46e7   : > { %v15913_v45 = vpop.f32.mrb[72].mxu0 }
0x46e8   : > { %v8641_v57 = vpop.f32.mrb[73].mxu0 }
0x46e9   : > { %15916 = vmatprep.mubr.msk.f32.mxu0 %vm839_vm3, %v8641_v57 }
0x46ea   : > { %15917 = vmatmul.mubr.msk.f32.vlgmr.msra.gmra.mrb[74].mxu0 %vm839_vm3, %v15913_v45  ;;  %v15949_v46 = vpop.f32.mrb[72].mxu1 }
0x46eb   : > { %15920 = vmatpush3.msra.mxu0 %v8247_v3  ;;  %15921 = vmatprep.mubr.msk.f32.mxu0 %vm839_vm3, %v19772_v17  ;;  %v9177_v9 = vpop.f32.mrb[73].mxu1  ;;  %v9189_v60 = vsel %vm8343_vm5, %v15949_v46, -inf  ;;  %v8924_v17 = vmul.f32 %v17683_v36, %v17679_v42 }
0x46ec   : > { %16699 = vmatprep.subr.bf16.mxu0 %v16698_v29  ;;  %v9186_v7 = vsel %vm6657_vm10, %v9177_v9, -inf }
0x46ed   : > { %9187 = vmax.xlane.f32.xlu0 %v9186_v7  ;;  %v9421_v7 = vld [vmem:[#allocation19 + $0xb0] sm:$0xff] }
0x46ee   : > { %v16716_v23 = vpack.c.bf16 %v9422_v8, %v9421_v7 }
0x46f1   : > { %9190 = vmax.xlane.f32.xlu0 %v9189_v60 }
0x46f2   : > { %15922 = vmatmul.mubr.msk.f32.vlgmr.msra.gmra.mrb[74].mxu0 %vm839_vm3, %v19770_v48 }
0x46f3   : > { %16701 = vmatpush3.bf16.msra.mxu0 %v16698_v29  ;;  %15935 = vmatprep.mubr.msk.f32.mxu0 %vm6657_vm10, %v8923_v56  ;;  %v9419_v29 = vld [vmem:[#allocation19 + $0xa0] sm:$0xff] }
0x46f4   : > { %15938 = vmatprep.subr.mxu0 %v8249_v30 }
0x46f6   : > { %15936 = vmatmul.mubr.msk.f32.vlgmr.msra.gmra.mrb[76].mxu0 %vm6657_vm10, %v8924_v17  ;;  %v19835_v17 = vsub.s32 2, %v18905_v32  ;;  %v9567_v32 = vld [vmem:[#allocation22 + $0x140] sm:$0xff] }
0x46f7   : > { %15939 = vmatpush3.msra.mxu0 %v8249_v30 }
0x46f8   : > { %16709 = vmatprep.subr.bf16.mxu0 %v16708_v5 }
0x477a   : > { %v9188_v2 = vpop.xlane.xlu0 %9187 }
0x477b   : > { %v9192_v25 = vsub.f32 %v9177_v9, %v9188_v2 }
0x477d   : > { %v9194_v28 = vmul.f32 1.442695, %v9192_v25 }
0x477e   : > { %v9191_v31 = vpop.xlane.xlu0 %9190 }
0x477f   : > { %17684 = vpow2.f32 %v9194_v28  ;;  %v9193_v4 = vsub.f32 %v15949_v46, %v9191_v31  ;;  %v9420_v46 = vld [vmem:[#allocation19 + $0xa8] sm:$0xff]  ;;  %v9415_v28 = vrot.slane %v19702_v27, %v19835_v17 }
0x4780   : > { %v16712_v9 = vpack.c.bf16 %v9420_v46, %v9419_v29  ;;  %v9571_v27 = vld [vmem:[#allocation22 + $0x160] sm:$0xff] }
0x4781   : > { %v9196_v33 = vmul.f32 1.442695, %v9193_v4 }
0x4782   : > { %16713 = vmatprep.subr.bf16.mxu1 %v16712_v9 }
0x4783   : > { %17686 = vpow2.f32 %v9196_v33  ;;  %16715 = vmatpush3.bf16.msra.mxu1 %v16712_v9 }
0x4784   : > { %16717 = vmatprep.subr.bf16.mxu1 %v16716_v23 }
0x4787   : > { %16719 = vmatpush3.bf16.msra.mxu1 %v16716_v23 }
0x4789   : > { %v17685_v37 = vpop.eup %17684 }
0x478a   : > { %v9198_v48 = vsel %vm6657_vm10, %v17685_v37, 0.0 }
0x478b   : > { %9199 = vadd.xlane.f32.xlu0 %v9198_v48 }
0x478d   : > { %v17687_v55 = vpop.eup %17686 }
0x478e   : > { %v9201_v38 = vsel %vm8343_vm5, %v17687_v55, 0.0 }
0x478f   : > { %9202 = vadd.xlane.f32.xlu0 %v9201_v38  ;;  %v9568_v38 = vld [vmem:[#allocation22 + $0x148] sm:$0xff] }
0x47c9   : > { %v15937_v39 = vpop.f32.mrb[76].mxu0 }
0x47ca   : > { %v9003_v41 = vpop.f32.mrb[77].mxu0 }
0x47cb   : > { %15940 = vmatprep.mubr.msk.f32.mxu0 %vm839_vm3, %v9003_v41  ;;  %v9570_v41 = vld [vmem:[#allocation22 + $0x158] sm:$0xff] }
0x47cc   : > { %15941 = vmatmul.mubr.msk.f32.vlgmr.msra.gmra.mrb[74].mxu0 %vm839_vm3, %v15937_v39  ;;  %v16720_v39 = vpack.c.bf16 %v9568_v38, %v9567_v32 }
0x47cd   : > { %16711 = vmatpush3.bf16.msra.mxu0 %v16708_v5  ;;  %v9409_v5 = vrot.slane %v19700_v44, %v19835_v17  ;;  %v9569_v44 = vld [vmem:[#allocation22 + $0x150] sm:$0xff] }
0x47ce   : > { %15957 = vmatprep.subr.mxu0 %v8250_v43 }
0x4818   : > { %v9200_v18 = vpop.xlane.xlu0 %9199 }
0x4819   : > { %17688 = vrcp.f32 %v9200_v18  ;;  %v9572_v18 = vld [vmem:[#allocation22 + $0x168] sm:$0xff] }
0x481c   : > { %v9203_v52 = vpop.xlane.xlu0 %9202 }
0x481d   : > { %17690 = vrcp.f32 %v9203_v52  ;;  %v16728_v52 = vpack.c.bf16 %v9572_v18, %v9571_v27 }
0x4823   : > { %v17689_v47 = vpop.eup %17688 }
0x4824   : > { %v9206_v50 = vmul.f32 %v17689_v47, %v17685_v37  ;;  %v9573_v47 = vld [vmem:[#allocation22 + $0x170] sm:$0xff] }
0x4826   : > { %15954 = vmatprep.mubr.msk.f32.mxu0 %vm6657_vm10, %v9206_v50  ;;  %v9574_v50 = vld [vmem:[#allocation22 + $0x178] sm:$0xff] }
0x4827   : > { %v17691_v24 = vpop.eup %17690 }
0x4828   : > { %v9207_v61 = vmul.f32 %v17691_v24, %v17687_v55  ;;  %v16732_v24 = vpack.c.bf16 %v9574_v50, %v9573_v47 }
0x482a   : > { %15955 = vmatmul.mubr.msk.f32.vlgmr.msra.gmra.mrb[78].mxu0 %vm6657_vm10, %v9207_v61  ;;  %v14663_v61 = vld [vmem:[#allocation20 + $0x5] ss:$0 sm:$0xff] }
0x482b   : > { %15958 = vmatpush3.msra.mxu0 %v8250_v43  ;;  %v16724_v43 = vpack.c.bf16 %v9570_v41, %v9569_v44 }
0x482c   : > { %16721 = vmatprep.subr.bf16.mxu0 %v16720_v39 }
0x48fd   : > { %v15956_v62 = vpop.f32.mrb[78].mxu0 }
0x48fe   : > { %v9286_v11 = vpop.f32.mrb[79].mxu0 }
0x48ff   : > { %15959 = vmatprep.mubr.msk.f32.mxu0 %vm839_vm3, %v9286_v11 }
0x4900   : > { %15960 = vmatmul.mubr.msk.f32.vlgmr.msra.gmra.mrb[74].mxu0 %vm839_vm3, %v15956_v62 }
0x4901   : > { %16723 = vmatpush3.bf16.msra.mxu0 %v16720_v39 }
0x4902   : > { %16725 = vmatprep.subr.bf16.mxu0 %v16724_v43 }
0x4905   : > { %16727 = vmatpush3.bf16.msra.mxu0 %v16724_v43 }
0x4906   : > { %16729 = vmatprep.subr.bf16.mxu0 %v16728_v52 }
0x4909   : > { %16731 = vmatpush3.bf16.msra.mxu0 %v16728_v52 }
0x490a   : > { %16733 = vmatprep.subr.bf16.mxu0 %v16732_v24 }
0x490d   : > { %16735 = vmatpush3.bf16.msra.mxu0 %v16732_v24 }
0x49d3   : > { %v15961_v63 = vpop.f32.mrb[74].mxu0 }
0x49d4   : > { %v19821_v1 = vadd.f32 %v15961_v63, %v19533_v21  ;;  %v9367_v54 = vpop.f32.mrb[75].mxu0 }
0x49d5   : > { %v19824_v0 = vadd.f32 %v9367_v54, %v19508_v14 }
0x49d6   : > { %v9383_v42 = vsel %vm705_vm2, %v19821_v1, 0.0 }
0x49d7   : > { %9384 = vadd.xlane.f32.xlu1 %v9383_v42  ;;  %v9380_v22 = vsel %vm701_vm1, %v19824_v0, 0.0 }
0x49d8   : > { %9381 = vadd.xlane.f32.xlu0 %v9380_v22 }
0x4a64   : > { %v9385_v59 = vpop.xlane.xlu1 %9384 }
0x4a65   : > { %v9387_v3 = vmul.f32 0.03125, %v9385_v59  ;;  %v9382_v15 = vpop.xlane.xlu0 %9381 }
0x4a66   : > { %v9386_v49 = vmul.f32 0.03125, %v9382_v15 }
0x4a67   : > { %v9389_v13 = vsub.f32 %v19821_v1, %v9387_v3 }
0x4a68   : > { %v9388_v21 = vsub.f32 %v19824_v0, %v9386_v49 }
0x4a69   : > { %v9391_v45 = vmul.f32 %v9389_v13, %v9389_v13 }
0x4a6a   : > { %v9390_v16 = vmul.f32 %v9388_v21, %v9388_v21 }
0x4a6b   : > { %v9395_v57 = vsel %vm705_vm2, %v9391_v45, 0.0 }
0x4a6c   : > { %v9392_v20 = vsel %vm701_vm1, %v9390_v16, 0.0 }
0x4a6d   : > { %9393 = vadd.xlane.f32.xlu0 %v9392_v20 }
0x4a71   : > { %9396 = vadd.xlane.f32.xlu0 %v9395_v57 }
0x4afa   : > { %v9394_v60 = vpop.xlane.xlu0 %9393 }
0x4afb   : > { %v9398_v36 = vmul.f32 0.03125, %v9394_v60 }
0x4afd   : > { %v9400_v56 = vadd.f32 1e-05, %v9398_v36 }
0x4afe   : > { %v9397_v30 = vpop.xlane.xlu0 %9396 }
0x4aff   : > { %17692 = vrsqrt.f32 %v9400_v56  ;;  %v9399_v26 = vmul.f32 0.03125, %v9397_v30 }
0x4b01   : > { %v9401_v19 = vadd.f32 1e-05, %v9399_v26 }
0x4b03   : > { %17694 = vrsqrt.f32 %v9401_v19 }
0x4b09   : > { %v17693_v2 = vpop.eup %17692 }
0x4b0a   : > { %v9404_v25 = vmul.f32 %v17693_v2, %v9388_v21 }
0x4b0c   : > { %v9410_v31 = vmul.f32 %v9409_v5, %v9404_v25 }
0x4b0d   : > { %v17695_v4 = vpop.eup %17694 }
0x4b0e   : > { %v9405_v33 = vmul.f32 %v17695_v4, %v9389_v13  ;;  %v9416_v37 = vadd.f32 %v9415_v28, %v9410_v31 }
0x4b10   : > { %v9411_v48 = vmul.f32 %v9409_v5, %v9405_v33  ;;  %15970 = vmatprep.mubr.msk.f32.mxu1 %vm701_vm1, %v9416_v37 }
0x4b12   : > { %v9417_v55 = vadd.f32 %v9415_v28, %v9411_v48 }
0x4b14   : > { %15971 = vmatmul.mubr.msk.f32.vlgmr.msra.gmra.mrb[74].mxu1 %vm701_vm1, %v9417_v55 }
0x4be7   : > { %v15972_v62 = vpop.f32.mrb[74].mxu1 }
0x4be8   : > { %v9509_v11 = vadd.f32 %v15972_v62, %v14663_v61  ;;  %v9503_v63 = vpop.f32.mrb[75].mxu1 }
0x4be9   : > { %v9504_v54 = vadd.f32 %v14663_v61, %v9503_v63 }
0x4bea   : > { %v9515_v42 = vmul.f32 0.70710677, %v9509_v11  ;;  %v9513_v62 = vmul.f32 0.5, %v9509_v11 }
0x4beb   : > { %v9514_v22 = vmul.f32 0.70710677, %v9504_v54  ;;  %v9512_v24 = vmul.f32 0.5, %v9504_v54 }
0x4bec   : > { %v9521_v59 = vand.u32 2147483647, %v9515_v42  ;;  %vm9517_vm6 = vcmp.ge.f32.partialorder %v9515_v42, 0.0  ;;  %v14666_v42 = vld [vmem:[#allocation23 + $0x5] ss:$0 sm:$0xff] }
0x4bed   : > { %v9520_v3 = vand.u32 2147483647, %v9514_v22  ;;  %vm9516_vm7 = vcmp.ge.f32.partialorder %v9514_v22, 0.0  ;;  %v9519_v43 = vsel %vm9517_vm6, 1.0, %v18328_v51 }
0x4bee   : > { %v9523_v15 = vmul.f32 0.3275911, %v9521_v59  ;;  %v9549_v16 = vsub.f32 0.0, %v9521_v59  ;;  %v9518_v52 = vsel %vm9516_vm7, 1.0, %v18328_v51 }
0x4bef   : > { %v9522_v49 = vmul.f32 0.3275911, %v9520_v3  ;;  %v9548_v20 = vsub.f32 0.0, %v9520_v3 }
0x4bf0   : > { %v9525_v13 = vadd.f32 1.0, %v9523_v15  ;;  %v9551_v57 = vmul.f32 %v9549_v16, %v9521_v59  ;;  %v9723_v16 = vld [vmem:[#allocation13 + $0xd0] sm:$0xff] }
0x4bf1   : > { %v9524_v21 = vadd.f32 1.0, %v9522_v49  ;;  %v9550_v9 = vmul.f32 %v9548_v20, %v9520_v3  ;;  %v9724_v20 = vld [vmem:[#allocation13 + $0xd8] sm:$0xff] }
0x4bf2   : > { %17696 = vrcp.f32 %v9525_v13  ;;  %v9554_v23 = vmul.f32 1.442695, %v9551_v57 }
0x4bf3   : > { %17698 = vrcp.f32 %v9524_v21  ;;  %v9552_v56 = vmul.f32 1.442695, %v9550_v9 }
0x4bf4   : > { %17700 = vpow2.f32 %v9554_v23 }
0x4bf5   : > { %17702 = vpow2.f32 %v9552_v56  ;;  %v9722_v56 = vld [vmem:[#allocation13 + $0xc8] sm:$0xff] }
0x4bfc   : > { %v17697_v45 = vpop.eup %17696 }
0x4bfd   : > { %v17699_v29 = vpop.eup %17698  ;;  %v9531_v46 = vmul.f32 1.0614054, %v17697_v45 }
0x4bfe   : > { %v9530_v7 = vmul.f32 1.0614054, %v17699_v29  ;;  %v17701_v55 = vpop.eup %17700 }
0x4bff   : > { %v9533_v8 = vadd.f32 -1.4531521, %v9531_v46  ;;  %v17703_v38 = vpop.eup %17702 }
0x4c00   : > { %v9532_v60 = vadd.f32 -1.4531521, %v9530_v7 }
0x4c01   : > { %v9535_v36 = vmul.f32 %v17697_v45, %v9533_v8 }
0x4c02   : > { %v9534_v30 = vmul.f32 %v17699_v29, %v9532_v60 }
0x4c03   : > { %v9537_v26 = vadd.f32 1.4214138, %v9535_v36  ;;  %v9721_v36 = vld [vmem:[#allocation13 + $0xc0] sm:$0xff] }
0x4c04   : > { %v9536_v19 = vadd.f32 1.4214138, %v9534_v30  ;;  %v17325_v30 = vpack.i.bf16 %v9722_v56, %v9721_v36 }
0x4c05   : > { %v9539_v5 = vmul.f32 %v17697_v45, %v9537_v26  ;;  %v16736_v26 = vpack.c.bf16 %v9722_v56, %v9721_v36 }
0x4c06   : > { %v9538_v2 = vmul.f32 %v17699_v29, %v9536_v19  ;;  %v16740_v19 = vpack.c.bf16 %v9724_v20, %v9723_v16 }
0x4c07   : > { %v9541_v25 = vadd.f32 -0.28449672, %v9539_v5  ;;  %16737 = vmatprep.subr.bf16.mxu1 %v16736_v26 }
0x4c08   : > { %v9540_v28 = vadd.f32 -0.28449672, %v9538_v2  ;;  %16739 = vmatpush3.bf16.msra.mxu1 %v16736_v26 }
0x4c09   : > { %v9543_v31 = vmul.f32 %v17697_v45, %v9541_v25  ;;  %16741 = vmatprep.subr.bf16.mxu1 %v16740_v19 }
0x4c0a   : > { %v9542_v4 = vmul.f32 %v17699_v29, %v9540_v28 }
0x4c0b   : > { %v9545_v33 = vadd.f32 0.2548296, %v9543_v31 }
0x4c0c   : > { %v9544_v37 = vadd.f32 0.2548296, %v9542_v4  ;;  %16743 = vmatpush3.bf16.msra.mxu1 %v16740_v19 }
0x4c0d   : > { %v9547_v48 = vmul.f32 %v17697_v45, %v9545_v33  ;;  %v17330_v45 = vpack.i.bf16 %v9724_v20, %v9723_v16 }
0x4c0e   : > { %v9546_v32 = vmul.f32 %v17699_v29, %v9544_v37 }
0x4c0f   : > { %v9557_v39 = vmul.f32 %v17701_v55, %v9547_v48  ;;  %17331 = vrot.lane.b32.xlu1 %v17330_v45, %s18317_s1 }
0x4c10   : > { %v9556_v44 = vmul.f32 %v17703_v38, %v9546_v32  ;;  %v19863_v32 = vld [vmem:[#allocation16 + $0x18] sm:$0x7] }
0x4c11   : > { %v9559_v41 = vsub.f32 1.0, %v9557_v39  ;;  %v9699_v38 = vrot.slane %v19863_v32, %v18908_v34 }
0x4c12   : > { %v9558_v27 = vsub.f32 1.0, %v9556_v44  ;;  %v19867_v44 = vld [vmem:[#allocation17 + $0x18] sm:$0x7] }
0x4c13   : > { %v9561_v18 = vmul.f32 %v9559_v41, %v9519_v43  ;;  %v9705_v43 = vrot.slane %v19867_v44, %v18908_v34 }
0x4c14   : > { %v9560_v47 = vmul.f32 %v9558_v27, %v9518_v52 }
0x4c15   : > { %v9563_v50 = vadd.f32 1.0, %v9561_v18  ;;  %v9711_v18 = vrot.slane %v19863_v32, %v19062_v40 }
0x4c16   : > { %v9562_v61 = vadd.f32 1.0, %v9560_v47 }
0x4c17   : > { %v9565_v59 = vmul.f32 %v9563_v50, %v9513_v62 }
0x4c18   : > { %v9564_v63 = vmul.f32 %v9562_v61, %v9512_v24 }
0x4c1a   : > { %15989 = vmatprep.mubr.msk.f32.mxu0 %vm2169_vm11, %v9564_v63  ;;  %v9712_v63 = vmul.f32 %v9711_v18, %v19716_v12 }
0x4c1b   : > { %15990 = vmatmul.mubr.msk.f32.vlgmr.msra.gmra.mrb[80].mxu0 %vm2169_vm11, %v9565_v59  ;;  %v9717_v59 = vrot.slane %v19867_v44, %v19062_v40 }
0x4c81   : > { %v17332_v27 = vpop.permute.xlu1 %17331 }
0x4c82   : > { %v17334_v61 = vunpack.i.h.bf16 %v17332_v27  ;;  %v17333_v62 = vunpack.i.l.bf16 %v17332_v27 }
0x4cee   : > { %v15991_v22 = vpop.f32.mrb[80].mxu0 }
0x4cef   : > { %v9655_v3 = vpop.f32.mrb[81].mxu0  ;;  %v9661_v15 = vadd.f32 %v15991_v22, %v14666_v42 }
0x4cf0   : > { %v9656_v49 = vadd.f32 %v14666_v42, %v9655_v3  ;;  %v16748_v3 = vpack.c.bf16 %v17334_v61, %v17333_v62 }
0x4cf1   : > { %v19851_v21 = vadd.f32 %v9661_v15, %v19821_v1  ;;  %v9718_v15 = vadd.f32 %v9717_v59, %v9712_v63 }
0x4cf2   : > { %v19848_v13 = vadd.f32 %v9656_v49, %v19824_v0  ;;  %v9713_v49 = vmul.f32 %v9711_v18, %v19714_v10 }
0x4cf3   : > { %v9673_v54 = vsel %vm705_vm2, %v19851_v21, 0.0 }
0x4cf4   : > { %v9670_v11 = vsel %vm701_vm1, %v19848_v13, 0.0 }
0x4cf5   : > { %9671 = vadd.xlane.f32.xlu0 %v9670_v11  ;;  %v9719_v11 = vadd.f32 %v9717_v59, %v9713_v49 }
0x4cf9   : > { %9674 = vadd.xlane.f32.xlu0 %v9673_v54 }
0x4d82   : > { %v9672_v57 = vpop.xlane.xlu0 %9671 }
0x4d83   : > { %v9676_v29 = vmul.f32 0.03125, %v9672_v57 }
0x4d85   : > { %v9678_v0 = vsub.f32 %v19848_v13, %v9676_v29 }
0x4d86   : > { %v9675_v46 = vpop.xlane.xlu0 %9674 }
0x4d87   : > { %v9677_v1 = vmul.f32 0.03125, %v9675_v46  ;;  %v9680_v9 = vmul.f32 %v9678_v0, %v9678_v0 }
0x4d89   : > { %v9679_v7 = vsub.f32 %v19851_v21, %v9677_v1  ;;  %v9682_v8 = vsel %vm701_vm1, %v9680_v9, 0.0 }
0x4d8a   : > { %9683 = vadd.xlane.f32.xlu0 %v9682_v8 }
0x4d8b   : > { %v9681_v23 = vmul.f32 %v9679_v7, %v9679_v7 }
0x4d8d   : > { %v9685_v60 = vsel %vm705_vm2, %v9681_v23, 0.0 }
0x4d8e   : > { %9686 = vadd.xlane.f32.xlu0 %v9685_v60 }
0x4da4   : > { %17326 = vrot.lane.b32.xlu0 %v17325_v30, %s18317_s1 }
0x4e17   : > { %v9684_v5 = vpop.xlane.xlu0 %9683 }
0x4e18   : > { %v9688_v2 = vmul.f32 0.03125, %v9684_v5 }
0x4e1a   : > { %v9690_v25 = vadd.f32 1e-05, %v9688_v2 }
0x4e1b   : > { %v9687_v28 = vpop.xlane.xlu0 %9686 }
0x4e1c   : > { %17704 = vrsqrt.f32 %v9690_v25  ;;  %v9689_v31 = vmul.f32 0.03125, %v9687_v28 }
0x4e1e   : > { %v9691_v4 = vadd.f32 1e-05, %v9689_v31 }
0x4e1f   : > { %v17327_v33 = vpop.permute.xlu0 %17326 }
0x4e20   : > { %17706 = vrsqrt.f32 %v9691_v4  ;;  %v17329_v37 = vunpack.i.h.bf16 %v17327_v33  ;;  %v17328_v48 = vunpack.i.l.bf16 %v17327_v33 }
0x4e22   : > { %v16744_v55 = vpack.c.bf16 %v17329_v37, %v17328_v48 }
0x4e24   : > { %16745 = vmatprep.subr.bf16.mxu1 %v16744_v55 }
0x4e26   : > { %v17705_v39 = vpop.eup %17704 }
0x4e27   : > { %v9694_v41 = vmul.f32 %v17705_v39, %v9678_v0 }
0x4e29   : > { %v9700_v52 = vmul.f32 %v9699_v38, %v9694_v41 }
0x4e2a   : > { %v17707_v47 = vpop.eup %17706 }
0x4e2b   : > { %v9695_v50 = vmul.f32 %v17707_v47, %v9679_v7  ;;  %v9706_v24 = vadd.f32 %v9705_v43, %v9700_v52 }
0x4e2d   : > { %v9701_v42 = vmul.f32 %v9699_v38, %v9695_v50  ;;  %16000 = vmatprep.mubr.msk.f32.mxu1 %vm701_vm1, %v9706_v24 }
0x4e2f   : > { %v9707_v22 = vadd.f32 %v9705_v43, %v9701_v42 }
0x4e31   : > { %16001 = vmatmul.mubr.msk.f32.vlgmr.msra.gmra.mrb[76].mxu1 %vm701_vm1, %v9707_v22 }
0x4e32   : > { %16747 = vmatpush3.bf16.msra.mxu1 %v16744_v55  ;;  %16011 = vmatprep.mubr.msk.f32.mxu1 %vm701_vm1, %v9718_v15 }
0x4e33   : > { %16749 = vmatprep.subr.bf16.mxu1 %v16748_v3 }
0x4e36   : > { %16751 = vmatpush3.bf16.msra.mxu1 %v16748_v3 }
0x4e39   : > { %16012 = vmatmul.mubr.msk.f32.vlgmr.msra.gmra.mrb[78].mxu1 %vm701_vm1, %v9719_v11 }
0x4f04   : > { %v16002_v54 = vpop.f32.mrb[76].mxu1 }
0x4f05   : > { %v9797_v16 = vpop.f32.mrb[77].mxu1  ;;  %v19891_v46 = vmul.f32 0.17677669, %v16002_v54 }
0x4f06   : > { %v19881_v20 = vmul.f32 0.17677669, %v9797_v16 }
0x4f08   : > { %16018 = vmatprep.mubr.msk.f32.mxu0 %vm839_vm3, %v19881_v20 }
0x4f0c   : > { %v16013_v45 = vpop.f32.mrb[78].mxu1 }
0x4f0d   : > { %v9894_v57 = vpop.f32.mrb[79].mxu1 }
0x4f0e   : > { %v16752_v29 = vpack.c.bf16 %v16013_v45, %v9894_v57  ;;  %v19885_v0 = vpack.i.bf16 %v16013_v45, %v9894_v57 }
0x4f10   : > { %16754 = vmatprep.subr.msk.bf16.mxu0 %vm18944_vm4, %v16752_v29 }
0x4f11   : > { %16757 = vmatpush3.bf16.xpose.msk.msra.mxu0 %vm18944_vm4, %v16752_v29 }
0x4f18   : > { %16019 = vmatmul.mubr.msk.f32.vlgmr.msra.gmra.mrb[82].mxu0 %vm839_vm3, %v19891_v46 }
0x4feb   : > { %v16020_v1 = vpop.f32.mrb[82].mxu0 }
0x4fec   : > { %v9988_v9 = vpop.f32.mrb[83].mxu0  ;;  %v10000_v7 = vsel %vm8343_vm5, %v16020_v1, -inf }
0x4fed   : > { %10001 = vmax.xlane.f32.xlu1 %v10000_v7  ;;  %v9997_v8 = vsel %vm6657_vm10, %v9988_v9, -inf }
0x4fee   : > { %9998 = vmax.xlane.f32.xlu0 %v9997_v8 }
0x4ffe   : > { %17341 = vrot.lane.b32.xlu1 %v19885_v0, %s18319_s17 }
0x5002   : > { %10106 = vrot.lane.b32.xlu1 %v19881_v20, %s18319_s17 }
0x5006   : > { %17346 = vrot.lane.b32.xlu1 %v19885_v0, %s18320_s10 }
0x500a   : > { %10470 = vrot.lane.b32.xlu1 %v19891_v46, %s18320_s10 }
0x507a   : > { %v10002_v23 = vpop.xlane.xlu1 %10001 }
0x507b   : > { %v10004_v60 = vsub.f32 %v16020_v1, %v10002_v23  ;;  %v9999_v36 = vpop.xlane.xlu0 %9998 }
0x507c   : > { %v10003_v56 = vsub.f32 %v9988_v9, %v9999_v36 }
0x507d   : > { %v10007_v30 = vmul.f32 1.442695, %v10004_v60 }
0x507e   : > { %v10005_v26 = vmul.f32 1.442695, %v10003_v56  ;;  %v17342_v31 = vpop.permute.xlu1 %17341 }
0x507f   : > { %17708 = vpow2.f32 %v10007_v30  ;;  %v17344_v37 = vunpack.i.h.bf16 %v17342_v31  ;;  %v17343_v48 = vunpack.i.l.bf16 %v17342_v31 }
0x5080   : > { %17710 = vpow2.f32 %v10005_v26 }
0x5081   : > { %v16762_v43 = vpack.c.bf16 %v17344_v37, %v17343_v48 }
0x5082   : > { %v10107_v55 = vpop.permute.xlu1 %10106 }
0x5086   : > { %v17347_v52 = vpop.permute.xlu1 %17346 }
0x5087   : > { %v17349_v24 = vunpack.i.h.bf16 %v17347_v52  ;;  %v17348_v61 = vunpack.i.l.bf16 %v17347_v52 }
0x5089   : > { %v17709_v19 = vpop.eup %17708  ;;  %v16772_v62 = vpack.c.bf16 %v17349_v24, %v17348_v61 }
0x508a   : > { %v10012_v5 = vsel %vm8343_vm5, %v17709_v19, 0.0  ;;  %v17711_v2 = vpop.eup %17710  ;;  %v10471_v42 = vpop.permute.xlu1 %10470 }
0x508b   : > { %10013 = vadd.xlane.f32.xlu0 %v10012_v5  ;;  %v10009_v25 = vsel %vm6657_vm10, %v17711_v2, 0.0 }
0x508f   : > { %10010 = vadd.xlane.f32.xlu0 %v10009_v25 }
0x50a5   : > { %17336 = vrot.lane.b32.xlu0 %v19885_v0, %s18317_s1 }
0x50a9   : > { %10108 = vrot.lane.b32.xlu0 %v19891_v46, %s18319_s17 }
0x50ad   : > { %10468 = vrot.lane.b32.xlu0 %v19881_v20, %s18320_s10 }
0x5118   : > { %v10014_v28 = vpop.xlane.xlu0 %10013 }
0x5119   : > { %17712 = vrcp.f32 %v10014_v28 }
0x511c   : > { %v10011_v4 = vpop.xlane.xlu0 %10010 }
0x511d   : > { %17714 = vrcp.f32 %v10011_v4 }
0x5120   : > { %v17337_v33 = vpop.permute.xlu0 %17336 }
0x5121   : > { %v17339_v38 = vunpack.i.h.bf16 %v17337_v33  ;;  %v17338_v39 = vunpack.i.l.bf16 %v17337_v33 }
0x5123   : > { %v16758_v41 = vpack.c.bf16 %v17339_v38, %v17338_v39  ;;  %v17713_v27 = vpop.eup %17712 }
0x5124   : > { %v10018_v50 = vmul.f32 %v17713_v27, %v17709_v19  ;;  %v10109_v63 = vpop.permute.xlu0 %10108 }
0x5125   : > { %16759 = vmatprep.subr.bf16.mxu1 %v16758_v41 }
0x5126   : > { %16761 = vmatpush3.bf16.msra.mxu1 %v16758_v41 }
0x5127   : > { %v17715_v18 = vpop.eup %17714  ;;  %16764 = vmatprep.subr.msk.bf16.mxu1 %vm18944_vm4, %v16762_v43 }
0x5128   : > { %v10017_v47 = vmul.f32 %v17715_v18, %v17711_v2  ;;  %v10469_v59 = vpop.permute.xlu0 %10468 }
0x512a   : > { %16025 = vmatprep.mubr.msk.f32.mxu1 %vm6657_vm10, %v10017_v47 }
0x512b   : > { %16026 = vmatmul.mubr.msk.f32.vlgmr.msra.gmra.mrb[80].mxu1 %vm6657_vm10, %v10018_v50 }
0x512c   : > { %16032 = vmatprep.mubr.msk.f32.mxu1 %vm839_vm3, %v10107_v55 }
0x512f   : > { %16767 = vmatpush3.bf16.xpose.msk.msra.mxu1 %vm18944_vm4, %v16762_v43 }
0x5130   : > { %16774 = vmatprep.subr.msk.bf16.mxu1 %vm18944_vm4, %v16772_v62 }
0x5136   : > { %16033 = vmatmul.mubr.msk.f32.vlgmr.msra.gmra.mrb[82].mxu1 %vm839_vm3, %v10109_v63  ;;  %v9905_v63 = vld [vmem:[#allocation14 + $0xc8] sm:$0xff] }
0x5137   : > { %16777 = vmatpush3.bf16.xpose.msk.msra.mxu1 %vm18944_vm4, %v16772_v62  ;;  %16056 = vmatprep.mubr.msk.f32.mxu1 %vm839_vm3, %v10469_v59  ;;  %v9904_v59 = vld [vmem:[#allocation14 + $0xc0] sm:$0xff] }
0x513e   : > { %16057 = vmatmul.mubr.msk.f32.vlgmr.msra.gmra.mrb[84].mxu1 %vm839_vm3, %v10471_v42 }
0x51fe   : > { %v19927_v22 = vpop.f32.mrb[80].mxu1 }
0x51ff   : > { %v19929_v3 = vpop.f32.mrb[81].mxu1 }
0x5209   : > { %v16034_v15 = vpop.f32.mrb[82].mxu1 }
0x520a   : > { %v10188_v49 = vpop.f32.mrb[83].mxu1  ;;  %v10200_v11 = vsel %vm8343_vm5, %v16034_v15, -inf }
0x520b   : > { %10201 = vmax.xlane.f32.xlu1 %v10200_v11  ;;  %v10197_v54 = vsel %vm6657_vm10, %v10188_v49, -inf }
0x520c   : > { %10198 = vmax.xlane.f32.xlu0 %v10197_v54 }
0x5211   : > { %v16058_v16 = vpop.f32.mrb[84].mxu1 }
0x5212   : > { %v10550_v45 = vpop.f32.mrb[85].mxu1  ;;  %v10562_v57 = vsel %vm8343_vm5, %v16058_v16, -inf }
0x5213   : > { %v10559_v2 = vsel %vm6657_vm10, %v10550_v45, -inf }
0x521c   : > { %17351 = vrot.lane.b32.xlu1 %v19885_v0, %s18316_s18 }
0x5220   : > { %10751 = vrot.lane.b32.xlu1 %v19881_v20, %s18323_s26 }
0x5224   : > { %10753 = vrot.lane.b32.xlu1 %v19891_v46, %s18323_s26 }
0x5248   : > { %10563 = vmax.xlane.f32.xlu1 %v10562_v57 }
0x5259   : > { %17361 = vrot.lane.b32.xlu1 %v19885_v0, %s18318_s2 }
0x525d   : > { %17366 = vrot.lane.b32.xlu1 %v19885_v0, %s18322_s25 }
0x5298   : > { %v10202_v29 = vpop.xlane.xlu1 %10201 }
0x5299   : > { %v10204_v1 = vsub.f32 %v16034_v15, %v10202_v29  ;;  %v10199_v9 = vpop.xlane.xlu0 %10198 }
0x529a   : > { %v10203_v7 = vsub.f32 %v10188_v49, %v10199_v9 }
0x529b   : > { %v10207_v8 = vmul.f32 1.442695, %v10204_v1 }
0x529c   : > { %v10205_v23 = vmul.f32 1.442695, %v10203_v7  ;;  %v17352_v60 = vpop.permute.xlu1 %17351 }
0x529d   : > { %v17354_v20 = vunpack.i.h.bf16 %v17352_v60  ;;  %v17353_v36 = vunpack.i.l.bf16 %v17352_v60 }
0x529e   : > { %17716 = vpow2.f32 %v10205_v23 }
0x529f   : > { %v16768_v46 = vpack.c.bf16 %v17354_v20, %v17353_v36  ;;  %17718 = vpow2.f32 %v10207_v8  ;;  %v9906_v36 = vld [vmem:[#allocation14 + $0xd0] sm:$0xff] }
0x52a0   : > { %v10752_v56 = vpop.permute.xlu1 %10751 }
0x52a1   : > { %16769 = vmatprep.subr.bf16.mxu0 %v16768_v46  ;;  %16075 = vmatprep.mubr.msk.f32.mxu1 %vm839_vm3, %v10752_v56 }
0x52a2   : > { %16771 = vmatpush3.bf16.msra.mxu0 %v16768_v46 }
0x52a3   : > { %16042 = vmatprep.subr.mxu0 %v9905_v63 }
0x52a4   : > { %v10754_v39 = vpop.permute.xlu1 %10753 }
0x52a8   : > { %v17717_v30 = vpop.eup %17716 }
0x52a9   : > { %v10209_v26 = vsel %vm6657_vm10, %v17717_v30, 0.0  ;;  %v17719_v19 = vpop.eup %17718 }
0x52aa   : > { %10210 = vadd.xlane.f32.xlu0 %v10209_v26  ;;  %v10212_v5 = vsel %vm8343_vm5, %v17719_v19, 0.0 }
0x52ae   : > { %10213 = vadd.xlane.f32.xlu0 %v10212_v5 }
0x52c4   : > { %17356 = vrot.lane.b32.xlu0 %v19885_v0, %s18323_s26 }
0x52d5   : > { %v10564_v41 = vpop.xlane.xlu1 %10563 }
0x52d6   : > { %v10566_v43 = vsub.f32 %v16058_v16, %v10564_v41 }
0x52d8   : > { %v10569_v52 = vmul.f32 1.442695, %v10566_v43 }
0x52d9   : > { %v17362_v15 = vpop.permute.xlu1 %17361 }
0x52da   : > { %v17364_v11 = vunpack.i.h.bf16 %v17362_v15  ;;  %v17363_v54 = vunpack.i.l.bf16 %v17362_v15  ;;  %v19988_v15 = vld [vmem:[#allocation13 + $0xf8] sm:$0xff] }
0x52dc   : > { %v16778_v57 = vpack.c.bf16 %v17364_v11, %v17363_v54 }
0x52dd   : > { %v17367_v8 = vpop.permute.xlu1 %17366 }
0x52de   : > { %v17369_v46 = vunpack.i.h.bf16 %v17367_v8  ;;  %v17368_v56 = vunpack.i.l.bf16 %v17367_v8 }
0x52e3   : > { %10560 = vmax.xlane.f32.xlu0 %v10559_v2 }
0x5337   : > { %v10211_v25 = vpop.xlane.xlu0 %10210 }
0x5338   : > { %17720 = vrcp.f32 %v10211_v25 }
0x533b   : > { %v10214_v28 = vpop.xlane.xlu0 %10213 }
0x533c   : > { %17722 = vrcp.f32 %v10214_v28 }
0x533f   : > { %v17357_v31 = vpop.permute.xlu0 %17356 }
0x5340   : > { %v17359_v4 = vunpack.i.h.bf16 %v17357_v31  ;;  %v17358_v33 = vunpack.i.l.bf16 %v17357_v31 }
0x5342   : > { %v17721_v37 = vpop.eup %17720  ;;  %v16782_v48 = vpack.c.bf16 %v17359_v4, %v17358_v33 }
0x5343   : > { %v10217_v55 = vmul.f32 %v17721_v37, %v17717_v30  ;;  %v16788_v30 = vpack.c.bf16 %v17369_v46, %v17368_v56  ;;  %v11361_v46 = vld [vmem:[#allocation13 + $0xe8] sm:$0xff] }
0x5344   : > { %16784 = vmatprep.subr.msk.bf16.mxu1 %vm18944_vm4, %v16782_v48 }
0x5345   : > { %16039 = vmatprep.mubr.msk.f32.mxu0 %vm6657_vm10, %v10217_v55  ;;  %16787 = vmatpush3.bf16.xpose.msk.msra.mxu1 %vm18944_vm4, %v16782_v48  ;;  %v9907_v55 = vld [vmem:[#allocation14 + $0xd8] sm:$0xff] }
0x5346   : > { %v17723_v0 = vpop.eup %17722 }
0x5347   : > { %v10218_v38 = vmul.f32 %v17723_v0, %v17719_v19 }
0x5349   : > { %16040 = vmatmul.mubr.msk.f32.vlgmr.msra.gmra.mrb[84].mxu0 %vm6657_vm10, %v10218_v38 }
0x534a   : > { %16043 = vmatpush3.msra.mxu0 %v9905_v63 }
0x534b   : > { %16047 = vmatprep.subr.mxu0 %v9904_v59 }
0x534c   : > { %16076 = vmatmul.mubr.msk.f32.vlgmr.msra.gmra.mrb[86].mxu1 %vm839_vm3, %v10754_v39 }
0x5370   : > { %v10561_v27 = vpop.xlane.xlu0 %10560 }
0x5371   : > { %v10565_v18 = vsub.f32 %v10550_v45, %v10561_v27 }
0x5373   : > { %v10567_v47 = vmul.f32 1.442695, %v10565_v18 }
0x5375   : > { %17724 = vpow2.f32 %v10567_v47 }
0x5376   : > { %17726 = vpow2.f32 %v10569_v52 }
0x537f   : > { %v17725_v50 = vpop.eup %17724 }
0x5380   : > { %v10571_v24 = vsel %vm6657_vm10, %v17725_v50, 0.0  ;;  %v17727_v61 = vpop.eup %17726 }
0x5381   : > { %10572 = vadd.xlane.f32.xlu0 %v10571_v24  ;;  %v10574_v62 = vsel %vm8343_vm5, %v17727_v61, 0.0 }
0x5385   : > { %10575 = vadd.xlane.f32.xlu0 %v10574_v62 }
0x540e   : > { %v10573_v42 = vpop.xlane.xlu0 %10572 }
0x540f   : > { %17728 = vrcp.f32 %v10573_v42  ;;  %v19986_v42 = vld [vmem:[#allocation13 + $0xf0] sm:$0xff] }
0x5412   : > { %v10576_v49 = vpop.xlane.xlu0 %10575 }
0x5413   : > { %17730 = vrcp.f32 %v10576_v49 }
0x5419   : > { %v17729_v7 = vpop.eup %17728 }
0x541a   : > { %v10579_v20 = vmul.f32 %v17729_v7, %v17725_v50 }
0x541c   : > { %v16041_v16 = vpop.f32.mrb[84].mxu0 }
0x541d   : > { %v10297_v45 = vpop.f32.mrb[85].mxu0  ;;  %v17731_v60 = vpop.eup %17730 }
0x541e   : > { %16044 = vmatprep.mubr.msk.f32.mxu0 %vm839_vm3, %v10297_v45 }
0x541f   : > { %16045 = vmatmul.mubr.msk.f32.vlgmr.msra.gmra.mrb[86].mxu0 %vm839_vm3, %v16041_v16  ;;  %v16077_v29 = vpop.f32.mrb[86].mxu1 }
0x5420   : > { %16048 = vmatpush3.msra.mxu0 %v9904_v59  ;;  %16049 = vmatprep.mubr.msk.f32.mxu0 %vm839_vm3, %v19929_v3  ;;  %v10833_v1 = vpop.f32.mrb[87].mxu1  ;;  %v10845_v23 = vsel %vm8343_vm5, %v16077_v29, -inf  ;;  %v10580_v3 = vmul.f32 %v17731_v60, %v17727_v61  ;;  %v11324_v59 = vsel %vm3820_vm12, %v19536_v53, 0.0 }
0x5421   : > { %16779 = vmatprep.subr.bf16.mxu0 %v16778_v57  ;;  %v10842_v9 = vsel %vm6657_vm10, %v10833_v1, -inf }
0x5422   : > { %10843 = vmax.xlane.f32.xlu0 %v10842_v9 }
0x5426   : > { %10846 = vmax.xlane.f32.xlu0 %v10845_v23 }
0x5427   : > { %16050 = vmatmul.mubr.msk.f32.vlgmr.msra.gmra.mrb[86].mxu0 %vm839_vm3, %v19927_v22 }
0x5428   : > { %16781 = vmatpush3.bf16.msra.mxu0 %v16778_v57  ;;  %16063 = vmatprep.mubr.msk.f32.mxu0 %vm6657_vm10, %v10579_v20 }
0x5429   : > { %16066 = vmatprep.subr.mxu0 %v9906_v36 }
0x542b   : > { %16064 = vmatmul.mubr.msk.f32.vlgmr.msra.gmra.mrb[88].mxu0 %vm6657_vm10, %v10580_v3  ;;  %v11075_v3 = vld [vmem:[#allocation19 + $0xc0] sm:$0xff] }
0x542c   : > { %16067 = vmatpush3.msra.mxu0 %v9906_v36  ;;  %v11360_v36 = vld [vmem:[#allocation13 + $0xe0] sm:$0xff] }
0x542d   : > { %16789 = vmatprep.subr.bf16.mxu0 %v16788_v30  ;;  %v17370_v56 = vpack.i.bf16 %v11361_v46, %v11360_v36 }
0x54af   : > { %v10844_v26 = vpop.xlane.xlu0 %10843 }
0x54b0   : > { %v10848_v19 = vsub.f32 %v10833_v1, %v10844_v26 }
0x54b2   : > { %v10850_v5 = vmul.f32 1.442695, %v10848_v19  ;;  %v11077_v19 = vld [vmem:[#allocation19 + $0xd0] sm:$0xff] }
0x54b3   : > { %v10847_v2 = vpop.xlane.xlu0 %10846 }
0x54b4   : > { %17732 = vpow2.f32 %v10850_v5  ;;  %v10849_v25 = vsub.f32 %v16077_v29, %v10847_v2  ;;  %v11078_v5 = vld [vmem:[#allocation19 + $0xd8] sm:$0xff] }
0x54b5   : > { %v16796_v2 = vpack.c.bf16 %v11078_v5, %v11077_v19  ;;  %v11227_v19 = vld [vmem:[#allocation22 + $0x1a0] sm:$0xff]  ;;  %v11228_v5 = vld [vmem:[#allocation22 + $0x1a8] sm:$0xff] }
0x54b6   : > { %v10852_v28 = vmul.f32 1.442695, %v10849_v25 }
0x54b8   : > { %17734 = vpow2.f32 %v10852_v28 }
0x54be   : > { %v17733_v31 = vpop.eup %17732 }
0x54bf   : > { %v10854_v22 = vsel %vm6657_vm10, %v17733_v31, 0.0 }
0x54c0   : > { %10855 = vadd.xlane.f32.xlu0 %v10854_v22 }
0x54c2   : > { %v17735_v4 = vpop.eup %17734 }
0x54c3   : > { %v10857_v33 = vsel %vm8343_vm5, %v17735_v4, 0.0 }
0x54c4   : > { %10858 = vadd.xlane.f32.xlu0 %v10857_v33 }
0x54fe   : > { %v16065_v37 = vpop.f32.mrb[88].mxu0 }
0x54ff   : > { %v10659_v48 = vpop.f32.mrb[89].mxu0 }
0x5500   : > { %16068 = vmatprep.mubr.msk.f32.mxu0 %vm839_vm3, %v10659_v48 }
0x5501   : > { %16069 = vmatmul.mubr.msk.f32.vlgmr.msra.gmra.mrb[86].mxu0 %vm839_vm3, %v16065_v37 }
0x5502   : > { %16791 = vmatpush3.bf16.msra.mxu0 %v16788_v30  ;;  %v11076_v30 = vld [vmem:[#allocation19 + $0xc8] sm:$0xff] }
0x5503   : > { %16085 = vmatprep.subr.mxu0 %v9907_v55  ;;  %v16792_v26 = vpack.c.bf16 %v11076_v30, %v11075_v3  ;;  %v11225_v3 = vld [vmem:[#allocation22 + $0x190] sm:$0xff]  ;;  %v11226_v30 = vld [vmem:[#allocation22 + $0x198] sm:$0xff] }
0x5505   : > { %16793 = vmatprep.subr.bf16.mxu1 %v16792_v26 }
0x5506   : > { %16795 = vmatpush3.bf16.msra.mxu1 %v16792_v26  ;;  %v16804_v26 = vpack.c.bf16 %v11226_v30, %v11225_v3 }
0x5507   : > { %16797 = vmatprep.subr.bf16.mxu1 %v16796_v2 }
0x550a   : > { %16799 = vmatpush3.bf16.msra.mxu1 %v16796_v2  ;;  %v16808_v2 = vpack.c.bf16 %v11228_v5, %v11227_v19 }
0x550b   : > { %16816 = vmatprep.subr.bf16.mxu1 %v18329_v35 }
0x554d   : > { %v10856_v0 = vpop.xlane.xlu0 %10855 }
0x554e   : > { %17736 = vrcp.f32 %v10856_v0  ;;  %v11065_v0 = vrot.slane %v19863_v32, %v19835_v17 }
0x5551   : > { %v10859_v38 = vpop.xlane.xlu0 %10858 }
0x5552   : > { %17738 = vrcp.f32 %v10859_v38 }
0x5558   : > { %v17737_v39 = vpop.eup %17736 }
0x5559   : > { %v10862_v41 = vmul.f32 %v17737_v39, %v17733_v31 }
0x555b   : > { %16082 = vmatprep.mubr.msk.f32.mxu0 %vm6657_vm10, %v10862_v41  ;;  %v11071_v41 = vrot.slane %v19867_v44, %v19835_v17 }
0x555c   : > { %v17739_v43 = vpop.eup %17738 }
0x555d   : > { %v10863_v27 = vmul.f32 %v17739_v43, %v17735_v4 }
0x555f   : > { %16083 = vmatmul.mubr.msk.f32.vlgmr.msra.gmra.mrb[90].mxu0 %vm6657_vm10, %v10863_v27 }
0x5560   : > { %16086 = vmatpush3.msra.mxu0 %v9907_v55 }
0x5632   : > { %v16084_v18 = vpop.f32.mrb[90].mxu0 }
0x5633   : > { %v10942_v52 = vpop.f32.mrb[91].mxu0 }
0x5634   : > { %16087 = vmatprep.mubr.msk.f32.mxu0 %vm839_vm3, %v10942_v52 }
0x5635   : > { %16088 = vmatmul.mubr.msk.f32.vlgmr.msra.gmra.mrb[86].mxu0 %vm839_vm3, %v16084_v18 }
0x5708   : > { %v16089_v47 = vpop.f32.mrb[86].mxu0 }
0x5709   : > { %v11035_v50 = vadd.f32 %v16089_v47, %v19851_v21  ;;  %v11023_v24 = vpop.f32.mrb[87].mxu0  ;;  %v17375_v21 = vpack.i.bf16 %v19988_v15, %v19986_v42 }
0x570a   : > { %v19979_v61 = vadd.f32 %v11023_v24, %v19848_v13  ;;  %v20005_v24 = vld [vmem:[#allocation16 + $0x1c] sm:$0x7] }
0x570b   : > { %v11039_v62 = vsel %vm705_vm2, %v11035_v50, 0.0  ;;  %v11340_v32 = vrot.slane %v20005_v24, %v18908_v34 }
0x570c   : > { %11040 = vadd.xlane.f32.xlu1 %v11039_v62  ;;  %v11036_v63 = vsel %vm701_vm1, %v19979_v61, 0.0 }
0x570d   : > { %11037 = vadd.xlane.f32.xlu0 %v11036_v63  ;;  %v16817_v63 = vpack.c.bf16 %v11361_v46, %v11360_v36  ;;  %v11223_v36 = vld [vmem:[#allocation22 + $0x180] sm:$0xff]  ;;  %v11224_v46 = vld [vmem:[#allocation22 + $0x188] sm:$0xff] }
0x5711   : > { %11325 = vadd.xlane.f32.xlu0 %v11324_v59 }
0x571d   : > { %17376 = vrot.lane.b32.xlu1 %v17375_v21, %s18317_s1 }
0x5799   : > { %v11041_v13 = vpop.xlane.xlu1 %11040 }
0x579a   : > { %v11043_v49 = vmul.f32 0.03125, %v11041_v13  ;;  %v11038_v11 = vpop.xlane.xlu0 %11037 }
0x579b   : > { %v11042_v54 = vmul.f32 0.03125, %v11038_v11  ;;  %v11350_v11 = vrot.slane %v20005_v24, %v19062_v40 }
0x579c   : > { %v11045_v16 = vsub.f32 %v11035_v50, %v11043_v49 }
0x579d   : > { %v11044_v45 = vsub.f32 %v19979_v61, %v11042_v54  ;;  %v17377_v44 = vpop.permute.xlu1 %17376  ;;  %v20012_v54 = vld [vmem:[#allocation17 + $0x1c] sm:$0x7] }
0x579e   : > { %v11326_v57 = vpop.xlane.xlu0 %11325  ;;  %v11047_v8 = vmul.f32 %v11045_v16, %v11045_v16 }
0x579f   : > { %v11327_v29 = vmul.f32 0.03125, %v11326_v57  ;;  %v11046_v1 = vmul.f32 %v11044_v45, %v11044_v45 }
0x57a0   : > { %v11051_v23 = vsel %vm705_vm2, %v11047_v8, 0.0  ;;  %v11356_v8 = vrot.slane %v20012_v54, %v19062_v40 }
0x57a1   : > { %v11328_v9 = vsub.f32 %v19536_v53, %v11327_v29  ;;  %v11048_v7 = vsel %vm701_vm1, %v11046_v1, 0.0  ;;  %v17379_v29 = vunpack.i.h.bf16 %v17377_v44  ;;  %v17378_v1 = vunpack.i.l.bf16 %v17377_v44 }
0x57a2   : > { %11049 = vadd.xlane.f32.xlu0 %v11048_v7  ;;  %v11351_v7 = vmul.f32 %v11350_v11, %v19716_v12 }
0x57a3   : > { %v11329_v60 = vmul.f32 %v11328_v9, %v11328_v9 }
0x57a5   : > { %v11330_v20 = vsel %vm3820_vm12, %v11329_v60, 0.0  ;;  %v11352_v60 = vmul.f32 %v11350_v11, %v19714_v10 }
0x57a6   : > { %11052 = vadd.xlane.f32.xlu0 %v11051_v23  ;;  %v16826_v23 = vpack.c.bf16 %v17379_v29, %v17378_v1 }
0x57aa   : > { %11331 = vadd.xlane.f32.xlu0 %v11330_v20  ;;  %v11358_v20 = vadd.f32 %v11356_v8, %v11352_v60 }
0x57c0   : > { %17371 = vrot.lane.b32.xlu0 %v17370_v56, %s18317_s1  ;;  %v16800_v56 = vpack.c.bf16 %v11224_v46, %v11223_v36 }
0x57c2   : > { %16801 = vmatprep.subr.bf16.mxu0 %v16800_v56 }
0x57c3   : > { %16803 = vmatpush3.bf16.msra.mxu0 %v16800_v56 }
0x57c4   : > { %16805 = vmatprep.subr.bf16.mxu0 %v16804_v26 }
0x57c7   : > { %16807 = vmatpush3.bf16.msra.mxu0 %v16804_v26 }
0x57c8   : > { %16809 = vmatprep.subr.bf16.mxu0 %v16808_v2 }
0x57cb   : > { %16811 = vmatpush3.bf16.msra.mxu0 %v16808_v2 }
0x582f   : > { %v11050_v25 = vpop.xlane.xlu0 %11049 }
0x5830   : > { %v11054_v28 = vmul.f32 0.03125, %v11050_v25  ;;  %v11229_v25 = vld [vmem:[#allocation22 + $0x1b0] sm:$0xff] }
0x5832   : > { %v11056_v31 = vadd.f32 1e-05, %v11054_v28  ;;  %v11230_v28 = vld [vmem:[#allocation22 + $0x1b8] sm:$0xff] }
0x5833   : > { %v11053_v22 = vpop.xlane.xlu0 %11052 }
0x5834   : > { %17740 = vrsqrt.f32 %v11056_v31  ;;  %v11055_v4 = vmul.f32 0.03125, %v11053_v22  ;;  %v16812_v31 = vpack.c.bf16 %v11230_v28, %v11229_v25  ;;  %v14705_v22 = vld [vmem:[#allocation20 + $0x6] ss:$0 sm:$0xff] }
0x5836   : > { %v11057_v33 = vadd.f32 1e-05, %v11055_v4  ;;  %16813 = vmatprep.subr.bf16.mxu0 %v16812_v31 }
0x5837   : > { %v11332_v37 = vpop.xlane.xlu0 %11331  ;;  %16815 = vmatpush3.bf16.msra.mxu0 %v16812_v31 }
0x5838   : > { %17742 = vrsqrt.f32 %v11057_v33  ;;  %v11333_v48 = vmul.f32 0.03125, %v11332_v37  ;;  %16830 = vmatprep.subr.bf16.mxu0 %v18329_v35 }
0x583a   : > { %v11334_v55 = vadd.f32 1e-05, %v11333_v48 }
0x583b   : > { %v17372_v47 = vpop.permute.xlu0 %17371 }
0x583c   : > { %17744 = vrsqrt.f32 %v11334_v55  ;;  %v17374_v13 = vunpack.i.h.bf16 %v17372_v47  ;;  %v17373_v49 = vunpack.i.l.bf16 %v17372_v47 }
0x583e   : > { %v17741_v38 = vpop.eup %17740  ;;  %v16822_v57 = vpack.c.bf16 %v17374_v13, %v17373_v49 }
0x583f   : > { %v11060_v39 = vmul.f32 %v17741_v38, %v11044_v45  ;;  %v11345_v45 = vrot.slane %v20012_v54, %v18908_v34 }
0x5841   : > { %v11066_v43 = vmul.f32 %v11065_v0, %v11060_v39 }
0x5842   : > { %v17743_v27 = vpop.eup %17742 }
0x5843   : > { %v11061_v18 = vmul.f32 %v17743_v27, %v11045_v16  ;;  %v11072_v52 = vadd.f32 %v11071_v41, %v11066_v43  ;;  %v16820_v16 = vpack.c.bf16 %v19988_v15, %v19986_v42  ;;  %v11357_v15 = vadd.f32 %v11356_v8, %v11351_v7 }
0x5845   : > { %v11067_v50 = vmul.f32 %v11065_v0, %v11061_v18  ;;  %16098 = vmatprep.mubr.msk.f32.mxu1 %vm701_vm1, %v11072_v52 }
0x5846   : > { %v17745_v62 = vpop.eup %17744 }
0x5847   : > { %v11336_v59 = vmul.f32 %v17745_v62, %v11328_v9  ;;  %v11073_v21 = vadd.f32 %v11071_v41, %v11067_v50 }
0x5849   : > { %16099 = vmatmul.mubr.msk.f32.vlgmr.msra.gmra.mrb[88].mxu1 %vm701_vm1, %v11073_v21  ;;  %v11341_v9 = vmul.f32 %v11340_v32, %v11336_v59 }
0x584a   : > { %16818 = vmatpush3.bf16.msra.mxu1 %v16817_v63  ;;  %16128 = vmatprep.mubr.msk.f32.mxu1 %vm18330_vm13, %v18331_v6 }
0x584b   : > { %16819 = vmatprep.subr.bf16.mxu1 %v18329_v35  ;;  %v11346_v42 = vadd.f32 %v11345_v45, %v11341_v9 }
0x584e   : > { %16821 = vmatpush3.bf16.msra.mxu1 %v16820_v16 }
0x584f   : > { %16823 = vmatprep.subr.bf16.mxu1 %v16822_v57 }
0x5851   : > { %16129 = vmatmul.mubr.msk.f32.vlgmr.msra.gmra.mrb[90].mxu1 %vm701_vm1, %v11346_v42 }
0x5852   : > { %16825 = vmatpush3.bf16.msra.mxu1 %v16822_v57  ;;  %16139 = vmatprep.mubr.msk.f32.mxu1 %vm701_vm1, %v11357_v15 }
0x5853   : > { %16827 = vmatprep.subr.bf16.mxu1 %v16826_v23 }
0x5856   : > { %16829 = vmatpush3.bf16.msra.mxu1 %v16826_v23 }
0x5857   : > { %16834 = vmatprep.subr.bf16.mxu1 %v18329_v35 }
0x5859   : > { %16140 = vmatmul.mubr.msk.f32.vlgmr.msra.gmra.mrb[92].mxu1 %vm701_vm1, %v11358_v20 }
0x585a   : > { %16153 = vmatprep.mubr.msk.f32.mxu1 %vm18330_vm13, %v18331_v6 }
0x591c   : > { %v16100_v4 = vpop.f32.mrb[88].mxu1 }
0x591d   : > { %v11165_v33 = vadd.f32 %v16100_v4, %v14705_v22  ;;  %v11159_v37 = vpop.f32.mrb[89].mxu1 }
0x591e   : > { %v11160_v48 = vadd.f32 %v14705_v22, %v11159_v37 }
0x591f   : > { %v11171_v55 = vmul.f32 0.70710677, %v11165_v33 }
0x5920   : > { %v11170_v0 = vmul.f32 0.70710677, %v11160_v48 }
0x5921   : > { %v11177_v38 = vand.u32 2147483647, %v11171_v55  ;;  %vm11173_vm2 = vcmp.ge.f32.partialorder %v11171_v55, 0.0 }
0x5922   : > { %v11176_v39 = vand.u32 2147483647, %v11170_v0  ;;  %vm11172_vm8 = vcmp.ge.f32.partialorder %v11170_v0, 0.0  ;;  %v11175_v22 = vsel %vm11173_vm2, 1.0, %v18328_v51 }
0x5923   : > { %v11179_v41 = vmul.f32 0.3275911, %v11177_v38  ;;  %v11205_v62 = vsub.f32 0.0, %v11177_v38 }
0x5924   : > { %v11178_v43 = vmul.f32 0.3275911, %v11176_v39  ;;  %v11433_v27 = vpop.f32.mrb[90].mxu1  ;;  %v11204_v63 = vsub.f32 0.0, %v11176_v39 }
0x5925   : > { %v11181_v18 = vadd.f32 1.0, %v11179_v41  ;;  %v16130_v52 = vpop.f32.mrb[91].mxu1  ;;  %v11207_v49 = vmul.f32 %v11205_v62, %v11177_v38  ;;  %v11174_v38 = vsel %vm11172_vm8, 1.0, %v18328_v51  ;;  %v11539_v55 = vmul.f32 0.17677669, %v11433_v27 }
0x5926   : > { %v11180_v47 = vadd.f32 1.0, %v11178_v43  ;;  %v11206_v16 = vmul.f32 %v11204_v63, %v11176_v39  ;;  %v11168_v43 = vmul.f32 0.5, %v11160_v48  ;;  %v11169_v52 = vmul.f32 0.5, %v11165_v33 }
0x5927   : > { %17746 = vrcp.f32 %v11181_v18  ;;  %v11210_v29 = vmul.f32 1.442695, %v11207_v49 }
0x5928   : > { %17748 = vrcp.f32 %v11180_v47  ;;  %v11208_v7 = vmul.f32 1.442695, %v11206_v16 }
0x5929   : > { %17750 = vpow2.f32 %v11210_v29 }
0x592a   : > { %17752 = vpow2.f32 %v11208_v7 }
0x592c   : > { %v16141_v50 = vpop.f32.mrb[92].mxu1 }
0x592d   : > { %v11525_v32 = vpop.f32.mrb[93].mxu1 }
0x592e   : > { %v16831_v59 = vpack.c.bf16 %v16141_v50, %v11525_v32  ;;  %v20032_v21 = vpack.i.bf16 %v16141_v50, %v11525_v32 }
0x5931   : > { %v17747_v13 = vpop.eup %17746 }
0x5932   : > { %v17749_v44 = vpop.eup %17748  ;;  %v11187_v11 = vmul.f32 1.0614054, %v17747_v13 }
0x5933   : > { %v11186_v45 = vmul.f32 1.0614054, %v17749_v44  ;;  %v17751_v19 = vpop.eup %17750 }
0x5934   : > { %v11189_v57 = vadd.f32 -1.4531521, %v11187_v11  ;;  %v17753_v2 = vpop.eup %17752 }
0x5935   : > { %v11188_v1 = vadd.f32 -1.4531521, %v11186_v45 }
0x5936   : > { %v11191_v9 = vmul.f32 %v17747_v13, %v11189_v57 }
0x5937   : > { %v11190_v8 = vmul.f32 %v17749_v44, %v11188_v1 }
0x5938   : > { %v11193_v23 = vadd.f32 1.4214138, %v11191_v9 }
0x5939   : > { %v11192_v42 = vadd.f32 1.4214138, %v11190_v8 }
0x593a   : > { %v11195_v15 = vmul.f32 %v17747_v13, %v11193_v23 }
0x593b   : > { %v11194_v60 = vmul.f32 %v17749_v44, %v11192_v42 }
0x593c   : > { %v11197_v20 = vadd.f32 -0.28449672, %v11195_v15  ;;  %v11535_v15 = vld [vmem:[#allocation14 + $0xe0] sm:$0xff] }
0x593d   : > { %v11196_v36 = vadd.f32 -0.28449672, %v11194_v60 }
0x593e   : > { %v11199_v46 = vmul.f32 %v17747_v13, %v11197_v20 }
0x593f   : > { %v11198_v56 = vmul.f32 %v17749_v44, %v11196_v36 }
0x5940   : > { %v11201_v3 = vadd.f32 0.2548296, %v11199_v46 }
0x5941   : > { %v11200_v30 = vadd.f32 0.2548296, %v11198_v56 }
0x5942   : > { %v11203_v26 = vmul.f32 %v17747_v13, %v11201_v3 }
0x5943   : > { %v11202_v5 = vmul.f32 %v17749_v44, %v11200_v30 }
0x5944   : > { %v11213_v25 = vmul.f32 %v17751_v19, %v11203_v26 }
0x5945   : > { %v11212_v28 = vmul.f32 %v17753_v2, %v11202_v5 }
0x5946   : > { %v11215_v31 = vsub.f32 1.0, %v11213_v25 }
0x5947   : > { %v11214_v4 = vsub.f32 1.0, %v11212_v28 }
0x5948   : > { %v11217_v37 = vmul.f32 %v11215_v31, %v11175_v22 }
0x5949   : > { %v11216_v39 = vmul.f32 %v11214_v4, %v11174_v38 }
0x594a   : > { %v11219_v41 = vadd.f32 1.0, %v11217_v37 }
0x594b   : > { %v11218_v18 = vadd.f32 1.0, %v11216_v39 }
0x594c   : > { %v11221_v50 = vmul.f32 %v11219_v41, %v11169_v52  ;;  %v11536_v41 = vld [vmem:[#allocation14 + $0xe8] sm:$0xff] }
0x594d   : > { %v11220_v47 = vmul.f32 %v11218_v18, %v11168_v43 }
0x594f   : > { %16117 = vmatprep.mubr.msk.f32.mxu0 %vm2169_vm11, %v11220_v47 }
0x5950   : > { %16118 = vmatmul.mubr.msk.f32.vlgmr.msra.gmra.mrb[92].mxu0 %vm2169_vm11, %v11221_v50 }
0x5951   : > { %16833 = vmatpush3.bf16.xpose.msk.msra.mxu0 %vm18944_vm4, %v16831_v59  ;;  %16146 = vmatprep.mubr.msk.f32.mxu0 %vm18330_vm13, %v18331_v6 }
0x5952   : > { %16841 = vmatprep.subr.bf16.mxu0 %v18329_v35 }
0x5958   : > { %16147 = vmatmul.mubr.msk.f32.vlgmr.msra.gmra.mrb[94].mxu0 %vm839_vm3, %v11539_v55 }
0x5959   : > { %16167 = vmatprep.mubr.msk.f32.mxu0 %vm18330_vm13, %v18331_v6 }
0x5a23   : > { %v16119_v33 = vpop.f32.mrb[92].mxu0 }
0x5a24   : > { %v20046_v48 = vpop.f32.mrb[93].mxu0 }
0x5a2b   : > { %v11615_v0 = vpop.f32.mrb[94].mxu0 }
0x5a2c   : > { %v16148_v62 = vpop.f32.mrb[95].mxu0  ;;  %v11620_v63 = vsel %vm11619_vm9, %v11615_v0, -inf }
0x5a2d   : > { %11621 = vmax.xlane.f32.xlu0 %v11620_v63 }
0x5a43   : > { %17381 = vrot.lane.b32.xlu0 %v20032_v21, %s18317_s1 }
0x5a47   : > { %11710 = vrot.lane.b32.xlu0 %v11539_v55, %s18319_s17 }
0x5aba   : > { %v11622_v27 = vpop.xlane.xlu0 %11621 }
0x5abb   : > { %v11623_v32 = vsub.f32 %v11615_v0, %v11622_v27 }
0x5abd   : > { %v11624_v59 = vmul.f32 1.442695, %v11623_v32 }
0x5abe   : > { %v17382_v13 = vpop.permute.xlu0 %17381 }
0x5abf   : > { %17754 = vpow2.f32 %v11624_v59  ;;  %v17384_v49 = vunpack.i.h.bf16 %v17382_v13  ;;  %v17383_v44 = vunpack.i.l.bf16 %v17382_v13 }
0x5ac1   : > { %v16835_v11 = vpack.c.bf16 %v17384_v49, %v17383_v44 }
0x5ac2   : > { %v11711_v42 = vpop.permute.xlu0 %11710 }
0x5ac3   : > { %16836 = vmatpush3.bf16.msra.mxu1 %v16835_v11 }
0x5ac4   : > { %16837 = vmatprep.subr.bf16.mxu1 %v18329_v35 }
0x5ac9   : > { %v17755_v16 = vpop.eup %17754 }
0x5aca   : > { %v11626_v45 = vsel %vm11619_vm9, %v17755_v16, 0.0 }
0x5acb   : > { %11627 = vadd.xlane.f32.xlu1 %v11626_v45 }
0x5adc   : > { %17386 = vrot.lane.b32.xlu1 %v20032_v21, %s18319_s17 }
0x5b58   : > { %v11628_v57 = vpop.xlane.xlu1 %11627 }
0x5b59   : > { %17756 = vrcp.f32 %v11628_v57 }
0x5b5c   : > { %v17387_v29 = vpop.permute.xlu1 %17386 }
0x5b5d   : > { %v17389_v1 = vunpack.i.h.bf16 %v17387_v29  ;;  %v17388_v9 = vunpack.i.l.bf16 %v17387_v29 }
0x5b5f   : > { %v16838_v23 = vpack.c.bf16 %v17389_v1, %v17388_v9 }
0x5b63   : > { %v17757_v7 = vpop.eup %17756 }
0x5b64   : > { %v11630_v8 = vmul.f32 %v17757_v7, %v17755_v16 }
0x5b66   : > { %16154 = vmatmul.mubr.msk.f32.vlgmr.msra.gmra.mrb[94].mxu1 %vm6657_vm10, %v11630_v8 }
0x5b67   : > { %16840 = vmatpush3.bf16.xpose.msk.msra.mxu1 %vm18944_vm4, %v16838_v23  ;;  %16160 = vmatprep.mubr.msk.f32.mxu1 %vm18330_vm13, %v18331_v6 }
0x5b68   : > { %16175 = vmatprep.subr.mxu1 %v18331_v6 }
0x5b6e   : > { %16161 = vmatmul.mubr.msk.f32.vlgmr.msra.gmra.mrb[96].mxu1 %vm839_vm3, %v11711_v42 }
0x5b6f   : > { %16177 = vmatprep.mubr.msk.f32.mxu1 %vm18330_vm13, %v18331_v6  ;;  %16176 = vmatpush3.msra.mxu1 %v11535_v15 }
0x5b70   : > { %16848 = vmatprep.subr.bf16.mxu1 %v18329_v35 }
0x5c39   : > { %v11706_v60 = vpop.f32.mrb[94].mxu1 }
0x5c3a   : > { %v16155_v20 = vpop.f32.mrb[95].mxu1  ;;  %16178 = vmatmul.mubr.msk.f32.vlgmr.msra.gmra.mrb[98].mxu1 %vm839_vm3, %v11706_v60 }
0x5c3b   : > { %16191 = vmatprep.mubr.msk.f32.mxu1 %vm18330_vm13, %v18331_v6 }
0x5c41   : > { %v11788_v36 = vpop.f32.mrb[96].mxu1 }
0x5c42   : > { %v16162_v46 = vpop.f32.mrb[97].mxu1  ;;  %v11792_v56 = vsel %vm11619_vm9, %v11788_v36, -inf }
0x5c43   : > { %11793 = vmax.xlane.f32.xlu0 %v11792_v56 }
0x5c59   : > { %17391 = vrot.lane.b32.xlu0 %v20032_v21, %s18316_s18 }
0x5c5d   : > { %12028 = vrot.lane.b32.xlu0 %v11539_v55, %s18320_s10 }
0x5c61   : > { %17401 = vrot.lane.b32.xlu0 %v20032_v21, %s18323_s26 }
0x5c65   : > { %12274 = vrot.lane.b32.xlu0 %v11539_v55, %s18323_s26 }
0x5cd0   : > { %v11794_v3 = vpop.xlane.xlu0 %11793 }
0x5cd1   : > { %v11795_v30 = vsub.f32 %v11788_v36, %v11794_v3 }
0x5cd3   : > { %v11796_v26 = vmul.f32 1.442695, %v11795_v30 }
0x5cd4   : > { %v17392_v19 = vpop.permute.xlu0 %17391 }
0x5cd5   : > { %17758 = vpow2.f32 %v11796_v26  ;;  %v17394_v5 = vunpack.i.h.bf16 %v17392_v19  ;;  %v17393_v2 = vunpack.i.l.bf16 %v17392_v19 }
0x5cd7   : > { %v16842_v25 = vpack.c.bf16 %v17394_v5, %v17393_v2  ;;  %v11537_v2 = vld [vmem:[#allocation14 + $0xf0] sm:$0xff] }
0x5cd8   : > { %v12029_v18 = vpop.permute.xlu0 %12028 }
0x5cd9   : > { %16843 = vmatpush3.bf16.msra.mxu0 %v16842_v25 }
0x5cda   : > { %16170 = vmatprep.subr.mxu0 %v18331_v6 }
0x5cdc   : > { %v17402_v33 = vpop.permute.xlu0 %17401 }
0x5cdd   : > { %v17404_v62 = vunpack.i.h.bf16 %v17402_v33  ;;  %v17403_v63 = vunpack.i.l.bf16 %v17402_v33 }
0x5cdf   : > { %v17759_v28 = vpop.eup %17758  ;;  %v16852_v27 = vpack.c.bf16 %v17404_v62, %v17403_v63 }
0x5ce0   : > { %v11798_v31 = vsel %vm11619_vm9, %v17759_v28, 0.0  ;;  %v12275_v32 = vpop.permute.xlu0 %12274 }
0x5ce1   : > { %11799 = vadd.xlane.f32.xlu1 %v11798_v31 }
0x5cf2   : > { %17396 = vrot.lane.b32.xlu1 %v20032_v21, %s18320_s10 }
0x5d0d   : > { %v12024_v22 = vpop.f32.mrb[98].mxu1 }
0x5d0e   : > { %v16179_v4 = vpop.f32.mrb[99].mxu1 }
0x5d6e   : > { %v11800_v37 = vpop.xlane.xlu1 %11799 }
0x5d6f   : > { %17760 = vrcp.f32 %v11800_v37 }
0x5d72   : > { %v17397_v43 = vpop.permute.xlu1 %17396 }
0x5d73   : > { %v17399_v52 = vunpack.i.h.bf16 %v17397_v43  ;;  %v17398_v47 = vunpack.i.l.bf16 %v17397_v43 }
0x5d75   : > { %v16845_v50 = vpack.c.bf16 %v17399_v52, %v17398_v47 }
0x5d79   : > { %v17761_v38 = vpop.eup %17760 }
0x5d7a   : > { %v11802_v39 = vmul.f32 %v17761_v38, %v17759_v28 }
0x5d7c   : > { %16168 = vmatmul.mubr.msk.f32.vlgmr.msra.gmra.mrb[96].mxu0 %vm6657_vm10, %v11802_v39 }
0x5d7d   : > { %16171 = vmatpush3.msra.mxu0 %v11536_v41  ;;  %16172 = vmatprep.mubr.msk.f32.mxu0 %vm18330_vm13, %v18331_v6  ;;  %v11538_v41 = vld [vmem:[#allocation14 + $0xf8] sm:$0xff] }
0x5d7e   : > { %16844 = vmatprep.subr.bf16.mxu0 %v18329_v35 }
0x5e4f   : > { %v11878_v55 = vpop.f32.mrb[96].mxu0 }
0x5e50   : > { %v16169_v0 = vpop.f32.mrb[97].mxu0  ;;  %16173 = vmatmul.mubr.msk.f32.vlgmr.msra.gmra.mrb[98].mxu0 %vm839_vm3, %v11878_v55 }
0x5e51   : > { %16847 = vmatpush3.bf16.xpose.msk.msra.mxu0 %vm18944_vm4, %v16845_v50  ;;  %16184 = vmatprep.mubr.msk.f32.mxu0 %vm18330_vm13, %v18331_v6 }
0x5e52   : > { %16851 = vmatprep.subr.bf16.mxu0 %v18329_v35 }
0x5e58   : > { %16185 = vmatmul.mubr.msk.f32.vlgmr.msra.gmra.mrb[100].mxu0 %vm839_vm3, %v12029_v18 }
0x5e59   : > { %16854 = vmatpush3.bf16.xpose.msk.msra.mxu0 %vm18944_vm4, %v16852_v27  ;;  %16203 = vmatprep.mubr.msk.f32.mxu0 %vm18330_vm13, %v18331_v6 }
0x5e5a   : > { %16858 = vmatprep.subr.bf16.mxu0 %v18329_v35 }
0x5e60   : > { %16204 = vmatmul.mubr.msk.f32.vlgmr.msra.gmra.mrb[102].mxu0 %vm839_vm3, %v12275_v32 }
0x5e61   : > { %16226 = vmatprep.mubr.msk.f32.mxu0 %vm18330_vm13, %v18331_v6 }
0x5f23   : > { %v11951_v59 = vpop.f32.mrb[98].mxu0 }
0x5f24   : > { %v12025_v13 = vadd.f32 %v12024_v22, %v11951_v59  ;;  %v16174_v49 = vpop.f32.mrb[99].mxu0 }
0x5f2b   : > { %v12106_v44 = vpop.f32.mrb[100].mxu0 }
0x5f2c   : > { %v16186_v11 = vpop.f32.mrb[101].mxu0  ;;  %v12110_v16 = vsel %vm11619_vm9, %v12106_v44, -inf }
0x5f2d   : > { %12111 = vmax.xlane.f32.xlu1 %v12110_v16  ;;  %v12546_v11 = vld [vmem:[#allocation19 + $0xe8] sm:$0xff] }
0x5f33   : > { %v12352_v45 = vpop.f32.mrb[102].mxu0 }
0x5f34   : > { %v16205_v57 = vpop.f32.mrb[103].mxu0  ;;  %v12356_v29 = vsel %vm11619_vm9, %v12352_v45, -inf }
0x5f35   : > { %12357 = vmax.xlane.f32.xlu1 %v12356_v29  ;;  %v12548_v57 = vld [vmem:[#allocation19 + $0xf8] sm:$0xff] }
0x5fba   : > { %v12112_v1 = vpop.xlane.xlu1 %12111 }
0x5fbb   : > { %v12113_v9 = vsub.f32 %v12106_v44, %v12112_v1  ;;  %v12545_v44 = vld [vmem:[#allocation19 + $0xe0] sm:$0xff] }
0x5fbc   : > { %v16859_v16 = vpack.c.bf16 %v12546_v11, %v12545_v44 }
0x5fbd   : > { %v12114_v7 = vmul.f32 1.442695, %v12113_v9 }
0x5fbe   : > { %16860 = vmatpush3.bf16.msra.mxu0 %v16859_v16 }
0x5fbf   : > { %17762 = vpow2.f32 %v12114_v7  ;;  %16861 = vmatprep.subr.bf16.mxu0 %v18329_v35 }
0x5fc2   : > { %v12358_v8 = vpop.xlane.xlu1 %12357 }
0x5fc3   : > { %v12359_v23 = vsub.f32 %v12352_v45, %v12358_v8  ;;  %v12547_v45 = vld [vmem:[#allocation19 + $0xf0] sm:$0xff]  ;;  %v12537_v8 = vrot.slane %v20005_v24, %v19835_v17  ;;  %v12661_v24 = vld [vmem:[#allocation22 + $0x1d8] sm:$0xff] }
0x5fc4   : > { %v16862_v29 = vpack.c.bf16 %v12548_v57, %v12547_v45 }
0x5fc5   : > { %v12360_v42 = vmul.f32 1.442695, %v12359_v23 }
0x5fc6   : > { %16863 = vmatpush3.bf16.msra.mxu0 %v16862_v29 }
0x5fc7   : > { %17764 = vpow2.f32 %v12360_v42  ;;  %16876 = vmatprep.subr.bf16.mxu0 %v18329_v35 }
0x5fc9   : > { %v17763_v15 = vpop.eup %17762 }
0x5fca   : > { %v12116_v60 = vsel %vm11619_vm9, %v17763_v15, 0.0 }
0x5fcb   : > { %12117 = vadd.xlane.f32.xlu0 %v12116_v60 }
0x5fd1   : > { %v17765_v20 = vpop.eup %17764 }
0x5fd2   : > { %v12362_v36 = vsel %vm11619_vm9, %v17765_v20, 0.0 }
0x5fd3   : > { %12363 = vadd.xlane.f32.xlu1 %v12362_v36  ;;  %v12658_v36 = vld [vmem:[#allocation22 + $0x1c0] sm:$0xff] }
0x5fe1   : > { %17406 = vrot.lane.b32.xlu0 %v20032_v21, %s18318_s2 }
0x5fe4   : > { %17411 = vrot.lane.b32.xlu1 %v20032_v21, %s18322_s25 }
0x6058   : > { %v12118_v46 = vpop.xlane.xlu0 %12117 }
0x6059   : > { %17766 = vrcp.f32 %v12118_v46  ;;  %v12659_v46 = vld [vmem:[#allocation22 + $0x1c8] sm:$0xff] }
0x605c   : > { %v17407_v56 = vpop.permute.xlu0 %17406 }
0x605d   : > { %v17409_v3 = vunpack.i.h.bf16 %v17407_v56  ;;  %v17408_v30 = vunpack.i.l.bf16 %v17407_v56  ;;  %v16865_v56 = vpack.c.bf16 %v12659_v46, %v12658_v36 }
0x605f   : > { %v16849_v26 = vpack.c.bf16 %v17409_v3, %v17408_v30  ;;  %v12660_v3 = vld [vmem:[#allocation22 + $0x1d0] sm:$0xff] }
0x6060   : > { %v12364_v21 = vpop.xlane.xlu1 %12363  ;;  %v16868_v30 = vpack.c.bf16 %v12661_v24, %v12660_v3 }
0x6061   : > { %16850 = vmatpush3.bf16.msra.mxu1 %v16849_v26  ;;  %17768 = vrcp.f32 %v12364_v21  ;;  %v12663_v26 = vld [vmem:[#allocation22 + $0x1e8] sm:$0xff] }
0x6062   : > { %16194 = vmatprep.subr.mxu1 %v18331_v6 }
0x6063   : > { %v17767_v19 = vpop.eup %17766 }
0x6064   : > { %v12120_v5 = vmul.f32 %v17767_v19, %v17763_v15  ;;  %v17412_v25 = vpop.permute.xlu1 %17411  ;;  %v12542_v15 = vrot.slane %v20012_v54, %v19835_v17  ;;  %v12662_v54 = vld [vmem:[#allocation22 + $0x1e0] sm:$0xff] }
0x6065   : > { %v17414_v28 = vunpack.i.h.bf16 %v17412_v25  ;;  %v17413_v31 = vunpack.i.l.bf16 %v17412_v25  ;;  %v16871_v19 = vpack.c.bf16 %v12663_v26, %v12662_v54  ;;  %v14734_v25 = vld [vmem:[#allocation20 + $0x7] ss:$0 sm:$0xff] }
0x6066   : > { %16192 = vmatmul.mubr.msk.f32.vlgmr.msra.gmra.mrb[100].mxu1 %vm6657_vm10, %v12120_v5  ;;  %v12664_v5 = vld [vmem:[#allocation22 + $0x1f0] sm:$0xff] }
0x6067   : > { %16195 = vmatpush3.msra.mxu1 %v11537_v2  ;;  %16196 = vmatprep.mubr.msk.f32.mxu1 %vm18330_vm13, %v18331_v6  ;;  %v16856_v4 = vpack.c.bf16 %v17414_v28, %v17413_v31  ;;  %v12665_v2 = vld [vmem:[#allocation22 + $0x1f8] sm:$0xff] }
0x6068   : > { %16855 = vmatprep.subr.bf16.mxu1 %v18329_v35  ;;  %v16874_v21 = vpack.c.bf16 %v12665_v2, %v12664_v5 }
0x606b   : > { %v17769_v22 = vpop.eup %17768 }
0x606c   : > { %v12366_v39 = vmul.f32 %v17769_v22, %v17765_v20 }
0x6139   : > { %v12196_v37 = vpop.f32.mrb[100].mxu1 }
0x613a   : > { %v16193_v38 = vpop.f32.mrb[101].mxu1  ;;  %16197 = vmatmul.mubr.msk.f32.vlgmr.msra.gmra.mrb[102].mxu1 %vm839_vm3, %v12196_v37 }
0x613b   : > { %16857 = vmatpush3.bf16.msra.mxu1 %v16856_v4  ;;  %16210 = vmatprep.mubr.msk.f32.mxu1 %vm18330_vm13, %v18331_v6 }
0x613c   : > { %16213 = vmatprep.subr.mxu1 %v18331_v6 }
0x613e   : > { %16211 = vmatmul.mubr.msk.f32.vlgmr.msra.gmra.mrb[104].mxu1 %vm6657_vm10, %v12366_v39 }
0x613f   : > { %16215 = vmatprep.mubr.msk.f32.mxu1 %vm18330_vm13, %v18331_v6  ;;  %16214 = vmatpush3.msra.mxu1 %v11538_v41 }
0x6140   : > { %16864 = vmatprep.subr.bf16.mxu1 %v18329_v35 }
0x620d   : > { %v12269_v43 = vpop.f32.mrb[102].mxu1 }
0x620e   : > { %v12273_v18 = vadd.f32 %v12269_v43, %v12025_v13  ;;  %v16198_v52 = vpop.f32.mrb[103].mxu1 }
0x6211   : > { %v12442_v47 = vpop.f32.mrb[104].mxu1 }
0x6212   : > { %v16212_v50 = vpop.f32.mrb[105].mxu1  ;;  %16216 = vmatmul.mubr.msk.f32.vlgmr.msra.gmra.mrb[106].mxu1 %vm839_vm3, %v12442_v47 }
0x6213   : > { %16245 = vmatprep.mubr.msk.f32.mxu1 %vm18330_vm13, %v18331_v6  ;;  %16866 = vmatpush3.bf16.msra.mxu1 %v16865_v56 }
0x6214   : > { %16867 = vmatprep.subr.bf16.mxu1 %v18329_v35 }
0x6217   : > { %16869 = vmatpush3.bf16.msra.mxu1 %v16868_v30  ;;  %v12788_v30 = vld [vmem:[#allocation13 + $0x100] sm:$0xff] }
0x6218   : > { %16870 = vmatprep.subr.bf16.mxu1 %v18329_v35 }
0x621b   : > { %16872 = vmatpush3.bf16.msra.mxu1 %v16871_v19 }
0x621c   : > { %16873 = vmatprep.subr.bf16.mxu1 %v18329_v35 }
0x621f   : > { %16875 = vmatpush3.bf16.msra.mxu1 %v16874_v21 }
0x6220   : > { %16890 = vmatprep.subr.bf16.mxu1 %v18329_v35 }
0x62e5   : > { %v12515_v55 = vpop.f32.mrb[106].mxu1 }
0x62e6   : > { %v12519_v33 = vadd.f32 %v12515_v55, %v12273_v18  ;;  %v16217_v0 = vpop.f32.mrb[107].mxu1 }
0x62e8   : > { %v20124_v62 = vadd.f32 %v12519_v33, %v19536_v53 }
0x62ea   : > { %v12521_v63 = vsel %vm3820_vm12, %v20124_v62, 0.0 }
0x62eb   : > { %12522 = vadd.xlane.f32.xlu0 %v12521_v63 }
0x6378   : > { %v12523_v27 = vpop.xlane.xlu0 %12522 }
0x6379   : > { %v12524_v32 = vmul.f32 0.03125, %v12523_v27 }
0x637b   : > { %v12525_v59 = vsub.f32 %v20124_v62, %v12524_v32 }
0x637d   : > { %v12526_v13 = vmul.f32 %v12525_v59, %v12525_v59 }
0x637f   : > { %v12527_v49 = vsel %vm3820_vm12, %v12526_v13, 0.0 }
0x6380   : > { %12528 = vadd.xlane.f32.xlu1 %v12527_v49 }
0x640d   : > { %v12529_v1 = vpop.xlane.xlu1 %12528 }
0x640e   : > { %v12530_v9 = vmul.f32 0.03125, %v12529_v1  ;;  %v14736_v1 = vld [vmem:[#allocation23 + $0x7] ss:$0 sm:$0xff] }
0x6410   : > { %v12531_v7 = vadd.f32 1e-05, %v12530_v9 }
0x6412   : > { %17770 = vrsqrt.f32 %v12531_v7 }
0x641c   : > { %v17771_v23 = vpop.eup %17770 }
0x641d   : > { %v12533_v42 = vmul.f32 %v17771_v23, %v12525_v59 }
0x641f   : > { %v12538_v60 = vmul.f32 %v12537_v8, %v12533_v42 }
0x6421   : > { %v12543_v20 = vadd.f32 %v12542_v15, %v12538_v60  ;;  %v12790_v15 = vld [vmem:[#allocation13 + $0x110] sm:$0xff]  ;;  %v12791_v60 = vld [vmem:[#allocation13 + $0x118] sm:$0xff] }
0x6422   : > { %v16880_v19 = vpack.c.bf16 %v12791_v60, %v12790_v15 }
0x6423   : > { %16227 = vmatmul.mubr.msk.f32.vlgmr.msra.gmra.mrb[104].mxu0 %vm701_vm1, %v12543_v20  ;;  %v17420_v20 = vpack.i.bf16 %v12791_v60, %v12790_v15 }
0x6424   : > { %16256 = vmatprep.mubr.msk.f32.mxu0 %vm18330_vm13, %v18331_v6 }
0x6425   : > { %17421 = vrot.lane.b32.xlu1 %v17420_v20, %s18317_s1 }
0x64f6   : > { %v12626_v28 = vpop.f32.mrb[104].mxu0 }
0x64f7   : > { %v12627_v31 = vadd.f32 %v14734_v25, %v12626_v28  ;;  %v16228_v22 = vpop.f32.mrb[105].mxu0 }
0x64f9   : > { %v12631_v4 = vmul.f32 0.70710677, %v12627_v31  ;;  %v12630_v45 = vmul.f32 0.5, %v12627_v31 }
0x64fb   : > { %v12634_v37 = vand.u32 2147483647, %v12631_v4  ;;  %vm12632_vm14 = vcmp.ge.f32.partialorder %v12631_v4, 0.0  ;;  %v20157_v4 = vld [vmem:[#allocation16 + $0x20] sm:$0x7] }
0x64fc   : > { %v12633_v11 = vsel %vm12632_vm14, 1.0, %v18328_v51 }
0x64fd   : > { %v12635_v38 = vmul.f32 0.3275911, %v12634_v37  ;;  %v12648_v41 = vsub.f32 0.0, %v12634_v37 }
0x64ff   : > { %v12636_v39 = vadd.f32 1.0, %v12635_v38  ;;  %v12649_v18 = vmul.f32 %v12648_v41, %v12634_v37  ;;  %v17422_v37 = vpop.permute.xlu1 %17421  ;;  %v12778_v38 = vrot.slane %v20157_v4, %v19062_v40  ;;  %v12768_v41 = vrot.slane %v20157_v4, %v18908_v34 }
0x6501   : > { %17772 = vrcp.f32 %v12636_v39  ;;  %v12650_v50 = vmul.f32 1.442695, %v12649_v18  ;;  %v20161_v39 = vld [vmem:[#allocation17 + $0x20] sm:$0x7] }
0x6503   : > { %17774 = vpow2.f32 %v12650_v50  ;;  %v12773_v50 = vrot.slane %v20161_v39, %v18908_v34 }
0x650b   : > { %v17773_v43 = vpop.eup %17772 }
0x650c   : > { %v12639_v52 = vmul.f32 1.0614054, %v17773_v43 }
0x650d   : > { %v17775_v13 = vpop.eup %17774 }
0x650e   : > { %v12640_v47 = vadd.f32 -1.4531521, %v12639_v52  ;;  %v17424_v52 = vunpack.i.h.bf16 %v17422_v37 }
0x6510   : > { %v12641_v55 = vmul.f32 %v17773_v43, %v12640_v47  ;;  %v17423_v47 = vunpack.i.l.bf16 %v17422_v37 }
0x6512   : > { %v12642_v33 = vadd.f32 1.4214138, %v12641_v55  ;;  %v12779_v55 = vmul.f32 %v12778_v38, %v19716_v12 }
0x6514   : > { %v12643_v0 = vmul.f32 %v17773_v43, %v12642_v33  ;;  %v12784_v33 = vrot.slane %v20161_v39, %v19062_v40 }
0x6516   : > { %v12644_v63 = vadd.f32 -0.28449672, %v12643_v0 }
0x6518   : > { %v12645_v27 = vmul.f32 %v17773_v43, %v12644_v63  ;;  %v16886_v63 = vpack.c.bf16 %v17424_v52, %v17423_v47 }
0x651a   : > { %v12646_v32 = vadd.f32 0.2548296, %v12645_v27 }
0x651c   : > { %v12647_v59 = vmul.f32 %v17773_v43, %v12646_v32  ;;  %v12785_v32 = vadd.f32 %v12784_v33, %v12779_v55 }
0x651e   : > { %v12652_v49 = vmul.f32 %v17775_v13, %v12647_v59  ;;  %v12780_v59 = vmul.f32 %v12778_v38, %v19714_v10 }
0x6520   : > { %v12653_v44 = vsub.f32 1.0, %v12652_v49  ;;  %v12786_v13 = vadd.f32 %v12784_v33, %v12780_v59 }
0x6522   : > { %v12654_v16 = vmul.f32 %v12653_v44, %v12633_v11 }
0x6524   : > { %v12655_v57 = vadd.f32 1.0, %v12654_v16 }
0x6526   : > { %v12656_v29 = vmul.f32 %v12655_v57, %v12630_v45 }
0x6528   : > { %16246 = vmatmul.mubr.msk.f32.vlgmr.msra.gmra.mrb[108].mxu1 %vm2169_vm11, %v12656_v29 }
0x6529   : > { %16274 = vmatprep.mubr.msk.f32.mxu1 %vm18330_vm13, %v18331_v6 }
0x65fb   : > { %v12743_v9 = vpop.f32.mrb[108].mxu1 }
0x65fc   : > { %v12744_v7 = vadd.f32 %v14736_v1, %v12743_v9  ;;  %v16247_v8 = vpop.f32.mrb[109].mxu1 }
0x65fe   : > { %v20148_v23 = vadd.f32 %v12744_v7, %v20124_v62  ;;  %v12789_v62 = vld [vmem:[#allocation13 + $0x108] sm:$0xff] }
0x65ff   : > { %v17415_v54 = vpack.i.bf16 %v12789_v62, %v12788_v30  ;;  %v16877_v26 = vpack.c.bf16 %v12789_v62, %v12788_v30 }
0x6600   : > { %v12752_v42 = vsel %vm3820_vm12, %v20148_v23, 0.0 }
0x6601   : > { %12753 = vadd.xlane.f32.xlu0 %v12752_v42  ;;  %16878 = vmatpush3.bf16.msra.mxu0 %v16877_v26 }
0x6602   : > { %16879 = vmatprep.subr.bf16.mxu0 %v18329_v35 }
0x6605   : > { %16881 = vmatpush3.bf16.msra.mxu0 %v16880_v19 }
0x668e   : > { %v12754_v36 = vpop.xlane.xlu0 %12753 }
0x668f   : > { %v12755_v46 = vmul.f32 0.03125, %v12754_v36 }
0x6691   : > { %v12756_v56 = vsub.f32 %v20148_v23, %v12755_v46 }
0x6693   : > { %v12757_v3 = vmul.f32 %v12756_v56, %v12756_v56 }
0x6695   : > { %v12758_v24 = vsel %vm3820_vm12, %v12757_v3, 0.0 }
0x6696   : > { %12759 = vadd.xlane.f32.xlu0 %v12758_v24 }
0x66ac   : > { %17416 = vrot.lane.b32.xlu0 %v17415_v54, %s18317_s1 }
0x6723   : > { %v12760_v5 = vpop.xlane.xlu0 %12759 }
0x6724   : > { %v12761_v2 = vmul.f32 0.03125, %v12760_v5 }
0x6726   : > { %v12762_v21 = vadd.f32 1e-05, %v12761_v2 }
0x6727   : > { %v17417_v25 = vpop.permute.xlu0 %17416 }
0x6728   : > { %17776 = vrsqrt.f32 %v12762_v21  ;;  %v17419_v28 = vunpack.i.h.bf16 %v17417_v25  ;;  %v17418_v31 = vunpack.i.l.bf16 %v17417_v25 }
0x672a   : > { %v16882_v22 = vpack.c.bf16 %v17419_v28, %v17418_v31 }
0x672c   : > { %16883 = vmatprep.subr.bf16.mxu0 %v16882_v22 }
0x6732   : > { %v17777_v43 = vpop.eup %17776 }
0x6733   : > { %v12764_v18 = vmul.f32 %v17777_v43, %v12756_v56 }
0x6735   : > { %v12769_v0 = vmul.f32 %v12768_v41, %v12764_v18 }
0x6737   : > { %v12774_v27 = vadd.f32 %v12773_v50, %v12769_v0  ;;  %v12964_v50 = vld [vmem:[#allocation14 + $0x108] sm:$0xff] }
0x6739   : > { %16257 = vmatmul.mubr.msk.f32.vlgmr.msra.gmra.mrb[106].mxu0 %vm701_vm1, %v12774_v27 }
0x673a   : > { %16885 = vmatpush3.bf16.msra.mxu0 %v16882_v22  ;;  %16267 = vmatprep.mubr.msk.f32.mxu0 %vm701_vm1, %v12785_v32  ;;  %v12963_v22 = vld [vmem:[#allocation14 + $0x100] sm:$0xff] }
0x673b   : > { %16887 = vmatprep.subr.bf16.mxu0 %v16886_v63 }
0x673e   : > { %16889 = vmatpush3.bf16.msra.mxu0 %v16886_v63 }
0x673f   : > { %16894 = vmatprep.subr.bf16.mxu0 %v18329_v35 }
0x6741   : > { %16268 = vmatmul.mubr.msk.f32.vlgmr.msra.gmra.mrb[108].mxu0 %vm701_vm1, %v12786_v13 }
0x6742   : > { %16281 = vmatprep.mubr.msk.f32.mxu0 %vm18330_vm13, %v18331_v6 }
0x680c   : > { %v12861_v34 = vpop.f32.mrb[106].mxu0 }
0x680d   : > { %v12967_v40 = vmul.f32 0.17677669, %v12861_v34  ;;  %v16258_v12 = vpop.f32.mrb[107].mxu0 }
0x680f   : > { %13137 = vrot.lane.b32.xlu0 %v12967_v40, %s18319_s17 }
0x6814   : > { %v16269_v49 = vpop.f32.mrb[108].mxu0 }
0x6815   : > { %v12953_v44 = vpop.f32.mrb[109].mxu0 }
0x6816   : > { %v20178_v11 = vpack.i.bf16 %v16269_v49, %v12953_v44  ;;  %v16891_v10 = vpack.c.bf16 %v16269_v49, %v12953_v44 }
0x6818   : > { %17426 = vrot.lane.b32.xlu1 %v20178_v11, %s18319_s17  ;;  %16893 = vmatpush3.bf16.xpose.msk.msra.mxu1 %vm18944_vm4, %v16891_v10  ;;  %s18196_s17 = scalar_lea.vmem %s20291_s22, 64 }
0x6819   : > { %16897 = vmatprep.subr.bf16.mxu1 %v18329_v35  ;;  %p18197_p6 = scmp.ne.s32.totalorder %s20291_s22, %s18196_s17 }
0x681b   : > { %p18198_p12 = pnand %p18197_p6, %p20425_p2 }
0x681d   : > { %p18199_p5 = pneg %p18198_p12 }
0x681f   : > { %16275 = vmatmul.mubr.msk.f32.vlgmr.msra.gmra.mrb[110].mxu1 %vm839_vm3, %v12967_v40 }
0x6820   : > { %16288 = vmatprep.mubr.msk.f32.mxu1 %vm18330_vm13, %v18331_v6 }
0x6881   : > { %v13138_v1 = vpop.permute.xlu0 %13137 }
0x688a   : > { %v17427_v16 = vpop.permute.xlu1 %17426 }
0x688b   : > { %v17429_v45 = vunpack.i.h.bf16 %v17427_v16  ;;  %v17428_v57 = vunpack.i.l.bf16 %v17427_v16 }
0x688d   : > { %v16898_v29 = vpack.c.bf16 %v17429_v45, %v17428_v57 }
0x688f   : > { %16900 = vmatpush3.bf16.xpose.msk.msra.mxu1 %vm18944_vm4, %v16898_v29 }
0x6890   : > { %16303 = vmatprep.subr.mxu1 %v18331_v6 }
0x6896   : > { %16289 = vmatmul.mubr.msk.f32.vlgmr.msra.gmra.mrb[112].mxu1 %vm839_vm3, %v13138_v1 }
0x6897   : > { %16305 = vmatprep.mubr.msk.f32.mxu1 %vm18330_vm13, %v18331_v6  ;;  %16304 = vmatpush3.msra.mxu1 %v12963_v22 }
0x6898   : > { %16908 = vmatprep.subr.bf16.mxu1 %v18329_v35 }
0x68f2   : > { %v13043_v9 = vpop.f32.mrb[110].mxu1 }
0x68f3   : > { %v16276_v7 = vpop.f32.mrb[111].mxu1  ;;  %v13047_v8 = vsel %vm11619_vm9, %v13043_v9, -inf }
0x68f4   : > { %13048 = vmax.xlane.f32.xlu1 %v13047_v8 }
0x6969   : > { %v13215_v42 = vpop.f32.mrb[112].mxu1 }
0x696a   : > { %v16290_v15 = vpop.f32.mrb[113].mxu1  ;;  %v13219_v60 = vsel %vm11619_vm9, %v13215_v42, -inf }
0x696b   : > { %13220 = vmax.xlane.f32.xlu0 %v13219_v60 }
0x6981   : > { %v13049_v20 = vpop.xlane.xlu1 %13048 }
0x6982   : > { %v13050_v36 = vsub.f32 %v13043_v9, %v13049_v20 }
0x6984   : > { %v13051_v46 = vmul.f32 1.442695, %v13050_v36 }
0x6986   : > { %17778 = vpow2.f32 %v13051_v46 }
0x6990   : > { %v17779_v56 = vpop.eup %17778 }
0x6991   : > { %v13053_v3 = vsel %vm11619_vm9, %v17779_v56, 0.0 }
0x6992   : > { %13054 = vadd.xlane.f32.xlu0 %v13053_v3 }
0x69a8   : > { %17431 = vrot.lane.b32.xlu0 %v20178_v11, %s18317_s1  ;;  %s20424_s1 = sld [smem:[#allocation48_spill]] }
0x69ac   : > { %13455 = vrot.lane.b32.xlu0 %v12967_v40, %s18320_s10 }
0x69b0   : > { %13701 = vrot.lane.b32.xlu0 %v12967_v40, %s18323_s26 }
0x69f8   : > { %v13221_v24 = vpop.xlane.xlu0 %13220 }
0x69f9   : > { %v13222_v30 = vsub.f32 %v13215_v42, %v13221_v24 }
0x69fb   : > { %v13223_v62 = vmul.f32 1.442695, %v13222_v30 }
0x69fd   : > { %17780 = vpow2.f32 %v13223_v62 }
0x6a07   : > { %v17781_v54 = vpop.eup %17780 }
0x6a08   : > { %v13225_v26 = vsel %vm11619_vm9, %v17781_v54, 0.0 }
0x6a09   : > { %13226 = vadd.xlane.f32.xlu1 %v13225_v26 }
0x6a1a   : > { %17436 = vrot.lane.b32.xlu1 %v20178_v11, %s18316_s18 }
0x6a1e   : > { %17441 = vrot.lane.b32.xlu1 %v20178_v11, %s18320_s10  ;;  %s18332_s10 = smov [#allocation25]  }
0x6a1f   : > { %v13055_v19 = vpop.xlane.xlu0 %13054  ;;  %s18200_s7 = sshll.u32 %s18332_s10, 4  ;;  %s18201_s7 = int_to_ptr.vmem [resolvable:$false] %s18200_s7 }
0x6a20   : > { %17782 = vrcp.f32 %v13055_v19  ;;  %p18203_p7 = scmp.lt.s32.totalorder %s20291_s22, %s18201_s7 }
0x6a22   : > { %17446 = vrot.lane.b32.xlu1 %v20178_v11, %s18323_s26 }
0x6a23   : > { %v17432_v5 = vpop.permute.xlu0 %17431 }
0x6a24   : > { %v17434_v2 = vunpack.i.h.bf16 %v17432_v5  ;;  %v17433_v21 = vunpack.i.l.bf16 %v17432_v5 }
0x6a26   : > { %v16895_v25 = vpack.c.bf16 %v17434_v2, %v17433_v21 }
0x6a27   : > { %v13456_v49 = vpop.permute.xlu0 %13455 }
0x6a28   : > { %16896 = vmatpush3.bf16.msra.mxu0 %v16895_v25 }
0x6a29   : > { %16901 = vmatprep.subr.bf16.mxu0 %v18329_v35 }
0x6a2a   : > { %v17783_v28 = vpop.eup %17782 }
0x6a2b   : > { %v13057_v31 = vmul.f32 %v17783_v28, %v17779_v56  ;;  %v13702_v10 = vpop.permute.xlu0 %13701 }
0x6a2d   : > { %16282 = vmatmul.mubr.msk.f32.vlgmr.msra.gmra.mrb[110].mxu0 %vm6657_vm10, %v13057_v31  ;;  %v12965_v31 = vld [vmem:[#allocation14 + $0x110] sm:$0xff] }
0x6a2e   : > { %16295 = vmatprep.mubr.msk.f32.mxu0 %vm18330_vm13, %v18331_v6 }
0x6a96   : > { %v13227_v37 = vpop.xlane.xlu1 %13226 }
0x6a97   : > { %17784 = vrcp.f32 %v13227_v37 }
0x6a9a   : > { %v17437_v38 = vpop.permute.xlu1 %17436 }
0x6a9b   : > { %v17439_v41 = vunpack.i.h.bf16 %v17437_v38  ;;  %v17438_v43 = vunpack.i.l.bf16 %v17437_v38 }
0x6a9d   : > { %v16902_v18 = vpack.c.bf16 %v17439_v41, %v17438_v43 }
0x6a9e   : > { %v17442_v0 = vpop.permute.xlu1 %17441 }
0x6a9f   : > { %16903 = vmatpush3.bf16.msra.mxu0 %v16902_v18  ;;  %v17444_v63 = vunpack.i.h.bf16 %v17442_v0  ;;  %v17443_v27 = vunpack.i.l.bf16 %v17442_v0 }
0x6aa0   : > { %16298 = vmatprep.subr.mxu0 %v18331_v6 }
0x6aa1   : > { %v17785_v52 = vpop.eup %17784  ;;  %v16905_v32 = vpack.c.bf16 %v17444_v63, %v17443_v27 }
0x6aa2   : > { %v13229_v47 = vmul.f32 %v17785_v52, %v17781_v54  ;;  %v17447_v13 = vpop.permute.xlu1 %17446 }
0x6aa3   : > { %v17449_v40 = vunpack.i.h.bf16 %v17447_v13  ;;  %v17448_v12 = vunpack.i.l.bf16 %v17447_v13 }
0x6aa4   : > { %16296 = vmatmul.mubr.msk.f32.vlgmr.msra.gmra.mrb[112].mxu0 %vm6657_vm10, %v13229_v47 }
0x6aa5   : > { %16299 = vmatpush3.msra.mxu0 %v12964_v50  ;;  %16300 = vmatprep.mubr.msk.f32.mxu0 %vm18330_vm13, %v18331_v6  ;;  %v16912_v44 = vpack.c.bf16 %v17449_v40, %v17448_v12  ;;  %v12966_v50 = vld [vmem:[#allocation14 + $0x118] sm:$0xff] }
0x6aa6   : > { %16904 = vmatprep.subr.bf16.mxu0 %v18329_v35 }
0x6b00   : > { %v13133_v55 = vpop.f32.mrb[110].mxu0 }
0x6b01   : > { %v16283_v33 = vpop.f32.mrb[111].mxu0  ;;  %16306 = vmatmul.mubr.msk.f32.vlgmr.msra.gmra.mrb[114].mxu1 %vm839_vm3, %v13133_v55 }
0x6b02   : > { %16319 = vmatprep.mubr.msk.f32.mxu1 %vm18330_vm13, %v18331_v6 }
0x6b77   : > { %v13305_v59 = vpop.f32.mrb[112].mxu0 }
0x6b78   : > { %v16297_v34 = vpop.f32.mrb[113].mxu0  ;;  %16301 = vmatmul.mubr.msk.f32.vlgmr.msra.gmra.mrb[114].mxu0 %vm839_vm3, %v13305_v59 }
0x6b79   : > { %16907 = vmatpush3.bf16.xpose.msk.msra.mxu0 %vm18944_vm4, %v16905_v32  ;;  %16312 = vmatprep.mubr.msk.f32.mxu0 %vm18330_vm13, %v18331_v6 }
0x6b7a   : > { %16911 = vmatprep.subr.bf16.mxu0 %v18329_v35 }
0x6b80   : > { %16313 = vmatmul.mubr.msk.f32.vlgmr.msra.gmra.mrb[116].mxu0 %vm839_vm3, %v13456_v49 }
0x6b81   : > { %16914 = vmatpush3.bf16.xpose.msk.msra.mxu0 %vm18944_vm4, %v16912_v44  ;;  %16331 = vmatprep.mubr.msk.f32.mxu0 %vm18330_vm13, %v18331_v6  ;;  %vm14187_vm4 = vcmask 1042432  }
0x6b82   : > { %16918 = vmatprep.subr.bf16.mxu0 %v18329_v35 }
0x6b88   : > { %16332 = vmatmul.mubr.msk.f32.vlgmr.msra.gmra.mrb[118].mxu0 %vm839_vm3, %v13702_v10 }
0x6b89   : > { %16354 = vmatprep.mubr.msk.f32.mxu0 %vm18330_vm13, %v18331_v6 }
0x6bd4   : > { %v13451_v16 = vpop.f32.mrb[114].mxu1 }
0x6bd5   : > { %v16307_v45 = vpop.f32.mrb[115].mxu1 }
0x6bd6   : > { %v13972_v45 = vld [vmem:[#allocation19 + $0x100] sm:$0xff] }
0x6c4b   : > { %v13378_v57 = vpop.f32.mrb[114].mxu0 }
0x6c4c   : > { %v13452_v29 = vadd.f32 %v13451_v16, %v13378_v57  ;;  %v16302_v1 = vpop.f32.mrb[115].mxu0 }
0x6c53   : > { %v13533_v9 = vpop.f32.mrb[116].mxu0 }
0x6c54   : > { %v16314_v7 = vpop.f32.mrb[117].mxu0  ;;  %v13537_v58 = vsel %vm11619_vm9, %v13533_v9, -inf }
0x6c55   : > { %13538 = vmax.xlane.f32.xlu1 %v13537_v58 }
0x6c5b   : > { %v13779_v8 = vpop.f32.mrb[118].mxu0 }
0x6c5c   : > { %v16333_v42 = vpop.f32.mrb[119].mxu0  ;;  %v13783_v15 = vsel %vm11619_vm9, %v13779_v8, -inf }
0x6c5d   : > { %13784 = vmax.xlane.f32.xlu1 %v13783_v15 }
0x6ce2   : > { %v13539_v60 = vpop.xlane.xlu1 %13538 }
0x6ce3   : > { %v13540_v20 = vsub.f32 %v13533_v9, %v13539_v60  ;;  %v13969_v60 = vrot.slane %v20161_v39, %v19835_v17  ;;  %v14092_v39 = vld [vmem:[#allocation22 + $0x238] sm:$0xff] }
0x6ce5   : > { %v13541_v36 = vmul.f32 1.442695, %v13540_v20 }
0x6ce7   : > { %17786 = vpow2.f32 %v13541_v36 }
0x6cea   : > { %v13785_v46 = vpop.xlane.xlu1 %13784 }
0x6ceb   : > { %v13786_v56 = vsub.f32 %v13779_v8, %v13785_v46  ;;  %v13964_v8 = vrot.slane %v20157_v4, %v19835_v17  ;;  %v14085_v46 = vld [vmem:[#allocation22 + $0x200] sm:$0xff]  ;;  %v14091_v17 = vld [vmem:[#allocation22 + $0x230] sm:$0xff] }
0x6cec   : > { %v14089_v4 = vld [vmem:[#allocation22 + $0x220] sm:$0xff] }
0x6ced   : > { %v13787_v3 = vmul.f32 1.442695, %v13786_v56  ;;  %v14086_v56 = vld [vmem:[#allocation22 + $0x208] sm:$0xff] }
0x6cef   : > { %17788 = vpow2.f32 %v13787_v3  ;;  %v16925_v3 = vpack.c.bf16 %v14086_v56, %v14085_v46 }
0x6cf1   : > { %v17787_v24 = vpop.eup %17786 }
0x6cf2   : > { %v13543_v30 = vsel %vm11619_vm9, %v17787_v24, 0.0 }
0x6cf3   : > { %13544 = vadd.xlane.f32.xlu0 %v13543_v30  ;;  %v14088_v30 = vld [vmem:[#allocation22 + $0x218] sm:$0xff] }
0x6cf9   : > { %v17789_v62 = vpop.eup %17788 }
0x6cfa   : > { %v13789_v54 = vsel %vm11619_vm9, %v17789_v62, 0.0 }
0x6cfb   : > { %13790 = vadd.xlane.f32.xlu1 %v13789_v54  ;;  %v14090_v54 = vld [vmem:[#allocation22 + $0x228] sm:$0xff] }
0x6d09   : > { %17451 = vrot.lane.b32.xlu0 %v20178_v11, %s18318_s2  ;;  %s20289_s2 = scalar_lea.hbm %s20424_s1, %s14766_s5 }
0x6d0c   : > { %17456 = vrot.lane.b32.xlu1 %v20178_v11, %s18322_s25  ;;  %s18202_s25 = scalar_lea.vmem %s18201_s7, 128 }
0x6d0d   : > { %p18204_p4 = scmp.lt.s32.totalorder %s18202_s25, %s18196_s17 }
0x6d0f   : > { %p18205_p1 = por %p18204_p4, %p18203_p7 }
0x6d11   : > { %p18206_p3 = pnand %p18205_p1, %p18199_p5 }
0x6d80   : > { %v13545_v26 = vpop.xlane.xlu0 %13544 }
0x6d81   : > { %17790 = vrcp.f32 %v13545_v26  ;;  %v16931_v26 = vpack.c.bf16 %v14090_v54, %v14089_v4 }
0x6d84   : > { %v17452_v19 = vpop.permute.xlu0 %17451 }
0x6d85   : > { %v17454_v5 = vunpack.i.h.bf16 %v17452_v19  ;;  %v17453_v2 = vunpack.i.l.bf16 %v17452_v19  ;;  %v16934_v19 = vpack.c.bf16 %v14092_v39, %v14091_v17 }
0x6d87   : > { %v16909_v21 = vpack.c.bf16 %v17454_v5, %v17453_v2  ;;  %v14761_v5 = vld [vmem:[#allocation20 + $0x8] ss:$0 sm:$0xff] }
0x6d88   : > { %v13791_v11 = vpop.xlane.xlu1 %13790 }
0x6d89   : > { %16910 = vmatpush3.bf16.msra.mxu1 %v16909_v21  ;;  %17792 = vrcp.f32 %v13791_v11 }
0x6d8a   : > { %16322 = vmatprep.subr.mxu1 %v18331_v6 }
0x6d8b   : > { %v17791_v25 = vpop.eup %17790 }
0x6d8c   : > { %v13547_v28 = vmul.f32 %v17791_v25, %v17787_v24  ;;  %v17457_v22 = vpop.permute.xlu1 %17456  ;;  %v14087_v24 = vld [vmem:[#allocation22 + $0x210] sm:$0xff] }
0x6d8d   : > { %v17459_v37 = vunpack.i.h.bf16 %v17457_v22  ;;  %v17458_v38 = vunpack.i.l.bf16 %v17457_v22 }
0x6d8e   : > { %16320 = vmatmul.mubr.msk.f32.vlgmr.msra.gmra.mrb[116].mxu1 %vm6657_vm10, %v13547_v28 }
0x6d8f   : > { %16323 = vmatpush3.msra.mxu1 %v12965_v31  ;;  %16324 = vmatprep.mubr.msk.f32.mxu1 %vm18330_vm13, %v18331_v6  ;;  %v16916_v43 = vpack.c.bf16 %v17459_v37, %v17458_v38 }
0x6d90   : > { %16915 = vmatprep.subr.bf16.mxu1 %v18329_v35 }
0x6d93   : > { %v17793_v41 = vpop.eup %17792 }
0x6d94   : > { %v13793_v47 = vmul.f32 %v17793_v41, %v17789_v62  ;;  %v16928_v62 = vpack.c.bf16 %v14088_v30, %v14087_v24 }
0x6e61   : > { %v13623_v18 = vpop.f32.mrb[116].mxu1 }
0x6e62   : > { %v16321_v52 = vpop.f32.mrb[117].mxu1  ;;  %16325 = vmatmul.mubr.msk.f32.vlgmr.msra.gmra.mrb[118].mxu1 %vm839_vm3, %v13623_v18 }
0x6e63   : > { %16917 = vmatpush3.bf16.msra.mxu1 %v16916_v43  ;;  %16338 = vmatprep.mubr.msk.f32.mxu1 %vm18330_vm13, %v18331_v6 }
0x6e64   : > { %16341 = vmatprep.subr.mxu1 %v18331_v6 }
0x6e66   : > { %16339 = vmatmul.mubr.msk.f32.vlgmr.msra.gmra.mrb[120].mxu1 %vm6657_vm10, %v13793_v47 }
0x6e67   : > { %16343 = vmatprep.mubr.msk.f32.mxu1 %vm18330_vm13, %v18331_v6  ;;  %16342 = vmatpush3.msra.mxu1 %v12966_v50 }
0x6e68   : > { %16924 = vmatprep.subr.bf16.mxu1 %v18329_v35 }
0x6f35   : > { %v13696_v55 = vpop.f32.mrb[118].mxu1 }
0x6f36   : > { %v13700_v33 = vadd.f32 %v13696_v55, %v13452_v29  ;;  %v16326_v0 = vpop.f32.mrb[119].mxu1  ;;  %v13975_v29 = vld [vmem:[#allocation19 + $0x118] sm:$0xff] }
0x6f39   : > { %v13869_v63 = vpop.f32.mrb[120].mxu1 }
0x6f3a   : > { %v16340_v27 = vpop.f32.mrb[121].mxu1  ;;  %16344 = vmatmul.mubr.msk.f32.vlgmr.msra.gmra.mrb[122].mxu1 %vm839_vm3, %v13869_v63  ;;  %vm14185_vm3 = vcmask 1041408  }
0x6f3b   : > { %16373 = vmatprep.mubr.msk.f32.mxu1 %vm18330_vm13, %v18331_v6  ;;  %v13973_v6 = vld [vmem:[#allocation19 + $0x108] sm:$0xff]  ;;  %16926 = vmatpush3.bf16.msra.mxu1 %v16925_v3 }
0x6f3c   : > { %v16919_v57 = vpack.c.bf16 %v13973_v6, %v13972_v45  ;;  %16927 = vmatprep.subr.bf16.mxu1 %v18329_v35  ;;  %v14763_v6 = vld [vmem:[#allocation23 + $0x8] ss:$0 sm:$0xff] }
0x6f3e   : > { %16920 = vmatpush3.bf16.msra.mxu0 %v16919_v57 }
0x6f3f   : > { %16921 = vmatprep.subr.bf16.mxu0 %v18329_v35  ;;  %16929 = vmatpush3.bf16.msra.mxu1 %v16928_v62 }
0x6f40   : > { %16930 = vmatprep.subr.bf16.mxu1 %v18329_v35 }
0x6f43   : > { %16932 = vmatpush3.bf16.msra.mxu1 %v16931_v26 }
0x6f44   : > { %16933 = vmatprep.subr.bf16.mxu1 %v18329_v35 }
0x6f47   : > { %16935 = vmatpush3.bf16.msra.mxu1 %v16934_v19 }
0x700d   : > { %v13942_v32 = vpop.f32.mrb[122].mxu1 }
0x700e   : > { %v13946_v59 = vadd.f32 %v13942_v32, %v13700_v33  ;;  %v16345_v13 = vpop.f32.mrb[123].mxu1 }
0x7010   : > { %v20261_v34 = vadd.f32 %v13946_v59, %v20148_v23  ;;  %v13974_v23 = vld [vmem:[#allocation19 + $0x110] sm:$0xff] }
0x7011   : > { %v16922_v1 = vpack.c.bf16 %v13975_v29, %v13974_v23  ;;  %v14176_v23 = vrot.slane %v19536_v53, 7 }
0x7012   : > { %v13948_v40 = vsel %vm3820_vm12, %v20261_v34, 0.0 }
0x7013   : > { %13949 = vadd.xlane.f32.xlu0 %v13948_v40  ;;  %16923 = vmatpush3.bf16.msra.mxu0 %v16922_v1 }
0x70a0   : > { %v13950_v12 = vpop.xlane.xlu0 %13949 }
0x70a1   : > { %v13951_v49 = vmul.f32 0.03125, %v13950_v12 }
0x70a3   : > { %v13952_v44 = vsub.f32 %v20261_v34, %v13951_v49 }
0x70a5   : > { %v13953_v10 = vmul.f32 %v13952_v44, %v13952_v44 }
0x70a7   : > { %v13954_v16 = vsel %vm3820_vm12, %v13953_v10, 0.0  ;;  %v14708_v10 = vld [vmem:[#allocation23 + $0x6] ss:$0 sm:$0xff] }
0x70a8   : > { %13955 = vadd.xlane.f32.xlu1 %v13954_v16  ;;  %v11312_v16 = vadd.f32 %v14708_v10, %v20046_v48  ;;  %v14184_v48 = vsel %vm693_vm0, %v19508_v14, %v14176_v23 }
0x70aa   : > { %v11319_v45 = vadd.f32 %v11312_v16, %v19979_v61 }
0x7135   : > { %v13956_v9 = vpop.xlane.xlu1 %13955 }
0x7136   : > { %v13957_v7 = vmul.f32 0.03125, %v13956_v9 }
0x7138   : > { %v13958_v58 = vadd.f32 1e-05, %v13957_v7 }
0x713a   : > { %17794 = vrsqrt.f32 %v13958_v58 }
0x7144   : > { %v17795_v42 = vpop.eup %17794 }
0x7145   : > { %v13960_v15 = vmul.f32 %v17795_v42, %v13952_v44 }
0x7147   : > { %v13965_v20 = vmul.f32 %v13964_v8, %v13960_v15 }
0x7149   : > { %v13970_v36 = vadd.f32 %v13969_v60, %v13965_v20 }
0x714b   : > { %16355 = vmatmul.mubr.msk.f32.vlgmr.msra.gmra.mrb[120].mxu0 %vm701_vm1, %v13970_v36 }
0x721e   : > { %v14053_v2 = vpop.f32.mrb[120].mxu0 }
0x721f   : > { %v14054_v21 = vadd.f32 %v14761_v5, %v14053_v2  ;;  %v16356_v25 = vpop.f32.mrb[121].mxu0 }
0x7221   : > { %v14058_v28 = vmul.f32 0.70710677, %v14054_v21  ;;  %v14057_v12 = vmul.f32 0.5, %v14054_v21 }
0x7223   : > { %v14061_v31 = vand.u32 2147483647, %v14058_v28  ;;  %vm14059_vm1 = vcmp.ge.f32.partialorder %v14058_v28, 0.0 }
0x7224   : > { %v14060_v13 = vsel %vm14059_vm1, 1.0, %v18328_v51  ;;  %v14179_v51 = vrot.slane %v11319_v45, 6 }
0x7225   : > { %v14062_v11 = vmul.f32 0.3275911, %v14061_v31  ;;  %v14075_v37 = vsub.f32 0.0, %v14061_v31 }
0x7226   : > { %v14186_v7 = vsel %vm14185_vm3, %v14184_v48, %v14179_v51 }
0x7227   : > { %v14063_v22 = vadd.f32 1.0, %v14062_v11  ;;  %v14076_v41 = vmul.f32 %v14075_v37, %v14061_v31 }
0x7229   : > { %17796 = vrcp.f32 %v14063_v22  ;;  %v14077_v52 = vmul.f32 1.442695, %v14076_v41 }
0x722b   : > { %17798 = vpow2.f32 %v14077_v52 }
0x7233   : > { %v17797_v38 = vpop.eup %17796 }
0x7234   : > { %v14066_v43 = vmul.f32 1.0614054, %v17797_v38 }
0x7235   : > { %v17799_v27 = vpop.eup %17798 }
0x7236   : > { %v14067_v18 = vadd.f32 -1.4531521, %v14066_v43 }
0x7238   : > { %v14068_v35 = vmul.f32 %v17797_v38, %v14067_v18 }
0x723a   : > { %v14069_v47 = vadd.f32 1.4214138, %v14068_v35 }
0x723c   : > { %v14070_v50 = vmul.f32 %v17797_v38, %v14069_v47 }
0x723e   : > { %v14071_v55 = vadd.f32 -0.28449672, %v14070_v50 }
0x7240   : > { %v14072_v33 = vmul.f32 %v17797_v38, %v14071_v55 }
0x7242   : > { %v14073_v0 = vadd.f32 0.2548296, %v14072_v33 }
0x7244   : > { %v14074_v63 = vmul.f32 %v17797_v38, %v14073_v0 }
0x7246   : > { %v14079_v32 = vmul.f32 %v17799_v27, %v14074_v63 }
0x7248   : > { %v14080_v59 = vsub.f32 1.0, %v14079_v32 }
0x724a   : > { %v14081_v40 = vmul.f32 %v14080_v59, %v14060_v13 }
0x724c   : > { %v14082_v49 = vadd.f32 1.0, %v14081_v40 }
0x724e   : > { %v14083_v44 = vmul.f32 %v14082_v49, %v14057_v12 }
0x7250   : > { %16374 = vmatmul.mubr.msk.f32.vlgmr.msra.gmra.mrb[124].mxu1 %vm2169_vm11, %v14083_v44  ;;  %vm14189_vm11 = vcmask 257024  }
0x7323   : > { %v14170_v57 = vpop.f32.mrb[124].mxu1 }
0x7324   : > { %v14171_v29 = vadd.f32 %v14763_v6, %v14170_v57  ;;  %v16375_v1 = vpop.f32.mrb[125].mxu1 }
0x7326   : > { %v14174_v9 = vadd.f32 %v14171_v29, %v20261_v34 }
0x7328   : > { %v14182_v61 = vrot.slane %v14174_v9, 5 }
0x732a   : > { %v14188_v53 = vsel %vm14187_vm4, %v14186_v7, %v14182_v61 }
0x732b   : > { %14190 = vst.msk [vmem:[%s687_s3] sm:$0xf] %vm14189_vm11, %v14188_v53 }
0x732c   : > { %18209 = shalt.err (!%p18206_p3)
}
0x732d   : > { %s18210_s8 = scalar_lea.hbm %s20289_s2, 64  ;;  %s18214_s20 = scalar_lea.hbm %s20424_s1, 128 }
0x732e   : > { %p18211_p13 = scmp.ne.s32.totalorder %s20289_s2, %s18210_s8  ;;  %p18215_p11 = scmp.lt.u32.totalorder %s20289_s2, %s20424_s1 }
0x732f   : > { %p18216_p9 = scmp.lt.u32.totalorder %s18214_s20, %s18210_s8  ;;  %p18218_p6 = scmp.lt.u32.totalorder %s18210_s8, %s20289_s2 }
0x7330   : > { %p18212_p0 = pnand %p18211_p13, %p20425_p2 }
0x7331   : > { %p18217_p8 = por %p18216_p9, %p18215_p11 }
0x7332   : > { %p18213_p10 = pneg %p18212_p0 }
0x7333   : > { %p18219_p12 = por %p18218_p6, %p18217_p8 }
0x7335   : > { %p18220_p5 = pnand %p18219_p12, %p18213_p10 }
0x7337   : > { %18223 = shalt.err (!%p18220_p5)
}
0x7338   : > { %17018 = dma.vmem_to_hbm [thread:$0]  (%p20425_p2), %s20291_s22, 64, %s20289_s2, %s14192_s19  }
0x7339 PF: > { %s14217_s5 = sand.u32 1, %s18282_s29   ;;  %p20426_p7 = scmp.ne.s32.totalorder %s20399_s27, 0 }
0x733a   : > { %p20427_p4 = scmp.ge.s32.totalorder %s18294_s16, 2  ;;  %s14218_s3 = scalar_lea.sflag [#allocation4], %s14217_s5 }
0x733c   : > { %p17065_p1 = pnand %p20427_p4, %p20426_p7 }
0x733e   : > { %18277 = dma.done.wait (!%p17065_p1), %s14218_s3, 64  }
0x733f   : > { %18279 = vsyncadd (!%p17065_p1), %s14218_s3, 4294967232  ;;  %p36_p3 = scmp.ge.s32.totalorder %s18742_s21, 4   ;;  %s20428_s29 = smov %s18286_s30 }
0x7340   : > { %s20429_s30 = smov %s18290_s15  ;;  %s20430_s15 = smov %s18753_s24 }
0x7341   : > { %s20431_s16 = smov %s18742_s21  ;;  %38 = sbr.rel (!%p36_p3) target bundleno = 26 (0x1a), region = 246 }
0x7348   :  { %14223 = vsyncpa [#allocation3], 1 }
0x7349   :  { %14225 = vsyncpa [#allocation3 + $0x1], 1 }
0x734a   :  { %14226 = vsyncpa [#allocation6], 1 }
0x734b   :  { %14228 = vsyncpa [#allocation6 + $0x1], 1 }
0x734c   :  { %14229 = vsyncpa [#allocation9], 1 }
0x734d   :  { %14230 = vsyncpa [#allocation12], 1 }
0x734e   :  { %14231 = vsyncpa [#allocation15], 1 }
0x734f   :  { %14232 = vsyncpa [#allocation18], 1 }
0x7350   :  { %14233 = vsyncpa [#allocation21], 1 }
0x7351   :  { %14234 = vsyncpa [#allocation24], 1 }
0x7352   :  { %14235 = vsyncpa [#allocation4], 1 }
0x7353   :  { %14237 = vsyncpa [#allocation4 + $0x1], 1 }

</bundles_post_ra>
